<compile_context>
chip_gen: v7x
topology: tpu7x:2x2x1
jax: 0.10.0
libtpu: 0.0.40
codegen_flags: <defaults>
</compile_context>

<pallas_src>
import jax
import jax.numpy as jnp
from jax.experimental import pallas as pl
from jax.experimental.pallas import tpu as pltpu


# ----------------------------------------------------------------------------
# Kernel: one output-channel tile x one H tile, all 4 output parities (phases)
# ----------------------------------------------------------------------------
def _up_conv_kernel(x_ref, w_ref, s_ref, b_ref, o_ref):
    # x_ref: (1, 1, TH+2, Wo+2, Cin) bf16   zero halo row top/bottom,
    #                                       zero col left, >=1 zero col right
    # w_ref: (4, 4*Cin, TC)          bf16   phase-summed 2x2 weights,
    #                                       K ordered as (a, b, cin)
    # s_ref: (1, TC)                 f32    folded BN scale
    # b_ref: (1, TC)                 f32    folded (conv bias + BN) bias
    # o_ref: (1, 4, TH, Wo, TC)      f32    phase-major output tile
    th, wo, tc = o_ref.shape[2], o_ref.shape[3], o_ref.shape[4]
    cin = x_ref.shape[4]
    m = th * wo

    scale = s_ref[0]                       # (TC,) f32, hoisted out of the loop
    bias = b_ref[0]

    for p in range(4):                     # phase = 2*py + px
        py, px = divmod(p, 2)
        # 2x2 taps of this phase, fused along K: columns ordered (a, b, cin)
        # to match w_ref[p]'s row ordering.  Pure static window loads; the
        # zero boundary comes from the wrapper-side halo padding.
        pieces = [
            x_ref[0, 0, pl.ds(py + a, th), pl.ds(px + b, wo)].reshape(m, cin)
            for a in range(2) for b in range(2)
        ]
        lhs = jnp.concatenate(pieces, axis=-1)            # (m, 4*Cin) bf16
        acc = jnp.dot(lhs, w_ref[p],
                      preferred_element_type=jnp.float32)  # (m, TC) f32
        y = jnp.maximum(acc * scale + bias, 0.0)            # folded BN + ReLU
        o_ref[0, p] = y.reshape(th, wo, tc)


# ----------------------------------------------------------------------------
# Wrapper helpers
# ----------------------------------------------------------------------------
def _round_up(x, m):
    return (x + m - 1) // m * m


def _cout_tile(coutp):
    """Lane-aligned Cout tile: 256 on 256-wide-MXU chips when divisible."""
    try:
        kind = jax.devices()[0].device_kind.lower()
    except Exception:
        kind = ""
    wide = not any(v in kind for v in ("v2", "v3", "v4", "v5"))
    if wide and coutp % 256 == 0:
        return 256
    return 128


def _vmem_limit_bytes():
    """Generation-aware scoped VMEM limit (v7x only has 64 MiB physical)."""
    try:
        cap = int(pltpu.get_tpu_info().vmem_capacity_bytes)
    except Exception:
        cap = 64 * 1024 * 1024
    return min(cap * 3 // 4, 100 * 1024 * 1024)


def _pick_tile_h(H, Wo, Cin, tc, vmem_limit):
    """Largest divisor of H whose per-step footprint fits a bounded budget."""
    budget = min(vmem_limit // 2, 24 * 1024 * 1024)
    for th in range(H, 0, -1):
        if H % th:
            continue
        m = th * Wo
        need = (2 * 4 * m * tc * 4                     # 2x f32 output block
                + 2 * (th + 2) * (Wo + 2) * Cin * 2    # 2x bf16 input window
                + 8 * m * Cin * 2                      # lhs + tap pieces (bf16)
                + 2 * m * tc * 4)                      # acc / activated (f32)
        if need <= budget:
            return th
    return 1


def _phase_weights(w):
    """Pre-sum the 3x3 HWIO weights into 4 per-parity 2x2 kernels.

    Returns (4, 4*Cin, Cout) with phase = 2*py + px and K ordered (a, b, cin),
    where a/b index the row/col taps at offsets {py-1, py} / {px-1, px}.
    """
    # Row-pair sums R[py, a, kw, ci, co]
    R = jnp.stack([
        jnp.stack([w[0], w[1] + w[2]], axis=0),        # py = 0
        jnp.stack([w[0] + w[1], w[2]], axis=0),        # py = 1
    ], axis=0)                                         # (2, 2, 3, Cin, Cout)
    # Column-pair sums -> W2[py, px, a, b, ci, co]
    W2 = jnp.stack([
        jnp.stack([R[:, :, 0], R[:, :, 1] + R[:, :, 2]], axis=2),   # px = 0
        jnp.stack([R[:, :, 0] + R[:, :, 1], R[:, :, 2]], axis=2),   # px = 1
    ], axis=1)                                         # (2, 2, 2, 2, Cin, Cout)
    cin, cout = w.shape[2], w.shape[3]
    return W2.reshape(4, 4 * cin, cout)


# ----------------------------------------------------------------------------
# Public wrapper (NCHW in / NCHW out, like the PyTorch module)
# ----------------------------------------------------------------------------
def up_conv(x_nchw, w, conv_b, gamma, beta, run_mean, run_var, eps=1e-5):
    """Up_Conv forward.

    x_nchw:   (N, Cin, H, W) f32
    w:        (3, 3, Cin, Cout)  (HWIO; == torch conv weight permuted (2,3,1,0))
    conv_b, gamma, beta, run_mean, run_var: (Cout,)
    Returns:  (N, Cout, 2H, 2W) f32
    """
    # Fold BatchNorm (inference form) and the conv bias into scale / bias.
    scale = gamma / jnp.sqrt(run_var + eps)
    bias = (conv_b - run_mean) * scale + beta

    x = jnp.transpose(x_nchw, (0, 2, 3, 1))            # NCHW -> NHWC
    N, H, W, Cin = x.shape
    Cout = w.shape[3]

    Wo = _round_up(W, 8)                               # padded compute width
    Coutp = _round_up(Cout, 128)                       # lane-dense channels
    tc = _cout_tile(Coutp)
    n_ct = Coutp // tc

    vmem_limit = _vmem_limit_bytes()
    TH = _pick_tile_h(H, Wo, Cin, tc, vmem_limit)
    n_h = H // TH

    # bf16 input with zero halos: 1 row top/bottom, 1 col left, Wo+1-W right.
    xb = x.astype(jnp.bfloat16)
    xp = jnp.pad(xb, ((0, 0), (1, 1), (1, Wo + 1 - W), (0, 0)))
    # Overlapping (TH+2)-row windows -> bounded VMEM x-block per grid step.
    xw = jnp.stack([xp[:, h * TH:h * TH + TH + 2] for h in range(n_h)],
                   axis=1)                             # (N, n_h, TH+2, Wo+2, Cin)

    w2 = _phase_weights(w.astype(jnp.float32))         # (4, 4*Cin, Cout) f32
    w2 = jnp.pad(w2, ((0, 0), (0, 0), (0, Coutp - Cout))).astype(jnp.bfloat16)
    s2 = jnp.pad(scale, (0, Coutp - Cout)).reshape(1, Coutp).astype(jnp.float32)
    b2 = jnp.pad(bias, (0, Coutp - Cout)).reshape(1, Coutp).astype(jnp.float32)

    # TODO(synk): emit bf16 (out_shape dtype) and skip the NCHW transpose when
    # the surrounding network can consume NHWC/bf16 directly.
    out = pl.pallas_call(
        _up_conv_kernel,
        out_shape=jax.ShapeDtypeStruct((N, 4, H, Wo, Coutp), jnp.float32),
        grid_spec=pltpu.PrefetchScalarGridSpec(
            num_scalar_prefetch=0,
            # h innermost: weights / scale / bias stay resident across H tiles;
            # only the (small) x window is re-fetched every step.
            grid=(N, n_ct, n_h),
            in_specs=[
                pl.BlockSpec((1, 1, TH + 2, Wo + 2, Cin),
                             lambda n, c, h: (n, h, 0, 0, 0)),
                pl.BlockSpec((4, 4 * Cin, tc), lambda n, c, h: (0, 0, c)),
                pl.BlockSpec((1, tc), lambda n, c, h: (0, c)),
                pl.BlockSpec((1, tc), lambda n, c, h: (0, c)),
            ],
            out_specs=pl.BlockSpec((1, 4, TH, Wo, tc),
                                   lambda n, c, h: (n, 0, h, 0, c)),
        ),
        compiler_params=pltpu.CompilerParams(
            dimension_semantics=("parallel", "parallel", "parallel"),
            vmem_limit_bytes=vmem_limit,
        ),
    )(xw, w2, s2, b2)

    # Crop the W / Cout padding, interleave the 4 parities, NHWC -> NCHW.
    out = out[:, :, :, :W, :Cout]                      # (N, 4, H, W, Cout)
    out = out.reshape(N, 2, 2, H, W, Cout)             # (N, py, px, H, W, C)
    out = jnp.transpose(out, (0, 5, 3, 1, 4, 2))       # (N, C, H, 2, W, 2)
    return out.reshape(N, Cout, 2 * H, 2 * W)


# ----------------------------------------------------------------------------
# Pure-JAX reference (f32) for numerical validation
# ----------------------------------------------------------------------------
def up_conv_reference(x_nchw, w, conv_b, gamma, beta, run_mean, run_var,
                      eps=1e-5):
    x = jnp.transpose(x_nchw, (0, 2, 3, 1)).astype(jnp.float32)
    up = jnp.repeat(jnp.repeat(x, 2, axis=1), 2, axis=2)     # nearest 2x
    y = jax.lax.conv_general_dilated(
        up, w.astype(jnp.float32), window_strides=(1, 1),
        padding=((1, 1), (1, 1)),
        dimension_numbers=("NHWC", "HWIO", "NHWC"))
    y = y + conv_b
    y = (y - run_mean) / jnp.sqrt(run_var + eps) * gamma + beta
    y = jnp.maximum(y, 0.0)
    return jnp.transpose(y, (0, 3, 1, 2))


if __name__ == "__main__":
    key = jax.random.PRNGKey(0)

    def make_case(case_key, N, Cin, Cout, H, W):
        k = jax.random.split(case_key, 7)
        x = jax.random.normal(k[0], (N, Cin, H, W), jnp.float32)
        w = jax.random.normal(k[1], (3, 3, Cin, Cout), jnp.float32) * (
            (2.0 / (9.0 * Cin)) ** 0.5)
        conv_b = 0.1 * jax.random.normal(k[2], (Cout,), jnp.float32)
        gamma = 1.0 + 0.1 * jax.random.normal(k[3], (Cout,), jnp.float32)
        beta = 0.1 * jax.random.normal(k[4], (Cout,), jnp.float32)
        run_mean = 0.1 * jax.random.normal(k[5], (Cout,), jnp.float32)
        run_var = jax.random.uniform(k[6], (Cout,), jnp.float32,
                                     minval=0.5, maxval=1.5)
        return x, w, conv_b, gamma, beta, run_mean, run_var

    fwd = jax.jit(up_conv)

    # (N, Cin, Cout, H, W): main case + one exercising W/Cout padding paths.
    cases = [
        (2, 16, 32, 16, 16),   # Up_Conv(16, 32): 16x16 -> 32x32
        (1, 8, 24, 7, 12),     # odd H, W % 8 != 0, Cout % 128 != 0
    ]
    case_keys = jax.random.split(key, len(cases))

    for ck, (N, Cin, Cout, H, W) in zip(case_keys, cases):
        args = make_case(ck, N, Cin, Cout, H, W)
        y = fwd(*args)
        jax.block_until_ready(y)

        assert y.shape == (N, Cout, 2 * H, 2 * W), y.shape
        assert bool(jnp.all(jnp.isfinite(y)))
        assert bool(jnp.all(y >= 0.0))               # ReLU output range

        y_ref = up_conv_reference(*args)
        max_err = float(jnp.max(jnp.abs(y - y_ref)))
        assert max_err < 7.5e-2, f"max abs err vs f32 reference: {max_err}"

    print("KERNEL_OK")
</pallas_src>

<mosaic_0001>
module attributes {stable_mosaic.version = 11 : i64} {
  func.func @_up_conv_kernel(%arg0: i32, %arg1: i32, %arg2: i32, %arg3: memref<1x1x18x18x16xbf16, #tpu.memory_space<vmem>>, %arg4: memref<4x64x128xbf16, #tpu.memory_space<vmem>>, %arg5: memref<1x128xf32, #tpu.memory_space<vmem>>, %arg6: memref<1x128xf32, #tpu.memory_space<vmem>>, %arg7: memref<1x4x16x16x128xf32, #tpu.memory_space<vmem>>) attributes {dimension_semantics = [#tpu.dimension_semantics<parallel>, #tpu.dimension_semantics<parallel>, #tpu.dimension_semantics<parallel>], iteration_bounds = array<i64: 2, 1, 1>, scalar_prefetch = 0 : i64, scratch_operands = 0 : i64, tpu.core_type = #tpu.core_type<tc>, window_params = [{transform_indices = @transform_0, window_bounds = array<i64: 1, 1, 18, 18, 16>}, {transform_indices = @transform_1, window_bounds = array<i64: 4, 64, 128>}, {transform_indices = @transform_2, window_bounds = array<i64: 1, 128>}, {transform_indices = @transform_3, window_bounds = array<i64: 1, 128>}, {transform_indices = @transform_4, window_bounds = array<i64: 1, 4, 16, 16, 128>}]} {
    %c0 = arith.constant 0 : index
    %c0_0 = arith.constant 0 : index
    %0 = vector.load %arg5[%c0, %c0_0] : memref<1x128xf32, #tpu.memory_space<vmem>>, vector<1x128xf32>
    %1 = vector.shape_cast %0 : vector<1x128xf32> to vector<128xf32>
    %c0_1 = arith.constant 0 : index
    %c0_2 = arith.constant 0 : index
    %2 = vector.load %arg6[%c0_1, %c0_2] : memref<1x128xf32, #tpu.memory_space<vmem>>, vector<1x128xf32>
    %3 = vector.shape_cast %2 : vector<1x128xf32> to vector<128xf32>
    %c0_3 = arith.constant 0 : index
    %c0_4 = arith.constant 0 : index
    %c0_5 = arith.constant 0 : index
    %c0_6 = arith.constant 0 : index
    %c0_7 = arith.constant 0 : index
    %4 = vector.load %arg3[%c0_3, %c0_4, %c0_5, %c0_6, %c0_7] : memref<1x1x18x18x16xbf16, #tpu.memory_space<vmem>>, vector<1x1x16x16x16xbf16>
    %5 = vector.shape_cast %4 : vector<1x1x16x16x16xbf16> to vector<16x16x16xbf16>
    %6 = vector.shape_cast %5 : vector<16x16x16xbf16> to vector<256x16xbf16>
    %c0_8 = arith.constant 0 : index
    %c0_9 = arith.constant 0 : index
    %c0_10 = arith.constant 0 : index
    %c1 = arith.constant 1 : index
    %c0_11 = arith.constant 0 : index
    %7 = vector.load %arg3[%c0_8, %c0_9, %c0_10, %c1, %c0_11] : memref<1x1x18x18x16xbf16, #tpu.memory_space<vmem>>, vector<1x1x16x16x16xbf16>
    %8 = vector.shape_cast %7 : vector<1x1x16x16x16xbf16> to vector<16x16x16xbf16>
    %9 = vector.shape_cast %8 : vector<16x16x16xbf16> to vector<256x16xbf16>
    %c0_12 = arith.constant 0 : index
    %c0_13 = arith.constant 0 : index
    %c1_14 = arith.constant 1 : index
    %c0_15 = arith.constant 0 : index
    %c0_16 = arith.constant 0 : index
    %10 = vector.load %arg3[%c0_12, %c0_13, %c1_14, %c0_15, %c0_16] : memref<1x1x18x18x16xbf16, #tpu.memory_space<vmem>>, vector<1x1x16x16x16xbf16>
    %11 = vector.shape_cast %10 : vector<1x1x16x16x16xbf16> to vector<16x16x16xbf16>
    %12 = vector.shape_cast %11 : vector<16x16x16xbf16> to vector<256x16xbf16>
    %c0_17 = arith.constant 0 : index
    %c0_18 = arith.constant 0 : index
    %c1_19 = arith.constant 1 : index
    %c1_20 = arith.constant 1 : index
    %c0_21 = arith.constant 0 : index
    %13 = vector.load %arg3[%c0_17, %c0_18, %c1_19, %c1_20, %c0_21] : memref<1x1x18x18x16xbf16, #tpu.memory_space<vmem>>, vector<1x1x16x16x16xbf16>
    %14 = vector.shape_cast %13 : vector<1x1x16x16x16xbf16> to vector<16x16x16xbf16>
    %15 = vector.shape_cast %14 : vector<16x16x16xbf16> to vector<256x16xbf16>
    %16 = tpu.concatenate %6, %9, %12, %15 in 1 : vector<256x16xbf16>, vector<256x16xbf16>, vector<256x16xbf16>, vector<256x16xbf16> -> vector<256x64xbf16>
    %c0_22 = arith.constant 0 : index
    %c0_23 = arith.constant 0 : index
    %c0_24 = arith.constant 0 : index
    %17 = vector.load %arg4[%c0_22, %c0_23, %c0_24] : memref<4x64x128xbf16, #tpu.memory_space<vmem>>, vector<1x64x128xbf16>
    %18 = vector.shape_cast %17 : vector<1x64x128xbf16> to vector<64x128xbf16>
    %cst = arith.constant dense<0.000000e+00> : vector<256x128xf32>
    %19 = tpu.matmul %16, %18, %cst {dimension_numbers = #tpu.dot_dimension_numbers<[1], [0], [0], [1], [0, 0, 1, 1], [], []>} : vector<256x64xbf16>, vector<64x128xbf16>, vector<256x128xf32> -> vector<256x128xf32>
    %20 = vector.shape_cast %1 : vector<128xf32> to vector<1x128xf32>
    %21 = vector.broadcast %20 : vector<1x128xf32> to vector<256x128xf32>
    %22 = arith.mulf %19, %21 : vector<256x128xf32>
    %23 = vector.shape_cast %3 : vector<128xf32> to vector<1x128xf32>
    %24 = vector.broadcast %23 : vector<1x128xf32> to vector<256x128xf32>
    %25 = arith.addf %22, %24 : vector<256x128xf32>
    %cst_25 = arith.constant 0.000000e+00 : f32
    %26 = vector.broadcast %cst_25 : f32 to vector<256x128xf32>
    %27 = arith.maximumf %25, %26 : vector<256x128xf32>
    %28 = vector.shape_cast %27 : vector<256x128xf32> to vector<16x16x128xf32>
    %c0_26 = arith.constant 0 : index
    %c0_27 = arith.constant 0 : index
    %c0_28 = arith.constant 0 : index
    %c0_29 = arith.constant 0 : index
    %c0_30 = arith.constant 0 : index
    %29 = vector.load %arg7[%c0_26, %c0_27, %c0_28, %c0_29, %c0_30] : memref<1x4x16x16x128xf32, #tpu.memory_space<vmem>>, vector<1x1x16x16x128xf32>
    %30 = vector.shape_cast %29 : vector<1x1x16x16x128xf32> to vector<16x16x128xf32>
    %31 = vector.shape_cast %28 : vector<16x16x128xf32> to vector<1x1x16x16x128xf32>
    tpu.vector_store %arg7[%c0_26, %c0_27, %c0_28, %c0_29, %c0_30], %31 {strides = array<i32>} : memref<1x4x16x16x128xf32, #tpu.memory_space<vmem>>, vector<1x1x16x16x128xf32>,
    %c0_31 = arith.constant 0 : index
    %c0_32 = arith.constant 0 : index
    %c0_33 = arith.constant 0 : index
    %c1_34 = arith.constant 1 : index
    %c0_35 = arith.constant 0 : index
    %32 = vector.load %arg3[%c0_31, %c0_32, %c0_33, %c1_34, %c0_35] : memref<1x1x18x18x16xbf16, #tpu.memory_space<vmem>>, vector<1x1x16x16x16xbf16>
    %33 = vector.shape_cast %32 : vector<1x1x16x16x16xbf16> to vector<16x16x16xbf16>
    %34 = vector.shape_cast %33 : vector<16x16x16xbf16> to vector<256x16xbf16>
    %c0_36 = arith.constant 0 : index
    %c0_37 = arith.constant 0 : index
    %c0_38 = arith.constant 0 : index
    %c2 = arith.constant 2 : index
    %c0_39 = arith.constant 0 : index
    %35 = vector.load %arg3[%c0_36, %c0_37, %c0_38, %c2, %c0_39] : memref<1x1x18x18x16xbf16, #tpu.memory_space<vmem>>, vector<1x1x16x16x16xbf16>
    %36 = vector.shape_cast %35 : vector<1x1x16x16x16xbf16> to vector<16x16x16xbf16>
    %37 = vector.shape_cast %36 : vector<16x16x16xbf16> to vector<256x16xbf16>
    %c0_40 = arith.constant 0 : index
    %c0_41 = arith.constant 0 : index
    %c1_42 = arith.constant 1 : index
    %c1_43 = arith.constant 1 : index
    %c0_44 = arith.constant 0 : index
    %38 = vector.load %arg3[%c0_40, %c0_41, %c1_42, %c1_43, %c0_44] : memref<1x1x18x18x16xbf16, #tpu.memory_space<vmem>>, vector<1x1x16x16x16xbf16>
    %39 = vector.shape_cast %38 : vector<1x1x16x16x16xbf16> to vector<16x16x16xbf16>
    %40 = vector.shape_cast %39 : vector<16x16x16xbf16> to vector<256x16xbf16>
    %c0_45 = arith.constant 0 : index
    %c0_46 = arith.constant 0 : index
    %c1_47 = arith.constant 1 : index
    %c2_48 = arith.constant 2 : index
    %c0_49 = arith.constant 0 : index
    %41 = vector.load %arg3[%c0_45, %c0_46, %c1_47, %c2_48, %c0_49] : memref<1x1x18x18x16xbf16, #tpu.memory_space<vmem>>, vector<1x1x16x16x16xbf16>
    %42 = vector.shape_cast %41 : vector<1x1x16x16x16xbf16> to vector<16x16x16xbf16>
    %43 = vector.shape_cast %42 : vector<16x16x16xbf16> to vector<256x16xbf16>
    %44 = tpu.concatenate %34, %37, %40, %43 in 1 : vector<256x16xbf16>, vector<256x16xbf16>, vector<256x16xbf16>, vector<256x16xbf16> -> vector<256x64xbf16>
    %c1_50 = arith.constant 1 : index
    %c0_51 = arith.constant 0 : index
    %c0_52 = arith.constant 0 : index
    %45 = vector.load %arg4[%c1_50, %c0_51, %c0_52] : memref<4x64x128xbf16, #tpu.memory_space<vmem>>, vector<1x64x128xbf16>
    %46 = vector.shape_cast %45 : vector<1x64x128xbf16> to vector<64x128xbf16>
    %cst_53 = arith.constant dense<0.000000e+00> : vector<256x128xf32>
    %47 = tpu.matmul %44, %46, %cst_53 {dimension_numbers = #tpu.dot_dimension_numbers<[1], [0], [0], [1], [0, 0, 1, 1], [], []>} : vector<256x64xbf16>, vector<64x128xbf16>, vector<256x128xf32> -> vector<256x128xf32>
    %48 = vector.shape_cast %1 : vector<128xf32> to vector<1x128xf32>
    %49 = vector.broadcast %48 : vector<1x128xf32> to vector<256x128xf32>
    %50 = arith.mulf %47, %49 : vector<256x128xf32>
    %51 = vector.shape_cast %3 : vector<128xf32> to vector<1x128xf32>
    %52 = vector.broadcast %51 : vector<1x128xf32> to vector<256x128xf32>
    %53 = arith.addf %50, %52 : vector<256x128xf32>
    %cst_54 = arith.constant 0.000000e+00 : f32
    %54 = vector.broadcast %cst_54 : f32 to vector<256x128xf32>
    %55 = arith.maximumf %53, %54 : vector<256x128xf32>
    %56 = vector.shape_cast %55 : vector<256x128xf32> to vector<16x16x128xf32>
    %c0_55 = arith.constant 0 : index
    %c1_56 = arith.constant 1 : index
    %c0_57 = arith.constant 0 : index
    %c0_58 = arith.constant 0 : index
    %c0_59 = arith.constant 0 : index
    %57 = vector.load %arg7[%c0_55, %c1_56, %c0_57, %c0_58, %c0_59] : memref<1x4x16x16x128xf32, #tpu.memory_space<vmem>>, vector<1x1x16x16x128xf32>
    %58 = vector.shape_cast %57 : vector<1x1x16x16x128xf32> to vector<16x16x128xf32>
    %59 = vector.shape_cast %56 : vector<16x16x128xf32> to vector<1x1x16x16x128xf32>
    tpu.vector_store %arg7[%c0_55, %c1_56, %c0_57, %c0_58, %c0_59], %59 {strides = array<i32>} : memref<1x4x16x16x128xf32, #tpu.memory_space<vmem>>, vector<1x1x16x16x128xf32>,
    %c0_60 = arith.constant 0 : index
    %c0_61 = arith.constant 0 : index
    %c1_62 = arith.constant 1 : index
    %c0_63 = arith.constant 0 : index
    %c0_64 = arith.constant 0 : index
    %60 = vector.load %arg3[%c0_60, %c0_61, %c1_62, %c0_63, %c0_64] : memref<1x1x18x18x16xbf16, #tpu.memory_space<vmem>>, vector<1x1x16x16x16xbf16>
    %61 = vector.shape_cast %60 : vector<1x1x16x16x16xbf16> to vector<16x16x16xbf16>
    %62 = vector.shape_cast %61 : vector<16x16x16xbf16> to vector<256x16xbf16>
    %c0_65 = arith.constant 0 : index
    %c0_66 = arith.constant 0 : index
    %c1_67 = arith.constant 1 : index
    %c1_68 = arith.constant 1 : index
    %c0_69 = arith.constant 0 : index
    %63 = vector.load %arg3[%c0_65, %c0_66, %c1_67, %c1_68, %c0_69] : memref<1x1x18x18x16xbf16, #tpu.memory_space<vmem>>, vector<1x1x16x16x16xbf16>
    %64 = vector.shape_cast %63 : vector<1x1x16x16x16xbf16> to vector<16x16x16xbf16>
    %65 = vector.shape_cast %64 : vector<16x16x16xbf16> to vector<256x16xbf16>
    %c0_70 = arith.constant 0 : index
    %c0_71 = arith.constant 0 : index
    %c2_72 = arith.constant 2 : index
    %c0_73 = arith.constant 0 : index
    %c0_74 = arith.constant 0 : index
    %66 = vector.load %arg3[%c0_70, %c0_71, %c2_72, %c0_73, %c0_74] : memref<1x1x18x18x16xbf16, #tpu.memory_space<vmem>>, vector<1x1x16x16x16xbf16>
    %67 = vector.shape_cast %66 : vector<1x1x16x16x16xbf16> to vector<16x16x16xbf16>
    %68 = vector.shape_cast %67 : vector<16x16x16xbf16> to vector<256x16xbf16>
    %c0_75 = arith.constant 0 : index
    %c0_76 = arith.constant 0 : index
    %c2_77 = arith.constant 2 : index
    %c1_78 = arith.constant 1 : index
    %c0_79 = arith.constant 0 : index
    %69 = vector.load %arg3[%c0_75, %c0_76, %c2_77, %c1_78, %c0_79] : memref<1x1x18x18x16xbf16, #tpu.memory_space<vmem>>, vector<1x1x16x16x16xbf16>
    %70 = vector.shape_cast %69 : vector<1x1x16x16x16xbf16> to vector<16x16x16xbf16>
    %71 = vector.shape_cast %70 : vector<16x16x16xbf16> to vector<256x16xbf16>
    %72 = tpu.concatenate %62, %65, %68, %71 in 1 : vector<256x16xbf16>, vector<256x16xbf16>, vector<256x16xbf16>, vector<256x16xbf16> -> vector<256x64xbf16>
    %c2_80 = arith.constant 2 : index
    %c0_81 = arith.constant 0 : index
    %c0_82 = arith.constant 0 : index
    %73 = vector.load %arg4[%c2_80, %c0_81, %c0_82] : memref<4x64x128xbf16, #tpu.memory_space<vmem>>, vector<1x64x128xbf16>
    %74 = vector.shape_cast %73 : vector<1x64x128xbf16> to vector<64x128xbf16>
    %cst_83 = arith.constant dense<0.000000e+00> : vector<256x128xf32>
    %75 = tpu.matmul %72, %74, %cst_83 {dimension_numbers = #tpu.dot_dimension_numbers<[1], [0], [0], [1], [0, 0, 1, 1], [], []>} : vector<256x64xbf16>, vector<64x128xbf16>, vector<256x128xf32> -> vector<256x128xf32>
    %76 = vector.shape_cast %1 : vector<128xf32> to vector<1x128xf32>
    %77 = vector.broadcast %76 : vector<1x128xf32> to vector<256x128xf32>
    %78 = arith.mulf %75, %77 : vector<256x128xf32>
    %79 = vector.shape_cast %3 : vector<128xf32> to vector<1x128xf32>
    %80 = vector.broadcast %79 : vector<1x128xf32> to vector<256x128xf32>
    %81 = arith.addf %78, %80 : vector<256x128xf32>
    %cst_84 = arith.constant 0.000000e+00 : f32
    %82 = vector.broadcast %cst_84 : f32 to vector<256x128xf32>
    %83 = arith.maximumf %81, %82 : vector<256x128xf32>
    %84 = vector.shape_cast %83 : vector<256x128xf32> to vector<16x16x128xf32>
    %c0_85 = arith.constant 0 : index
    %c2_86 = arith.constant 2 : index
    %c0_87 = arith.constant 0 : index
    %c0_88 = arith.constant 0 : index
    %c0_89 = arith.constant 0 : index
    %85 = vector.load %arg7[%c0_85, %c2_86, %c0_87, %c0_88, %c0_89] : memref<1x4x16x16x128xf32, #tpu.memory_space<vmem>>, vector<1x1x16x16x128xf32>
    %86 = vector.shape_cast %85 : vector<1x1x16x16x128xf32> to vector<16x16x128xf32>
    %87 = vector.shape_cast %84 : vector<16x16x128xf32> to vector<1x1x16x16x128xf32>
    tpu.vector_store %arg7[%c0_85, %c2_86, %c0_87, %c0_88, %c0_89], %87 {strides = array<i32>} : memref<1x4x16x16x128xf32, #tpu.memory_space<vmem>>, vector<1x1x16x16x128xf32>,
    %c0_90 = arith.constant 0 : index
    %c0_91 = arith.constant 0 : index
    %c1_92 = arith.constant 1 : index
    %c1_93 = arith.constant 1 : index
    %c0_94 = arith.constant 0 : index
    %88 = vector.load %arg3[%c0_90, %c0_91, %c1_92, %c1_93, %c0_94] : memref<1x1x18x18x16xbf16, #tpu.memory_space<vmem>>, vector<1x1x16x16x16xbf16>
    %89 = vector.shape_cast %88 : vector<1x1x16x16x16xbf16> to vector<16x16x16xbf16>
    %90 = vector.shape_cast %89 : vector<16x16x16xbf16> to vector<256x16xbf16>
    %c0_95 = arith.constant 0 : index
    %c0_96 = arith.constant 0 : index
    %c1_97 = arith.constant 1 : index
    %c2_98 = arith.constant 2 : index
    %c0_99 = arith.constant 0 : index
    %91 = vector.load %arg3[%c0_95, %c0_96, %c1_97, %c2_98, %c0_99] : memref<1x1x18x18x16xbf16, #tpu.memory_space<vmem>>, vector<1x1x16x16x16xbf16>
    %92 = vector.shape_cast %91 : vector<1x1x16x16x16xbf16> to vector<16x16x16xbf16>
    %93 = vector.shape_cast %92 : vector<16x16x16xbf16> to vector<256x16xbf16>
    %c0_100 = arith.constant 0 : index
    %c0_101 = arith.constant 0 : index
    %c2_102 = arith.constant 2 : index
    %c1_103 = arith.constant 1 : index
    %c0_104 = arith.constant 0 : index
    %94 = vector.load %arg3[%c0_100, %c0_101, %c2_102, %c1_103, %c0_104] : memref<1x1x18x18x16xbf16, #tpu.memory_space<vmem>>, vector<1x1x16x16x16xbf16>
    %95 = vector.shape_cast %94 : vector<1x1x16x16x16xbf16> to vector<16x16x16xbf16>
    %96 = vector.shape_cast %95 : vector<16x16x16xbf16> to vector<256x16xbf16>
    %c0_105 = arith.constant 0 : index
    %c0_106 = arith.constant 0 : index
    %c2_107 = arith.constant 2 : index
    %c2_108 = arith.constant 2 : index
    %c0_109 = arith.constant 0 : index
    %97 = vector.load %arg3[%c0_105, %c0_106, %c2_107, %c2_108, %c0_109] : memref<1x1x18x18x16xbf16, #tpu.memory_space<vmem>>, vector<1x1x16x16x16xbf16>
    %98 = vector.shape_cast %97 : vector<1x1x16x16x16xbf16> to vector<16x16x16xbf16>
    %99 = vector.shape_cast %98 : vector<16x16x16xbf16> to vector<256x16xbf16>
    %100 = tpu.concatenate %90, %93, %96, %99 in 1 : vector<256x16xbf16>, vector<256x16xbf16>, vector<256x16xbf16>, vector<256x16xbf16> -> vector<256x64xbf16>
    %c3 = arith.constant 3 : index
    %c0_110 = arith.constant 0 : index
    %c0_111 = arith.constant 0 : index
    %101 = vector.load %arg4[%c3, %c0_110, %c0_111] : memref<4x64x128xbf16, #tpu.memory_space<vmem>>, vector<1x64x128xbf16>
    %102 = vector.shape_cast %101 : vector<1x64x128xbf16> to vector<64x128xbf16>
    %cst_112 = arith.constant dense<0.000000e+00> : vector<256x128xf32>
    %103 = tpu.matmul %100, %102, %cst_112 {dimension_numbers = #tpu.dot_dimension_numbers<[1], [0], [0], [1], [0, 0, 1, 1], [], []>} : vector<256x64xbf16>, vector<64x128xbf16>, vector<256x128xf32> -> vector<256x128xf32>
    %104 = vector.shape_cast %1 : vector<128xf32> to vector<1x128xf32>
    %105 = vector.broadcast %104 : vector<1x128xf32> to vector<256x128xf32>
    %106 = arith.mulf %103, %105 : vector<256x128xf32>
    %107 = vector.shape_cast %3 : vector<128xf32> to vector<1x128xf32>
    %108 = vector.broadcast %107 : vector<1x128xf32> to vector<256x128xf32>
    %109 = arith.addf %106, %108 : vector<256x128xf32>
    %cst_113 = arith.constant 0.000000e+00 : f32
    %110 = vector.broadcast %cst_113 : f32 to vector<256x128xf32>
    %111 = arith.maximumf %109, %110 : vector<256x128xf32>
    %112 = vector.shape_cast %111 : vector<256x128xf32> to vector<16x16x128xf32>
    %c0_114 = arith.constant 0 : index
    %c3_115 = arith.constant 3 : index
    %c0_116 = arith.constant 0 : index
    %c0_117 = arith.constant 0 : index
    %c0_118 = arith.constant 0 : index
    %113 = vector.load %arg7[%c0_114, %c3_115, %c0_116, %c0_117, %c0_118] : memref<1x4x16x16x128xf32, #tpu.memory_space<vmem>>, vector<1x1x16x16x128xf32>
    %114 = vector.shape_cast %113 : vector<1x1x16x16x128xf32> to vector<16x16x128xf32>
    %115 = vector.shape_cast %112 : vector<16x16x128xf32> to vector<1x1x16x16x128xf32>
    tpu.vector_store %arg7[%c0_114, %c3_115, %c0_116, %c0_117, %c0_118], %115 {strides = array<i32>} : memref<1x4x16x16x128xf32, #tpu.memory_space<vmem>>, vector<1x1x16x16x128xf32>,
    return
  }
  func.func @transform_0(%arg0: i32, %arg1: i32, %arg2: i32) -> (i32, i32, i32, i32, i32) {
    %c0_i32 = arith.constant 0 : i32
    %c0_i32_0 = arith.constant 0 : i32
    %c0_i32_1 = arith.constant 0 : i32
    %c0_i32_2 = arith.constant 0 : i32
    return %arg0, %arg2, %c0_i32, %c0_i32_0, %c0_i32_1 : i32, i32, i32, i32, i32
  }
  func.func @transform_1(%arg0: i32, %arg1: i32, %arg2: i32) -> (i32, i32, i32) {
    %c0_i32 = arith.constant 0 : i32
    %c0_i32_0 = arith.constant 0 : i32
    %c0_i32_1 = arith.constant 0 : i32
    return %c0_i32, %c0_i32_0, %arg1 : i32, i32, i32
  }
  func.func @transform_2(%arg0: i32, %arg1: i32, %arg2: i32) -> (i32, i32) {
    %c0_i32 = arith.constant 0 : i32
    %c0_i32_0 = arith.constant 0 : i32
    return %c0_i32, %arg1 : i32, i32
  }
  func.func @transform_3(%arg0: i32, %arg1: i32, %arg2: i32) -> (i32, i32) {
    %c0_i32 = arith.constant 0 : i32
    %c0_i32_0 = arith.constant 0 : i32
    return %c0_i32, %arg1 : i32, i32
  }
  func.func @transform_4(%arg0: i32, %arg1: i32, %arg2: i32) -> (i32, i32, i32, i32, i32) {
    %c0_i32 = arith.constant 0 : i32
    %c0_i32_0 = arith.constant 0 : i32
    %c0_i32_1 = arith.constant 0 : i32
    return %arg0, %c0_i32, %arg2, %c0_i32_0, %arg1 : i32, i32, i32, i32, i32
  }
}

</mosaic_0001>

<bundles_post_ra>
// kernel: up_conv.1
= control target key start
LH: loop header
LB: loop body
LE: loop exit
PB: predicated region body
PF: predicated region fallthrough
CT: control target
= control target key end

     0   :  { %s9165_s15 = smov 0   ;;  %s9167_s16 = smov 0   ;;  %s12973_s0 = inlined_call_operand.vmem [shape: bf16[2,1,18,18,16], index: 0, kind: input, shape index: {}]   ;;  %s12974_s1 = inlined_call_operand.vmem [shape: bf16[4,64,128], index: 1, kind: input, shape index: {}]   ;;  %s12975_s2 = inlined_call_operand.vmem [shape: f32[1,128], index: 2, kind: input, shape index: {}]   ;;  %s12976_s3 = inlined_call_operand.vmem [shape: f32[1,128], index: 3, kind: input, shape index: {}]   ;;  %s12977_s4 = inlined_call_operand.vmem [shape: f32[2,4,16,16,128], index: 4, kind: output, shape index: {}]  }
   0x1   :  { %s9169_s17 = smov 0  }
   0x2 LB: > { %s33_s18 = sadd.s32 1, %s9131_s16  ;;  %p7785_p0 = scmp.ge.s32.totalorder %s9135_s17, 1  ;;  %s9135_s17 = sphi %s9169_s17, %s14_s17   ;;  %s9131_s16 = sphi %s9167_s16, %s13066_s16   ;;  %s9127_s15 = sphi %s9165_s15, %s13065_s15  }
   0x3   : > { %p35_p1 = scmp.ge.s32.totalorder %s33_s18, 2  ;;  %p216_p2 = scmp.lt.s32.totalorder %s9135_s17, 3 }
   0x5   : > { %s13068_s18 = smov (%p35_p1, %s33_s18), 0  ;;  %p217_p3 = pnand %p7785_p0, %p216_p2 }
   0x7   : > { %220 = sbr.rel (%p217_p3) target bundleno = 1041 (0x411), region = 36 }
   0xe   : > { %p264_p4 = scmp.lt.s32.totalorder %s9127_s15, 1  ;;  %vm2497_vm0 = vcmask 1042432   ;;  %vm2498_vm1 = vcmask 1046532   ;;  %s9137_s23 = smov 32   ;;  %vm348_vm3 = vsmask.f32 3328 }
   0xf   : > { %vm9217_vm2 = vmor %vm2497_vm0, %vm2498_vm1  ;;  %vm349_vm4 = vsmask.f32 7440  ;;  %s9138_s24 = smov 16   ;;  %s9139_s25 = smov 48   ;;  %vm1520_vm6 = vcmask 130048   ;;  %vm1569_vm7 = vcmask 261120  }
  0x10   : > { %s13070_s15 = smov (!%p264_p4, %s9127_s15), 1  ;;  %vm9268_vm5 = vmor %vm348_vm3, %vm349_vm4  ;;  %vm1602_vm8 = vcmask 392192   ;;  %vm1667_vm9 = vcmask 523264  }
  0x11   : > { %s8890_s19 = smul.u32 216, %s13070_s15  ;;  %s8649_s26 = sshll.u32 %s13070_s15, 10 }
  0x12   : > { %s11877_s28 = scalar_lea.vmem %s12977_s4, %s8649_s26 }
  0x13   : > { %s9189_s22 = scalar_lea.vmem %s12973_s0, %s8890_s19 }
  0x14   : > { %v7791_v0 = vld [vmem:[%s9189_s22 + $0x18] sm:$0xf]  ;;  %v7792_v1 = vld [vmem:[%s9189_s22 + $0x1c] sm:$0xf]  ;;  %v7789_v2 = vld [vmem:[%s9189_s22 + $0xc] sm:$0xf] }
  0x15   : > { %v818_v3 = vshll.u32 %v7792_v1, 16  ;;  %v822_v4 = vshrl.u32 %v7792_v1, 16  ;;  %v7870_v5 = vcombine.low %v7791_v0, %v7792_v1  ;;  %v809_v6 = vshrl.u32 %v7791_v0, 16  ;;  %v7790_v7 = vld [vmem:[%s9189_s22 + $0x10] sm:$0xf] }
  0x16   : > { %v812_v8 = vshll.u32 %v7791_v0, 16  ;;  %v794_v9 = vshll.u32 %v7790_v7, 16  ;;  %v798_v10 = vshrl.u32 %v7790_v7, 16  ;;  %v7869_v11 = vcombine.low %v7789_v2, %v7790_v7  ;;  %v9196_v12 = vld [vmem:[%s9189_s22 + $0x4] sm:$0xf] }
  0x17   : > { %v9198_v13 = vrot.slane %v818_v3, 5  ;;  %v824_v14 = vrot.slane %v822_v4, 4  ;;  %1410 = vrot.lane.b32.xlu0 %v7870_v5, %s9137_s23  ;;  %v811_v15 = vrot.slane %v809_v6, 4  ;;  %v785_v16 = vshrl.u32 %v7789_v2, 16  ;;  %v9202_v17 = vld [vmem:[%s9189_s22 + $0x8] sm:$0x1] }
  0x18   : > { %v814_v18 = vrot.slane %v812_v8, 5  ;;  %v9204_v19 = vrot.slane %v794_v9, 5  ;;  %v800_v20 = vrot.slane %v798_v10, 4  ;;  %1408 = vrot.lane.b32.xlu1 %v7869_v11, %s9137_s23  ;;  %v788_v21 = vshll.u32 %v7789_v2, 16  ;;  %v2433_v22 = vld [vmem:[%s9189_s22] sm:$0xe] }
  0x19   : > { %v825_v23 = vor.u32 %v824_v14, %v9198_v13  ;;  %v787_v24 = vrot.slane %v785_v16, 4  ;;  %v2063_v25 = vshrl.u32 %v9196_v12, 16  ;;  %v2069_v26 = vshll.u32 %v9202_v17, 16  ;;  %v9212_v27 = vld [vmem:[%s9189_s22 + $0x10] sm:$0xf] }
  0x1a   : > { %v815_v28 = vor.u32 %v814_v18, %v811_v15  ;;  %v801_v29 = vor.u32 %v800_v20, %v9204_v19  ;;  %v790_v30 = vrot.slane %v788_v21, 5  ;;  %v7923_v32 = vrot.slane %v2433_v22, 9  ;;  %v9222_v33 = vld [vmem:[%s9189_s22 + $0x14] sm:$0x1]  ;;  %v7987_v34 = vld [vmem:[%s9189_s22 + $0xc] sm:$0xe] }
  0x1b   : > { %v9225_v35 = vrot.slane %v825_v23, 4  ;;  %v2502_v36 = vrot.slane %v9196_v12, 5  ;;  %v2505_v37 = vrot.slane %v9202_v17, 5  ;;  %v8003_v38 = vrot.slane %v7987_v34, 9  ;;  %v9233_v42 = vld [vmem:[%s9189_s22 + $0x10] sm:$0xf] }
  0x1c   : > { %v9229_v39 = vrot.slane %v815_v28, 4  ;;  %v791_v40 = vor.u32 %v790_v30, %v787_v24  ;;  %v3110_v41 = vrot.slane %v9212_v27, 5  ;;  %v9236_v43 = vld [vmem:[%s9189_s22 + $0x14] sm:$0x1]  ;;  %v9238_v44 = vrot.slane %v801_v29, 4 }
  0x1d   : > { %v2503_v45 = vsel %vm9217_vm2, %v7923_v32, %v2502_v36  ;;  %v2504_v46 = vrot.slane %v2502_v36, 4  ;;  %v3113_v47 = vrot.slane %v9222_v33, 5  ;;  %v2434_v48 = vld [vmem:[%s9189_s22 + $0xc] sm:$0xe]  ;;  %v2087_v52 = vshrl.u32 %v9233_v42, 16 }
  0x1e   : > { %v9244_v49 = vrot.slane %v791_v40, 4  ;;  %v3111_v50 = vsel %vm9217_vm2, %v8003_v38, %v3110_v41  ;;  %v3112_v51 = vrot.slane %v3110_v41, 4  ;;  %v302_v53 = vld [vmem:[%s9189_s22 + $0xc] sm:$0xf]  ;;  %v7924_v55 = vrot.slane %v2434_v48, 9 }
  0x1f   : > { %v2506_v54 = vsel %vm9217_vm2, %v2504_v46, %v2505_v37  ;;  %v2509_v56 = vrot.slane %v9233_v42, 5  ;;  %v2512_v57 = vrot.slane %v9236_v43, 5  ;;  %v303_v58 = vld [vmem:[%s9189_s22 + $0x10] sm:$0xf]  ;;  %v333_v61 = vld [vmem:[%s9189_s22 + $0x14] sm:$0x1] }
  0x20   : > { %v8035_v59 = vcombine.low %v2503_v45, %v2506_v54  ;;  %v3114_v60 = vsel %vm9217_vm2, %v3112_v51, %v3113_v47  ;;  %v376_v62 = vshrl.u32 %v302_v53, 16  ;;  %v379_v63 = vshll.u32 %v302_v53, 16  ;;  %v7939_v0 = vld [vmem:[%s9189_s22 + $0xc] sm:$0xf]  ;;  %v300_v15 = vld [vmem:[%s9189_s22] sm:$0xf] }
  0x21   : > { %v8067_v1 = vcombine.low %v3111_v50, %v3114_v60  ;;  %v2510_v2 = vsel %vm9217_vm2, %v7924_v55, %v2509_v56  ;;  %v2511_v3 = vrot.slane %v2509_v56, 4  ;;  %v385_v4 = vshll.u32 %v303_v58, 16  ;;  %v301_v36 = vld [vmem:[%s9189_s22 + $0x4] sm:$0xf]  ;;  %v332_v45 = vld [vmem:[%s9189_s22 + $0x8] sm:$0x1] }
  0x22   : > { %3316 = vrot.lane.b32.xlu0 %v8035_v59, %s9138_s24  ;;  %v378_v5 = vrot.slane %v376_v62, 4  ;;  %v381_v6 = vrot.slane %v379_v63, 5  ;;  %v389_v7 = vshrl.u32 %v303_v58, 16  ;;  %v395_v8 = vshll.u32 %v333_v61, 16  ;;  %v7821_v55 = vld [vmem:[%s9189_s22 + $0x14] sm:$0x1] }
  0x23   : > { %3476 = vrot.lane.b32.xlu1 %v8067_v1, %s9139_s25  ;;  %v2513_v9 = vsel %vm9217_vm2, %v2511_v3, %v2512_v57  ;;  %v387_v10 = vrot.slane %v385_v4, 5  ;;  %v2661_v11 = vshrl.u32 %v7939_v0, 16  ;;  %v2664_v14 = vshll.u32 %v7939_v0, 16  ;;  %v7942_v60 = vld [vmem:[%s9189_s22 + $0x18] sm:$0xf] }
  0x24   : > { %v8036_v16 = vcombine.low %v2510_v2, %v2513_v9  ;;  %v382_v18 = vor.u32 %v381_v6, %v378_v5  ;;  %v391_v20 = vrot.slane %v389_v7, 4  ;;  %v397_v21 = vrot.slane %v395_v8, 5  ;;  %v7943_v1 = vld [vmem:[%s9189_s22 + $0x1c] sm:$0xf] }
  0x25   : > { %v2663_v23 = vrot.slane %v2661_v11, 4  ;;  %v2666_v24 = vrot.slane %v2664_v14, 5  ;;  %v2670_v28 = vshll.u32 %v9212_v27, 16  ;;  %v2674_v29 = vshrl.u32 %v9212_v27, 16 }
  0x26   : > { %3318 = vrot.lane.b32.xlu0 %v8036_v16, %s9138_s24  ;;  %v383_v30 = vrot.slane %v382_v18, 4  ;;  %v392_v32 = vor.u32 %v391_v20, %v387_v10  ;;  %v2680_v34 = vshll.u32 %v9222_v33, 16  ;;  %v352_v37 = vshrl.u32 %v300_v15, 16 }
  0x27   : > { %v2667_v38 = vor.u32 %v2666_v24, %v2663_v23  ;;  %v2672_v40 = vrot.slane %v2670_v28, 5  ;;  %v2676_v41 = vrot.slane %v2674_v29, 4  ;;  %v355_v46 = vshll.u32 %v300_v15, 16  ;;  %v7988_v15 = vld [vmem:[%s9189_s22 + $0x18] sm:$0xe] }
  0x28   : > { %v388_v47 = vsel %vm9268_vm5, %v383_v30, %v387_v10  ;;  %v393_v48 = vrot.slane %v392_v32, 4  ;;  %v2682_v27 = vrot.slane %v2680_v34, 5  ;;  %v354_v50 = vrot.slane %v352_v37, 4  ;;  %v7822_v37 = vld [vmem:[%s9189_s22 + $0x20] sm:$0x1] }
  0x29   : > { %v2668_v51 = vrot.slane %v2667_v38, 4  ;;  %v2677_v53 = vor.u32 %v2676_v41, %v2672_v40  ;;  %v357_v54 = vrot.slane %v355_v46, 5  ;;  %v361_v33 = vshll.u32 %v301_v36, 16 }
  0x2a   : > { %v398_v56 = vsel %vm9268_vm5, %v393_v48, %v397_v21  ;;  %v365_v57 = vshrl.u32 %v301_v36, 16  ;;  %v371_v58 = vshll.u32 %v332_v45, 16  ;;  %v797_v59 = vsel %vm9268_vm5, %v9244_v49, %v9204_v19  ;;  %v7944_v19 = vld [vmem:[%s9189_s22 + $0x20] sm:$0x1] }
  0x2b   : > { %v7854_v61 = vcombine.low %v388_v47, %v398_v56  ;;  %v2673_v62 = vsel %vm9268_vm5, %v2668_v51, %v2672_v40  ;;  %v2678_v63 = vrot.slane %v2677_v53, 4  ;;  %v358_v0 = vor.u32 %v357_v54, %v354_v50  ;;  %v9308_v50 = vld [vmem:[%s9189_s22 + $0x1c] sm:$0xf]  ;;  %v9311_v51 = vld [vmem:[%s9189_s22 + $0x20] sm:$0x1] }
  0x2c   : > { %v363_v2 = vrot.slane %v361_v33, 5  ;;  %v367_v3 = vrot.slane %v365_v57, 4  ;;  %v373_v4 = vrot.slane %v371_v58, 5  ;;  %v804_v5 = vshll.u32 %v7821_v55, 16  ;;  %v304_v56 = vld [vmem:[%s9189_s22 + $0x18] sm:$0xf] }
  0x2d   : > { %1298 = vrot.lane.b32.xlu1 %v7854_v61, %s9138_s24  ;;  %v2683_v6 = vsel %vm9268_vm5, %v2678_v63, %v2682_v27  ;;  %v359_v7 = vrot.slane %v358_v0, 4  ;;  %v2685_v49 = vshrl.u32 %v7942_v60, 16  ;;  %v2688_v8 = vshll.u32 %v7942_v60, 16  ;;  %v305_v63 = vld [vmem:[%s9189_s22 + $0x1c] sm:$0xf] }
  0x2e   : > { %v8051_v9 = vcombine.low %v2673_v62, %v2683_v6  ;;  %v368_v10 = vor.u32 %v367_v3, %v363_v2  ;;  %v806_v11 = vrot.slane %v804_v5, 5  ;;  %v2694_v14 = vshll.u32 %v7943_v1, 16  ;;  %v7793_v5 = vld [vmem:[%s9189_s22 + $0x24] sm:$0xf] }
  0x2f   : > { %v364_v16 = vsel %vm9268_vm5, %v359_v7, %v363_v2  ;;  %v2687_v18 = vrot.slane %v2685_v49, 4  ;;  %v2690_v20 = vrot.slane %v2688_v8, 5  ;;  %v2698_v21 = vshrl.u32 %v7943_v1, 16  ;;  %v334_v2 = vld [vmem:[%s9189_s22 + $0x20] sm:$0x1] }
  0x30   : > { %v369_v23 = vrot.slane %v368_v10, 4  ;;  %v807_v24 = vsel %vm9268_vm5, %v9238_v44, %v806_v11  ;;  %v2696_v28 = vrot.slane %v2694_v14, 5  ;;  %v2704_v29 = vshll.u32 %v7944_v19, 16  ;;  %v2435_v44 = vld [vmem:[%s9189_s22 + $0x18] sm:$0xe] }
  0x31   : > { %3396 = vrot.lane.b32.xlu1 %v8051_v9, %s9137_s23  ;;  %v7885_v30 = vcombine.low %v797_v59, %v807_v24  ;;  %v2691_v32 = vor.u32 %v2690_v20, %v2687_v18  ;;  %v2700_v34 = vrot.slane %v2698_v21, 4  ;;  %v8004_v36 = vrot.slane %v7988_v15, 9  ;;  %v7794_v14 = vld [vmem:[%s9189_s22 + $0x28] sm:$0xf] }
  0x32   : > { %v2093_v38 = vshll.u32 %v9236_v43, 16  ;;  %v374_v40 = vsel %vm9268_vm5, %v369_v23, %v373_v4  ;;  %v3117_v41 = vrot.slane %v7943_v1, 5  ;;  %v3120_v45 = vrot.slane %v7944_v19, 5 }
  0x33   : > { %v7853_v46 = vcombine.low %v364_v16, %v374_v40  ;;  %v2692_v47 = vrot.slane %v2691_v32, 4  ;;  %v2701_v48 = vor.u32 %v2700_v34, %v2696_v28  ;;  %v2706_v27 = vrot.slane %v2704_v29, 5 }
  0x34   : > { %v3118_v53 = vsel %vm9217_vm2, %v8004_v36, %v3117_v41  ;;  %v3119_v54 = vrot.slane %v3117_v41, 4  ;;  %v821_v33 = vsel %vm9268_vm5, %v9229_v39, %v9198_v13  ;;  %v828_v55 = vshll.u32 %v7822_v37, 16  ;;  %v307_v36 = vld [vmem:[%s9189_s22 + $0x28] sm:$0xf] }
  0x35   : > { %1296 = vrot.lane.b32.xlu0 %v7853_v46, %s9138_s24  ;;  %1488 = vrot.lane.b32.xlu1 %v7885_v30, %s9139_s25  ;;  %v2697_v57 = vsel %vm9268_vm5, %v2692_v47, %v2696_v28  ;;  %v2702_v58 = vrot.slane %v2701_v48, 4  ;;  %v2111_v59 = vshrl.u32 %v9308_v50, 16  ;;  %v7925_v60 = vrot.slane %v2435_v44, 9  ;;  %v306_v28 = vld [vmem:[%s9189_s22 + $0x24] sm:$0xf] }
  0x36   : > { %v3121_v61 = vsel %vm9217_vm2, %v3119_v54, %v3120_v45  ;;  %v830_v62 = vrot.slane %v828_v55, 5  ;;  %v2516_v13 = vrot.slane %v9308_v50, 5  ;;  %v2519_v39 = vrot.slane %v9311_v51, 5  ;;  %v335_v44 = vld [vmem:[%s9189_s22 + $0x2c] sm:$0x1] }
  0x37   : > { %v2707_v0 = vsel %vm9268_vm5, %v2702_v58, %v2706_v27  ;;  %v8068_v1 = vcombine.low %v3118_v53, %v3121_v61  ;;  %v400_v3 = vshrl.u32 %v304_v56, 16  ;;  %v403_v4 = vshll.u32 %v304_v56, 16  ;;  %v7945_v53 = vld [vmem:[%s9189_s22 + $0x24] sm:$0xf] }
  0x38   : > { %v8052_v6 = vcombine.low %v2697_v57, %v2707_v0  ;;  %v831_v7 = vsel %vm9268_vm5, %v9225_v35, %v830_v62  ;;  %v2517_v19 = vsel %vm9217_vm2, %v7925_v60, %v2516_v13  ;;  %v2518_v49 = vrot.slane %v2516_v13, 4  ;;  %v9359_v57 = vld [vmem:[%s9189_s22 + $0x28] sm:$0xf] }
  0x39   : > { %3478 = vrot.lane.b32.xlu1 %v8068_v1, %s9139_s25  ;;  %v7886_v8 = vcombine.low %v821_v33, %v831_v7  ;;  %v402_v9 = vrot.slane %v400_v3, 4  ;;  %v405_v10 = vrot.slane %v403_v4, 5  ;;  %v409_v11 = vshll.u32 %v305_v63, 16 }
  0x3a   : > { %3398 = vrot.lane.b32.xlu0 %v8052_v6, %s9137_s23  ;;  %v2520_v15 = vsel %vm9217_vm2, %v2518_v49, %v2519_v39  ;;  %v413_v16 = vshrl.u32 %v305_v63, 16  ;;  %v419_v35 = vshll.u32 %v334_v2, 16  ;;  %v833_v18 = vshrl.u32 %v7793_v5, 16  ;;  %v9363_v63 = vld [vmem:[%s9189_s22 + $0x2c] sm:$0x1] }
  0x3b   : > { %v8037_v20 = vcombine.low %v2517_v19, %v2520_v15  ;;  %v406_v21 = vor.u32 %v405_v10, %v402_v9  ;;  %v411_v23 = vrot.slane %v409_v11, 5  ;;  %v836_v24 = vshll.u32 %v7793_v5, 16  ;;  %v2436_v9 = vld [vmem:[%s9189_s22 + $0x24] sm:$0xe] }
  0x3c   : > { %v415_v29 = vrot.slane %v413_v16, 4  ;;  %v421_v30 = vrot.slane %v419_v35, 5  ;;  %v9345_v32 = vrot.slane %v833_v18, 4  ;;  %v842_v34 = vshll.u32 %v7794_v14, 16  ;;  %v9375_v16 = vld [vmem:[%s9189_s22 + $0x2c] sm:$0x1] }
  0x3d   : > { %3320 = vrot.lane.b32.xlu1 %v8037_v20, %s9138_s24  ;;  %v407_v37 = vrot.slane %v406_v21, 4  ;;  %v9349_v40 = vrot.slane %v836_v24, 5  ;;  %v846_v41 = vshrl.u32 %v7794_v14, 16  ;;  %v7871_v45 = vcombine.low %v7793_v5, %v7794_v14 }
  0x3e   : > { %1490 = vrot.lane.b32.xlu0 %v7886_v8, %s9139_s25  ;;  %v416_v46 = vor.u32 %v415_v29, %v411_v23  ;;  %v9353_v47 = vrot.slane %v842_v34, 5  ;;  %v424_v48 = vshrl.u32 %v306_v28, 16  ;;  %v427_v27 = vshll.u32 %v306_v28, 16  ;;  %v9369_v8 = vld [vmem:[%s9189_s22 + $0x28] sm:$0xf] }
  0x3f   : > { %v412_v54 = vsel %vm9268_vm5, %v407_v37, %v411_v23  ;;  %v848_v33 = vrot.slane %v846_v41, 4  ;;  %v433_v55 = vshll.u32 %v307_v36, 16  ;;  %v437_v56 = vshrl.u32 %v307_v36, 16 }
  0x40   : > { %v417_v58 = vrot.slane %v416_v46, 4  ;;  %v426_v60 = vrot.slane %v424_v48, 4  ;;  %v429_v61 = vrot.slane %v427_v27, 5  ;;  %v443_v62 = vshll.u32 %v335_v44, 16 }
  0x41   : > { %1412 = vrot.lane.b32.xlu1 %v7871_v45, %s9137_s23  ;;  %v435_v13 = vrot.slane %v433_v55, 5  ;;  %v439_v39 = vrot.slane %v437_v56, 4  ;;  %v2709_v0 = vshrl.u32 %v7945_v53, 16  ;;  %v2712_v1 = vshll.u32 %v7945_v53, 16  ;;  %v7795_v45 = vld [vmem:[%s9189_s22 + $0x30] sm:$0xf] }
  0x42   : > { %v422_v2 = vsel %vm9268_vm5, %v417_v58, %v421_v30  ;;  %v430_v3 = vor.u32 %v429_v61, %v426_v60  ;;  %v445_v4 = vrot.slane %v443_v62, 5  ;;  %v2718_v5 = vshll.u32 %v9359_v57, 16  ;;  %v7823_v30 = vld [vmem:[%s9189_s22 + $0x2c] sm:$0x1]  ;;  %v7796_v53 = vld [vmem:[%s9189_s22 + $0x34] sm:$0xf] }
  0x43   : > { %v7855_v6 = vcombine.low %v412_v54, %v422_v2  ;;  %v440_v7 = vor.u32 %v439_v39, %v435_v13  ;;  %v2711_v19 = vrot.slane %v2709_v0, 4  ;;  %v2714_v49 = vrot.slane %v2712_v1, 5  ;;  %v7989_v0 = vld [vmem:[%s9189_s22 + $0x24] sm:$0xe] }
  0x44   : > { %v431_v10 = vrot.slane %v430_v3, 4  ;;  %v2720_v11 = vrot.slane %v2718_v5, 5  ;;  %v2722_v14 = vshrl.u32 %v9359_v57, 16  ;;  %v2728_v15 = vshll.u32 %v9363_v63, 16  ;;  %v8928_v1 = vld [vmem:[%s12974_s1] sm:$0xff]  }
  0x45   : > { %v2117_v35 = vshll.u32 %v9311_v51, 16  ;;  %1300 = vrot.lane.b32.xlu0 %v7855_v6, %s9138_s24  ;;  %v441_v18 = vrot.slane %v440_v7, 4  ;;  %v2715_v20 = vor.u32 %v2714_v49, %v2711_v19  ;;  %v2135_v21 = vshrl.u32 %v9369_v8, 16  ;;  %v7948_v6 = vld [vmem:[%s9189_s22 + $0x30] sm:$0xf]  ;;  %v8929_v7 = vld [vmem:[%s12974_s1 + $0x20] sm:$0xff]   ;;  %8730 = vmatprep.subr.bf16.mxu0 %v8928_v1 }
  0x46   : > { %v436_v23 = vsel %vm9268_vm5, %v431_v10, %v435_v13  ;;  %v2724_v24 = vrot.slane %v2722_v14, 4  ;;  %v2730_v28 = vrot.slane %v2728_v15, 5  ;;  %v7926_v29 = vrot.slane %v2436_v9, 9  ;;  %v7950_v14 = vld [vmem:[%s9189_s22 + $0x38] sm:$0x1]  ;;  %8770 = vmatprep.subr.bf16.mxu1 %v8929_v7  ;;  %8731 = vmatpush3.bf16.msra.mxu0 %v8928_v1 }
  0x47   : > { %v446_v34 = vsel %vm9268_vm5, %v441_v18, %v445_v4  ;;  %v2716_v36 = vrot.slane %v2715_v20, 4  ;;  %v2523_v37 = vrot.slane %v9369_v8, 5  ;;  %v2526_v41 = vrot.slane %v9375_v16, 5  ;;  %8771 = vmatpush3.bf16.msra.mxu1 %v8929_v7 }
  0x48   : > { %v7856_v44 = vcombine.low %v436_v23, %v446_v34  ;;  %v2725_v46 = vor.u32 %v2724_v24, %v2720_v11  ;;  %v839_v48 = vor.u32 %v9349_v40, %v9345_v32  ;;  %v849_v27 = vor.u32 %v848_v33, %v9353_v47 }
  0x49   : > { %v2721_v54 = vsel %vm9268_vm5, %v2716_v36, %v2720_v11  ;;  %v2524_v55 = vsel %vm9217_vm2, %v7926_v29, %v2523_v37  ;;  %v2525_v56 = vrot.slane %v2523_v37, 4  ;;  %v852_v58 = vshll.u32 %v7823_v30, 16  ;;  %v7949_v11 = vld [vmem:[%s9189_s22 + $0x34] sm:$0xf]  ;;  %v7990_v30 = vld [vmem:[%s9189_s22 + $0x30] sm:$0xe] }
  0x4a   : > { %1302 = vrot.lane.b32.xlu0 %v7856_v44, %s9138_s24  ;;  %v2726_v60 = vrot.slane %v2725_v46, 4  ;;  %v840_v61 = vrot.slane %v839_v48, 4  ;;  %v850_v62 = vrot.slane %v849_v27, 4  ;;  %v857_v13 = vshrl.u32 %v7795_v45, 16 }
  0x4b   : > { %v2527_v32 = vsel %vm9217_vm2, %v2525_v56, %v2526_v41  ;;  %v854_v40 = vrot.slane %v852_v58, 5  ;;  %v860_v33 = vshll.u32 %v7795_v45, 16  ;;  %v866_v39 = vshll.u32 %v7796_v53, 16 }
  0x4c   : > { %v2731_v2 = vsel %vm9268_vm5, %v2726_v60, %v2730_v28  ;;  %v8038_v3 = vcombine.low %v2524_v55, %v2527_v32  ;;  %v845_v4 = vsel %vm9268_vm5, %v840_v61, %v9353_v47  ;;  %v859_v5 = vrot.slane %v857_v13, 4 }
  0x4d   : > { %v8053_v19 = vcombine.low %v2721_v54, %v2731_v2  ;;  %v855_v49 = vsel %vm9268_vm5, %v850_v62, %v854_v40  ;;  %v862_v9 = vrot.slane %v860_v33, 5  ;;  %v9414_v10 = vrot.slane %v866_v39, 5  ;;  %v7824_v54 = vld [vmem:[%s9189_s22 + $0x38] sm:$0x1]  ;;  %v9432_v40 = vld [vmem:[%s9189_s22 + $0x34] sm:$0xf] }
  0x4e   : > { %3322 = vrot.lane.b32.xlu0 %v8038_v3, %s9138_s24  ;;  %v7887_v47 = vcombine.low %v845_v4, %v855_v49  ;;  %v870_v15 = vshrl.u32 %v7796_v53, 16  ;;  %v7872_v18 = vcombine.low %v7795_v45, %v7796_v53  ;;  %v8005_v20 = vrot.slane %v7989_v0, 9  ;;  %v2437_v2 = vld [vmem:[%s9189_s22 + $0x30] sm:$0xe]  ;;  %v8931_v3 = vld [vmem:[%s12974_s1 + $0x8] sm:$0xff]  }
  0x4f   : > { %3400 = vrot.lane.b32.xlu1 %v8053_v19, %s9137_s23  ;;  %v3124_v23 = vrot.slane %v9359_v57, 5  ;;  %v3127_v24 = vrot.slane %v9363_v63, 5  ;;  %v2733_v28 = vshrl.u32 %v7948_v6, 16  ;;  %v2736_v29 = vshll.u32 %v7948_v6, 16  ;;  %v9442_v19 = vld [vmem:[%s9189_s22 + $0x38] sm:$0x1]  ;;  %8732 = vmatprep.subr.bf16.mxu0 %v8931_v3 }
  0x50   : > { %v872_v34 = vrot.slane %v870_v15, 4  ;;  %v2742_v36 = vshll.u32 %v7949_v11, 16  ;;  %v2746_v37 = vshrl.u32 %v7949_v11, 16  ;;  %v2752_v41 = vshll.u32 %v7950_v14, 16  ;;  %v309_v15 = vld [vmem:[%s9189_s22 + $0x34] sm:$0xf]  ;;  %8733 = vmatpush3.bf16.msra.mxu0 %v8931_v3 }
  0x51   : > { %v3125_v45 = vsel %vm9217_vm2, %v8005_v20, %v3124_v23  ;;  %v3126_v44 = vrot.slane %v3124_v23, 4  ;;  %v2735_v46 = vrot.slane %v2733_v28, 4  ;;  %v2738_v48 = vrot.slane %v2736_v29, 5  ;;  %v336_v28 = vld [vmem:[%s9189_s22 + $0x38] sm:$0x1]  ;;  %v8932_v29 = vld [vmem:[%s12974_s1 + $0x28] sm:$0xff]  }
  0x52   : > { %1414 = vrot.lane.b32.xlu0 %v7872_v18, %s9137_s23  ;;  %v2744_v57 = vrot.slane %v2742_v36, 5  ;;  %v2748_v63 = vrot.slane %v2746_v37, 4  ;;  %v2754_v27 = vrot.slane %v2752_v41, 5  ;;  %v8006_v53 = vrot.slane %v7990_v30, 9  ;;  %v9466_v41 = vld [vmem:[%s9189_s22 + $0x3c] sm:$0xf]  ;;  %8772 = vmatprep.subr.bf16.mxu1 %v8932_v29 }
  0x53   : > { %1492 = vrot.lane.b32.xlu1 %v7887_v47, %s9139_s25  ;;  %v3128_v55 = vsel %vm9217_vm2, %v3126_v44, %v3127_v24  ;;  %v2739_v56 = vor.u32 %v2738_v48, %v2735_v46  ;;  %v3131_v58 = vrot.slane %v7949_v11, 5  ;;  %v3134_v60 = vrot.slane %v7950_v14, 5  ;;  %v308_v47 = vld [vmem:[%s9189_s22 + $0x30] sm:$0xf]  ;;  %8773 = vmatpush3.bf16.msra.mxu1 %v8932_v29 }
  0x54   : > { %v8069_v61 = vcombine.low %v3125_v45, %v3128_v55  ;;  %v2749_v62 = vor.u32 %v2748_v63, %v2744_v57  ;;  %v863_v13 = vor.u32 %v862_v9, %v859_v5  ;;  %v873_v32 = vor.u32 %v872_v34, %v9414_v10 }
  0x55   : > { %v2740_v33 = vrot.slane %v2739_v56, 4  ;;  %v3132_v39 = vsel %vm9217_vm2, %v8006_v53, %v3131_v58  ;;  %v3133_v0 = vrot.slane %v3131_v58, 4  ;;  %v876_v1 = vshll.u32 %v7824_v54, 16  ;;  %v9473_v53 = vld [vmem:[%s9189_s22 + $0x40] sm:$0xf]  ;;  %v8935_v54 = vld [vmem:[%s12974_s1 + $0x10] sm:$0xff]  }
  0x56   : > { %v2141_v4 = vshll.u32 %v9375_v16, 16  ;;  %v2750_v5 = vrot.slane %v2749_v62, 4  ;;  %v864_v6 = vrot.slane %v863_v13, 4  ;;  %v874_v7 = vrot.slane %v873_v32, 4  ;;  %8734 = vmatprep.subr.bf16.mxu0 %v8935_v54 }
  0x57   : > { %3480 = vrot.lane.b32.xlu1 %v8069_v61, %s9139_s25  ;;  %v2745_v49 = vsel %vm9268_vm5, %v2740_v33, %v2744_v57  ;;  %v3135_v9 = vsel %vm9217_vm2, %v3133_v0, %v3134_v60  ;;  %v878_v11 = vrot.slane %v876_v1, 5  ;;  %v2159_v14 = vshrl.u32 %v9432_v40, 16  ;;  %v310_v33 = vld [vmem:[%s9189_s22 + $0x3c] sm:$0xf]  ;;  %8735 = vmatpush3.bf16.msra.mxu0 %v8935_v54 }
  0x58   : > { %v2755_v18 = vsel %vm9268_vm5, %v2750_v5, %v2754_v27  ;;  %v8070_v20 = vcombine.low %v3132_v39, %v3135_v9  ;;  %v869_v23 = vsel %vm9268_vm5, %v864_v6, %v9414_v10  ;;  %v7927_v24 = vrot.slane %v2437_v2, 9  ;;  %v8936_v39 = vld [vmem:[%s12974_s1 + $0x30] sm:$0xff]   ;;  %v311_v5 = vld [vmem:[%s9189_s22 + $0x40] sm:$0xf] }
  0x59   : > { %v8054_v30 = vcombine.low %v2745_v49, %v2755_v18  ;;  %v879_v34 = vsel %vm9268_vm5, %v874_v7, %v878_v11  ;;  %v2530_v36 = vrot.slane %v9432_v40, 5  ;;  %v2533_v37 = vrot.slane %v9442_v19, 5  ;;  %v337_v11 = vld [vmem:[%s9189_s22 + $0x44] sm:$0x1]  ;;  %8774 = vmatprep.subr.bf16.mxu1 %v8936_v39 }
  0x5a   : > { %v7888_v45 = vcombine.low %v869_v23, %v879_v34  ;;  %v448_v10 = vshrl.u32 %v308_v47, 16  ;;  %v451_v44 = vshll.u32 %v308_v47, 16  ;;  %v457_v46 = vshll.u32 %v309_v15, 16  ;;  %v7951_v23 = vld [vmem:[%s9189_s22 + $0x3c] sm:$0xf]  ;;  %8775 = vmatpush3.bf16.msra.mxu1 %v8936_v39 }
  0x5b   : > { %3402 = vrot.lane.b32.xlu0 %v8054_v30, %s9137_s23  ;;  %3482 = vrot.lane.b32.xlu1 %v8070_v20, %s9139_s25  ;;  %v2531_v48 = vsel %vm9217_vm2, %v7927_v24, %v2530_v36  ;;  %v2532_v57 = vrot.slane %v2530_v36, 4  ;;  %v461_v63 = vshrl.u32 %v309_v15, 16  ;;  %v467_v27 = vshll.u32 %v336_v28, 16 }
  0x5c   : > { %v450_v55 = vrot.slane %v448_v10, 4  ;;  %v453_v56 = vrot.slane %v451_v44, 5  ;;  %v459_v58 = vrot.slane %v457_v46, 5  ;;  %v881_v60 = vshrl.u32 %v9466_v41, 16  ;;  %v9505_v10 = vld [vmem:[%s9189_s22 + $0x40] sm:$0xf] }
  0x5d   : > { %v2165_v61 = vshll.u32 %v9442_v19, 16  ;;  %v2534_v62 = vsel %vm9217_vm2, %v2532_v57, %v2533_v37  ;;  %v463_v13 = vrot.slane %v461_v63, 4  ;;  %v884_v32 = vshll.u32 %v9466_v41, 16  ;;  %v9513_v57 = vld [vmem:[%s9189_s22 + $0x44] sm:$0x1] }
  0x5e   : > { %v8039_v0 = vcombine.low %v2531_v48, %v2534_v62  ;;  %v454_v1 = vor.u32 %v453_v56, %v450_v55  ;;  %v469_v2 = vrot.slane %v467_v27, 5  ;;  %v890_v3 = vshll.u32 %v9473_v53, 16  ;;  %v8938_v27 = vld [vmem:[%s12974_s1 + $0x38] sm:$0xff]  }
  0x5f   : > { %1494 = vrot.lane.b32.xlu0 %v7888_v45, %s9139_s25  ;;  %v464_v6 = vor.u32 %v463_v13, %v459_v58  ;;  %v9490_v7 = vrot.slane %v881_v60, 4  ;;  %v9492_v49 = vrot.slane %v884_v32, 5  ;;  %v894_v9 = vshrl.u32 %v9473_v53, 16  ;;  %8776 = vmatprep.subr.bf16.mxu1 %v8938_v27 }
  0x60   : > { %3324 = vrot.lane.b32.xlu1 %v8039_v0, %s9138_s24  ;;  %v455_v47 = vrot.slane %v454_v1, 4  ;;  %v7873_v15 = vcombine.low %v9466_v41, %v9473_v53  ;;  %v472_v18 = vshrl.u32 %v310_v33, 16  ;;  %v475_v20 = vshll.u32 %v310_v33, 16  ;;  %v8937_v41 = vld [vmem:[%s12974_s1 + $0x18] sm:$0xff]   ;;  %8777 = vmatpush3.bf16.msra.mxu1 %v8938_v27 }
  0x61   : > { %v465_v24 = vrot.slane %v464_v6, 4  ;;  %v9500_v28 = vrot.slane %v890_v3, 5  ;;  %v481_v29 = vshll.u32 %v311_v5, 16  ;;  %v485_v30 = vshrl.u32 %v311_v5, 16  ;;  %8736 = vmatprep.subr.bf16.mxu0 %v8937_v41  ;;  %v2438_v33 = vld [vmem:[%s9189_s22 + $0x3c] sm:$0xe] }
  0x62   : > { %v460_v34 = vsel %vm9268_vm5, %v455_v47, %v459_v58  ;;  %v474_v36 = vrot.slane %v472_v18, 4  ;;  %v477_v37 = vrot.slane %v475_v20, 5  ;;  %v491_v45 = vshll.u32 %v337_v11, 16  ;;  %v9520_v58 = vld [vmem:[%s9189_s22 + $0x40] sm:$0xf]  ;;  %8737 = vmatpush3.bf16.msra.mxu0 %v8937_v41 }
  0x63   : > { %v470_v44 = vsel %vm9268_vm5, %v465_v24, %v469_v2  ;;  %v483_v46 = vrot.slane %v481_v29, 5  ;;  %v487_v48 = vrot.slane %v485_v30, 4  ;;  %v2757_v63 = vshrl.u32 %v7951_v23, 16  ;;  %v9528_v3 = vld [vmem:[%s9189_s22 + $0x44] sm:$0x1] }
  0x64   : > { %v7857_v53 = vcombine.low %v460_v34, %v470_v44  ;;  %1416 = vrot.lane.b32.xlu1 %v7873_v15, %s9137_s23  ;;  %v478_v54 = vor.u32 %v477_v37, %v474_v36  ;;  %v493_v55 = vrot.slane %v491_v45, 5  ;;  %v2760_v56 = vshll.u32 %v7951_v23, 16  ;;  %v7799_v36 = vld [vmem:[%s9189_s22 + $0x48] sm:$0xf] }
  0x65   : > { %v488_v60 = vor.u32 %v487_v48, %v483_v46  ;;  %v2759_v62 = vrot.slane %v2757_v63, 4  ;;  %v2766_v13 = vshll.u32 %v9505_v10, 16  ;;  %v2770_v32 = vshrl.u32 %v9505_v10, 16 }
  0x66   : > { %1304 = vrot.lane.b32.xlu0 %v7857_v53, %s9138_s24  ;;  %v896_v39 = vrot.slane %v894_v9, 4  ;;  %v479_v0 = vrot.slane %v478_v54, 4  ;;  %v2762_v1 = vrot.slane %v2760_v56, 5  ;;  %v2776_v2 = vshll.u32 %v9513_v57, 16  ;;  %v7825_v9 = vld [vmem:[%s9189_s22 + $0x44] sm:$0x1] }
  0x67   : > { %v489_v5 = vrot.slane %v488_v60, 4  ;;  %v2768_v6 = vrot.slane %v2766_v13, 5  ;;  %v2772_v11 = vrot.slane %v2770_v32, 4  ;;  %v7928_v23 = vrot.slane %v2438_v33, 9  ;;  %v7800_v56 = vld [vmem:[%s9189_s22 + $0x4c] sm:$0xf] }
  0x68   : > { %v484_v15 = vsel %vm9268_vm5, %v479_v0, %v483_v46  ;;  %v2763_v18 = vor.u32 %v2762_v1, %v2759_v62  ;;  %v2778_v20 = vrot.slane %v2776_v2, 5  ;;  %v2537_v30 = vrot.slane %v9520_v58, 5  ;;  %v7991_v32 = vld [vmem:[%s9189_s22 + $0x3c] sm:$0xe]  ;;  %v7954_v2 = vld [vmem:[%s9189_s22 + $0x48] sm:$0xf] }
  0x69   : > { %v494_v24 = vsel %vm9268_vm5, %v489_v5, %v493_v55  ;;  %v2773_v29 = vor.u32 %v2772_v11, %v2768_v6  ;;  %v2540_v34 = vrot.slane %v9528_v3, 5  ;;  %v887_v41 = vor.u32 %v9492_v49, %v9490_v7 }
  0x6a   : > { %v7858_v37 = vcombine.low %v484_v15, %v494_v24  ;;  %v2764_v45 = vrot.slane %v2763_v18, 4  ;;  %v897_v44 = vor.u32 %v896_v39, %v9500_v28  ;;  %v2538_v48 = vsel %vm9217_vm2, %v7928_v23, %v2537_v30  ;;  %v7955_v18 = vld [vmem:[%s9189_s22 + $0x4c] sm:$0xf] }
  0x6b   : > { %v2774_v46 = vrot.slane %v2773_v29, 4  ;;  %v2539_v63 = vrot.slane %v2537_v30, 4  ;;  %v900_v27 = vshll.u32 %v7825_v9, 16  ;;  %v888_v54 = vrot.slane %v887_v41, 4  ;;  %v7956_v29 = vld [vmem:[%s9189_s22 + $0x50] sm:$0x1] }
  0x6c   : > { %1306 = vrot.lane.b32.xlu0 %v7858_v37, %s9138_s24  ;;  %v2769_v53 = vsel %vm9268_vm5, %v2764_v45, %v2768_v6  ;;  %v898_v55 = vrot.slane %v897_v44, 4  ;;  %v905_v7 = vshrl.u32 %v7799_v36, 16  ;;  %v908_v13 = vshll.u32 %v7799_v36, 16 }
  0x6d   : > { %v2779_v49 = vsel %vm9268_vm5, %v2774_v46, %v2778_v20  ;;  %v2541_v60 = vsel %vm9217_vm2, %v2539_v63, %v2540_v34  ;;  %v902_v62 = vrot.slane %v900_v27, 5  ;;  %v893_v0 = vsel %vm9268_vm5, %v888_v54, %v9500_v28  ;;  %v7992_v28 = vld [vmem:[%s9189_s22 + $0x48] sm:$0xe] }
  0x6e   : > { %v8055_v33 = vcombine.low %v2769_v53, %v2779_v49  ;;  %v8040_v39 = vcombine.low %v2538_v48, %v2541_v60  ;;  %v907_v1 = vrot.slane %v905_v7, 4  ;;  %v910_v6 = vrot.slane %v908_v13, 5 }
  0x6f   : > { %v903_v5 = vsel %vm9268_vm5, %v898_v55, %v902_v62  ;;  %v914_v11 = vshll.u32 %v7800_v56, 16  ;;  %v918_v15 = vshrl.u32 %v7800_v56, 16  ;;  %v7874_v23 = vcombine.low %v7799_v36, %v7800_v56  ;;  %v7826_v56 = vld [vmem:[%s9189_s22 + $0x50] sm:$0x1] }
  0x70   : > { %3404 = vrot.lane.b32.xlu1 %v8055_v33, %s9137_s23  ;;  %3326 = vrot.lane.b32.xlu0 %v8040_v39, %s9138_s24  ;;  %v7889_v20 = vcombine.low %v893_v0, %v903_v5  ;;  %v8007_v9 = vrot.slane %v7991_v32, 9  ;;  %v3138_v24 = vrot.slane %v9505_v10, 5  ;;  %v3141_v37 = vrot.slane %v9513_v57, 5  ;;  %v9577_v0 = vld [vmem:[%s9189_s22 + $0x4c] sm:$0xf] }
  0x71   : > { %v916_v30 = vrot.slane %v914_v11, 5  ;;  %v920_v34 = vrot.slane %v918_v15, 4  ;;  %v2781_v45 = vshrl.u32 %v7954_v2, 16  ;;  %v2784_v46 = vshll.u32 %v7954_v2, 16 }
  0x72   : > { %v3139_v41 = vsel %vm9217_vm2, %v8007_v9, %v3138_v24  ;;  %v3140_v44 = vrot.slane %v3138_v24, 4  ;;  %v2790_v48 = vshll.u32 %v7955_v18, 16  ;;  %v2794_v27 = vshrl.u32 %v7955_v18, 16 }
  0x73   : > { %v2783_v63 = vrot.slane %v2781_v45, 4  ;;  %v2800_v36 = vshll.u32 %v7956_v29, 16  ;;  %v8008_v53 = vrot.slane %v7992_v28, 9  ;;  %v2786_v57 = vrot.slane %v2784_v46, 5 }
  0x74   : > { %1496 = vrot.lane.b32.xlu1 %v7889_v20, %s9139_s25  ;;  %1418 = vrot.lane.b32.xlu0 %v7874_v23, %s9137_s23  ;;  %v3142_v10 = vsel %vm9217_vm2, %v3140_v44, %v3141_v37  ;;  %v2792_v54 = vrot.slane %v2790_v48, 5  ;;  %v3145_v55 = vrot.slane %v7955_v18, 5  ;;  %v2796_v60 = vrot.slane %v2794_v27, 4  ;;  %v9580_v18 = vld [vmem:[%s9189_s22 + $0x50] sm:$0x1] }
  0x75   : > { %v8071_v49 = vcombine.low %v3139_v41, %v3142_v10  ;;  %v3148_v62 = vrot.slane %v7956_v29, 5  ;;  %v2787_v13 = vor.u32 %v2786_v57, %v2783_v63  ;;  %v911_v39 = vor.u32 %v910_v6, %v907_v1  ;;  %v2439_v20 = vld [vmem:[%s9189_s22 + $0x48] sm:$0xe]  ;;  %v313_v48 = vld [vmem:[%s9189_s22 + $0x4c] sm:$0xf] }
  0x76   : > { %v3146_v32 = vsel %vm9217_vm2, %v8008_v53, %v3145_v55  ;;  %v3147_v33 = vrot.slane %v3145_v55, 4  ;;  %v2797_v2 = vor.u32 %v2796_v60, %v2792_v54  ;;  %v2802_v5 = vrot.slane %v2800_v36, 5  ;;  %v312_v6 = vld [vmem:[%s9189_s22 + $0x48] sm:$0xf]  ;;  %v338_v53 = vld [vmem:[%s9189_s22 + $0x50] sm:$0x1] }
  0x77   : > { %v921_v11 = vor.u32 %v920_v34, %v916_v30  ;;  %v924_v15 = vshll.u32 %v7826_v56, 16  ;;  %v2788_v23 = vrot.slane %v2787_v13, 4  ;;  %v912_v24 = vrot.slane %v911_v39, 4  ;;  %v7801_v57 = vld [vmem:[%s9189_s22 + $0x54] sm:$0xf] }
  0x78   : > { %3484 = vrot.lane.b32.xlu1 %v8071_v49, %s9139_s25  ;;  %v3149_v9 = vsel %vm9217_vm2, %v3147_v33, %v3148_v62  ;;  %v2798_v29 = vrot.slane %v2797_v2, 4  ;;  %v7929_v44 = vrot.slane %v2439_v20, 9  ;;  %v2544_v46 = vrot.slane %v9577_v0, 5  ;;  %v7802_v49 = vld [vmem:[%s9189_s22 + $0x58] sm:$0xf] }
  0x79   : > { %v8072_v28 = vcombine.low %v3146_v32, %v3149_v9  ;;  %v922_v34 = vrot.slane %v921_v11, 4  ;;  %v926_v37 = vrot.slane %v924_v15, 5  ;;  %v2793_v45 = vsel %vm9268_vm5, %v2788_v23, %v2792_v54  ;;  %v314_v33 = vld [vmem:[%s9189_s22 + $0x54] sm:$0xf]  ;;  %v315_v15 = vld [vmem:[%s9189_s22 + $0x58] sm:$0xf] }
  0x7a   : > { %v917_v41 = vsel %vm9268_vm5, %v912_v24, %v916_v30  ;;  %v2803_v63 = vsel %vm9268_vm5, %v2798_v29, %v2802_v5  ;;  %v2547_v36 = vrot.slane %v9580_v18, 5  ;;  %v496_v10 = vshrl.u32 %v312_v6, 16 }
  0x7b   : > { %v927_v27 = vsel %vm9268_vm5, %v922_v34, %v926_v37  ;;  %v8056_v54 = vcombine.low %v2793_v45, %v2803_v63  ;;  %v2545_v55 = vsel %vm9217_vm2, %v7929_v44, %v2544_v46  ;;  %v2546_v56 = vrot.slane %v2544_v46, 4  ;;  %v339_v46 = vld [vmem:[%s9189_s22 + $0x5c] sm:$0x1] }
  0x7c   : > { %3486 = vrot.lane.b32.xlu1 %v8072_v28, %s9139_s25  ;;  %v7890_v30 = vcombine.low %v917_v41, %v927_v27  ;;  %v498_v60 = vrot.slane %v496_v10, 4  ;;  %v499_v62 = vshll.u32 %v312_v6, 16  ;;  %v505_v13 = vshll.u32 %v313_v48, 16 }
  0x7d   : > { %v509_v32 = vshrl.u32 %v313_v48, 16  ;;  %3406 = vrot.lane.b32.xlu0 %v8056_v54, %s9137_s23  ;;  %v2548_v39 = vsel %vm9217_vm2, %v2546_v56, %v2547_v36  ;;  %v515_v2 = vshll.u32 %v338_v53, 16  ;;  %v929_v5 = vshrl.u32 %v7801_v57, 16  ;;  %v7957_v53 = vld [vmem:[%s9189_s22 + $0x54] sm:$0xf] }
  0x7e   : > { %v932_v11 = vshll.u32 %v7801_v57, 16  ;;  %v8041_v20 = vcombine.low %v2545_v55, %v2548_v39  ;;  %v501_v23 = vrot.slane %v499_v62, 5  ;;  %v507_v9 = vrot.slane %v505_v13, 5  ;;  %v9630_v39 = vld [vmem:[%s9189_s22 + $0x5c] sm:$0x1] }
  0x7f   : > { %v511_v24 = vrot.slane %v509_v32, 4  ;;  %v517_v29 = vrot.slane %v515_v2, 5  ;;  %v9611_v28 = vrot.slane %v929_v5, 4  ;;  %v938_v34 = vshll.u32 %v7802_v49, 16  ;;  %v9622_v32 = vld [vmem:[%s9189_s22 + $0x58] sm:$0xf] }
  0x80   : > { %3328 = vrot.lane.b32.xlu1 %v8041_v20, %s9138_s24  ;;  %v502_v37 = vor.u32 %v501_v23, %v498_v60  ;;  %v9614_v41 = vrot.slane %v932_v11, 5  ;;  %v7875_v44 = vcombine.low %v7801_v57, %v7802_v49  ;;  %v942_v48 = vshrl.u32 %v7802_v49, 16  ;;  %v9633_v23 = vld [vmem:[%s9189_s22 + $0x58] sm:$0xf] }
  0x81   : > { %v512_v45 = vor.u32 %v511_v24, %v507_v9  ;;  %1498 = vrot.lane.b32.xlu0 %v7890_v30, %s9139_s25  ;;  %v520_v63 = vshrl.u32 %v314_v33, 16  ;;  %v523_v27 = vshll.u32 %v314_v33, 16  ;;  %v529_v36 = vshll.u32 %v315_v15, 16 }
  0x82   : > { %v503_v10 = vrot.slane %v502_v37, 4  ;;  %v9619_v55 = vrot.slane %v938_v34, 5  ;;  %v533_v56 = vshrl.u32 %v315_v15, 16  ;;  %v539_v57 = vshll.u32 %v339_v46, 16 }
  0x83   : > { %v513_v54 = vrot.slane %v512_v45, 4  ;;  %v522_v60 = vrot.slane %v520_v63, 4  ;;  %v525_v62 = vrot.slane %v523_v27, 5  ;;  %v531_v13 = vrot.slane %v529_v36, 5  ;;  %v9641_v27 = vld [vmem:[%s9189_s22 + $0x5c] sm:$0x1] }
  0x84   : > { %v508_v30 = vsel %vm9268_vm5, %v503_v10, %v507_v9  ;;  %1420 = vrot.lane.b32.xlu1 %v7875_v44, %s9137_s23  ;;  %v535_v33 = vrot.slane %v533_v56, 4  ;;  %v2805_v2 = vshrl.u32 %v7957_v53, 16  ;;  %v541_v15 = vrot.slane %v539_v57, 5 }
  0x85   : > { %v518_v49 = vsel %vm9268_vm5, %v513_v54, %v517_v29  ;;  %v526_v11 = vor.u32 %v525_v62, %v522_v60  ;;  %v2808_v20 = vshll.u32 %v7957_v53, 16  ;;  %v2814_v9 = vshll.u32 %v9622_v32, 16  ;;  %v2440_v29 = vld [vmem:[%s9189_s22 + $0x54] sm:$0xe] }
  0x86   : > { %v7859_v5 = vcombine.low %v508_v30, %v518_v49  ;;  %v536_v24 = vor.u32 %v535_v33, %v531_v13  ;;  %v2807_v34 = vrot.slane %v2805_v2, 4  ;;  %v2818_v37 = vshrl.u32 %v9622_v32, 16  ;;  %v7827_v30 = vld [vmem:[%s9189_s22 + $0x5c] sm:$0x1] }
  0x87   : > { %v944_v45 = vrot.slane %v942_v48, 4  ;;  %v527_v44 = vrot.slane %v526_v11, 4  ;;  %v2810_v46 = vrot.slane %v2808_v20, 5  ;;  %v2824_v63 = vshll.u32 %v9630_v39, 16 }
  0x88   : > { %1308 = vrot.lane.b32.xlu0 %v7859_v5, %s9138_s24  ;;  %v537_v36 = vrot.slane %v536_v24, 4  ;;  %v2816_v53 = vrot.slane %v2814_v9, 5  ;;  %v2820_v10 = vrot.slane %v2818_v37, 4  ;;  %v7930_v57 = vrot.slane %v2440_v29, 9  ;;  %v7803_v5 = vld [vmem:[%s9189_s22 + $0x60] sm:$0xf] }
  0x89   : > { %v532_v56 = vsel %vm9268_vm5, %v527_v44, %v531_v13  ;;  %v2811_v60 = vor.u32 %v2810_v46, %v2807_v34  ;;  %v2826_v62 = vrot.slane %v2824_v63, 5  ;;  %v2551_v33 = vrot.slane %v9633_v23, 5  ;;  %v7804_v63 = vld [vmem:[%s9189_s22 + $0x64] sm:$0xf] }
  0x8a   : > { %v542_v48 = vsel %vm9268_vm5, %v537_v36, %v541_v15  ;;  %v2821_v49 = vor.u32 %v2820_v10, %v2816_v53  ;;  %v2554_v2 = vrot.slane %v9641_v27, 5  ;;  %v935_v24 = vor.u32 %v9614_v41, %v9611_v28 }
  0x8b   : > { %v7860_v11 = vcombine.low %v532_v56, %v542_v48  ;;  %v2812_v20 = vrot.slane %v2811_v60, 4  ;;  %v945_v13 = vor.u32 %v944_v45, %v9619_v55  ;;  %v2552_v9 = vsel %vm9217_vm2, %v7930_v57, %v2551_v33  ;;  %v7993_v56 = vld [vmem:[%s9189_s22 + $0x54] sm:$0xe]  ;;  %v7960_v48 = vld [vmem:[%s9189_s22 + $0x60] sm:$0xf] }
  0x8c   : > { %v2822_v34 = vrot.slane %v2821_v49, 4  ;;  %v2553_v15 = vrot.slane %v2551_v33, 4  ;;  %v948_v37 = vshll.u32 %v7827_v30, 16  ;;  %v936_v44 = vrot.slane %v935_v24, 4 }
  0x8d   : > { %1310 = vrot.lane.b32.xlu0 %v7860_v11, %s9138_s24  ;;  %v2817_v29 = vsel %vm9268_vm5, %v2812_v20, %v2816_v53  ;;  %v946_v46 = vrot.slane %v945_v13, 4  ;;  %v953_v28 = vshrl.u32 %v7803_v5, 16  ;;  %v956_v10 = vshll.u32 %v7803_v5, 16 }
  0x8e   : > { %v2827_v41 = vsel %vm9268_vm5, %v2822_v34, %v2826_v62  ;;  %v2555_v45 = vsel %vm9217_vm2, %v2553_v15, %v2554_v2  ;;  %v950_v36 = vrot.slane %v948_v37, 5  ;;  %v941_v53 = vsel %vm9268_vm5, %v936_v44, %v9619_v55  ;;  %v7961_v2 = vld [vmem:[%s9189_s22 + $0x64] sm:$0xf]  ;;  %v7994_v55 = vld [vmem:[%s9189_s22 + $0x60] sm:$0xe] }
  0x8f   : > { %v8057_v60 = vcombine.low %v2817_v29, %v2827_v41  ;;  %v8042_v57 = vcombine.low %v2552_v9, %v2555_v45  ;;  %v955_v30 = vrot.slane %v953_v28, 4  ;;  %v958_v62 = vrot.slane %v956_v10, 5  ;;  %v7962_v9 = vld [vmem:[%s9189_s22 + $0x68] sm:$0x1] }
  0x90   : > { %v951_v49 = vsel %vm9268_vm5, %v946_v46, %v950_v36  ;;  %v962_v33 = vshll.u32 %v7804_v63, 16  ;;  %v966_v11 = vshrl.u32 %v7804_v63, 16  ;;  %v7876_v24 = vcombine.low %v7803_v5, %v7804_v63 }
  0x91   : > { %3408 = vrot.lane.b32.xlu1 %v8057_v60, %s9137_s23  ;;  %3330 = vrot.lane.b32.xlu0 %v8042_v57, %s9138_s24  ;;  %v7891_v20 = vcombine.low %v941_v53, %v951_v49  ;;  %v8009_v13 = vrot.slane %v7993_v56, 9  ;;  %v3152_v34 = vrot.slane %v9622_v32, 5  ;;  %v3155_v29 = vrot.slane %v9630_v39, 5  ;;  %v7828_v57 = vld [vmem:[%s9189_s22 + $0x68] sm:$0x1] }
  0x92   : > { %v964_v15 = vrot.slane %v962_v33, 5  ;;  %v968_v37 = vrot.slane %v966_v11, 4  ;;  %v2829_v44 = vshrl.u32 %v7960_v48, 16  ;;  %v2832_v41 = vshll.u32 %v7960_v48, 16 }
  0x93   : > { %v3153_v46 = vsel %vm9217_vm2, %v8009_v13, %v3152_v34  ;;  %v3154_v28 = vrot.slane %v3152_v34, 4  ;;  %v2838_v45 = vshll.u32 %v7961_v2, 16  ;;  %v2842_v10 = vshrl.u32 %v7961_v2, 16  ;;  %v9690_v34 = vld [vmem:[%s9189_s22 + $0x64] sm:$0xf] }
  0x94   : > { %v2831_v36 = vrot.slane %v2829_v44, 4  ;;  %v2848_v5 = vshll.u32 %v7962_v9, 16  ;;  %v8010_v63 = vrot.slane %v7994_v55, 9  ;;  %v2834_v39 = vrot.slane %v2832_v41, 5  ;;  %v2441_v41 = vld [vmem:[%s9189_s22 + $0x60] sm:$0xe] }
  0x95   : > { %1500 = vrot.lane.b32.xlu1 %v7891_v20, %s9139_s25  ;;  %1422 = vrot.lane.b32.xlu0 %v7876_v24, %s9137_s23  ;;  %v3156_v32 = vsel %vm9217_vm2, %v3154_v28, %v3155_v29  ;;  %v2840_v56 = vrot.slane %v2838_v45, 5  ;;  %v3159_v60 = vrot.slane %v7961_v2, 5  ;;  %v2844_v49 = vrot.slane %v2842_v10, 4  ;;  %v9693_v28 = vld [vmem:[%s9189_s22 + $0x68] sm:$0x1] }
  0x96   : > { %v8073_v48 = vcombine.low %v3153_v46, %v3156_v32  ;;  %v3162_v33 = vrot.slane %v7962_v9, 5  ;;  %v2835_v11 = vor.u32 %v2834_v39, %v2831_v36  ;;  %v959_v13 = vor.u32 %v958_v62, %v955_v30  ;;  %v316_v62 = vld [vmem:[%s9189_s22 + $0x60] sm:$0xf] }
  0x97   : > { %v3160_v20 = vsel %vm9217_vm2, %v8010_v63, %v3159_v60  ;;  %v3161_v24 = vrot.slane %v3159_v60, 4  ;;  %v2845_v55 = vor.u32 %v2844_v49, %v2840_v56  ;;  %v2850_v29 = vrot.slane %v2848_v5, 5  ;;  %v317_v63 = vld [vmem:[%s9189_s22 + $0x64] sm:$0xf]  ;;  %v7805_v49 = vld [vmem:[%s9189_s22 + $0x6c] sm:$0xf] }
  0x98   : > { %v969_v2 = vor.u32 %v968_v37, %v964_v15  ;;  %v972_v44 = vshll.u32 %v7828_v57, 16  ;;  %v2836_v9 = vrot.slane %v2835_v11, 4  ;;  %v960_v45 = vrot.slane %v959_v13, 4 }
  0x99   : > { %3488 = vrot.lane.b32.xlu1 %v8073_v48, %s9139_s25  ;;  %v3163_v46 = vsel %vm9217_vm2, %v3161_v24, %v3162_v33  ;;  %v2846_v36 = vrot.slane %v2845_v55, 4  ;;  %v7931_v60 = vrot.slane %v2441_v41, 9  ;;  %v2558_v57 = vrot.slane %v9690_v34, 5  ;;  %v340_v48 = vld [vmem:[%s9189_s22 + $0x68] sm:$0x1] }
  0x9a   : > { %v8074_v10 = vcombine.low %v3160_v20, %v3163_v46  ;;  %v970_v5 = vrot.slane %v969_v2, 4  ;;  %v974_v37 = vrot.slane %v972_v44, 5  ;;  %v2841_v32 = vsel %vm9268_vm5, %v2836_v9, %v2840_v56  ;;  %v7806_v2 = vld [vmem:[%s9189_s22 + $0x70] sm:$0xf]  ;;  %v318_v46 = vld [vmem:[%s9189_s22 + $0x6c] sm:$0xf] }
  0x9b   : > { %v965_v39 = vsel %vm9268_vm5, %v960_v45, %v964_v15  ;;  %v2851_v33 = vsel %vm9268_vm5, %v2846_v36, %v2850_v29  ;;  %v2561_v20 = vrot.slane %v9693_v28, 5  ;;  %v544_v24 = vshrl.u32 %v316_v62, 16 }
  0x9c   : > { %v975_v11 = vsel %vm9268_vm5, %v970_v5, %v974_v37  ;;  %v8058_v13 = vcombine.low %v2841_v32, %v2851_v33  ;;  %v2559_v56 = vsel %vm9217_vm2, %v7931_v60, %v2558_v57  ;;  %v2560_v55 = vrot.slane %v2558_v57, 4  ;;  %v319_v37 = vld [vmem:[%s9189_s22 + $0x70] sm:$0xf]  ;;  %v341_v33 = vld [vmem:[%s9189_s22 + $0x74] sm:$0x1] }
  0x9d   : > { %3490 = vrot.lane.b32.xlu1 %v8074_v10, %s9139_s25  ;;  %v7892_v15 = vcombine.low %v965_v39, %v975_v11  ;;  %v546_v44 = vrot.slane %v544_v24, 4  ;;  %v547_v41 = vshll.u32 %v316_v62, 16  ;;  %v553_v29 = vshll.u32 %v317_v63, 16 }
  0x9e   : > { %v557_v9 = vshrl.u32 %v317_v63, 16  ;;  %3410 = vrot.lane.b32.xlu0 %v8058_v13, %s9137_s23  ;;  %v2562_v45 = vsel %vm9217_vm2, %v2560_v55, %v2561_v20  ;;  %v563_v36 = vshll.u32 %v340_v48, 16  ;;  %v977_v5 = vshrl.u32 %v7805_v49, 16 }
  0x9f   : > { %v980_v10 = vshll.u32 %v7805_v49, 16  ;;  %v8043_v32 = vcombine.low %v2559_v56, %v2562_v45  ;;  %v549_v39 = vrot.slane %v547_v41, 5  ;;  %v555_v60 = vrot.slane %v553_v29, 5  ;;  %v7963_v56 = vld [vmem:[%s9189_s22 + $0x6c] sm:$0xf] }
  0xa0   : > { %v559_v57 = vrot.slane %v557_v9, 4  ;;  %v565_v11 = vrot.slane %v563_v36, 5  ;;  %v9725_v63 = vrot.slane %v977_v5, 4  ;;  %v986_v24 = vshll.u32 %v7806_v2, 16 }
  0xa1   : > { %3332 = vrot.lane.b32.xlu1 %v8043_v32, %s9138_s24  ;;  %v550_v20 = vor.u32 %v549_v39, %v546_v44  ;;  %v9728_v13 = vrot.slane %v980_v10, 5  ;;  %v7877_v55 = vcombine.low %v7805_v49, %v7806_v2  ;;  %v990_v41 = vshrl.u32 %v7806_v2, 16  ;;  %v9735_v32 = vld [vmem:[%s9189_s22 + $0x70] sm:$0xf] }
  0xa2   : > { %v560_v48 = vor.u32 %v559_v57, %v555_v60  ;;  %1502 = vrot.lane.b32.xlu0 %v7892_v15, %s9139_s25  ;;  %v568_v29 = vshrl.u32 %v318_v46, 16  ;;  %v571_v9 = vshll.u32 %v318_v46, 16  ;;  %v577_v45 = vshll.u32 %v319_v37, 16  ;;  %v9738_v57 = vld [vmem:[%s9189_s22 + $0x74] sm:$0x1] }
  0xa3   : > { %v551_v36 = vrot.slane %v550_v20, 4  ;;  %v9732_v62 = vrot.slane %v986_v24, 5  ;;  %v581_v30 = vshrl.u32 %v319_v37, 16  ;;  %v587_v39 = vshll.u32 %v341_v33, 16  ;;  %v9749_v33 = vld [vmem:[%s9189_s22 + $0x74] sm:$0x1] }
  0xa4   : > { %v561_v5 = vrot.slane %v560_v48, 4  ;;  %v570_v44 = vrot.slane %v568_v29, 4  ;;  %v573_v10 = vrot.slane %v571_v9, 5  ;;  %v579_v49 = vrot.slane %v577_v45, 5  ;;  %v9746_v9 = vld [vmem:[%s9189_s22 + $0x70] sm:$0xf] }
  0xa5   : > { %v556_v15 = vsel %vm9268_vm5, %v551_v36, %v555_v60  ;;  %1424 = vrot.lane.b32.xlu1 %v7877_v55, %s9137_s23  ;;  %v583_v46 = vrot.slane %v581_v30, 4  ;;  %v2853_v37 = vshrl.u32 %v7963_v56, 16  ;;  %v589_v48 = vrot.slane %v587_v39, 5 }
  0xa6   : > { %v566_v2 = vsel %vm9268_vm5, %v561_v5, %v565_v11  ;;  %v574_v20 = vor.u32 %v573_v10, %v570_v44  ;;  %v2856_v29 = vshll.u32 %v7963_v56, 16  ;;  %v2862_v60 = vshll.u32 %v9735_v32, 16  ;;  %v2442_v11 = vld [vmem:[%s9189_s22 + $0x6c] sm:$0xe]  ;;  %v7829_v56 = vld [vmem:[%s9189_s22 + $0x74] sm:$0x1] }
  0xa7   : > { %v7861_v24 = vcombine.low %v556_v15, %v566_v2  ;;  %v584_v45 = vor.u32 %v583_v46, %v579_v49  ;;  %v2855_v53 = vrot.slane %v2853_v37, 4  ;;  %v2866_v36 = vshrl.u32 %v9735_v32, 16 }
  0xa8   : > { %v992_v30 = vrot.slane %v990_v41, 4  ;;  %v575_v55 = vrot.slane %v574_v20, 4  ;;  %v2858_v5 = vrot.slane %v2856_v29, 5  ;;  %v2872_v44 = vshll.u32 %v9738_v57, 16 }
  0xa9   : > { %1312 = vrot.lane.b32.xlu0 %v7861_v24, %s9138_s24  ;;  %v585_v10 = vrot.slane %v584_v45, 4  ;;  %v2864_v39 = vrot.slane %v2862_v60, 5  ;;  %v2868_v15 = vrot.slane %v2866_v36, 4  ;;  %v7932_v6 = vrot.slane %v2442_v11, 9  ;;  %v7807_v45 = vld [vmem:[%s9189_s22 + $0x78] sm:$0xf] }
  0xaa   : > { %v580_v46 = vsel %vm9268_vm5, %v575_v55, %v579_v49  ;;  %v2859_v37 = vor.u32 %v2858_v5, %v2855_v53  ;;  %v2874_v54 = vrot.slane %v2872_v44, 5  ;;  %v2565_v20 = vrot.slane %v9746_v9, 5 }
  0xab   : > { %v590_v41 = vsel %vm9268_vm5, %v585_v10, %v589_v48  ;;  %v2869_v24 = vor.u32 %v2868_v15, %v2864_v39  ;;  %v2568_v29 = vrot.slane %v9749_v33, 5  ;;  %v983_v2 = vor.u32 %v9728_v13, %v9725_v63  ;;  %v7808_v15 = vld [vmem:[%s9189_s22 + $0x7c] sm:$0xf] }
  0xac   : > { %v7862_v60 = vcombine.low %v580_v46, %v590_v41  ;;  %v2860_v36 = vrot.slane %v2859_v37, 4  ;;  %v993_v53 = vor.u32 %v992_v30, %v9732_v62  ;;  %v2566_v11 = vsel %vm9217_vm2, %v7932_v6, %v2565_v20 }
  0xad   : > { %v2870_v49 = vrot.slane %v2869_v24, 4  ;;  %v2567_v48 = vrot.slane %v2565_v20, 4  ;;  %v996_v55 = vshll.u32 %v7829_v56, 16  ;;  %v984_v44 = vrot.slane %v983_v2, 4  ;;  %v7995_v56 = vld [vmem:[%s9189_s22 + $0x6c] sm:$0xe] }
  0xae   : > { %1314 = vrot.lane.b32.xlu0 %v7862_v60, %s9138_s24  ;;  %v2865_v5 = vsel %vm9268_vm5, %v2860_v36, %v2864_v39  ;;  %v994_v10 = vrot.slane %v993_v53, 4  ;;  %v1001_v63 = vshrl.u32 %v7807_v45, 16  ;;  %v1004_v46 = vshll.u32 %v7807_v45, 16  ;;  %v7966_v24 = vld [vmem:[%s9189_s22 + $0x78] sm:$0xf] }
  0xaf   : > { %v2875_v13 = vsel %vm9268_vm5, %v2870_v49, %v2874_v54  ;;  %v2569_v30 = vsel %vm9217_vm2, %v2567_v48, %v2568_v29  ;;  %v998_v6 = vrot.slane %v996_v55, 5  ;;  %v989_v39 = vsel %vm9268_vm5, %v984_v44, %v9732_v62  ;;  %v7967_v29 = vld [vmem:[%s9189_s22 + $0x7c] sm:$0xf]  ;;  %v7968_v55 = vld [vmem:[%s9189_s22 + $0x80] sm:$0x1] }
  0xb0   : > { %v8059_v37 = vcombine.low %v2865_v5, %v2875_v13  ;;  %v8044_v41 = vcombine.low %v2566_v11, %v2569_v30  ;;  %v1003_v2 = vrot.slane %v1001_v63, 4  ;;  %v1006_v54 = vrot.slane %v1004_v46, 5  ;;  %v7996_v62 = vld [vmem:[%s9189_s22 + $0x78] sm:$0xe] }
  0xb1   : > { %v999_v20 = vsel %vm9268_vm5, %v994_v10, %v998_v6  ;;  %v1010_v60 = vshll.u32 %v7808_v15, 16  ;;  %v1014_v36 = vshrl.u32 %v7808_v15, 16  ;;  %v7878_v49 = vcombine.low %v7807_v45, %v7808_v15 }
  0xb2   : > { %3412 = vrot.lane.b32.xlu1 %v8059_v37, %s9137_s23  ;;  %3334 = vrot.lane.b32.xlu0 %v8044_v41, %s9138_s24  ;;  %v7893_v53 = vcombine.low %v989_v39, %v999_v20  ;;  %v8011_v11 = vrot.slane %v7995_v56, 9  ;;  %v3166_v48 = vrot.slane %v9735_v32, 5  ;;  %v3169_v63 = vrot.slane %v9738_v57, 5  ;;  %v7830_v20 = vld [vmem:[%s9189_s22 + $0x80] sm:$0x1] }
  0xb3   : > { %v1012_v5 = vrot.slane %v1010_v60, 5  ;;  %v1016_v44 = vrot.slane %v1014_v36, 4  ;;  %v2877_v10 = vshrl.u32 %v7966_v24, 16  ;;  %v2880_v6 = vshll.u32 %v7966_v24, 16 }
  0xb4   : > { %v3167_v13 = vsel %vm9217_vm2, %v8011_v11, %v3166_v48  ;;  %v3168_v30 = vrot.slane %v3166_v48, 4  ;;  %v2886_v46 = vshll.u32 %v7967_v29, 16  ;;  %v2890_v45 = vshrl.u32 %v7967_v29, 16  ;;  %v2001_v48 = vld [vmem:[%s9189_s22] sm:$0xf] }
  0xb5   : > { %v2879_v37 = vrot.slane %v2877_v10, 4  ;;  %v2896_v15 = vshll.u32 %v7968_v55, 16  ;;  %v8012_v56 = vrot.slane %v7996_v62, 9  ;;  %v2882_v57 = vrot.slane %v2880_v6, 5 }
  0xb6   : > { %1504 = vrot.lane.b32.xlu1 %v7893_v53, %s9139_s25  ;;  %1426 = vrot.lane.b32.xlu0 %v7878_v49, %s9137_s23  ;;  %v3170_v32 = vsel %vm9217_vm2, %v3168_v30, %v3169_v63  ;;  %v2888_v41 = vrot.slane %v2886_v46, 5  ;;  %v3173_v39 = vrot.slane %v7967_v29, 5  ;;  %v2892_v36 = vrot.slane %v2890_v45, 4  ;;  %v9806_v46 = vpop.permute.xlu1 %1408 }
  0xb7   : > { %v8075_v24 = vcombine.low %v3167_v13, %v3170_v32  ;;  %v3176_v11 = vrot.slane %v7968_v55, 5  ;;  %v2883_v10 = vor.u32 %v2882_v57, %v2879_v37  ;;  %v1007_v1 = vor.u32 %v1006_v54, %v1003_v2  ;;  %v9813_v32 = vld [vmem:[%s9189_s22 + $0x7c] sm:$0xf] }
  0xb8   : > { %v3174_v62 = vsel %vm9217_vm2, %v8012_v56, %v3173_v39  ;;  %v3175_v53 = vrot.slane %v3173_v39, 4  ;;  %v2893_v49 = vor.u32 %v2892_v36, %v2888_v41  ;;  %v2898_v7 = vrot.slane %v2896_v15, 5  ;;  %v9818_v39 = vpop.permute.xlu0 %1410  ;;  %v320_v36 = vld [vmem:[%s9189_s22 + $0x78] sm:$0xf] }
  0xb9   : > { %v1017_v47 = vor.u32 %v1016_v44, %v1012_v5  ;;  %v1020_v63 = vshll.u32 %v7830_v20, 16  ;;  %v2884_v29 = vrot.slane %v2883_v10, 4  ;;  %v1008_v55 = vrot.slane %v1007_v1, 4  ;;  %v2443_v1 = vld [vmem:[%s9189_s22 + $0x78] sm:$0xe] }
  0xba   : > { %3492 = vrot.lane.b32.xlu1 %v8075_v24, %s9139_s25  ;;  %v3177_v13 = vsel %vm9217_vm2, %v3175_v53, %v3176_v11  ;;  %v2050_v30 = vshrl.u32 %v2001_v48, 16  ;;  %v2894_v6 = vrot.slane %v2893_v49, 4  ;;  %v2053_v56 = vshll.u32 %v2001_v48, 16  ;;  %v8998_v20 = vld [vmem:[%s9189_s22 + $0x4] sm:$0xf]  ;;  %v9839_v17 = vpop.permute.xlu1 %3476 }
  0xbb   : > { %v8076_v37 = vcombine.low %v3174_v62, %v3177_v13  ;;  %v1018_v2 = vrot.slane %v1017_v47, 4  ;;  %v1022_v54 = vrot.slane %v1020_v63, 5  ;;  %v2889_v44 = vsel %vm9268_vm5, %v2884_v29, %v2888_v41  ;;  %v9826_v24 = vld [vmem:[%s9189_s22 + $0x80] sm:$0x1]  ;;  %v321_v62 = vld [vmem:[%s9189_s22 + $0x7c] sm:$0xf] }
  0xbc   : > { %v1013_v45 = vsel %vm9268_vm5, %v1008_v55, %v1012_v5  ;;  %v2052_v15 = vrot.slane %v2050_v30, 4  ;;  %v2899_v57 = vsel %vm9268_vm5, %v2894_v6, %v2898_v7  ;;  %v2059_v41 = vshll.u32 %v8998_v20, 16  ;;  %v342_v55 = vld [vmem:[%s9189_s22 + $0x80] sm:$0x1] }
  0xbd   : > { %v1023_v47 = vsel %vm9268_vm5, %v1018_v2, %v1022_v54  ;;  %v2065_v5 = vrot.slane %v2063_v25, 4  ;;  %v8060_v11 = vcombine.low %v2889_v44, %v2899_v57  ;;  %v2055_v7 = vrot.slane %v2053_v56, 5  ;;  %v2004_v54 = vld [vmem:[%s9189_s22 + $0xc] sm:$0xf]  ;;  %v3317_v57 = vpop.permute.xlu0 %3316 }
  0xbe   : > { %3494 = vrot.lane.b32.xlu1 %v8076_v37, %s9139_s25  ;;  %v7894_v48 = vcombine.low %v1013_v45, %v1023_v47  ;;  %v2071_v10 = vrot.slane %v2069_v26, 5  ;;  %v2061_v53 = vrot.slane %v2059_v41, 5  ;;  %v7933_v25 = vrot.slane %v2443_v1, 9 }
  0xbf   : > { %3414 = vrot.lane.b32.xlu0 %v8060_v11, %s9137_s23  ;;  %v2056_v63 = vor.u32 %v2055_v7, %v2052_v15  ;;  %v2572_v29 = vrot.slane %v9813_v32, 5  ;;  %v2575_v13 = vrot.slane %v9826_v24, 5  ;;  %v592_v30 = vshrl.u32 %v320_v36, 16 }
  0xc0   : > { %v2066_v6 = vor.u32 %v2065_v5, %v2061_v53  ;;  %v595_v26 = vshll.u32 %v320_v36, 16  ;;  %v601_v37 = vshll.u32 %v321_v62, 16  ;;  %v605_v2 = vshrl.u32 %v321_v62, 16 }
  0xc1   : > { %v2057_v44 = vrot.slane %v2056_v63, 4  ;;  %v2573_v45 = vsel %vm9217_vm2, %v7933_v25, %v2572_v29  ;;  %v2574_v56 = vrot.slane %v2572_v29, 4  ;;  %v594_v1 = vrot.slane %v592_v30, 4 }
  0xc2   : > { %v2067_v15 = vrot.slane %v2066_v6, 4  ;;  %v597_v47 = vrot.slane %v595_v26, 5  ;;  %v603_v20 = vrot.slane %v601_v37, 5  ;;  %v607_v41 = vrot.slane %v605_v2, 4 }
  0xc3   : > { %1506 = vrot.lane.b32.xlu0 %v7894_v48, %s9139_s25  ;;  %v2062_v5 = vsel %vm9268_vm5, %v2057_v44, %v2061_v53  ;;  %v2576_v36 = vsel %vm9217_vm2, %v2574_v56, %v2575_v13  ;;  %v611_v11 = vshll.u32 %v342_v55, 16  ;;  %v2074_v7 = vshrl.u32 %v2004_v54, 16  ;;  %v7809_v53 = vld [vmem:[%s9189_s22 + $0x84] sm:$0xf]  ;;  %v8999_v55 = vld [vmem:[%s9189_s22 + $0x10] sm:$0xf]  ;;  %v1299_v44 = vpop.permute.xlu1 %1298 }
  0xc4   : > { %v2072_v62 = vsel %vm9268_vm5, %v2067_v15, %v2071_v10  ;;  %v8045_v25 = vcombine.low %v2573_v45, %v2576_v36  ;;  %v598_v63 = vor.u32 %v597_v47, %v594_v1  ;;  %v608_v29 = vor.u32 %v607_v41, %v603_v20  ;;  %v9000_v15 = vld [vmem:[%s9189_s22 + $0xc] sm:$0xf]  ;;  %v7810_v41 = vld [vmem:[%s9189_s22 + $0x88] sm:$0xf] }
  0xc5   : > { %v8019_v30 = vcombine.low %v2062_v5, %v2072_v62  ;;  %v613_v6 = vrot.slane %v611_v11, 5  ;;  %v2076_v48 = vrot.slane %v2074_v7, 4  ;;  %v2077_v26 = vshll.u32 %v2004_v54, 16  ;;  %v9001_v54 = vld [vmem:[%s9189_s22 + $0x10] sm:$0xf] }
  0xc6   : > { %3336 = vrot.lane.b32.xlu1 %v8045_v25, %s9138_s24  ;;  %v599_v37 = vrot.slane %v598_v63, 4  ;;  %v609_v13 = vrot.slane %v608_v29, 4  ;;  %v2083_v2 = vshll.u32 %v8999_v55, 16  ;;  %v2089_v10 = vrot.slane %v2087_v52, 4  ;;  %v3319_v52 = vpop.permute.xlu0 %3318 }
  0xc7   : > { %v3510_v45 = vsel %vm1520_vm6, %v8019_v30, %v3317_v57  ;;  %v2079_v56 = vrot.slane %v2077_v26, 5  ;;  %v2095_v1 = vrot.slane %v2093_v38, 5  ;;  %v7838_v47 = vcombine.low %v9000_v15, %v9001_v54  ;;  %v322_v57 = vld [vmem:[%s9189_s22 + $0x84] sm:$0xf] }
  0xc8   : > { %v604_v5 = vsel %vm9268_vm5, %v599_v37, %v603_v20  ;;  %v614_v36 = vsel %vm9268_vm5, %v609_v13, %v613_v6  ;;  %v2085_v42 = vrot.slane %v2083_v2, 5  ;;  %v1025_v11 = vshrl.u32 %v7809_v53, 16  ;;  %v323_v20 = vld [vmem:[%s9189_s22 + $0x88] sm:$0xf]  ;;  %v343_v13 = vld [vmem:[%s9189_s22 + $0x8c] sm:$0x1] }
  0xc9   : > { %v7863_v7 = vcombine.low %v604_v5, %v614_v36  ;;  %v2080_v62 = vor.u32 %v2079_v56, %v2076_v48  ;;  %v9868_v43 = vsel %vm1520_vm6, %v7838_v47, %v1299_v44  ;;  %v1028_v38 = vshll.u32 %v7809_v53, 16  ;;  %v3397_v56 = vpop.permute.xlu1 %3396 }
  0xca   : > { %v2090_v25 = vor.u32 %v2089_v10, %v2085_v42  ;;  %v9870_v63 = vrot.slane %v1025_v11, 4  ;;  %v1034_v29 = vshll.u32 %v7810_v41, 16  ;;  %v1038_v30 = vshrl.u32 %v7810_v41, 16 }
  0xcb   : > { %1316 = vrot.lane.b32.xlu0 %v7863_v7, %s9138_s24  ;;  %v2081_v6 = vrot.slane %v2080_v62, 4  ;;  %v9874_v26 = vrot.slane %v1028_v38, 5  ;;  %v7879_v37 = vcombine.low %v7809_v53, %v7810_v41  ;;  %v616_v55 = vshrl.u32 %v322_v57, 16  ;;  %v7969_v41 = vld [vmem:[%s9189_s22 + $0x84] sm:$0xf] }
  0xcc   : > { %v2091_v48 = vrot.slane %v2090_v25, 4  ;;  %v9877_v2 = vrot.slane %v1034_v29, 5  ;;  %v9879_v44 = vrot.slane %v1038_v30, 4  ;;  %v619_v10 = vshll.u32 %v322_v57, 16  ;;  %v1297_v57 = vpop.permute.xlu0 %1296  ;;  %v9888_v7 = vld [vmem:[%s9189_s22 + $0x88] sm:$0xf] }
  0xcd   : > { %v2086_v15 = vsel %vm9268_vm5, %v2081_v6, %v2085_v42  ;;  %1428 = vrot.lane.b32.xlu1 %v7879_v37, %s9137_s23  ;;  %v618_v54 = vrot.slane %v616_v55, 4  ;;  %v625_v47 = vshll.u32 %v323_v20, 16  ;;  %v629_v53 = vshrl.u32 %v323_v20, 16  ;;  %v9002_v20 = vld [vmem:[%s9189_s22] sm:$0xf] }
  0xce   : > { %v2096_v5 = vsel %vm9268_vm5, %v2091_v48, %v2095_v1  ;;  %v621_v36 = vrot.slane %v619_v10, 5  ;;  %v635_v11 = vshll.u32 %v343_v13, 16  ;;  %v3557_v25 = vsel %vm1569_vm7, %v3510_v45, %v3397_v56  ;;  %v9003_v6 = vld [vmem:[%s9189_s22 + $0x4] sm:$0xf]  ;;  %v9894_v55 = vld [vmem:[%s9189_s22 + $0x8c] sm:$0x1] }
  0xcf   : > { %v8020_v42 = vcombine.low %v2086_v15, %v2096_v5  ;;  %v627_v62 = vrot.slane %v625_v47, 5  ;;  %v631_v38 = vrot.slane %v629_v53, 4  ;;  %v7837_v37 = vcombine.low %v9002_v20, %v9003_v6  ;;  %v9899_v47 = vld [vmem:[%s9189_s22 + $0x88] sm:$0xf]  ;;  %v2444_v5 = vld [vmem:[%s9189_s22 + $0x84] sm:$0xe] }
  0xd0   : > { %v622_v29 = vor.u32 %v621_v36, %v618_v54  ;;  %v637_v30 = vrot.slane %v635_v11, 5  ;;  %v2901_v1 = vshrl.u32 %v7969_v41, 16  ;;  %v2904_v10 = vshll.u32 %v7969_v41, 16 }
  0xd1   : > { %v3513_v13 = vsel %vm1520_vm6, %v8020_v42, %v3319_v52  ;;  %v632_v48 = vor.u32 %v631_v38, %v627_v62  ;;  %v2910_v15 = vshll.u32 %v9888_v7, 16  ;;  %v1523_v45 = vsel %vm1520_vm6, %v7837_v37, %v1297_v57  ;;  %v9906_v52 = vld [vmem:[%s9189_s22 + $0x8c] sm:$0x1]  ;;  %v7811_v38 = vld [vmem:[%s9189_s22 + $0x90] sm:$0xf] }
  0xd2   : > { %v623_v53 = vrot.slane %v622_v29, 4  ;;  %v2903_v56 = vrot.slane %v2901_v1, 4  ;;  %v2914_v54 = vshrl.u32 %v9888_v7, 16  ;;  %v2906_v11 = vrot.slane %v2904_v10, 5  ;;  %v3399_v29 = vpop.permute.xlu0 %3398 }
  0xd3   : > { %v633_v36 = vrot.slane %v632_v48, 4  ;;  %v2912_v20 = vrot.slane %v2910_v15, 5  ;;  %v2920_v6 = vshll.u32 %v9894_v55, 16  ;;  %v7934_v10 = vrot.slane %v2444_v5, 9  ;;  %v1489_v15 = vpop.permute.xlu1 %1488 }
  0xd4   : > { %v628_v41 = vsel %vm9268_vm5, %v623_v53, %v627_v62  ;;  %v2916_v42 = vrot.slane %v2914_v54, 4  ;;  %v2907_v1 = vor.u32 %v2906_v11, %v2903_v56  ;;  %v2579_v60 = vrot.slane %v9899_v47, 5  ;;  %v7831_v53 = vld [vmem:[%s9189_s22 + $0x8c] sm:$0x1] }
  0xd5   : > { %v638_v37 = vsel %vm9268_vm5, %v633_v36, %v637_v30  ;;  %v2922_v48 = vrot.slane %v2920_v6, 5  ;;  %v2582_v62 = vrot.slane %v9906_v52, 5  ;;  %v3559_v57 = vsel %vm1569_vm7, %v3513_v13, %v3399_v29 }
  0xd6   : > { %v7864_v12 = vcombine.low %v628_v41, %v638_v37  ;;  %v2917_v49 = vor.u32 %v2916_v42, %v2912_v20  ;;  %v2908_v54 = vrot.slane %v2907_v1, 4  ;;  %v2580_v56 = vsel %vm9217_vm2, %v7934_v10, %v2579_v60 }
  0xd7   : > { %v2581_v5 = vrot.slane %v2579_v60, 4  ;;  %v3589_v36 = vsel %vm1602_vm8, %v3557_v25, %v9839_v17  ;;  %v1031_v6 = vor.u32 %v9874_v26, %v9870_v63  ;;  %v1041_v13 = vor.u32 %v9879_v44, %v9877_v2  ;;  %v3479_v63 = vpop.permute.xlu1 %3478 }
  0xd8   : > { %1318 = vrot.lane.b32.xlu0 %v7864_v12, %s9138_s24  ;;  %v2918_v30 = vrot.slane %v2917_v49, 4  ;;  %v2913_v11 = vsel %vm9268_vm5, %v2908_v54, %v2912_v20  ;;  %8778 = vmatprep.mubr.msk.bf16.mxu1 %vm1667_vm9, %v3589_v36  ;;  %v1044_v49 = vshll.u32 %v7831_v53, 16  ;;  %v7812_v12 = vld [vmem:[%s9189_s22 + $0x94] sm:$0xf]  ;;  %v1049_v25 = vshrl.u32 %v7811_v38, 16 }
  0xd9   : > { %v2583_v17 = vsel %vm9217_vm2, %v2581_v5, %v2582_v62  ;;  %v1052_v41 = vshll.u32 %v7811_v38, 16  ;;  %v1032_v29 = vrot.slane %v1031_v6, 4  ;;  %v1042_v37 = vrot.slane %v1041_v13, 4  ;;  %v7972_v5 = vld [vmem:[%s9189_s22 + $0x90] sm:$0xf] }
  0xda   : > { %v2923_v60 = vsel %vm9268_vm5, %v2918_v30, %v2922_v48  ;;  %v8046_v42 = vcombine.low %v2580_v56, %v2583_v17  ;;  %v1046_v26 = vrot.slane %v1044_v49, 5  ;;  %v9936_v1 = vrot.slane %v1049_v25, 4  ;;  %v7997_v48 = vld [vmem:[%s9189_s22 + $0x84] sm:$0xe]  ;;  %v1491_v56 = vpop.permute.xlu0 %1490  ;;  %v7973_v49 = vld [vmem:[%s9189_s22 + $0x94] sm:$0xf] }
  0xdb   : > { %v8061_v20 = vcombine.low %v2913_v11, %v2923_v60  ;;  %v9938_v44 = vrot.slane %v1052_v41, 5  ;;  %v1058_v10 = vshll.u32 %v7812_v12, 16  ;;  %v1037_v62 = vsel %vm9268_vm5, %v1032_v29, %v9877_v2  ;;  %v9957_v60 = vld [vmem:[%s9189_s22 + $0x98] sm:$0x1] }
  0xdc   : > { %3338 = vrot.lane.b32.xlu0 %v8046_v42, %s9138_s24  ;;  %v1062_v53 = vshrl.u32 %v7812_v12, 16  ;;  %v7880_v54 = vcombine.low %v7811_v38, %v7812_v12  ;;  %v1571_v30 = vsel %vm1569_vm7, %v1523_v45, %v9806_v46  ;;  %v1047_v36 = vsel %vm9268_vm5, %v1042_v37, %v1046_v26  ;;  %v2007_v12 = vld [vmem:[%s9189_s22 + $0x18] sm:$0xf] }
  0xdd   : > { %3416 = vrot.lane.b32.xlu1 %v8061_v20, %s9137_s23  ;;  %v9951_v11 = vrot.slane %v1058_v10, 5  ;;  %v1604_v6 = vsel %vm1602_vm8, %v1571_v30, %v1489_v15  ;;  %v3591_v13 = vsel %vm1602_vm8, %v3559_v57, %v3479_v63  ;;  %v7895_v2 = vcombine.low %v1037_v62, %v1047_v36  ;;  %v9004_v30 = vld [vmem:[%s9189_s22 + $0x1c] sm:$0xf] }
  0xde   : > { %v9959_v38 = vrot.slane %v1062_v53, 4  ;;  %8738 = vmatprep.mubr.msk.bf16.mxu0 %vm1667_vm9, %v1604_v6  ;;  %v1573_v46 = vsel %vm1569_vm7, %v9868_v43, %v9818_v39  ;;  %v8013_v45 = vrot.slane %v7997_v48, 9  ;;  %8779 = vmatmul.mubr.msk.bf16.vlgmr.msra.gmra.mrb[0].mxu1 %vm1667_vm9, %v3591_v13  ;;  %v3180_v57 = vrot.slane %v9888_v7, 5 }
  0xdf   : > { %v1606_v15 = vsel %vm1602_vm8, %v1573_v46, %v1491_v56  ;;  %v3183_v17 = vrot.slane %v9894_v55, 5  ;;  %v2925_v25 = vshrl.u32 %v7972_v5, 16  ;;  %v2928_v41 = vshll.u32 %v7972_v5, 16  ;;  %v9976_v55 = vpop.permute.xlu1 %3320  ;;  %v7998_v5 = vld [vmem:[%s9189_s22 + $0x90] sm:$0xe]  ;;  %v1301_v46 = vpop.permute.xlu0 %1300 }
  0xe0   : > { %1430 = vrot.lane.b32.xlu0 %v7880_v54, %s9137_s23  ;;  %v2934_v20 = vshll.u32 %v7973_v49, 16  ;;  %v2938_v42 = vshrl.u32 %v7973_v49, 16  ;;  %v2944_v39 = vshll.u32 %v9957_v60, 16  ;;  %v3181_v43 = vsel %vm9217_vm2, %v8013_v45, %v3180_v57  ;;  %8739 = vmatmul.mubr.msk.bf16.vlgmr.msra.gmra.mrb[0].mxu0 %vm1667_vm9, %v1606_v15 }
  0xe1   : > { %1508 = vrot.lane.b32.xlu1 %v7895_v2, %s9139_s25  ;;  %v3182_v29 = vrot.slane %v3180_v57, 4  ;;  %v2927_v37 = vrot.slane %v2925_v25, 4  ;;  %v2098_v7 = vshrl.u32 %v2007_v12, 16  ;;  %v2930_v63 = vrot.slane %v2928_v41, 5  ;;  %v9005_v25 = vld [vmem:[%s9189_s22 + $0x18] sm:$0xf] }
  0xe2   : > { %v2936_v26 = vrot.slane %v2934_v20, 5  ;;  %v2940_v10 = vrot.slane %v2938_v42, 4  ;;  %v2946_v48 = vrot.slane %v2944_v39, 5  ;;  %v2101_v54 = vshll.u32 %v2007_v12, 16 }
  0xe3   : > { %v3184_v62 = vsel %vm9217_vm2, %v3182_v29, %v3183_v17  ;;  %v2100_v53 = vrot.slane %v2098_v7, 4  ;;  %v2107_v56 = vshll.u32 %v9004_v30, 16  ;;  %v2931_v6 = vor.u32 %v2930_v63, %v2927_v37  ;;  %v9006_v17 = vld [vmem:[%s9189_s22 + $0x1c] sm:$0xf]  ;;  %v7832_v37 = vld [vmem:[%s9189_s22 + $0x98] sm:$0x1]  ;;  %v1413_v7 = vpop.permute.xlu1 %1412 }
  0xe4   : > { %v8077_v36 = vcombine.low %v3181_v43, %v3184_v62  ;;  %v2941_v13 = vor.u32 %v2940_v10, %v2936_v26  ;;  %v2113_v2 = vrot.slane %v2111_v59, 4  ;;  %v2103_v45 = vrot.slane %v2101_v54, 5 }
  0xe5   : > { %v2109_v15 = vrot.slane %v2107_v56, 5  ;;  %v2119_v57 = vrot.slane %v2117_v35, 5  ;;  %v7839_v41 = vcombine.low %v9005_v25, %v9006_v17  ;;  %v2932_v12 = vrot.slane %v2931_v6, 4  ;;  %v2445_v56 = vld [vmem:[%s9189_s22 + $0x90] sm:$0xe]  ;;  %v1303_v6 = vpop.permute.xlu0 %1302 }
  0xe6   : > { %3496 = vrot.lane.b32.xlu1 %v8077_v36, %s9139_s25  ;;  %v2942_v20 = vrot.slane %v2941_v13, 4  ;;  %v8014_v42 = vrot.slane %v7998_v5, 9  ;;  %v3187_v39 = vrot.slane %v7973_v49, 5  ;;  %v2104_v43 = vor.u32 %v2103_v45, %v2100_v53  ;;  %v9007_v45 = vld [vmem:[%s9189_s22 + $0x24] sm:$0xf] }
  0xe7   : > { %v2114_v29 = vor.u32 %v2113_v2, %v2109_v15  ;;  %v1529_v50 = vsel %vm1520_vm6, %v7839_v41, %v1301_v46  ;;  %v3190_v59 = vrot.slane %v9957_v60, 5  ;;  %v2937_v51 = vsel %vm9268_vm5, %v2932_v12, %v2936_v26  ;;  %v9008_v25 = vld [vmem:[%s9189_s22 + $0x28] sm:$0xf]  ;;  %v10019_v41 = vld [vmem:[%s9189_s22 + $0x98] sm:$0x1] }
  0xe8   : > { %v2947_v35 = vsel %vm9268_vm5, %v2942_v20, %v2946_v48  ;;  %v3188_v63 = vsel %vm9217_vm2, %v8014_v42, %v3187_v39  ;;  %v3189_v10 = vrot.slane %v3187_v39, 4  ;;  %v2105_v62 = vrot.slane %v2104_v43, 4  ;;  %v324_v12 = vld [vmem:[%s9189_s22 + $0x90] sm:$0xf]  ;;  %v325_v39 = vld [vmem:[%s9189_s22 + $0x94] sm:$0xf] }
  0xe9   : > { %v8062_v49 = vcombine.low %v2937_v51, %v2947_v35  ;;  %v2115_v53 = vrot.slane %v2114_v29, 4  ;;  %v1055_v54 = vor.u32 %v9938_v44, %v9936_v1  ;;  %v1065_v26 = vor.u32 %v9959_v38, %v9951_v11  ;;  %v10014_v38 = vld [vmem:[%s9189_s22 + $0x94] sm:$0xf] }
  0xea   : > { %v3191_v60 = vsel %vm9217_vm2, %v3189_v10, %v3190_v59  ;;  %v1068_v48 = vshll.u32 %v7832_v37, 16  ;;  %v10005_v30 = vsel %vm1569_vm7, %v1529_v50, %v1413_v7  ;;  %v2110_v1 = vsel %vm9268_vm5, %v2105_v62, %v2109_v15  ;;  %v344_v37 = vld [vmem:[%s9189_s22 + $0x98] sm:$0x1]  ;;  %v3401_v7 = vpop.permute.xlu1 %3400  ;;  %v2010_v10 = vld [vmem:[%s9189_s22 + $0x24] sm:$0xf] }
  0xeb   : > { %3418 = vrot.lane.b32.xlu0 %v8062_v49, %s9137_s23  ;;  %v2120_v44 = vsel %vm9268_vm5, %v2115_v53, %v2119_v57  ;;  %v8078_v5 = vcombine.low %v3188_v63, %v3191_v60  ;;  %v1056_v36 = vrot.slane %v1055_v54, 4  ;;  %v1066_v2 = vrot.slane %v1065_v26, 4 }
  0xec   : > { %v8021_v13 = vcombine.low %v2110_v1, %v2120_v44  ;;  %v1070_v46 = vrot.slane %v1068_v48, 5  ;;  %v7840_v17 = vcombine.low %v9007_v45, %v9008_v25  ;;  %v2351_v57 = vshrl.u32 %v10014_v38, 16  ;;  %v7814_v45 = vld [vmem:[%s9189_s22 + $0xa0] sm:$0xf] }
  0xed   : > { %3498 = vrot.lane.b32.xlu1 %v8078_v5, %s9139_s25  ;;  %v1061_v15 = vsel %vm9268_vm5, %v1056_v36, %v9951_v11  ;;  %v2357_v20 = vshll.u32 %v10019_v41, 16  ;;  %v7935_v42 = vrot.slane %v2445_v56, 9  ;;  %v2586_v59 = vrot.slane %v10014_v38, 5  ;;  %v7813_v36 = vld [vmem:[%s9189_s22 + $0x9c] sm:$0xf] }
  0xee   : > { %v3516_v43 = vsel %vm1520_vm6, %v8021_v13, %v9976_v55  ;;  %v1071_v29 = vsel %vm9268_vm5, %v1066_v2, %v1070_v46  ;;  %v10034_v50 = vsel %vm1520_vm6, %v7840_v17, %v1303_v6  ;;  %v2589_v51 = vrot.slane %v10019_v41, 5  ;;  %v9035_v38 = vld [vmem:[%s9189_s22 + $0x90] sm:$0xf] }
  0xef   : > { %v7896_v11 = vcombine.low %v1061_v15, %v1071_v29  ;;  %v640_v35 = vshrl.u32 %v324_v12, 16  ;;  %v643_v63 = vshll.u32 %v324_v12, 16  ;;  %v2587_v55 = vsel %vm9217_vm2, %v7935_v42, %v2586_v59  ;;  %v9009_v12 = vld [vmem:[%s9189_s22 + $0x28] sm:$0xf] }
  0xf0   : > { %v2588_v49 = vrot.slane %v2586_v59, 4  ;;  %v649_v62 = vshll.u32 %v325_v39, 16  ;;  %v653_v53 = vshrl.u32 %v325_v39, 16  ;;  %v659_v26 = vshll.u32 %v344_v37, 16  ;;  %v3323_v39 = vpop.permute.xlu0 %3322 }
  0xf1   : > { %1510 = vrot.lane.b32.xlu0 %v7896_v11, %s9139_s25  ;;  %v642_v54 = vrot.slane %v640_v35, 4  ;;  %v645_v60 = vrot.slane %v643_v63, 5  ;;  %v10044_v48 = vsel %vm1569_vm7, %v3516_v43, %v3401_v7  ;;  %v2122_v5 = vshrl.u32 %v2010_v10, 16 }
  0xf2   : > { %v2590_v56 = vsel %vm9217_vm2, %v2588_v49, %v2589_v51  ;;  %v651_v1 = vrot.slane %v649_v62, 5  ;;  %v655_v44 = vrot.slane %v653_v53, 4  ;;  %v661_v2 = vrot.slane %v659_v26, 5  ;;  %v327_v49 = vld [vmem:[%s9189_s22 + $0xa0] sm:$0xf] }
  0xf3   : > { %v8047_v6 = vcombine.low %v2587_v55, %v2590_v56  ;;  %v646_v13 = vor.u32 %v645_v60, %v642_v54  ;;  %v2125_v46 = vshll.u32 %v2010_v10, 16  ;;  %v2124_v17 = vrot.slane %v2122_v5, 4  ;;  %v326_v55 = vld [vmem:[%s9189_s22 + $0x9c] sm:$0xf]  ;;  %v345_v54 = vld [vmem:[%s9189_s22 + $0xa4] sm:$0x1]  ;;  %v1493_v60 = vpop.permute.xlu1 %1492 }
  0xf4   : > { %v656_v25 = vor.u32 %v655_v44, %v651_v1  ;;  %v2131_v15 = vshll.u32 %v9009_v12, 16  ;;  %v2137_v42 = vrot.slane %v2135_v21, 4  ;;  %v2143_v59 = vrot.slane %v2141_v4, 5 }
  0xf5   : > { %3340 = vrot.lane.b32.xlu1 %v8047_v6, %s9138_s24  ;;  %v647_v43 = vrot.slane %v646_v13, 4  ;;  %v2127_v29 = vrot.slane %v2125_v46, 5  ;;  %v1073_v37 = vshrl.u32 %v7813_v36, 16  ;;  %v1076_v51 = vshll.u32 %v7813_v36, 16 }
  0xf6   : > { %v657_v7 = vrot.slane %v656_v25, 4  ;;  %v2133_v11 = vrot.slane %v2131_v15, 5  ;;  %v1082_v35 = vshll.u32 %v7814_v45, 16  ;;  %v1086_v10 = vshrl.u32 %v7814_v45, 16 }
  0xf7   : > { %v652_v8 = vsel %vm9268_vm5, %v647_v43, %v651_v1  ;;  %v2128_v63 = vor.u32 %v2127_v29, %v2124_v17  ;;  %v10058_v21 = vrot.slane %v1073_v37, 4  ;;  %v10064_v4 = vrot.slane %v1076_v51, 5 }
  0xf8   : > { %v662_v62 = vsel %vm9268_vm5, %v657_v7, %v661_v2  ;;  %v2138_v16 = vor.u32 %v2137_v42, %v2133_v11  ;;  %v10066_v53 = vrot.slane %v1082_v35, 5  ;;  %v10069_v1 = vrot.slane %v1086_v10, 4  ;;  %v1415_v2 = vpop.permute.xlu0 %1414  ;;  %v7975_v42 = vld [vmem:[%s9189_s22 + $0x9c] sm:$0xf]  ;;  %v10084_v7 = vld [vmem:[%s9189_s22 + $0xa4] sm:$0x1] }
  0xf9   : > { %v7865_v26 = vcombine.low %v652_v8, %v662_v62  ;;  %v2129_v56 = vrot.slane %v2128_v63, 4  ;;  %v7881_v44 = vcombine.low %v7813_v36, %v7814_v45  ;;  %v664_v6 = vshrl.u32 %v326_v55, 16  ;;  %v10079_v36 = vld [vmem:[%s9189_s22 + $0xa0] sm:$0xf] }
  0xfa   : > { %v2139_v5 = vrot.slane %v2138_v16, 4  ;;  %v667_v13 = vshll.u32 %v326_v55, 16  ;;  %v673_v46 = vshll.u32 %v327_v49, 16  ;;  %v677_v17 = vshrl.u32 %v327_v49, 16 }
  0xfb   : > { %1320 = vrot.lane.b32.xlu0 %v7865_v26, %s9138_s24  ;;  %v2134_v25 = vsel %vm9268_vm5, %v2129_v56, %v2133_v11  ;;  %1432 = vrot.lane.b32.xlu1 %v7881_v44, %s9137_s23  ;;  %v683_v12 = vshll.u32 %v345_v54, 16  ;;  %v1608_v15 = vsel %vm1602_vm8, %v10005_v30, %v1493_v60  ;;  %v666_v43 = vrot.slane %v664_v6, 4  ;;  %v10096_v54 = vld [vmem:[%s9189_s22 + $0xa0] sm:$0xf]  ;;  %v2446_v60 = vld [vmem:[%s9189_s22 + $0x9c] sm:$0xe] }
  0xfc   : > { %v2144_v45 = vsel %vm9268_vm5, %v2139_v5, %v2143_v59  ;;  %v669_v29 = vrot.slane %v667_v13, 5  ;;  %v675_v37 = vrot.slane %v673_v46, 5  ;;  %8742 = vmatprep.mubr.msk.bf16.mxu0 %vm1667_vm9, %v1608_v15  ;;  %v679_v51 = vrot.slane %v677_v17, 4  ;;  %v10100_v5 = vld [vmem:[%s9189_s22 + $0xa4] sm:$0x1] }
  0xfd   : > { %v8022_v11 = vcombine.low %v2134_v25, %v2144_v45  ;;  %v685_v35 = vrot.slane %v683_v12, 5  ;;  %v10089_v30 = vsel %vm1569_vm7, %v10034_v50, %v1415_v2  ;;  %v2949_v63 = vshrl.u32 %v7975_v42, 16  ;;  %v3481_v2 = vpop.permute.xlu1 %3480  ;;  %v3403_v25 = vpop.permute.xlu0 %3402 }
  0xfe   : > { %v670_v8 = vor.u32 %v669_v29, %v666_v43  ;;  %v2952_v59 = vshll.u32 %v7975_v42, 16  ;;  %v2958_v10 = vshll.u32 %v10079_v36, 16  ;;  %v680_v49 = vor.u32 %v679_v51, %v675_v37  ;;  %v7833_v51 = vld [vmem:[%s9189_s22 + $0xa4] sm:$0x1] }
  0xff   : > { %v3519_v55 = vsel %vm1520_vm6, %v8022_v11, %v3323_v39  ;;  %v2962_v62 = vshrl.u32 %v10079_v36, 16  ;;  %v2968_v16 = vshll.u32 %v10084_v7, 16  ;;  %v2951_v56 = vrot.slane %v2949_v63, 4 }
 0x100   : > { %v671_v26 = vrot.slane %v670_v8, 4  ;;  %v2954_v44 = vrot.slane %v2952_v59, 5  ;;  %v2960_v50 = vrot.slane %v2958_v10, 5  ;;  %v681_v6 = vrot.slane %v680_v49, 4  ;;  %v7815_v8 = vld [vmem:[%s9189_s22 + $0xa8] sm:$0xf] }
 0x101   : > { %v2964_v13 = vrot.slane %v2962_v62, 4  ;;  %v2970_v46 = vrot.slane %v2968_v16, 5  ;;  %v2375_v39 = vshrl.u32 %v10096_v54, 16  ;;  %v2381_v15 = vshll.u32 %v10100_v5, 16 }
 0x102   : > { %v676_v17 = vsel %vm9268_vm5, %v671_v26, %v675_v37  ;;  %v2955_v12 = vor.u32 %v2954_v44, %v2951_v56  ;;  %v7936_v42 = vrot.slane %v2446_v60, 9  ;;  %v686_v45 = vsel %vm9268_vm5, %v681_v6, %v685_v35  ;;  %v7816_v26 = vld [vmem:[%s9189_s22 + $0xac] sm:$0xf] }
 0x103   : > { %v2965_v43 = vor.u32 %v2964_v13, %v2960_v50  ;;  %v2593_v29 = vrot.slane %v10096_v54, 5  ;;  %v2596_v11 = vrot.slane %v10100_v5, 5  ;;  %v7866_v63 = vcombine.low %v676_v17, %v686_v45  ;;  %v3483_v13 = vpop.permute.xlu1 %3482 }
 0x104   : > { %v2956_v59 = vrot.slane %v2955_v12, 4  ;;  %v3593_v37 = vsel %vm1602_vm8, %v10044_v48, %v3481_v2  ;;  %v3563_v10 = vsel %vm1569_vm7, %v3519_v55, %v3403_v25  ;;  %v1079_v16 = vor.u32 %v10064_v4, %v10058_v21  ;;  %v7999_v12 = vld [vmem:[%s9189_s22 + $0x9c] sm:$0xe] }
 0x105   : > { %v2966_v49 = vrot.slane %v2965_v43, 4  ;;  %v2594_v62 = vsel %vm9217_vm2, %v7936_v42, %v2593_v29  ;;  %v2595_v35 = vrot.slane %v2593_v29, 4  ;;  %8782 = vmatprep.mubr.msk.bf16.mxu1 %vm1667_vm9, %v3593_v37  ;;  %1322 = vrot.lane.b32.xlu0 %v7866_v63, %s9138_s24  ;;  %v1089_v48 = vor.u32 %v10069_v1, %v10066_v53  ;;  %v1495_v1 = vpop.permute.xlu0 %1494  ;;  %v7978_v29 = vld [vmem:[%s9189_s22 + $0xa8] sm:$0xf]  ;;  %v7979_v37 = vld [vmem:[%s9189_s22 + $0xac] sm:$0xf] }
 0x106   : > { %v2961_v60 = vsel %vm9268_vm5, %v2956_v59, %v2960_v50  ;;  %v1092_v55 = vshll.u32 %v7833_v51, 16  ;;  %v1097_v56 = vshrl.u32 %v7815_v8, 16  ;;  %v1080_v4 = vrot.slane %v1079_v16, 4 }
 0x107   : > { %v2971_v44 = vsel %vm9268_vm5, %v2966_v49, %v2970_v46  ;;  %v2597_v21 = vsel %vm9217_vm2, %v2595_v35, %v2596_v11  ;;  %v1100_v6 = vshll.u32 %v7815_v8, 16  ;;  %v1090_v50 = vrot.slane %v1089_v48, 4 }
 0x108   : > { %v8063_v2 = vcombine.low %v2961_v60, %v2971_v44  ;;  %v8048_v25 = vcombine.low %v2594_v62, %v2597_v21  ;;  %v1094_v17 = vrot.slane %v1092_v55, 5  ;;  %v1085_v42 = vsel %vm9268_vm5, %v1080_v4, %v10066_v53  ;;  %v10146_v53 = vld [vmem:[%s9189_s22 + $0xb0] sm:$0x1] }
 0x109   : > { %v10134_v45 = vrot.slane %v1097_v56, 4  ;;  %v10136_v46 = vrot.slane %v1100_v6, 5  ;;  %v1106_v43 = vshll.u32 %v7816_v26, 16  ;;  %v1110_v51 = vshrl.u32 %v7816_v26, 16  ;;  %v2013_v60 = vld [vmem:[%s9189_s22 + $0x30] sm:$0xf]  ;;  %v10164_v6 = vpop.permute.xlu1 %3324 }
 0x10a   : > { %3420 = vrot.lane.b32.xlu1 %v8063_v2, %s9137_s23  ;;  %3342 = vrot.lane.b32.xlu0 %v8048_v25, %s9138_s24  ;;  %v1095_v11 = vsel %vm9268_vm5, %v1090_v50, %v1094_v17  ;;  %v7882_v63 = vcombine.low %v7815_v8, %v7816_v26  ;;  %v3595_v59 = vsel %vm1602_vm8, %v3563_v10, %v3483_v13  ;;  %v8015_v16 = vrot.slane %v7999_v12, 9 }
 0x10b   : > { %v7897_v49 = vcombine.low %v1085_v42, %v1095_v11  ;;  %v10148_v62 = vrot.slane %v1106_v43, 5  ;;  %v1610_v35 = vsel %vm1602_vm8, %v10089_v30, %v1495_v1  ;;  %8783 = vmatmul.mubr.msk.bf16.gmra.mrb[4].mxu1 %vm1667_vm9, %v3595_v59  ;;  %v10154_v48 = vrot.slane %v1110_v51, 4  ;;  %v9010_v42 = vld [vmem:[%s9189_s22 + $0x34] sm:$0xf] }
 0x10c   : > { %v3194_v55 = vrot.slane %v10079_v36, 5  ;;  %v3197_v8 = vrot.slane %v10084_v7, 5  ;;  %v2973_v10 = vshrl.u32 %v7978_v29, 16  ;;  %8743 = vmatmul.mubr.msk.bf16.gmra.mrb[4].mxu0 %vm1667_vm9, %v1610_v35  ;;  %v2976_v26 = vshll.u32 %v7978_v29, 16  ;;  %v8000_v29 = vld [vmem:[%s9189_s22 + $0xa8] sm:$0xe] }
 0x10d   : > { %v2982_v56 = vshll.u32 %v7979_v37, 16  ;;  %v2986_v44 = vshrl.u32 %v7979_v37, 16  ;;  %v2992_v21 = vshll.u32 %v10146_v53, 16  ;;  %v2146_v7 = vshrl.u32 %v2013_v60, 16 }
 0x10e   : > { %1512 = vrot.lane.b32.xlu1 %v7897_v49, %s9139_s25  ;;  %1434 = vrot.lane.b32.xlu0 %v7882_v63, %s9137_s23  ;;  %v3195_v30 = vsel %vm9217_vm2, %v8015_v16, %v3194_v55  ;;  %v3196_v36 = vrot.slane %v3194_v55, 4  ;;  %v2975_v4 = vrot.slane %v2973_v10, 4  ;;  %v2978_v13 = vrot.slane %v2976_v26, 5  ;;  %v1305_v49 = vpop.permute.xlu0 %1304  ;;  %v9011_v10 = vld [vmem:[%s9189_s22 + $0x30] sm:$0xf] }
 0x10f   : > { %v2984_v2 = vrot.slane %v2982_v56, 5  ;;  %v2988_v25 = vrot.slane %v2986_v44, 4  ;;  %v2994_v50 = vrot.slane %v2992_v21, 5  ;;  %v2148_v1 = vrot.slane %v2146_v7, 4  ;;  %v1417_v7 = vpop.permute.xlu1 %1416 }
 0x110   : > { %v3198_v17 = vsel %vm9217_vm2, %v3196_v36, %v3197_v8  ;;  %v2149_v12 = vshll.u32 %v2013_v60, 16  ;;  %v2155_v43 = vshll.u32 %v9010_v42, 16  ;;  %v2979_v51 = vor.u32 %v2978_v13, %v2975_v4  ;;  %v9012_v8 = vld [vmem:[%s9189_s22 + $0x34] sm:$0xf]  ;;  %v7834_v4 = vld [vmem:[%s9189_s22 + $0xb0] sm:$0x1] }
 0x111   : > { %v8079_v11 = vcombine.low %v3195_v30, %v3198_v17  ;;  %v2989_v63 = vor.u32 %v2988_v25, %v2984_v2  ;;  %v2161_v59 = vrot.slane %v2159_v14, 4  ;;  %v2167_v55 = vrot.slane %v2165_v61, 5 }
 0x112   : > { %v2151_v35 = vrot.slane %v2149_v12, 5  ;;  %v2157_v16 = vrot.slane %v2155_v43, 5  ;;  %v7841_v26 = vcombine.low %v9011_v10, %v9012_v8  ;;  %v2980_v60 = vrot.slane %v2979_v51, 4  ;;  %v2447_v43 = vld [vmem:[%s9189_s22 + $0xa8] sm:$0xe]  ;;  %v1307_v51 = vpop.permute.xlu0 %1306 }
 0x113   : > { %3500 = vrot.lane.b32.xlu1 %v8079_v11, %s9139_s25  ;;  %v2990_v56 = vrot.slane %v2989_v63, 4  ;;  %v8016_v44 = vrot.slane %v8000_v29, 9  ;;  %v3201_v21 = vrot.slane %v7979_v37, 5  ;;  %v3204_v14 = vrot.slane %v10146_v53, 5  ;;  %v9014_v10 = vld [vmem:[%s9189_s22 + $0x40] sm:$0xf] }
 0x114   : > { %v2152_v30 = vor.u32 %v2151_v35, %v2148_v1  ;;  %v2162_v36 = vor.u32 %v2161_v59, %v2157_v16  ;;  %v1535_v40 = vsel %vm1520_vm6, %v7841_v26, %v1305_v49  ;;  %v2985_v19 = vsel %vm9268_vm5, %v2980_v60, %v2984_v2  ;;  %v9013_v35 = vld [vmem:[%s9189_s22 + $0x3c] sm:$0xf]  ;;  %v10207_v26 = vld [vmem:[%s9189_s22 + $0xb0] sm:$0x1]  ;;  %v328_v60 = vld [vmem:[%s9189_s22 + $0xa8] sm:$0xf] }
 0x115   : > { %v2995_v61 = vsel %vm9268_vm5, %v2990_v56, %v2994_v50  ;;  %v3202_v13 = vsel %vm9217_vm2, %v8016_v44, %v3201_v21  ;;  %v3203_v25 = vrot.slane %v3201_v21, 4  ;;  %v1103_v12 = vor.u32 %v10136_v46, %v10134_v45  ;;  %v329_v21 = vld [vmem:[%s9189_s22 + $0xac] sm:$0xf] }
 0x116   : > { %v8064_v37 = vcombine.low %v2985_v19, %v2995_v61  ;;  %v2153_v17 = vrot.slane %v2152_v30, 4  ;;  %v2163_v1 = vrot.slane %v2162_v36, 4  ;;  %v1113_v2 = vor.u32 %v10154_v48, %v10148_v62  ;;  %v10202_v48 = vld [vmem:[%s9189_s22 + $0xac] sm:$0xf] }
 0x117   : > { %v3205_v53 = vsel %vm9217_vm2, %v3203_v25, %v3204_v14  ;;  %v1116_v50 = vshll.u32 %v7834_v4, 16  ;;  %v10193_v42 = vsel %vm1569_vm7, %v1535_v40, %v1417_v7  ;;  %v1104_v11 = vrot.slane %v1103_v12, 4  ;;  %v346_v4 = vld [vmem:[%s9189_s22 + $0xb0] sm:$0x1]  ;;  %v3405_v7 = vpop.permute.xlu1 %3404  ;;  %v2016_v25 = vld [vmem:[%s9189_s22 + $0x3c] sm:$0xf] }
 0x118   : > { %3422 = vrot.lane.b32.xlu0 %v8064_v37, %s9137_s23  ;;  %v2158_v45 = vsel %vm9268_vm5, %v2153_v17, %v2157_v16  ;;  %v2168_v46 = vsel %vm9268_vm5, %v2163_v1, %v2167_v55  ;;  %v8080_v29 = vcombine.low %v3202_v13, %v3205_v53  ;;  %v1114_v59 = vrot.slane %v1113_v2, 4 }
 0x119   : > { %v8023_v63 = vcombine.low %v2158_v45, %v2168_v46  ;;  %v1118_v49 = vrot.slane %v1116_v50, 5  ;;  %v7842_v8 = vcombine.low %v9013_v35, %v9014_v10  ;;  %v1109_v16 = vsel %vm9268_vm5, %v1104_v11, %v10148_v62  ;;  %v7817_v11 = vld [vmem:[%s9189_s22 + $0xb4] sm:$0xf]  ;;  %v7818_v35 = vld [vmem:[%s9189_s22 + $0xb8] sm:$0xf] }
 0x11a   : > { %3502 = vrot.lane.b32.xlu1 %v8080_v29, %s9139_s25  ;;  %v2399_v55 = vshrl.u32 %v10202_v48, 16  ;;  %v2405_v56 = vshll.u32 %v10207_v26, 16  ;;  %v7937_v44 = vrot.slane %v2447_v43, 9  ;;  %v2600_v14 = vrot.slane %v10202_v48, 5 }
 0x11b   : > { %v3522_v30 = vsel %vm1520_vm6, %v8023_v63, %v10164_v6  ;;  %v1119_v36 = vsel %vm9268_vm5, %v1114_v59, %v1118_v49  ;;  %v10222_v40 = vsel %vm1520_vm6, %v7842_v8, %v1307_v51  ;;  %v2603_v19 = vrot.slane %v10207_v26, 5 }
 0x11c   : > { %v7898_v62 = vcombine.low %v1109_v16, %v1119_v36  ;;  %v688_v61 = vshrl.u32 %v328_v60, 16  ;;  %v691_v13 = vshll.u32 %v328_v60, 16  ;;  %v2601_v6 = vsel %vm9217_vm2, %v7937_v44, %v2600_v14  ;;  %v9015_v60 = vld [vmem:[%s9189_s22 + $0x40] sm:$0xf] }
 0x11d   : > { %v2602_v37 = vrot.slane %v2600_v14, 4  ;;  %v697_v17 = vshll.u32 %v329_v21, 16  ;;  %v701_v1 = vshrl.u32 %v329_v21, 16  ;;  %v707_v2 = vshll.u32 %v346_v4, 16 }
 0x11e   : > { %1514 = vrot.lane.b32.xlu0 %v7898_v62, %s9139_s25  ;;  %v690_v12 = vrot.slane %v688_v61, 4  ;;  %v693_v53 = vrot.slane %v691_v13, 5  ;;  %v10232_v50 = vsel %vm1569_vm7, %v3522_v30, %v3405_v7  ;;  %v2170_v29 = vshrl.u32 %v2016_v25, 16  ;;  %v3327_v30 = vpop.permute.xlu0 %3326 }
 0x11f   : > { %v2604_v43 = vsel %vm9217_vm2, %v2602_v37, %v2603_v19  ;;  %v699_v45 = vrot.slane %v697_v17, 5  ;;  %v703_v46 = vrot.slane %v701_v1, 4  ;;  %v709_v59 = vrot.slane %v707_v2, 5  ;;  %v330_v1 = vld [vmem:[%s9189_s22 + $0xb4] sm:$0xf] }
 0x120   : > { %v8049_v51 = vcombine.low %v2601_v6, %v2604_v43  ;;  %v694_v63 = vor.u32 %v693_v53, %v690_v12  ;;  %v2173_v49 = vshll.u32 %v2016_v25, 16  ;;  %v2172_v8 = vrot.slane %v2170_v29, 4  ;;  %v331_v12 = vld [vmem:[%s9189_s22 + $0xb8] sm:$0xf]  ;;  %v1497_v29 = vpop.permute.xlu1 %1496 }
 0x121   : > { %v704_v10 = vor.u32 %v703_v46, %v699_v45  ;;  %v2179_v16 = vshll.u32 %v9015_v60, 16  ;;  %v12982_v44 = vshrl.u32 %v9520_v58, 16  ;;  %v12983_v4 = vshll.u32 %v9528_v3, 16  ;;  %v347_v46 = vld [vmem:[%s9189_s22 + $0xbc] sm:$0x1] }
 0x122   : > { %3344 = vrot.lane.b32.xlu1 %v8049_v51, %s9138_s24  ;;  %v695_v36 = vrot.slane %v694_v63, 4  ;;  %v2175_v14 = vrot.slane %v2173_v49, 5  ;;  %v1121_v62 = vshrl.u32 %v7817_v11, 16  ;;  %v1124_v13 = vshll.u32 %v7817_v11, 16 }
 0x123   : > { %v2185_v21 = vrot.slane %v12982_v44, 4  ;;  %v2191_v7 = vrot.slane %v12983_v4, 5  ;;  %v705_v19 = vrot.slane %v704_v10, 4  ;;  %v2181_v61 = vrot.slane %v2179_v16, 5  ;;  %v7981_v4 = vld [vmem:[%s9189_s22 + $0xb4] sm:$0xf] }
 0x124   : > { %v1130_v25 = vshll.u32 %v7818_v35, 16  ;;  %v700_v58 = vsel %vm9268_vm5, %v695_v36, %v699_v45  ;;  %v2176_v6 = vor.u32 %v2175_v14, %v2172_v8  ;;  %v10246_v37 = vrot.slane %v1121_v62, 4 }
 0x125   : > { %v1134_v17 = vshrl.u32 %v7818_v35, 16  ;;  %v710_v53 = vsel %vm9268_vm5, %v705_v19, %v709_v59  ;;  %v2186_v3 = vor.u32 %v2185_v21, %v2181_v61  ;;  %v10252_v2 = vrot.slane %v1124_v13, 5  ;;  %v1419_v59 = vpop.permute.xlu0 %1418 }
 0x126   : > { %v10254_v43 = vrot.slane %v1130_v25, 5  ;;  %v7867_v51 = vcombine.low %v700_v58, %v710_v53  ;;  %v2177_v45 = vrot.slane %v2176_v6, 4  ;;  %v7883_v49 = vcombine.low %v7817_v11, %v7818_v35  ;;  %v10267_v11 = vld [vmem:[%s9189_s22 + $0xb8] sm:$0xf]  ;;  %v10272_v25 = vld [vmem:[%s9189_s22 + $0xbc] sm:$0x1] }
 0x127   : > { %v10257_v63 = vrot.slane %v1134_v17, 4  ;;  %v2187_v10 = vrot.slane %v2186_v3, 4  ;;  %v712_v8 = vshrl.u32 %v330_v1, 16  ;;  %v715_v60 = vshll.u32 %v330_v1, 16 }
 0x128   : > { %v721_v16 = vshll.u32 %v331_v12, 16  ;;  %1324 = vrot.lane.b32.xlu0 %v7867_v51, %s9138_s24  ;;  %v2182_v44 = vsel %vm9268_vm5, %v2177_v45, %v2181_v61  ;;  %1436 = vrot.lane.b32.xlu1 %v7883_v49, %s9137_s23  ;;  %v725_v21 = vshrl.u32 %v331_v12, 16  ;;  %v731_v36 = vshll.u32 %v347_v46, 16  ;;  %v10284_v51 = vld [vmem:[%s9189_s22 + $0xb8] sm:$0xf] }
 0x129   : > { %v1612_v14 = vsel %vm1602_vm8, %v10193_v42, %v1497_v29  ;;  %v2192_v35 = vsel %vm9268_vm5, %v2187_v10, %v2191_v7  ;;  %v714_v62 = vrot.slane %v712_v8, 4  ;;  %v717_v19 = vrot.slane %v715_v60, 5  ;;  %v2448_v45 = vld [vmem:[%s9189_s22 + $0xb4] sm:$0xe]  ;;  %v10288_v60 = vld [vmem:[%s9189_s22 + $0xbc] sm:$0x1] }
 0x12a   : > { %v723_v13 = vrot.slane %v721_v16, 5  ;;  %8746 = vmatprep.mubr.msk.bf16.mxu0 %vm1667_vm9, %v1612_v14  ;;  %v8024_v61 = vcombine.low %v2182_v44, %v2192_v35  ;;  %v727_v58 = vrot.slane %v725_v21, 4  ;;  %v733_v6 = vrot.slane %v731_v36, 5  ;;  %v3485_v21 = vpop.permute.xlu1 %3484  ;;  %v3407_v36 = vpop.permute.xlu0 %3406 }
 0x12b   : > { %v10277_v42 = vsel %vm1569_vm7, %v10222_v40, %v1419_v59  ;;  %v718_v17 = vor.u32 %v717_v19, %v714_v62  ;;  %v2997_v1 = vshrl.u32 %v7981_v4, 16  ;;  %v3000_v7 = vshll.u32 %v7981_v4, 16 }
 0x12c   : > { %v3006_v12 = vshll.u32 %v10267_v11, 16  ;;  %v3525_v53 = vsel %vm1520_vm6, %v8024_v61, %v3327_v30  ;;  %v728_v3 = vor.u32 %v727_v58, %v723_v13  ;;  %v3010_v46 = vshrl.u32 %v10267_v11, 16 }
 0x12d   : > { %v3016_v29 = vshll.u32 %v10272_v25, 16  ;;  %v719_v49 = vrot.slane %v718_v17, 4  ;;  %v2999_v10 = vrot.slane %v2997_v1, 4  ;;  %v3002_v8 = vrot.slane %v3000_v7, 5  ;;  %v7835_v1 = vld [vmem:[%s9189_s22 + $0xbc] sm:$0x1] }
 0x12e   : > { %v3008_v40 = vrot.slane %v3006_v12, 5  ;;  %v729_v16 = vrot.slane %v728_v3, 4  ;;  %v3012_v59 = vrot.slane %v3010_v46, 4  ;;  %v2423_v30 = vshrl.u32 %v10284_v51, 16  ;;  %v7819_v7 = vld [vmem:[%s9189_s22 + $0xc0] sm:$0xf] }
 0x12f   : > { %v3018_v44 = vrot.slane %v3016_v29, 5  ;;  %v724_v14 = vsel %vm9268_vm5, %v719_v49, %v723_v13  ;;  %v3003_v4 = vor.u32 %v3002_v8, %v2999_v10  ;;  %v7938_v62 = vrot.slane %v2448_v45, 9  ;;  %v7820_v8 = vld [vmem:[%s9189_s22 + $0xc4] sm:$0xf] }
 0x130   : > { %v734_v19 = vsel %vm9268_vm5, %v729_v16, %v733_v6  ;;  %v3013_v61 = vor.u32 %v3012_v59, %v3008_v40  ;;  %v2607_v58 = vrot.slane %v10284_v51, 5  ;;  %v2610_v17 = vrot.slane %v10288_v60, 5 }
 0x131   : > { %v7868_v12 = vcombine.low %v724_v14, %v734_v19  ;;  %v3004_v3 = vrot.slane %v3003_v4, 4  ;;  %v3597_v13 = vsel %vm1602_vm8, %v10232_v50, %v3485_v21  ;;  %v3567_v46 = vsel %vm1569_vm7, %v3525_v53, %v3407_v36  ;;  %v3487_v36 = vpop.permute.xlu1 %3486  ;;  %v8001_v19 = vld [vmem:[%s9189_s22 + $0xb4] sm:$0xe] }
 0x132   : > { %v3014_v29 = vrot.slane %v3013_v61, 4  ;;  %v2608_v45 = vsel %vm9217_vm2, %v7938_v62, %v2607_v58  ;;  %v2609_v6 = vrot.slane %v2607_v58, 4  ;;  %v1127_v49 = vor.u32 %v10252_v2, %v10246_v37  ;;  %8786 = vmatprep.mubr.msk.bf16.mxu1 %vm1667_vm9, %v3597_v13 }
 0x133   : > { %1326 = vrot.lane.b32.xlu0 %v7868_v12, %s9138_s24  ;;  %v3009_v10 = vsel %vm9268_vm5, %v3004_v3, %v3008_v40  ;;  %v1137_v50 = vor.u32 %v10257_v63, %v10254_v43  ;;  %v1140_v53 = vshll.u32 %v7835_v1, 16  ;;  %v1145_v16 = vshrl.u32 %v7819_v7, 16  ;;  %v1499_v63 = vpop.permute.xlu0 %1498  ;;  %v7984_v1 = vld [vmem:[%s9189_s22 + $0xc0] sm:$0xf] }
 0x134   : > { %v3019_v59 = vsel %vm9268_vm5, %v3014_v29, %v3018_v44  ;;  %v2611_v37 = vsel %vm9217_vm2, %v2609_v6, %v2610_v17  ;;  %v1128_v2 = vrot.slane %v1127_v49, 4  ;;  %v1148_v21 = vshll.u32 %v7819_v7, 16 }
 0x135   : > { %v8065_v14 = vcombine.low %v3009_v10, %v3019_v59  ;;  %v8050_v4 = vcombine.low %v2608_v45, %v2611_v37  ;;  %v1138_v40 = vrot.slane %v1137_v50, 4  ;;  %v1142_v62 = vrot.slane %v1140_v53, 5  ;;  %v7985_v45 = vld [vmem:[%s9189_s22 + $0xc4] sm:$0xf]  ;;  %v2019_v53 = vld [vmem:[%s9189_s22 + $0x48] sm:$0xf] }
 0x136   : > { %v1133_v61 = vsel %vm9268_vm5, %v1128_v2, %v10254_v43  ;;  %v10322_v58 = vrot.slane %v1145_v16, 4  ;;  %v10324_v44 = vrot.slane %v1148_v21, 5  ;;  %v1154_v17 = vshll.u32 %v7820_v8, 16  ;;  %v10334_v43 = vld [vmem:[%s9189_s22 + $0xc8] sm:$0x1] }
 0x137   : > { %3424 = vrot.lane.b32.xlu1 %v8065_v14, %s9137_s23  ;;  %3346 = vrot.lane.b32.xlu0 %v8050_v4, %s9138_s24  ;;  %v1143_v12 = vsel %vm9268_vm5, %v1138_v40, %v1142_v62  ;;  %v1158_v3 = vshrl.u32 %v7820_v8, 16  ;;  %v7884_v13 = vcombine.low %v7819_v7, %v7820_v8  ;;  %v3599_v29 = vsel %vm1602_vm8, %v3567_v46, %v3487_v36  ;;  %v10352_v14 = vpop.permute.xlu1 %3328 }
 0x138   : > { %v7899_v6 = vcombine.low %v1133_v61, %v1143_v12  ;;  %v10336_v49 = vrot.slane %v1154_v17, 5  ;;  %v1614_v10 = vsel %vm1602_vm8, %v10277_v42, %v1499_v63  ;;  %v8017_v50 = vrot.slane %v8001_v19, 9  ;;  %8787 = vmatmul.mubr.msk.bf16.gmra.mrb[8].mxu1 %vm1667_vm9, %v3599_v29 }
 0x139   : > { %v10342_v16 = vrot.slane %v1158_v3, 4  ;;  %v3208_v59 = vrot.slane %v10267_v11, 5  ;;  %v3211_v7 = vrot.slane %v10272_v25, 5  ;;  %v3021_v46 = vshrl.u32 %v7984_v1, 16  ;;  %8747 = vmatmul.mubr.msk.bf16.gmra.mrb[8].mxu0 %vm1667_vm9, %v1614_v10  ;;  %v8002_v3 = vld [vmem:[%s9189_s22 + $0xc0] sm:$0xe] }
 0x13a   : > { %v3024_v8 = vshll.u32 %v7984_v1, 16  ;;  %v3030_v37 = vshll.u32 %v7985_v45, 16  ;;  %v3034_v2 = vshrl.u32 %v7985_v45, 16  ;;  %v3040_v21 = vshll.u32 %v10334_v43, 16  ;;  %v9016_v1 = vld [vmem:[%s9189_s22 + $0x4c] sm:$0xf] }
 0x13b   : > { %1516 = vrot.lane.b32.xlu1 %v7899_v6, %s9139_s25  ;;  %1438 = vrot.lane.b32.xlu0 %v7884_v13, %s9137_s23  ;;  %v3209_v42 = vsel %vm9217_vm2, %v8017_v50, %v3208_v59  ;;  %v3210_v11 = vrot.slane %v3208_v59, 4  ;;  %v3023_v36 = vrot.slane %v3021_v46, 4  ;;  %v2194_v25 = vshrl.u32 %v2019_v53, 16  ;;  %v1309_v59 = vpop.permute.xlu0 %1308 }
 0x13c   : > { %v3026_v4 = vrot.slane %v3024_v8, 5  ;;  %v3032_v40 = vrot.slane %v3030_v37, 5  ;;  %v3036_v62 = vrot.slane %v3034_v2, 4  ;;  %v3042_v63 = vrot.slane %v3040_v21, 5  ;;  %v9017_v21 = vld [vmem:[%s9189_s22 + $0x48] sm:$0xf] }
 0x13d   : > { %v3212_v19 = vsel %vm9217_vm2, %v3210_v11, %v3211_v7  ;;  %v2196_v61 = vrot.slane %v2194_v25, 4  ;;  %v2197_v17 = vshll.u32 %v2019_v53, 16  ;;  %v2203_v12 = vshll.u32 %v9016_v1, 16  ;;  %v9018_v7 = vld [vmem:[%s9189_s22 + $0x4c] sm:$0xf]  ;;  %v1421_v1 = vpop.permute.xlu1 %1420 }
 0x13e   : > { %v8081_v13 = vcombine.low %v3209_v42, %v3212_v19  ;;  %v3027_v29 = vor.u32 %v3026_v4, %v3023_v36  ;;  %v3037_v6 = vor.u32 %v3036_v62, %v3032_v40  ;;  %v12984_v10 = vshrl.u32 %v9577_v0, 16 }
 0x13f   : > { %v2199_v46 = vrot.slane %v2197_v17, 5  ;;  %v2205_v8 = vrot.slane %v2203_v12, 5  ;;  %v12985_v37 = vshll.u32 %v9580_v18, 16  ;;  %v7843_v11 = vcombine.low %v9017_v21, %v9018_v7  ;;  %v7836_v17 = vld [vmem:[%s9189_s22 + $0xc8] sm:$0x1] }
 0x140   : > { %v2209_v50 = vrot.slane %v12984_v10, 4  ;;  %3504 = vrot.lane.b32.xlu1 %v8081_v13, %s9139_s25  ;;  %v3028_v53 = vrot.slane %v3027_v29, 4  ;;  %v3038_v25 = vrot.slane %v3037_v6, 4  ;;  %v8018_v42 = vrot.slane %v8002_v3, 9 }
 0x141   : > { %v2215_v2 = vrot.slane %v12985_v37, 5  ;;  %v3215_v36 = vrot.slane %v7985_v45, 5  ;;  %v2200_v4 = vor.u32 %v2199_v46, %v2196_v61  ;;  %v1541_v0 = vsel %vm1520_vm6, %v7843_v11, %v1309_v59  ;;  %v1311_v37 = vpop.permute.xlu0 %1310 }
 0x142   : > { %v2210_v62 = vor.u32 %v2209_v50, %v2205_v8  ;;  %v3218_v19 = vrot.slane %v10334_v43, 5  ;;  %v3033_v18 = vsel %vm9268_vm5, %v3028_v53, %v3032_v40  ;;  %v3043_v12 = vsel %vm9268_vm5, %v3038_v25, %v3042_v63  ;;  %v8411_v50 = vld [vmem:[%s9189_s22 + $0xc] sm:$0xe]  ;;  %v9019_v53 = vld [vmem:[%s9189_s22 + $0x54] sm:$0xf] }
 0x143   : > { %v3216_v13 = vsel %vm9217_vm2, %v8018_v42, %v3215_v36  ;;  %v3217_v3 = vrot.slane %v3215_v36, 4  ;;  %v8066_v45 = vcombine.low %v3033_v18, %v3043_v12  ;;  %v2201_v61 = vrot.slane %v2200_v4, 4  ;;  %v9020_v25 = vld [vmem:[%s9189_s22 + $0x58] sm:$0xf]  ;;  %v10395_v36 = vld [vmem:[%s9189_s22 + $0x14] sm:$0x1] }
 0x144   : > { %v2211_v29 = vrot.slane %v2210_v62, 4  ;;  %v1151_v6 = vor.u32 %v10324_v44, %v10322_v58  ;;  %v1161_v40 = vor.u32 %v10342_v16, %v10336_v49  ;;  %v1164_v63 = vshll.u32 %v7836_v17, 16  ;;  %v10390_v16 = vld [vmem:[%s9189_s22 + $0x10] sm:$0xf]  ;;  %v8143_v4 = vld [vmem:[%s9189_s22 + $0xc] sm:$0xf] }
 0x145   : > { %v3219_v43 = vsel %vm9217_vm2, %v3217_v3, %v3218_v19  ;;  %v10381_v10 = vsel %vm1569_vm7, %v1541_v0, %v1421_v1  ;;  %3426 = vrot.lane.b32.xlu0 %v8066_v45, %s9137_s23  ;;  %v2206_v58 = vsel %vm9268_vm5, %v2201_v61, %v2205_v8  ;;  %v7844_v42 = vcombine.low %v9019_v53, %v9020_v25  ;;  %v8144_v19 = vld [vmem:[%s9189_s22 + $0x10] sm:$0xf]  ;;  %v3409_v3 = vpop.permute.xlu1 %3408 }
 0x146   : > { %v2216_v44 = vsel %vm9268_vm5, %v2211_v29, %v2215_v2  ;;  %v8082_v59 = vcombine.low %v3216_v13, %v3219_v43  ;;  %v1152_v46 = vrot.slane %v1151_v6, 4  ;;  %v1162_v7 = vrot.slane %v1161_v40, 4  ;;  %v8175_v13 = vld [vmem:[%s9189_s22 + $0x14] sm:$0x1]  ;;  %v8223_v2 = vld [vmem:[%s9189_s22 + $0x20] sm:$0x1] }
 0x147   : > { %v8025_v21 = vcombine.low %v2206_v58, %v2216_v44  ;;  %v1166_v11 = vrot.slane %v1164_v63, 5  ;;  %v8427_v0 = vrot.slane %v8411_v50, 9  ;;  %v10410_v18 = vsel %vm1520_vm6, %v7844_v42, %v1311_v37  ;;  %v2022_v6 = vld [vmem:[%s9189_s22 + $0x54] sm:$0xf] }
 0x148   : > { %3506 = vrot.lane.b32.xlu1 %v8082_v59, %s9139_s25  ;;  %v1157_v8 = vsel %vm9268_vm5, %v1152_v46, %v10336_v49  ;;  %v6157_v12 = vrot.slane %v10390_v16, 5  ;;  %v6160_v45 = vrot.slane %v10395_v36, 5  ;;  %v4024_v61 = vshrl.u32 %v8143_v4, 16 }
 0x149   : > { %v3528_v17 = vsel %vm1520_vm6, %v8025_v21, %v10352_v14  ;;  %v1167_v1 = vsel %vm9268_vm5, %v1162_v7, %v1166_v11  ;;  %v4027_v29 = vshll.u32 %v8143_v4, 16  ;;  %v4033_v40 = vshll.u32 %v8144_v19, 16  ;;  %v8191_v11 = vld [vmem:[%s9189_s22 + $0x18] sm:$0xf] }
 0x14a   : > { %v7900_v49 = vcombine.low %v1157_v8, %v1167_v1  ;;  %v6158_v14 = vsel %vm9217_vm2, %v8427_v0, %v6157_v12  ;;  %v6159_v43 = vrot.slane %v6157_v12, 4  ;;  %v4037_v63 = vshrl.u32 %v8144_v19, 16  ;;  %v8192_v8 = vld [vmem:[%s9189_s22 + $0x1c] sm:$0xf]  ;;  %v9021_v1 = vld [vmem:[%s9189_s22 + $0x58] sm:$0xf] }
 0x14b   : > { %v4026_v50 = vrot.slane %v4024_v61, 4  ;;  %v4029_v58 = vrot.slane %v4027_v29, 5  ;;  %v4043_v44 = vshll.u32 %v8175_v13, 16  ;;  %v10420_v59 = vsel %vm1569_vm7, %v3528_v17, %v3409_v3  ;;  %v3331_v3 = vpop.permute.xlu0 %3330 }
 0x14c   : > { %1518 = vrot.lane.b32.xlu0 %v7900_v49, %s9139_s25  ;;  %v6161_v46 = vsel %vm9217_vm2, %v6159_v43, %v6160_v45  ;;  %v4035_v37 = vrot.slane %v4033_v40, 5  ;;  %v4039_v21 = vrot.slane %v4037_v63, 4  ;;  %v2218_v7 = vshrl.u32 %v2022_v6, 16 }
 0x14d   : > { %v8539_v53 = vcombine.low %v6158_v14, %v6161_v46  ;;  %v4030_v25 = vor.u32 %v4029_v58, %v4026_v50  ;;  %v4045_v42 = vrot.slane %v4043_v44, 5  ;;  %v2221_v4 = vshll.u32 %v2022_v6, 16  ;;  %v8145_v46 = vld [vmem:[%s9189_s22 + $0x18] sm:$0xf] }
 0x14e   : > { %v4040_v0 = vor.u32 %v4039_v21, %v4035_v37  ;;  %v2220_v19 = vrot.slane %v2218_v7, 4  ;;  %v2227_v12 = vshll.u32 %v9021_v1, 16  ;;  %v12986_v13 = vshrl.u32 %v9633_v23, 16  ;;  %v8146_v21 = vld [vmem:[%s9189_s22 + $0x1c] sm:$0xf] }
 0x14f   : > { %6971 = vrot.lane.b32.xlu1 %v8539_v53, %s9138_s24  ;;  %v4031_v49 = vrot.slane %v4030_v25, 4  ;;  %v2223_v45 = vrot.slane %v2221_v4, 5  ;;  %v12987_v61 = vshll.u32 %v9641_v27, 16  ;;  %v4457_v6 = vshrl.u32 %v8191_v11, 16  ;;  %v8176_v4 = vld [vmem:[%s9189_s22 + $0x20] sm:$0x1] }
 0x150   : > { %v2233_v17 = vrot.slane %v12986_v13, 4  ;;  %v4041_v14 = vrot.slane %v4040_v0, 4  ;;  %v2229_v43 = vrot.slane %v2227_v12, 5  ;;  %v4460_v40 = vshll.u32 %v8191_v11, 16  ;;  %v1501_v0 = vpop.permute.xlu1 %1500 }
 0x151   : > { %v2239_v29 = vrot.slane %v12987_v61, 5  ;;  %v4466_v63 = vshll.u32 %v8192_v8, 16  ;;  %v4036_v23 = vsel %vm9268_vm5, %v4031_v49, %v4035_v37  ;;  %v2224_v50 = vor.u32 %v2223_v45, %v2220_v19 }
 0x152   : > { %v10434_v58 = vrot.slane %v4457_v6, 4  ;;  %v4470_v44 = vshrl.u32 %v8192_v8, 16  ;;  %v4046_v7 = vsel %vm9268_vm5, %v4041_v14, %v4045_v42  ;;  %v2234_v27 = vor.u32 %v2233_v17, %v2229_v43  ;;  %v1423_v42 = vpop.permute.xlu0 %1422 }
 0x153   : > { %v10440_v53 = vrot.slane %v4460_v40, 5  ;;  %v10442_v25 = vrot.slane %v4466_v63, 5  ;;  %v8255_v1 = vcombine.low %v4036_v23, %v4046_v7  ;;  %v2225_v37 = vrot.slane %v2224_v50, 4  ;;  %v8443_v63 = vld [vmem:[%s9189_s22 + $0x18] sm:$0xf] }
 0x154   : > { %v10445_v19 = vrot.slane %v4470_v44, 4  ;;  %v8271_v12 = vcombine.low %v8191_v11, %v8192_v8  ;;  %v2235_v13 = vrot.slane %v2234_v27, 4  ;;  %v4048_v49 = vshrl.u32 %v8145_v46, 16  ;;  %v10455_v11 = vld [vmem:[%s9189_s22 + $0x1c] sm:$0xf] }
 0x155   : > { %v4051_v45 = vshll.u32 %v8145_v46, 16  ;;  %v4057_v61 = vshll.u32 %v8146_v21, 16  ;;  %4968 = vrot.lane.b32.xlu0 %v8255_v1, %s9138_s24  ;;  %v2230_v17 = vsel %vm9268_vm5, %v2225_v37, %v2229_v43  ;;  %v4061_v6 = vshrl.u32 %v8146_v21, 16  ;;  %v10460_v46 = vld [vmem:[%s9189_s22 + $0x20] sm:$0x1]  ;;  %v3489_v37 = vpop.permute.xlu1 %3488 }
 0x156   : > { %5080 = vrot.lane.b32.xlu1 %v8271_v12, %s9137_s23  ;;  %v4067_v14 = vshll.u32 %v8176_v4, 16  ;;  %v1616_v40 = vsel %vm1602_vm8, %v10381_v10, %v1501_v0  ;;  %v2240_v8 = vsel %vm9268_vm5, %v2235_v13, %v2239_v29  ;;  %v4050_v23 = vrot.slane %v4048_v49, 4  ;;  %v8412_v1 = vld [vmem:[%s9189_s22 + $0x18] sm:$0xe] }
 0x157   : > { %v4053_v50 = vrot.slane %v4051_v45, 5  ;;  %v4059_v44 = vrot.slane %v4057_v61, 5  ;;  %8750 = vmatprep.mubr.msk.bf16.mxu0 %vm1667_vm9, %v1616_v40  ;;  %v8026_v43 = vcombine.low %v2230_v17, %v2240_v8  ;;  %v4063_v21 = vrot.slane %v4061_v6, 4  ;;  %v8367_v61 = vld [vmem:[%s9189_s22 + $0x1c] sm:$0xf]  ;;  %v3411_v40 = vpop.permute.xlu0 %3410 }
 0x158   : > { %v4069_v7 = vrot.slane %v4067_v14, 5  ;;  %v10465_v10 = vsel %vm1569_vm7, %v10410_v18, %v1423_v42  ;;  %v6316_v4 = vshrl.u32 %v8443_v63, 16  ;;  %v6319_v0 = vshll.u32 %v8443_v63, 16  ;;  %v8368_v17 = vld [vmem:[%s9189_s22 + $0x20] sm:$0x1] }
 0x159   : > { %v4054_v27 = vor.u32 %v4053_v50, %v4050_v23  ;;  %v6325_v29 = vshll.u32 %v10455_v11, 16  ;;  %v3531_v12 = vsel %vm1520_vm6, %v8026_v43, %v3331_v3  ;;  %v4064_v13 = vor.u32 %v4063_v21, %v4059_v44 }
 0x15a   : > { %v6329_v49 = vshrl.u32 %v10455_v11, 16  ;;  %v6335_v45 = vshll.u32 %v10460_v46, 16  ;;  %v6318_v18 = vrot.slane %v6316_v4, 4  ;;  %v6321_v42 = vrot.slane %v6319_v0, 5 }
 0x15b   : > { %v4055_v6 = vrot.slane %v4054_v27, 4  ;;  %v6327_v14 = vrot.slane %v6325_v29, 5  ;;  %v4065_v63 = vrot.slane %v4064_v13, 4  ;;  %v8428_v50 = vrot.slane %v8412_v1, 9  ;;  %v8193_v29 = vld [vmem:[%s9189_s22 + $0x24] sm:$0xf] }
 0x15c   : > { %v6331_v8 = vrot.slane %v6329_v49, 4  ;;  %v6337_v23 = vrot.slane %v6335_v45, 5  ;;  %v6322_v43 = vor.u32 %v6321_v42, %v6318_v18  ;;  %v6164_v21 = vrot.slane %v8367_v61, 5  ;;  %v3491_v45 = vpop.permute.xlu1 %3490 }
 0x15d   : > { %v4060_v3 = vsel %vm9268_vm5, %v4055_v6, %v4059_v44  ;;  %v6167_v62 = vrot.slane %v8368_v17, 5  ;;  %v4070_v35 = vsel %vm9268_vm5, %v4065_v63, %v4069_v7  ;;  %v3601_v4 = vsel %vm1602_vm8, %v10420_v59, %v3489_v37  ;;  %v8194_v17 = vld [vmem:[%s9189_s22 + $0x28] sm:$0xf] }
 0x15e   : > { %v6332_v27 = vor.u32 %v6331_v8, %v6327_v14  ;;  %v3571_v0 = vsel %vm1569_vm7, %v3531_v12, %v3411_v40  ;;  %v8256_v13 = vcombine.low %v4060_v3, %v4070_v35  ;;  %v6323_v1 = vrot.slane %v6322_v43, 4  ;;  %8790 = vmatprep.mubr.msk.bf16.mxu1 %vm1667_vm9, %v3601_v4  ;;  %v8491_v40 = vld [vmem:[%s9189_s22 + $0x18] sm:$0xe] }
 0x15f   : > { %v6165_v44 = vsel %vm9217_vm2, %v8428_v50, %v6164_v21  ;;  %v6166_v49 = vrot.slane %v6164_v21, 4  ;;  %v4463_v7 = vor.u32 %v10440_v53, %v10434_v58  ;;  %v4473_v59 = vor.u32 %v10445_v19, %v10442_v25 }
 0x160   : > { %v6333_v61 = vrot.slane %v6332_v27, 4  ;;  %v4476_v37 = vshll.u32 %v8223_v2, 16  ;;  %4970 = vrot.lane.b32.xlu0 %v8256_v13, %s9138_s24  ;;  %v6328_v35 = vsel %vm9268_vm5, %v6323_v1, %v6327_v14  ;;  %v4481_v6 = vshrl.u32 %v8193_v29, 16  ;;  %v1503_v2 = vpop.permute.xlu0 %1502  ;;  %v10508_v27 = vld [vmem:[%s9189_s22 + $0x28] sm:$0xf] }
 0x161   : > { %v6168_v12 = vsel %vm9217_vm2, %v6166_v49, %v6167_v62  ;;  %v4484_v18 = vshll.u32 %v8193_v29, 16  ;;  %v4464_v42 = vrot.slane %v4463_v7, 4  ;;  %v4474_v19 = vrot.slane %v4473_v59, 4 }
 0x162   : > { %v6338_v58 = vsel %vm9268_vm5, %v6333_v61, %v6337_v23  ;;  %v8540_v53 = vcombine.low %v6165_v44, %v6168_v12  ;;  %v4478_v8 = vrot.slane %v4476_v37, 5  ;;  %v10499_v14 = vrot.slane %v4481_v6, 4  ;;  %v8446_v23 = vld [vmem:[%s9189_s22 + $0x24] sm:$0xf]  ;;  %v10518_v44 = vld [vmem:[%s9189_s22 + $0x2c] sm:$0x1] }
 0x163   : > { %v8555_v63 = vcombine.low %v6328_v35, %v6338_v58  ;;  %v10501_v50 = vrot.slane %v4484_v18, 5  ;;  %v4469_v62 = vsel %vm9268_vm5, %v4464_v42, %v10442_v25  ;;  %v4490_v3 = vshll.u32 %v8194_v17, 16 }
 0x164   : > { %v4494_v43 = vshrl.u32 %v8194_v17, 16  ;;  %v8272_v21 = vcombine.low %v8193_v29, %v8194_v17  ;;  %6973 = vrot.lane.b32.xlu0 %v8540_v53, %s9138_s24  ;;  %v4479_v4 = vsel %vm9268_vm5, %v4474_v19, %v4478_v8  ;;  %v3603_v13 = vsel %vm1602_vm8, %v3571_v0, %v3491_v45  ;;  %v10520_v29 = vpop.permute.xlu1 %3332  ;;  %v2025_v0 = vld [vmem:[%s9189_s22 + $0x60] sm:$0xf]  ;;  %v8492_v8 = vld [vmem:[%s9189_s22 + $0x24] sm:$0xe] }
 0x165   : > { %7051 = vrot.lane.b32.xlu1 %v8555_v63, %s9137_s23  ;;  %v1618_v1 = vsel %vm1602_vm8, %v10465_v10, %v1503_v2  ;;  %v8507_v25 = vrot.slane %v8491_v40, 9  ;;  %v8287_v49 = vcombine.low %v4469_v62, %v4479_v4  ;;  %v10522_v61 = vrot.slane %v4490_v3, 5  ;;  %8791 = vmatmul.mubr.msk.bf16.gmra.mrb[12].mxu1 %vm1667_vm9, %v3603_v13  ;;  %v1313_v63 = vpop.permute.xlu0 %1312 }
 0x166   : > { %v10524_v7 = vrot.slane %v4494_v43, 4  ;;  %v6765_v59 = vrot.slane %v10455_v11, 5  ;;  %8751 = vmatmul.mubr.msk.bf16.gmra.mrb[12].mxu0 %vm1667_vm9, %v1618_v1  ;;  %v6768_v45 = vrot.slane %v10460_v46, 5  ;;  %v6340_v10 = vshrl.u32 %v8446_v23, 16 }
 0x167   : > { %v6343_v37 = vshll.u32 %v8446_v23, 16  ;;  %v6349_v35 = vshll.u32 %v10508_v27, 16  ;;  %v6353_v6 = vshrl.u32 %v10508_v27, 16  ;;  %v6359_v11 = vshll.u32 %v10518_v44, 16  ;;  %v9022_v23 = vld [vmem:[%s9189_s22 + $0x64] sm:$0xf] }
 0x168   : > { %v6766_v12 = vsel %vm9217_vm2, %v8507_v25, %v6765_v59  ;;  %v6767_v17 = vrot.slane %v6765_v59, 4  ;;  %5082 = vrot.lane.b32.xlu0 %v8272_v21, %s9137_s23  ;;  %v6342_v18 = vrot.slane %v6340_v10, 4  ;;  %v2242_v53 = vshrl.u32 %v2025_v0, 16  ;;  %v1425_v21 = vpop.permute.xlu1 %1424 }
 0x169   : > { %5160 = vrot.lane.b32.xlu1 %v8287_v49, %s9139_s25  ;;  %v6345_v46 = vrot.slane %v6343_v37, 5  ;;  %v6351_v58 = vrot.slane %v6349_v35, 5  ;;  %v6355_v19 = vrot.slane %v6353_v6, 4  ;;  %v6361_v2 = vrot.slane %v6359_v11, 5  ;;  %v9023_v37 = vld [vmem:[%s9189_s22 + $0x60] sm:$0xf] }
 0x16a   : > { %v6769_v42 = vsel %vm9217_vm2, %v6767_v17, %v6768_v45  ;;  %v2245_v40 = vshll.u32 %v2025_v0, 16  ;;  %v2244_v43 = vrot.slane %v2242_v53, 4  ;;  %v2251_v4 = vshll.u32 %v9022_v23, 16  ;;  %v9024_v35 = vld [vmem:[%s9189_s22 + $0x64] sm:$0xf] }
 0x16b   : > { %v8571_v62 = vcombine.low %v6766_v12, %v6769_v42  ;;  %v6346_v3 = vor.u32 %v6345_v46, %v6342_v18  ;;  %v6356_v13 = vor.u32 %v6355_v19, %v6351_v58  ;;  %v12988_v25 = vshrl.u32 %v9690_v34, 16  ;;  %v8224_v42 = vld [vmem:[%s9189_s22 + $0x2c] sm:$0x1]  ;;  %v8413_v23 = vld [vmem:[%s9189_s22 + $0x24] sm:$0xe] }
 0x16c   : > { %v2247_v1 = vrot.slane %v2245_v40, 5  ;;  %v12989_v59 = vshll.u32 %v9693_v28, 16  ;;  %v2253_v10 = vrot.slane %v2251_v4, 5  ;;  %v7845_v12 = vcombine.low %v9023_v37, %v9024_v35  ;;  %v8148_v37 = vld [vmem:[%s9189_s22 + $0x28] sm:$0xf] }
 0x16d   : > { %v2257_v49 = vrot.slane %v12988_v25, 4  ;;  %7131 = vrot.lane.b32.xlu1 %v8571_v62, %s9139_s25  ;;  %v6347_v0 = vrot.slane %v6346_v3, 4  ;;  %v8508_v17 = vrot.slane %v8492_v8, 9  ;;  %v6357_v6 = vrot.slane %v6356_v13, 4  ;;  %v1315_v62 = vpop.permute.xlu0 %1314  ;;  %v8370_v25 = vld [vmem:[%s9189_s22 + $0x28] sm:$0xf] }
 0x16e   : > { %v2263_v45 = vrot.slane %v12989_v59, 5  ;;  %v2248_v11 = vor.u32 %v2247_v1, %v2244_v43  ;;  %v6772_v18 = vrot.slane %v10508_v27, 5  ;;  %v6775_v34 = vrot.slane %v10518_v44, 5 }
 0x16f   : > { %v6352_v28 = vsel %vm9268_vm5, %v6347_v0, %v6351_v58  ;;  %v2258_v46 = vor.u32 %v2257_v49, %v2253_v10  ;;  %v1547_v53 = vsel %vm1520_vm6, %v7845_v12, %v1313_v63  ;;  %v4487_v19 = vor.u32 %v10501_v50, %v10499_v14  ;;  %v8147_v14 = vld [vmem:[%s9189_s22 + $0x24] sm:$0xf]  ;;  %v3413_v50 = vpop.permute.xlu1 %3412  ;;  %v8371_v49 = vld [vmem:[%s9189_s22 + $0x2c] sm:$0x1] }
 0x170   : > { %v6362_v40 = vsel %vm9268_vm5, %v6357_v6, %v6361_v2  ;;  %v2249_v8 = vrot.slane %v2248_v11, 4  ;;  %v6773_v27 = vsel %vm9217_vm2, %v8508_v17, %v6772_v18  ;;  %v6774_v44 = vrot.slane %v6772_v18, 4  ;;  %v9026_v17 = vld [vmem:[%s9189_s22 + $0x70] sm:$0xf] }
 0x171   : > { %v8556_v3 = vcombine.low %v6352_v28, %v6362_v40  ;;  %v2259_v58 = vrot.slane %v2258_v46, 4  ;;  %v4488_v43 = vrot.slane %v4487_v19, 4  ;;  %v4497_v63 = vor.u32 %v10524_v7, %v10522_v61  ;;  %v8177_v28 = vld [vmem:[%s9189_s22 + $0x2c] sm:$0x1] }
 0x172   : > { %v2254_v2 = vsel %vm9268_vm5, %v2249_v8, %v2253_v10  ;;  %v6776_v4 = vsel %vm9217_vm2, %v6774_v44, %v6775_v34  ;;  %v4500_v13 = vshll.u32 %v8224_v42, 16  ;;  %v10570_v1 = vsel %vm1569_vm7, %v1547_v53, %v1425_v21  ;;  %v9025_v21 = vld [vmem:[%s9189_s22 + $0x6c] sm:$0xf]  ;;  %v10593_v8 = vpop.permute.xlu0 %3334 }
 0x173   : > { %7053 = vrot.lane.b32.xlu0 %v8556_v3, %s9137_s23  ;;  %v2264_v7 = vsel %vm9268_vm5, %v2259_v58, %v2263_v45  ;;  %v8572_v59 = vcombine.low %v6773_v27, %v6776_v4  ;;  %v4493_v0 = vsel %vm9268_vm5, %v4488_v43, %v10522_v61  ;;  %v4498_v10 = vrot.slane %v4497_v63, 4  ;;  %v2028_v40 = vld [vmem:[%s9189_s22 + $0x6c] sm:$0xf]  ;;  %v10597_v43 = vpop.permute.xlu1 %1504 }
 0x174   : > { %v8027_v35 = vcombine.low %v2254_v2, %v2264_v7  ;;  %v4502_v12 = vrot.slane %v4500_v13, 5  ;;  %v7846_v6 = vcombine.low %v9025_v21, %v9026_v17  ;;  %v8429_v11 = vrot.slane %v8413_v23, 9 }
 0x175   : > { %7133 = vrot.lane.b32.xlu1 %v8572_v59, %s9139_s25  ;;  %v6171_v18 = vrot.slane %v8370_v25, 5  ;;  %v6174_v34 = vrot.slane %v8371_v49, 5  ;;  %v4072_v45 = vshrl.u32 %v8147_v14, 16  ;;  %v4075_v46 = vshll.u32 %v8147_v14, 16  ;;  %v8195_v25 = vld [vmem:[%s9189_s22 + $0x30] sm:$0xf] }
 0x176   : > { %v3534_v53 = vsel %vm1520_vm6, %v8027_v35, %v10520_v29  ;;  %v4503_v61 = vsel %vm9268_vm5, %v4498_v10, %v4502_v12  ;;  %v10590_v42 = vsel %vm1520_vm6, %v7846_v6, %v1315_v62  ;;  %v4081_v19 = vshll.u32 %v8148_v37, 16  ;;  %v8196_v10 = vld [vmem:[%s9189_s22 + $0x34] sm:$0xf]  ;;  %v9027_v12 = vld [vmem:[%s9189_s22 + $0x70] sm:$0xf] }
 0x177   : > { %v8288_v27 = vcombine.low %v4493_v0, %v4503_v61  ;;  %v6172_v44 = vsel %vm9217_vm2, %v8429_v11, %v6171_v18  ;;  %v6173_v3 = vrot.slane %v6171_v18, 4  ;;  %v4074_v58 = vrot.slane %v4072_v45, 4  ;;  %v1427_v45 = vpop.permute.xlu0 %1426 }
 0x178   : > { %v4077_v29 = vrot.slane %v4075_v46, 5  ;;  %v4083_v63 = vrot.slane %v4081_v19, 5  ;;  %v4085_v23 = vshrl.u32 %v8148_v37, 16  ;;  %v4091_v62 = vshll.u32 %v8177_v28, 16 }
 0x179   : > { %5162 = vrot.lane.b32.xlu0 %v8288_v27, %s9139_s25  ;;  %v6175_v14 = vsel %vm9217_vm2, %v6173_v3, %v6174_v34  ;;  %v10603_v2 = vsel %vm1569_vm7, %v3534_v53, %v3413_v50  ;;  %v2266_v4 = vshrl.u32 %v2028_v40, 16  ;;  %v2269_v13 = vshll.u32 %v2028_v40, 16  ;;  %v8149_v40 = vld [vmem:[%s9189_s22 + $0x30] sm:$0xf]  ;;  %v10614_v27 = vpop.permute.xlu1 %3492 }
 0x17a   : > { %v8541_v49 = vcombine.low %v6172_v44, %v6175_v14  ;;  %v4078_v7 = vor.u32 %v4077_v29, %v4074_v58  ;;  %v4087_v59 = vrot.slane %v4085_v23, 4  ;;  %v4093_v0 = vrot.slane %v4091_v62, 5 }
 0x17b   : > { %v2268_v35 = vrot.slane %v2266_v4, 4  ;;  %v2271_v37 = vrot.slane %v2269_v13, 5  ;;  %v2275_v21 = vshll.u32 %v9027_v12, 16  ;;  %v12990_v17 = vshrl.u32 %v9746_v9, 16  ;;  %v8178_v4 = vld [vmem:[%s9189_s22 + $0x38] sm:$0x1] }
 0x17c   : > { %6975 = vrot.lane.b32.xlu1 %v8541_v49, %s9138_s24  ;;  %v4079_v50 = vrot.slane %v4078_v7, 4  ;;  %v4088_v11 = vor.u32 %v4087_v59, %v4083_v63  ;;  %v12991_v18 = vshll.u32 %v9749_v33, 16  ;;  %v4505_v28 = vshrl.u32 %v8195_v25, 16  ;;  %v8150_v33 = vld [vmem:[%s9189_s22 + $0x34] sm:$0xf] }
 0x17d   : > { %v2281_v6 = vrot.slane %v12990_v17, 4  ;;  %v2272_v46 = vor.u32 %v2271_v37, %v2268_v35  ;;  %v2277_v53 = vrot.slane %v2275_v21, 5  ;;  %v4508_v61 = vshll.u32 %v8195_v25, 16  ;;  %v8449_v21 = vld [vmem:[%s9189_s22 + $0x30] sm:$0xf] }
 0x17e   : > { %v2287_v34 = vrot.slane %v12991_v18, 5  ;;  %v4514_v19 = vshll.u32 %v8196_v10, 16  ;;  %v4084_v9 = vsel %vm9268_vm5, %v4079_v50, %v4083_v63  ;;  %v4089_v44 = vrot.slane %v4088_v11, 4  ;;  %v10635_v18 = vld [vmem:[%s9189_s22 + $0x34] sm:$0xf] }
 0x17f   : > { %v10618_v3 = vrot.slane %v4505_v28, 4  ;;  %v4518_v58 = vshrl.u32 %v8196_v10, 16  ;;  %v2273_v29 = vrot.slane %v2272_v46, 4  ;;  %v2282_v23 = vor.u32 %v2281_v6, %v2277_v53 }
 0x180   : > { %v10621_v62 = vrot.slane %v4508_v61, 5  ;;  %v10623_v14 = vrot.slane %v4514_v19, 5  ;;  %v4094_v13 = vsel %vm9268_vm5, %v4089_v44, %v4093_v0  ;;  %v8273_v63 = vcombine.low %v8195_v25, %v8196_v10  ;;  %v3415_v0 = vpop.permute.xlu0 %3414  ;;  %v10650_v61 = vpop.permute.xlu1 %3494 }
 0x181   : > { %v10628_v49 = vrot.slane %v4518_v58, 4  ;;  %v4096_v7 = vshrl.u32 %v8149_v40, 16  ;;  %v8257_v59 = vcombine.low %v4084_v9, %v4094_v13  ;;  %v2278_v35 = vsel %vm9268_vm5, %v2273_v29, %v2277_v53  ;;  %v10648_v53 = vld [vmem:[%s9189_s22 + $0x38] sm:$0x1] }
 0x182   : > { %v2283_v37 = vrot.slane %v2282_v23, 4  ;;  %v4099_v12 = vshll.u32 %v8149_v40, 16  ;;  %5084 = vrot.lane.b32.xlu1 %v8273_v63, %s9137_s23  ;;  %v4105_v6 = vshll.u32 %v8150_v33, 16  ;;  %v4109_v50 = vshrl.u32 %v8150_v33, 16  ;;  %v8374_v13 = vld [vmem:[%s9189_s22 + $0x38] sm:$0x1] }
 0x183   : > { %v4098_v17 = vrot.slane %v4096_v7, 4  ;;  %v4115_v11 = vshll.u32 %v8178_v4, 16  ;;  %4972 = vrot.lane.b32.xlu0 %v8257_v59, %s9138_s24  ;;  %v1620_v28 = vsel %vm1602_vm8, %v10570_v1, %v10597_v43  ;;  %v10645_v46 = vsel %vm1569_vm7, %v10590_v42, %v1427_v45  ;;  %v8414_v43 = vld [vmem:[%s9189_s22 + $0x30] sm:$0xe]  ;;  %v8373_v4 = vld [vmem:[%s9189_s22 + $0x34] sm:$0xf] }
 0x184   : > { %v2288_v25 = vsel %vm9268_vm5, %v2283_v37, %v2287_v34  ;;  %v4101_v10 = vrot.slane %v4099_v12, 5  ;;  %v4107_v40 = vrot.slane %v4105_v6, 5  ;;  %v4111_v9 = vrot.slane %v4109_v50, 4  ;;  %8754 = vmatprep.mubr.msk.bf16.mxu0 %vm1667_vm9, %v1620_v28  ;;  %v1507_v6 = vpop.permute.xlu0 %1506  ;;  %v10664_v28 = vpop.permute.xlu1 %3336 }
 0x185   : > { %v8028_v19 = vcombine.low %v2278_v35, %v2288_v25  ;;  %v4117_v44 = vrot.slane %v4115_v11, 5  ;;  %v6364_v58 = vshrl.u32 %v8449_v21, 16  ;;  %v6367_v33 = vshll.u32 %v8449_v21, 16 }
 0x186   : > { %v4102_v34 = vor.u32 %v4101_v10, %v4098_v17  ;;  %v6373_v1 = vshll.u32 %v10635_v18, 16  ;;  %v4112_v45 = vor.u32 %v4111_v9, %v4107_v40  ;;  %v6377_v29 = vshrl.u32 %v10635_v18, 16  ;;  %v8225_v10 = vld [vmem:[%s9189_s22 + $0x38] sm:$0x1] }
 0x187   : > { %v3537_v42 = vsel %vm1520_vm6, %v8028_v19, %v10593_v8  ;;  %v6383_v23 = vshll.u32 %v10648_v53, 16  ;;  %v6366_v7 = vrot.slane %v6364_v58, 4  ;;  %v6369_v59 = vrot.slane %v6367_v33, 5  ;;  %v8197_v33 = vld [vmem:[%s9189_s22 + $0x3c] sm:$0xf] }
 0x188   : > { %v4103_v63 = vrot.slane %v4102_v34, 4  ;;  %v6375_v35 = vrot.slane %v6373_v1, 5  ;;  %v4113_v37 = vrot.slane %v4112_v45, 4  ;;  %v6379_v12 = vrot.slane %v6377_v29, 4 }
 0x189   : > { %v6385_v21 = vrot.slane %v6383_v23, 5  ;;  %v8430_v17 = vrot.slane %v8414_v43, 9  ;;  %v6370_v50 = vor.u32 %v6369_v59, %v6366_v7  ;;  %v6178_v11 = vrot.slane %v8373_v4, 5  ;;  %v8493_v7 = vld [vmem:[%s9189_s22 + $0x30] sm:$0xe]  ;;  %v10689_v59 = vpop.permute.xlu0 %1316 }
 0x18a   : > { %v4108_v8 = vsel %vm9268_vm5, %v4103_v63, %v4107_v40  ;;  %v6181_v25 = vrot.slane %v8374_v13, 5  ;;  %v4118_v19 = vsel %vm9268_vm5, %v4113_v37, %v4117_v44  ;;  %v6380_v9 = vor.u32 %v6379_v12, %v6375_v35 }
 0x18b   : > { %v3605_v34 = vsel %vm1602_vm8, %v10603_v2, %v10614_v27  ;;  %v3575_v58 = vsel %vm1569_vm7, %v3537_v42, %v3415_v0  ;;  %v8258_v1 = vcombine.low %v4108_v8, %v4118_v19  ;;  %v6371_v40 = vrot.slane %v6370_v50, 4  ;;  %v8198_v42 = vld [vmem:[%s9189_s22 + $0x40] sm:$0xf]  ;;  %v10695_v8 = vpop.permute.xlu1 %1428 }
 0x18c   : > { %v6179_v43 = vsel %vm9217_vm2, %v8430_v17, %v6178_v11  ;;  %v6180_v45 = vrot.slane %v6178_v11, 4  ;;  %8794 = vmatprep.mubr.msk.bf16.mxu1 %vm1667_vm9, %v3605_v34  ;;  %v6381_v29 = vrot.slane %v6380_v9, 4  ;;  %v4511_v44 = vor.u32 %v10621_v62, %v10618_v3  ;;  %v10702_v19 = vld [vmem:[%s9189_s22 + $0x40] sm:$0xf] }
 0x18d   : > { %v4521_v23 = vor.u32 %v10628_v49, %v10623_v14  ;;  %v4524_v2 = vshll.u32 %v8225_v10, 16  ;;  %4974 = vrot.lane.b32.xlu0 %v8258_v1, %s9138_s24  ;;  %v6376_v27 = vsel %vm9268_vm5, %v6371_v40, %v6375_v35  ;;  %v4529_v4 = vshrl.u32 %v8197_v33, 16  ;;  %v8452_v10 = vld [vmem:[%s9189_s22 + $0x3c] sm:$0xf]  ;;  %v10713_v40 = vld [vmem:[%s9189_s22 + $0x44] sm:$0x1] }
 0x18e   : > { %v6182_v0 = vsel %vm9217_vm2, %v6180_v45, %v6181_v25  ;;  %v4532_v13 = vshll.u32 %v8197_v33, 16  ;;  %v6386_v63 = vsel %vm9268_vm5, %v6381_v29, %v6385_v21  ;;  %v4512_v62 = vrot.slane %v4511_v44, 4  ;;  %v2031_v44 = vld [vmem:[%s9189_s22 + $0x78] sm:$0xf] }
 0x18f   : > { %v8542_v3 = vcombine.low %v6179_v43, %v6182_v0  ;;  %v4522_v49 = vrot.slane %v4521_v23, 4  ;;  %v8557_v37 = vcombine.low %v6376_v27, %v6386_v63  ;;  %v4526_v12 = vrot.slane %v4524_v2, 5  ;;  %v10729_v0 = vpop.permute.xlu0 %1318  ;;  %v10733_v63 = vpop.permute.xlu1 %3416 }
 0x190   : > { %v10691_v35 = vrot.slane %v4529_v4, 4  ;;  %v10693_v17 = vrot.slane %v4532_v13, 5  ;;  %v4517_v21 = vsel %vm9268_vm5, %v4512_v62, %v10623_v14  ;;  %v4538_v50 = vshll.u32 %v8198_v42, 16 }
 0x191   : > { %v4542_v11 = vshrl.u32 %v8198_v42, 16  ;;  %v8274_v25 = vcombine.low %v8197_v33, %v8198_v42  ;;  %7055 = vrot.lane.b32.xlu1 %v8557_v37, %s9137_s23  ;;  %6977 = vrot.lane.b32.xlu0 %v8542_v3, %s9138_s24  ;;  %v4527_v9 = vsel %vm9268_vm5, %v4522_v49, %v4526_v12  ;;  %v3607_v34 = vsel %vm1602_vm8, %v3575_v58, %v10650_v61  ;;  %v8494_v37 = vld [vmem:[%s9189_s22 + $0x3c] sm:$0xe] }
 0x192   : > { %v1622_v14 = vsel %vm1602_vm8, %v10645_v46, %v1507_v6  ;;  %v8509_v1 = vrot.slane %v8493_v7, 9  ;;  %v8289_v33 = vcombine.low %v4517_v21, %v4527_v9  ;;  %v10715_v43 = vrot.slane %v4538_v50, 5  ;;  %8795 = vmatmul.mubr.msk.bf16.gmra.mrb[16].mxu1 %vm1667_vm9, %v3607_v34 }
 0x193   : > { %v10717_v45 = vrot.slane %v4542_v11, 4  ;;  %v6779_v29 = vrot.slane %v10635_v18, 5  ;;  %8755 = vmatmul.mubr.msk.bf16.gmra.mrb[16].mxu0 %vm1667_vm9, %v1622_v14  ;;  %v6782_v61 = vrot.slane %v10648_v53, 5  ;;  %v6388_v58 = vshrl.u32 %v8452_v10, 16  ;;  %v9028_v11 = vld [vmem:[%s9189_s22 + $0x7c] sm:$0xf] }
 0x194   : > { %v6391_v23 = vshll.u32 %v8452_v10, 16  ;;  %v6397_v46 = vshll.u32 %v10702_v19, 16  ;;  %v6401_v27 = vshrl.u32 %v10702_v19, 16  ;;  %v6407_v18 = vshll.u32 %v10713_v40, 16 }
 0x195   : > { %v6780_v6 = vsel %vm9217_vm2, %v8509_v1, %v6779_v29  ;;  %v6781_v2 = vrot.slane %v6779_v29, 4  ;;  %5164 = vrot.lane.b32.xlu1 %v8289_v33, %s9139_s25  ;;  %5086 = vrot.lane.b32.xlu0 %v8274_v25, %s9137_s23  ;;  %v6390_v53 = vrot.slane %v6388_v58, 4  ;;  %v2290_v13 = vshrl.u32 %v2031_v44, 16  ;;  %v9030_v58 = vld [vmem:[%s9189_s22 + $0x7c] sm:$0xf] }
 0x196   : > { %v6393_v42 = vrot.slane %v6391_v23, 5  ;;  %v6399_v4 = vrot.slane %v6397_v46, 5  ;;  %v6403_v62 = vrot.slane %v6401_v27, 4  ;;  %v6409_v49 = vrot.slane %v6407_v18, 5 }
 0x197   : > { %v6783_v3 = vsel %vm9217_vm2, %v6781_v2, %v6782_v61  ;;  %v2293_v7 = vshll.u32 %v2031_v44, 16  ;;  %v2292_v50 = vrot.slane %v2290_v13, 4  ;;  %v2299_v25 = vshll.u32 %v9028_v11, 16  ;;  %v9029_v44 = vld [vmem:[%s9189_s22 + $0x78] sm:$0xf] }
 0x198   : > { %v8573_v12 = vcombine.low %v6780_v6, %v6783_v3  ;;  %v6394_v21 = vor.u32 %v6393_v42, %v6390_v53  ;;  %v6404_v10 = vor.u32 %v6403_v62, %v6399_v4  ;;  %v12992_v34 = vshrl.u32 %v9813_v32, 16  ;;  %v10748_v32 = vpop.permute.xlu0 %3338  ;;  %v8226_v13 = vld [vmem:[%s9189_s22 + $0x44] sm:$0x1]  ;;  %v10757_v62 = vpop.permute.xlu1 %1508 }
 0x199   : > { %v2295_v9 = vrot.slane %v2293_v7, 5  ;;  %v12993_v1 = vshll.u32 %v9826_v24, 16  ;;  %v2301_v61 = vrot.slane %v2299_v25, 5  ;;  %v7847_v23 = vcombine.low %v9029_v44, %v9030_v58  ;;  %v9031_v58 = vld [vmem:[%s9189_s22 + $0x84] sm:$0xf] }
 0x19a   : > { %v2305_v14 = vrot.slane %v12992_v34, 4  ;;  %7135 = vrot.lane.b32.xlu1 %v8573_v12, %s9139_s25  ;;  %v6395_v29 = vrot.slane %v6394_v21, 4  ;;  %v8510_v46 = vrot.slane %v8494_v37, 9  ;;  %v6405_v6 = vrot.slane %v6404_v10, 4  ;;  %v8376_v10 = vld [vmem:[%s9189_s22 + $0x40] sm:$0xf] }
 0x19b   : > { %v2311_v33 = vrot.slane %v12993_v1, 5  ;;  %v2296_v2 = vor.u32 %v2295_v9, %v2292_v50  ;;  %v6786_v27 = vrot.slane %v10702_v19, 5  ;;  %v6789_v18 = vrot.slane %v10713_v40, 5  ;;  %v8377_v9 = vld [vmem:[%s9189_s22 + $0x44] sm:$0x1] }
 0x19c   : > { %v6400_v24 = vsel %vm9268_vm5, %v6395_v29, %v6399_v4  ;;  %v2306_v53 = vor.u32 %v2305_v14, %v2301_v61  ;;  %v1553_v42 = vsel %vm1520_vm6, %v7847_v23, %v10689_v59  ;;  %v4535_v3 = vor.u32 %v10693_v17, %v10691_v35  ;;  %v8415_v35 = vld [vmem:[%s9189_s22 + $0x3c] sm:$0xe]  ;;  %v8152_v29 = vld [vmem:[%s9189_s22 + $0x40] sm:$0xf] }
 0x19d   : > { %v6410_v19 = vsel %vm9268_vm5, %v6405_v6, %v6409_v49  ;;  %v2297_v40 = vrot.slane %v2296_v2, 4  ;;  %v6787_v7 = vsel %vm9217_vm2, %v8510_v46, %v6786_v27  ;;  %v6788_v4 = vrot.slane %v6786_v27, 4  ;;  %v8151_v17 = vld [vmem:[%s9189_s22 + $0x3c] sm:$0xf]  ;;  %v10786_v6 = vpop.permute.xlu0 %1430  ;;  %v8179_v27 = vld [vmem:[%s9189_s22 + $0x44] sm:$0x1] }
 0x19e   : > { %v8558_v37 = vcombine.low %v6400_v24, %v6410_v19  ;;  %v2307_v12 = vrot.slane %v2306_v53, 4  ;;  %v4536_v59 = vrot.slane %v4535_v3, 4  ;;  %v4545_v21 = vor.u32 %v10717_v45, %v10715_v43  ;;  %v10790_v53 = vpop.permute.xlu1 %3496  ;;  %v2034_v19 = vld [vmem:[%s9189_s22 + $0x84] sm:$0xf] }
 0x19f   : > { %v2302_v50 = vsel %vm9268_vm5, %v2297_v40, %v2301_v61  ;;  %v6790_v49 = vsel %vm9217_vm2, %v6788_v4, %v6789_v18  ;;  %v4548_v11 = vshll.u32 %v8226_v13, 16  ;;  %v10773_v25 = vsel %vm1569_vm7, %v1553_v42, %v10695_v8  ;;  %v9032_v8 = vld [vmem:[%s9189_s22 + $0x88] sm:$0xf] }
 0x1a0   : > { %7057 = vrot.lane.b32.xlu0 %v8558_v37, %s9137_s23  ;;  %v2312_v45 = vsel %vm9268_vm5, %v2307_v12, %v2311_v33  ;;  %v8574_v34 = vcombine.low %v6787_v7, %v6790_v49  ;;  %v4541_v14 = vsel %vm9268_vm5, %v4536_v59, %v10715_v43  ;;  %v4546_v1 = vrot.slane %v4545_v21, 4  ;;  %v8199_v49 = vld [vmem:[%s9189_s22 + $0x48] sm:$0xf] }
 0x1a1   : > { %v8029_v61 = vcombine.low %v2302_v50, %v2312_v45  ;;  %v4550_v44 = vrot.slane %v4548_v11, 5  ;;  %v7848_v23 = vcombine.low %v9031_v58, %v9032_v8  ;;  %v8431_v46 = vrot.slane %v8415_v35, 9 }
 0x1a2   : > { %7137 = vrot.lane.b32.xlu1 %v8574_v34, %s9139_s25  ;;  %v6185_v2 = vrot.slane %v8376_v10, 5  ;;  %v6188_v33 = vrot.slane %v8377_v9, 5  ;;  %v4120_v18 = vshrl.u32 %v8151_v17, 16  ;;  %v4123_v24 = vshll.u32 %v8151_v17, 16  ;;  %v8200_v34 = vld [vmem:[%s9189_s22 + $0x4c] sm:$0xf] }
 0x1a3   : > { %v3540_v43 = vsel %vm1520_vm6, %v8029_v61, %v10664_v28  ;;  %v4551_v42 = vsel %vm9268_vm5, %v4546_v1, %v4550_v44  ;;  %v10798_v13 = vsel %vm1520_vm6, %v7848_v23, %v10729_v0  ;;  %v4129_v3 = vshll.u32 %v8152_v29, 16  ;;  %v9033_v61 = vld [vmem:[%s9189_s22 + $0x88] sm:$0xf] }
 0x1a4   : > { %v8290_v40 = vcombine.low %v4541_v14, %v4551_v42  ;;  %v6186_v7 = vsel %vm9217_vm2, %v8431_v46, %v6185_v2  ;;  %v6187_v4 = vrot.slane %v6185_v2, 4  ;;  %v4122_v37 = vrot.slane %v4120_v18, 4  ;;  %v10812_v14 = vpop.permute.xlu0 %3418  ;;  %v8153_v18 = vld [vmem:[%s9189_s22 + $0x48] sm:$0xf] }
 0x1a5   : > { %v4125_v12 = vrot.slane %v4123_v24, 5  ;;  %v4131_v59 = vrot.slane %v4129_v3, 5  ;;  %v4133_v28 = vshrl.u32 %v8152_v29, 16  ;;  %v4139_v21 = vshll.u32 %v8179_v27, 16 }
 0x1a6   : > { %5166 = vrot.lane.b32.xlu0 %v8290_v40, %s9139_s25  ;;  %v6189_v0 = vsel %vm9217_vm2, %v6187_v4, %v6188_v33  ;;  %v10808_v35 = vsel %vm1569_vm7, %v3540_v43, %v10733_v63  ;;  %v2314_v17 = vshrl.u32 %v2034_v19, 16  ;;  %v2317_v50 = vshll.u32 %v2034_v19, 16  ;;  %v10817_v63 = vpop.permute.xlu1 %3498  ;;  %v8971_v19 = vld [vmem:[%s12974_s1 + $0x60] sm:$0xff]  }
 0x1a7   : > { %v8543_v11 = vcombine.low %v6186_v7, %v6189_v0  ;;  %v4126_v10 = vor.u32 %v4125_v12, %v4122_v37  ;;  %v4135_v9 = vrot.slane %v4133_v28, 4  ;;  %v4141_v45 = vrot.slane %v4139_v21, 5  ;;  %v8154_v37 = vld [vmem:[%s9189_s22 + $0x4c] sm:$0xf]  ;;  %8850 = vmatprep.subr.bf16.mxu1 %v8971_v19 }
 0x1a8   : > { %v2316_v1 = vrot.slane %v2314_v17, 4  ;;  %v2319_v29 = vrot.slane %v2317_v50, 5  ;;  %v2323_v44 = vshll.u32 %v9033_v61, 16  ;;  %v12994_v58 = vshrl.u32 %v9899_v47, 16  ;;  %v8970_v47 = vld [vmem:[%s12974_s1 + $0x40] sm:$0xff]   ;;  %8851 = vmatpush3.bf16.msra.mxu1 %v8971_v19 }
 0x1a9   : > { %6979 = vrot.lane.b32.xlu1 %v8543_v11, %s9138_s24  ;;  %v4127_v23 = vrot.slane %v4126_v10, 4  ;;  %v4136_v46 = vor.u32 %v4135_v9, %v4131_v59  ;;  %v12995_v2 = vshll.u32 %v9906_v52, 16  ;;  %v4553_v27 = vshrl.u32 %v8199_v49, 16  ;;  %v8180_v17 = vld [vmem:[%s9189_s22 + $0x50] sm:$0x1]  ;;  %8810 = vmatprep.subr.bf16.mxu0 %v8970_v47  ;;  %v10843_v9 = vpop.permute.xlu0 %1510 }
 0x1aa   : > { %v2329_v8 = vrot.slane %v12994_v58, 4  ;;  %v2320_v24 = vor.u32 %v2319_v29, %v2316_v1  ;;  %v2325_v43 = vrot.slane %v2323_v44, 5  ;;  %v4556_v42 = vshll.u32 %v8199_v49, 16  ;;  %8811 = vmatpush3.bf16.msra.mxu0 %v8970_v47  ;;  %v8455_v58 = vld [vmem:[%s9189_s22 + $0x48] sm:$0xf] }
 0x1ab   : > { %v2335_v33 = vrot.slane %v12995_v2, 5  ;;  %v4562_v3 = vshll.u32 %v8200_v34, 16  ;;  %v4132_v40 = vsel %vm9268_vm5, %v4127_v23, %v4131_v59  ;;  %v4137_v52 = vrot.slane %v4136_v46, 4  ;;  %v10852_v46 = vld [vmem:[%s9189_s22 + $0x4c] sm:$0xf] }
 0x1ac   : > { %v10831_v7 = vrot.slane %v4553_v27, 4  ;;  %v4566_v4 = vshrl.u32 %v8200_v34, 16  ;;  %v2321_v12 = vrot.slane %v2320_v24, 4  ;;  %v2330_v28 = vor.u32 %v2329_v8, %v2325_v43  ;;  %v10848_v8 = vpop.permute.xlu1 %3340 }
 0x1ad   : > { %v10834_v21 = vrot.slane %v4556_v42, 5  ;;  %v10836_v0 = vrot.slane %v4562_v3, 5  ;;  %v4142_v50 = vsel %vm9268_vm5, %v4137_v52, %v4141_v45  ;;  %v8275_v59 = vcombine.low %v8199_v49, %v8200_v34 }
 0x1ae   : > { %v10841_v11 = vrot.slane %v4566_v4, 4  ;;  %v4144_v10 = vshrl.u32 %v8153_v18, 16  ;;  %v8259_v1 = vcombine.low %v4132_v40, %v4142_v50  ;;  %v2326_v29 = vsel %vm9268_vm5, %v2321_v12, %v2325_v43  ;;  %v10866_v43 = vld [vmem:[%s9189_s22 + $0x50] sm:$0x1]  ;;  %v8379_v12 = vld [vmem:[%s9189_s22 + $0x4c] sm:$0xf] }
 0x1af   : > { %v2331_v61 = vrot.slane %v2330_v28, 4  ;;  %v4147_v44 = vshll.u32 %v8153_v18, 16  ;;  %5088 = vrot.lane.b32.xlu1 %v8275_v59, %s9137_s23  ;;  %v4153_v49 = vshll.u32 %v8154_v37, 16  ;;  %v4157_v34 = vshrl.u32 %v8154_v37, 16  ;;  %v8380_v28 = vld [vmem:[%s9189_s22 + $0x50] sm:$0x1] }
 0x1b0   : > { %v4146_v45 = vrot.slane %v4144_v10, 4  ;;  %v4163_v23 = vshll.u32 %v8180_v17, 16  ;;  %4976 = vrot.lane.b32.xlu0 %v8259_v1, %s9138_s24  ;;  %v1624_v18 = vsel %vm1602_vm8, %v10773_v25, %v10757_v62  ;;  %v10863_v24 = vsel %vm1569_vm7, %v10798_v13, %v10786_v6  ;;  %v8416_v25 = vld [vmem:[%s9189_s22 + $0x48] sm:$0xe]  ;;  %v10877_v17 = vpop.permute.xlu0 %1320 }
 0x1b1   : > { %v2336_v2 = vsel %vm9268_vm5, %v2331_v61, %v2335_v33  ;;  %v4149_v27 = vrot.slane %v4147_v44, 5  ;;  %v4155_v3 = vrot.slane %v4153_v49, 5  ;;  %v4159_v47 = vrot.slane %v4157_v34, 4  ;;  %8758 = vmatprep.mubr.msk.bf16.mxu0 %vm1667_vm9, %v1624_v18  ;;  %v8974_v18 = vld [vmem:[%s12974_s1 + $0x68] sm:$0xff]  }
 0x1b2   : > { %v8030_v42 = vcombine.low %v2326_v29, %v2336_v2  ;;  %v4165_v19 = vrot.slane %v4163_v23, 5  ;;  %v6412_v40 = vshrl.u32 %v8455_v58, 16  ;;  %v6415_v52 = vshll.u32 %v8455_v58, 16  ;;  %v10879_v29 = vpop.permute.xlu1 %1432  ;;  %v8227_v2 = vld [vmem:[%s9189_s22 + $0x50] sm:$0x1]  ;;  %8852 = vmatprep.subr.bf16.mxu1 %v8974_v18 }
 0x1b3   : > { %v4150_v33 = vor.u32 %v4149_v27, %v4146_v45  ;;  %v6421_v62 = vshll.u32 %v10852_v46, 16  ;;  %v4160_v13 = vor.u32 %v4159_v47, %v4155_v3  ;;  %v6425_v4 = vshrl.u32 %v10852_v46, 16  ;;  %v8973_v27 = vld [vmem:[%s12974_s1 + $0x48] sm:$0xff]   ;;  %8853 = vmatpush3.bf16.msra.mxu1 %v8974_v18 }
 0x1b4   : > { %v3543_v6 = vsel %vm1520_vm6, %v8030_v42, %v10748_v32  ;;  %v6431_v37 = vshll.u32 %v10866_v43, 16  ;;  %v6414_v59 = vrot.slane %v6412_v40, 4  ;;  %v6417_v10 = vrot.slane %v6415_v52, 5  ;;  %v10898_v40 = vld [vmem:[%s9189_s22 + $0x54] sm:$0xf]  ;;  %8812 = vmatprep.subr.bf16.mxu0 %v8973_v27 }
 0x1b5   : > { %v4151_v50 = vrot.slane %v4150_v33, 4  ;;  %v6423_v1 = vrot.slane %v6421_v62, 5  ;;  %v4161_v61 = vrot.slane %v4160_v13, 4  ;;  %v6427_v44 = vrot.slane %v6425_v4, 4  ;;  %8813 = vmatpush3.bf16.msra.mxu0 %v8973_v27  ;;  %v10932_v27 = vld [vmem:[%s9189_s22 + $0x58] sm:$0xf] }
 0x1b6   : > { %v6433_v32 = vrot.slane %v6431_v37, 5  ;;  %v8432_v58 = vrot.slane %v8416_v25, 9  ;;  %v6418_v49 = vor.u32 %v6417_v10, %v6414_v59  ;;  %v6192_v34 = vrot.slane %v8379_v12, 5  ;;  %v8202_v12 = vld [vmem:[%s9189_s22 + $0x58] sm:$0xf] }
 0x1b7   : > { %v4156_v45 = vsel %vm9268_vm5, %v4151_v50, %v4155_v3  ;;  %v6195_v23 = vrot.slane %v8380_v28, 5  ;;  %v4166_v42 = vsel %vm9268_vm5, %v4161_v61, %v4165_v19  ;;  %v6428_v47 = vor.u32 %v6427_v44, %v6423_v1 }
 0x1b8   : > { %v3609_v3 = vsel %vm1602_vm8, %v10808_v35, %v10790_v53  ;;  %v3579_v33 = vsel %vm1569_vm7, %v3543_v6, %v10812_v14  ;;  %v8260_v52 = vcombine.low %v4156_v45, %v4166_v42  ;;  %v6419_v62 = vrot.slane %v6418_v49, 4  ;;  %v10907_v14 = vpop.permute.xlu0 %1322 }
 0x1b9   : > { %v6193_v25 = vsel %vm9217_vm2, %v8432_v58, %v6192_v34  ;;  %v6194_v13 = vrot.slane %v6192_v34, 4  ;;  %8798 = vmatprep.mubr.msk.bf16.mxu1 %vm1667_vm9, %v3609_v3  ;;  %v6429_v19 = vrot.slane %v6428_v47, 4  ;;  %v4559_v4 = vor.u32 %v10834_v21, %v10831_v7  ;;  %v10944_v3 = vld [vmem:[%s9189_s22 + $0x5c] sm:$0x1] }
 0x1ba   : > { %v4569_v53 = vor.u32 %v10841_v11, %v10836_v0  ;;  %v4572_v35 = vshll.u32 %v8227_v2, 16  ;;  %4978 = vrot.lane.b32.xlu0 %v8260_v52, %s9138_s24  ;;  %v6424_v6 = vsel %vm9268_vm5, %v6419_v62, %v6423_v1  ;;  %v4577_v7 = vshrl.u32 %v10898_v40, 16  ;;  %v10917_v11 = vpop.permute.xlu1 %3420  ;;  %v8495_v1 = vld [vmem:[%s9189_s22 + $0x48] sm:$0xe] }
 0x1bb   : > { %v6196_v37 = vsel %vm9217_vm2, %v6194_v13, %v6195_v23  ;;  %v4580_v21 = vshll.u32 %v10898_v40, 16  ;;  %v6434_v28 = vsel %vm9268_vm5, %v6429_v19, %v6433_v32  ;;  %v4560_v59 = vrot.slane %v4559_v4, 4  ;;  %v8458_v32 = vld [vmem:[%s9189_s22 + $0x54] sm:$0xf]  ;;  %v2037_v13 = vld [vmem:[%s9189_s22 + $0x90] sm:$0xf] }
 0x1bc   : > { %v8544_v50 = vcombine.low %v6193_v25, %v6196_v37  ;;  %v4570_v10 = vrot.slane %v4569_v53, 4  ;;  %v8559_v61 = vcombine.low %v6424_v6, %v6434_v28  ;;  %v4574_v44 = vrot.slane %v4572_v35, 5  ;;  %v8975_v37 = vld [vmem:[%s12974_s1 + $0x50] sm:$0xff]  }
 0x1bd   : > { %v10922_v58 = vrot.slane %v4577_v7, 4  ;;  %v10924_v45 = vrot.slane %v4580_v21, 5  ;;  %v4565_v49 = vsel %vm9268_vm5, %v4560_v59, %v10836_v0  ;;  %v4586_v34 = vshll.u32 %v8202_v12, 16  ;;  %8814 = vmatprep.subr.bf16.mxu0 %v8975_v37 }
 0x1be   : > { %v4590_v23 = vshrl.u32 %v8202_v12, 16  ;;  %v8276_v2 = vcombine.low %v10898_v40, %v8202_v12  ;;  %7059 = vrot.lane.b32.xlu1 %v8559_v61, %s9137_s23  ;;  %6981 = vrot.lane.b32.xlu0 %v8544_v50, %s9138_s24  ;;  %v4575_v18 = vsel %vm9268_vm5, %v4570_v10, %v4574_v44  ;;  %v3611_v42 = vsel %vm1602_vm8, %v3579_v33, %v10817_v63  ;;  %v10954_v63 = vpop.permute.xlu0 %3342  ;;  %v10958_v4 = vpop.permute.xlu1 %1512  ;;  %v8496_v61 = vld [vmem:[%s9189_s22 + $0x54] sm:$0xe] }
 0x1bf   : > { %v1626_v0 = vsel %vm1602_vm8, %v10863_v24, %v10843_v9  ;;  %v8511_v47 = vrot.slane %v8495_v1, 9  ;;  %v8291_v40 = vcombine.low %v4565_v49, %v4575_v18  ;;  %v10946_v52 = vrot.slane %v4586_v34, 5  ;;  %8799 = vmatmul.mubr.msk.bf16.gmra.mrb[20].mxu1 %vm1667_vm9, %v3611_v42  ;;  %8815 = vmatpush3.bf16.msra.mxu0 %v8975_v37 }
 0x1c0   : > { %v10948_v62 = vrot.slane %v4590_v23, 4  ;;  %v6793_v25 = vrot.slane %v10852_v46, 5  ;;  %8759 = vmatmul.mubr.msk.bf16.gmra.mrb[20].mxu0 %vm1667_vm9, %v1626_v0  ;;  %v6796_v33 = vrot.slane %v10866_v43, 5  ;;  %v6436_v9 = vshrl.u32 %v8458_v32, 16  ;;  %v8976_v43 = vld [vmem:[%s12974_s1 + $0x70] sm:$0xff]  }
 0x1c1   : > { %v6439_v24 = vshll.u32 %v8458_v32, 16  ;;  %v6445_v19 = vshll.u32 %v10932_v27, 16  ;;  %v6449_v35 = vshrl.u32 %v10932_v27, 16  ;;  %v6455_v6 = vshll.u32 %v10944_v3, 16  ;;  %8854 = vmatprep.subr.bf16.mxu1 %v8976_v43  ;;  %v9034_v23 = vld [vmem:[%s9189_s22 + $0x94] sm:$0xf] }
 0x1c2   : > { %v6794_v53 = vsel %vm9217_vm2, %v8511_v47, %v6793_v25  ;;  %v6795_v46 = vrot.slane %v6793_v25, 4  ;;  %5168 = vrot.lane.b32.xlu1 %v8291_v40, %s9139_s25  ;;  %5090 = vrot.lane.b32.xlu0 %v8276_v2, %s9137_s23  ;;  %v6438_v12 = vrot.slane %v6436_v9, 4  ;;  %v2338_v28 = vshrl.u32 %v2037_v13, 16  ;;  %v10980_v47 = vpop.permute.xlu0 %1434  ;;  %v8977_v40 = vld [vmem:[%s12974_s1 + $0x58] sm:$0xff]  }
 0x1c3   : > { %v6441_v7 = vrot.slane %v6439_v24, 5  ;;  %v6447_v21 = vrot.slane %v6445_v19, 5  ;;  %v6451_v59 = vrot.slane %v6449_v35, 4  ;;  %v6457_v10 = vrot.slane %v6455_v6, 5  ;;  %8855 = vmatpush3.bf16.msra.mxu1 %v8976_v43  ;;  %v8978_v25 = vld [vmem:[%s12974_s1 + $0x78] sm:$0xff]   ;;  %8816 = vmatprep.subr.bf16.mxu0 %v8977_v40 }
 0x1c4   : > { %v6797_v50 = vsel %vm9217_vm2, %v6795_v46, %v6796_v33  ;;  %v2341_v1 = vshll.u32 %v2037_v13, 16  ;;  %v2340_v34 = vrot.slane %v2338_v28, 4  ;;  %v2347_v2 = vshll.u32 %v9034_v23, 16  ;;  %8856 = vmatprep.subr.bf16.mxu1 %v8978_v25  ;;  %v8228_v43 = vld [vmem:[%s9189_s22 + $0x5c] sm:$0x1]  ;;  %8817 = vmatpush3.bf16.msra.mxu0 %v8977_v40 }
 0x1c5   : > { %v8575_v44 = vcombine.low %v6794_v53, %v6797_v50  ;;  %v6442_v49 = vor.u32 %v6441_v7, %v6438_v12  ;;  %v6452_v32 = vor.u32 %v6451_v59, %v6447_v21  ;;  %v2353_v42 = vrot.slane %v2351_v57, 4  ;;  %v9036_v57 = vld [vmem:[%s9189_s22 + $0x94] sm:$0xf] }
 0x1c6   : > { %v2343_v18 = vrot.slane %v2341_v1, 5  ;;  %v2359_v0 = vrot.slane %v2357_v20, 5  ;;  %v2349_v33 = vrot.slane %v2347_v2, 5  ;;  %v7849_v9 = vcombine.low %v9035_v38, %v9036_v57  ;;  %v10991_v20 = vpop.permute.xlu1 %3500  ;;  %v11020_v23 = vpop.permute.xlu0 %3422 }
 0x1c7   : > { %7139 = vrot.lane.b32.xlu1 %v8575_v44, %s9139_s25  ;;  %v6443_v13 = vrot.slane %v6442_v49, 4  ;;  %v8512_v41 = vrot.slane %v8496_v61, 9  ;;  %v6453_v24 = vrot.slane %v6452_v32, 4  ;;  %v6800_v53 = vrot.slane %v10932_v27, 5  ;;  %8857 = vmatpush3.bf16.msra.mxu1 %v8978_v25  ;;  %v8382_v49 = vld [vmem:[%s9189_s22 + $0x58] sm:$0xf] }
 0x1c8   : > { %v2344_v19 = vor.u32 %v2343_v18, %v2340_v34  ;;  %v6803_v46 = vrot.slane %v10944_v3, 5  ;;  %v2354_v6 = vor.u32 %v2353_v42, %v2349_v33  ;;  %v1559_v37 = vsel %vm1520_vm6, %v7849_v9, %v10877_v17  ;;  %v8383_v34 = vld [vmem:[%s9189_s22 + $0x5c] sm:$0x1]  ;;  %v8156_v42 = vld [vmem:[%s9189_s22 + $0x58] sm:$0xf] }
 0x1c9   : > { %v6448_v35 = vsel %vm9268_vm5, %v6443_v13, %v6447_v21  ;;  %v4583_v12 = vor.u32 %v10924_v45, %v10922_v58  ;;  %v6458_v27 = vsel %vm9268_vm5, %v6453_v24, %v6457_v10  ;;  %v6801_v7 = vsel %vm9217_vm2, %v8512_v41, %v6800_v53  ;;  %v8417_v58 = vld [vmem:[%s9189_s22 + $0x54] sm:$0xe]  ;;  %v9037_v13 = vld [vmem:[%s9189_s22 + $0x9c] sm:$0xf] }
 0x1ca   : > { %v2345_v3 = vrot.slane %v2344_v19, 4  ;;  %v6802_v21 = vrot.slane %v6800_v53, 4  ;;  %v8560_v28 = vcombine.low %v6448_v35, %v6458_v27  ;;  %v2355_v50 = vrot.slane %v2354_v6, 4  ;;  %v8155_v45 = vld [vmem:[%s9189_s22 + $0x54] sm:$0xf]  ;;  %v11029_v40 = vpop.permute.xlu1 %3502 }
 0x1cb   : > { %v4584_v59 = vrot.slane %v4583_v12, 4  ;;  %v4593_v17 = vor.u32 %v10948_v62, %v10946_v52  ;;  %v4596_v61 = vshll.u32 %v8228_v43, 16  ;;  %v11016_v44 = vsel %vm1569_vm7, %v1559_v37, %v10879_v29  ;;  %v8181_v41 = vld [vmem:[%s9189_s22 + $0x5c] sm:$0x1] }
 0x1cc   : > { %v2350_v1 = vsel %vm9268_vm5, %v2345_v3, %v2349_v33  ;;  %v6804_v10 = vsel %vm9217_vm2, %v6802_v21, %v6803_v46  ;;  %7061 = vrot.lane.b32.xlu0 %v8560_v28, %s9137_s23  ;;  %v2360_v62 = vsel %vm9268_vm5, %v2355_v50, %v2359_v0  ;;  %v9038_v33 = vld [vmem:[%s9189_s22 + $0xa0] sm:$0xf]  ;;  %v8433_v57 = vrot.slane %v8417_v58, 9  ;;  %v2040_v6 = vld [vmem:[%s9189_s22 + $0x9c] sm:$0xf]  ;;  %v11046_v28 = vpop.permute.xlu0 %1514 }
 0x1cd   : > { %v8576_v2 = vcombine.low %v6801_v7, %v6804_v10  ;;  %v4589_v32 = vsel %vm9268_vm5, %v4584_v59, %v10946_v52  ;;  %v4594_v18 = vrot.slane %v4593_v17, 4  ;;  %v8031_v29 = vcombine.low %v2350_v1, %v2360_v62  ;;  %v8203_v58 = vld [vmem:[%s9189_s22 + $0x60] sm:$0xf] }
 0x1ce   : > { %v4598_v25 = vrot.slane %v4596_v61, 5  ;;  %v7850_v38 = vcombine.low %v9037_v13, %v9038_v33  ;;  %v6199_v9 = vrot.slane %v8382_v49, 5  ;;  %v6202_v0 = vrot.slane %v8383_v34, 5  ;;  %v8204_v34 = vld [vmem:[%s9189_s22 + $0x64] sm:$0xf] }
 0x1cf   : > { %7141 = vrot.lane.b32.xlu1 %v8576_v2, %s9139_s25  ;;  %v4168_v24 = vshrl.u32 %v8155_v45, 16  ;;  %v4171_v19 = vshll.u32 %v8155_v45, 16  ;;  %v3546_v52 = vsel %vm1520_vm6, %v8031_v29, %v10848_v8  ;;  %v4177_v35 = vshll.u32 %v8156_v42, 16  ;;  %v11056_v45 = vpop.permute.xlu1 %3344 }
 0x1d0   : > { %v4599_v53 = vsel %vm9268_vm5, %v4594_v18, %v4598_v25  ;;  %v11041_v46 = vsel %vm1520_vm6, %v7850_v38, %v10907_v14  ;;  %v6200_v43 = vsel %vm9217_vm2, %v8433_v57, %v6199_v9  ;;  %v6201_v12 = vrot.slane %v6199_v9, 4 }
 0x1d1   : > { %v8292_v37 = vcombine.low %v4589_v32, %v4599_v53  ;;  %v4170_v27 = vrot.slane %v4168_v24, 4  ;;  %v4173_v3 = vrot.slane %v4171_v19, 5  ;;  %v4179_v7 = vrot.slane %v4177_v35, 5  ;;  %v9039_v32 = vld [vmem:[%s9189_s22 + $0xa0] sm:$0xf] }
 0x1d2   : > { %v4181_v8 = vshrl.u32 %v8156_v42, 16  ;;  %v4187_v21 = vshll.u32 %v8181_v41, 16  ;;  %v6203_v14 = vsel %vm9217_vm2, %v6201_v12, %v6202_v0  ;;  %v11053_v50 = vsel %vm1569_vm7, %v3546_v52, %v10917_v11  ;;  %v8157_v0 = vld [vmem:[%s9189_s22 + $0x60] sm:$0xf]  ;;  %v8158_v19 = vld [vmem:[%s9189_s22 + $0x64] sm:$0xf]  ;;  %v11071_v52 = vpop.permute.xlu0 %1324 }
 0x1d3   : > { %5170 = vrot.lane.b32.xlu0 %v8292_v37, %s9139_s25  ;;  %v2362_v59 = vshrl.u32 %v2040_v6, 16  ;;  %v2365_v17 = vshll.u32 %v2040_v6, 16  ;;  %v8545_v1 = vcombine.low %v6200_v43, %v6203_v14  ;;  %v4174_v10 = vor.u32 %v4173_v3, %v4170_v27  ;;  %v8182_v6 = vld [vmem:[%s9189_s22 + $0x68] sm:$0x1]  ;;  %v11078_v37 = vpop.permute.xlu1 %1436 }
 0x1d4   : > { %v4183_v61 = vrot.slane %v4181_v8, 4  ;;  %v4189_v49 = vrot.slane %v4187_v21, 5  ;;  %v2371_v18 = vshll.u32 %v9039_v32, 16  ;;  %v2377_v11 = vrot.slane %v2375_v39, 4  ;;  %v11103_v32 = vld [vmem:[%s9189_s22 + $0x68] sm:$0x1] }
 0x1d5   : > { %v2364_v62 = vrot.slane %v2362_v59, 4  ;;  %v2367_v2 = vrot.slane %v2365_v17, 5  ;;  %6983 = vrot.lane.b32.xlu1 %v8545_v1, %s9138_s24  ;;  %v4175_v42 = vrot.slane %v4174_v10, 4  ;;  %v2383_v25 = vrot.slane %v2381_v15, 5  ;;  %v8461_v59 = vld [vmem:[%s9189_s22 + $0x60] sm:$0xf] }
 0x1d6   : > { %v4184_v29 = vor.u32 %v4183_v61, %v4179_v7  ;;  %v4601_v13 = vshrl.u32 %v8203_v58, 16  ;;  %v2373_v38 = vrot.slane %v2371_v18, 5  ;;  %v4604_v57 = vshll.u32 %v8203_v58, 16 }
 0x1d7   : > { %v2368_v33 = vor.u32 %v2367_v2, %v2364_v62  ;;  %v4610_v9 = vshll.u32 %v8204_v34, 16  ;;  %v4180_v41 = vsel %vm9268_vm5, %v4175_v42, %v4179_v7  ;;  %v4614_v39 = vshrl.u32 %v8204_v34, 16  ;;  %v11089_v62 = vld [vmem:[%s9189_s22 + $0x64] sm:$0xf] }
 0x1d8   : > { %v4185_v54 = vrot.slane %v4184_v29, 4  ;;  %v11068_v24 = vrot.slane %v4601_v13, 4  ;;  %v2378_v15 = vor.u32 %v2377_v11, %v2373_v38  ;;  %v11073_v53 = vrot.slane %v4604_v57, 5 }
 0x1d9   : > { %v2369_v5 = vrot.slane %v2368_v33, 4  ;;  %v11075_v35 = vrot.slane %v4610_v9, 5  ;;  %v11082_v12 = vrot.slane %v4614_v39, 4  ;;  %v8277_v27 = vcombine.low %v8203_v58, %v8204_v34 }
 0x1da   : > { %v4190_v43 = vsel %vm9268_vm5, %v4185_v54, %v4189_v49  ;;  %v4192_v3 = vshrl.u32 %v8157_v0, 16  ;;  %v2379_v21 = vrot.slane %v2378_v15, 4  ;;  %v4195_v14 = vshll.u32 %v8157_v0, 16  ;;  %v8386_v54 = vld [vmem:[%s9189_s22 + $0x68] sm:$0x1] }
 0x1db   : > { %v8261_v7 = vcombine.low %v4180_v41, %v4190_v43  ;;  %v2374_v8 = vsel %vm9268_vm5, %v2369_v5, %v2373_v38  ;;  %5092 = vrot.lane.b32.xlu1 %v8277_v27, %s9137_s23  ;;  %v4201_v1 = vshll.u32 %v8158_v19, 16  ;;  %v4205_v10 = vshrl.u32 %v8158_v19, 16  ;;  %v8418_v38 = vld [vmem:[%s9189_s22 + $0x60] sm:$0xe]  ;;  %v8385_v41 = vld [vmem:[%s9189_s22 + $0x64] sm:$0xf] }
 0x1dc   : > { %v4194_v17 = vrot.slane %v4192_v3, 4  ;;  %v4211_v61 = vshll.u32 %v8182_v6, 16  ;;  %v2384_v58 = vsel %vm9268_vm5, %v2379_v21, %v2383_v25  ;;  %v4197_v49 = vrot.slane %v4195_v14, 5  ;;  %v11106_v25 = vpop.permute.xlu0 %1326  ;;  %v8229_v14 = vld [vmem:[%s9189_s22 + $0x68] sm:$0x1] }
 0x1dd   : > { %4980 = vrot.lane.b32.xlu0 %v8261_v7, %s9138_s24  ;;  %v1628_v34 = vsel %vm1602_vm8, %v11016_v44, %v10958_v4  ;;  %v11100_v2 = vsel %vm1569_vm7, %v11041_v46, %v10980_v47  ;;  %v8032_v18 = vcombine.low %v2374_v8, %v2384_v58  ;;  %v4203_v11 = vrot.slane %v4201_v1, 5  ;;  %v11110_v47 = vpop.permute.xlu1 %3424 }
 0x1de   : > { %v4207_v42 = vrot.slane %v4205_v10, 4  ;;  %v4213_v29 = vrot.slane %v4211_v61, 5  ;;  %8762 = vmatprep.mubr.msk.bf16.mxu0 %vm1667_vm9, %v1628_v34  ;;  %v4198_v13 = vor.u32 %v4197_v49, %v4194_v17  ;;  %v6460_v33 = vshrl.u32 %v8461_v59, 16  ;;  %v8205_v61 = vld [vmem:[%s9189_s22 + $0x6c] sm:$0xf] }
 0x1df   : > { %v6463_v4 = vshll.u32 %v8461_v59, 16  ;;  %v6469_v44 = vshll.u32 %v11089_v62, 16  ;;  %v3549_v46 = vsel %vm1520_vm6, %v8032_v18, %v10954_v63  ;;  %v6473_v9 = vshrl.u32 %v11089_v62, 16 }
 0x1e0   : > { %v4208_v57 = vor.u32 %v4207_v42, %v4203_v11  ;;  %v6479_v0 = vshll.u32 %v11103_v32, 16  ;;  %v4199_v39 = vrot.slane %v4198_v13, 4  ;;  %v6462_v19 = vrot.slane %v6460_v33, 4  ;;  %v11129_v58 = vpop.permute.xlu0 %3346 }
 0x1e1   : > { %v6465_v5 = vrot.slane %v6463_v4, 5  ;;  %v6471_v15 = vrot.slane %v6469_v44, 5  ;;  %v6475_v43 = vrot.slane %v6473_v9, 4  ;;  %v8434_v3 = vrot.slane %v8418_v38, 9  ;;  %v11134_v42 = vpop.permute.xlu1 %1516  ;;  %v8206_v4 = vld [vmem:[%s9189_s22 + $0x70] sm:$0xf] }
 0x1e2   : > { %v4209_v6 = vrot.slane %v4208_v57, 4  ;;  %v6481_v27 = vrot.slane %v6479_v0, 5  ;;  %v4204_v63 = vsel %vm9268_vm5, %v4199_v39, %v4203_v11  ;;  %v6206_v8 = vrot.slane %v8385_v41, 5  ;;  %v8497_v57 = vld [vmem:[%s9189_s22 + $0x60] sm:$0xe] }
 0x1e3   : > { %v6466_v7 = vor.u32 %v6465_v5, %v6462_v19  ;;  %v6209_v21 = vrot.slane %v8386_v54, 5  ;;  %v6476_v17 = vor.u32 %v6475_v43, %v6471_v15  ;;  %v3613_v1 = vsel %vm1602_vm8, %v11053_v50, %v10991_v20  ;;  %v11158_v43 = vld [vmem:[%s9189_s22 + $0x70] sm:$0xf] }
 0x1e4   : > { %v4214_v59 = vsel %vm9268_vm5, %v4209_v6, %v4213_v29  ;;  %v3583_v10 = vsel %vm1569_vm7, %v3549_v46, %v11020_v23  ;;  %v6207_v18 = vsel %vm9217_vm2, %v8434_v3, %v6206_v8  ;;  %v6208_v11 = vrot.slane %v6206_v8, 4  ;;  %8802 = vmatprep.mubr.msk.bf16.mxu1 %vm1667_vm9, %v3613_v1  ;;  %v8464_v6 = vld [vmem:[%s9189_s22 + $0x6c] sm:$0xf]  ;;  %v11172_v8 = vld [vmem:[%s9189_s22 + $0x74] sm:$0x1] }
 0x1e5   : > { %v8262_v49 = vcombine.low %v4204_v63, %v4214_v59  ;;  %v6467_v34 = vrot.slane %v6466_v7, 4  ;;  %v6477_v29 = vrot.slane %v6476_v17, 4  ;;  %v4607_v20 = vor.u32 %v11073_v53, %v11068_v24 }
 0x1e6   : > { %v4617_v23 = vor.u32 %v11082_v12, %v11075_v35  ;;  %v4620_v50 = vshll.u32 %v8229_v14, 16  ;;  %v6210_v33 = vsel %vm9217_vm2, %v6208_v11, %v6209_v21  ;;  %v4625_v44 = vshrl.u32 %v8205_v61, 16  ;;  %v11174_v21 = vpop.permute.xlu1 %3504 }
 0x1e7   : > { %4982 = vrot.lane.b32.xlu0 %v8262_v49, %s9138_s24  ;;  %v6472_v13 = vsel %vm9268_vm5, %v6467_v34, %v6471_v15  ;;  %v4628_v38 = vshll.u32 %v8205_v61, 16  ;;  %v6482_v24 = vsel %vm9268_vm5, %v6477_v29, %v6481_v27  ;;  %v8546_v53 = vcombine.low %v6207_v18, %v6210_v33  ;;  %v11160_v27 = vpop.permute.xlu0 %1438 }
 0x1e8   : > { %v4608_v46 = vrot.slane %v4607_v20, 4  ;;  %v4618_v12 = vrot.slane %v4617_v23, 4  ;;  %v8561_v9 = vcombine.low %v6472_v13, %v6482_v24  ;;  %v4622_v0 = vrot.slane %v4620_v50, 5 }
 0x1e9   : > { %v11149_v41 = vrot.slane %v4625_v44, 4  ;;  %v11151_v54 = vrot.slane %v4628_v38, 5  ;;  %v4634_v19 = vshll.u32 %v8206_v4, 16  ;;  %v4638_v5 = vshrl.u32 %v8206_v4, 16 }
 0x1ea   : > { %v4613_v39 = vsel %vm9268_vm5, %v4608_v46, %v11075_v35  ;;  %v8278_v15 = vcombine.low %v8205_v61, %v8206_v4  ;;  %7063 = vrot.lane.b32.xlu1 %v8561_v9, %s9137_s23  ;;  %v4623_v3 = vsel %vm9268_vm5, %v4618_v12, %v4622_v0  ;;  %v3615_v63 = vsel %vm1602_vm8, %v3583_v10, %v11029_v40  ;;  %v2043_v40 = vld [vmem:[%s9189_s22 + $0xa8] sm:$0xf]  ;;  %v8498_v4 = vld [vmem:[%s9189_s22 + $0x6c] sm:$0xe]  ;;  %v11200_v9 = vpop.f32.mrb[0].mxu0 }
 0x1eb   : > { %6985 = vrot.lane.b32.xlu0 %v8546_v53, %s9138_s24  ;;  %v1630_v35 = vsel %vm1602_vm8, %v11100_v2, %v11046_v28  ;;  %v8513_v7 = vrot.slane %v8497_v57, 9  ;;  %v8293_v14 = vcombine.low %v4613_v39, %v4623_v3  ;;  %v11176_v59 = vrot.slane %v4634_v19, 5  ;;  %8803 = vmatmul.mubr.msk.bf16.gmra.mrb[24].mxu1 %vm1667_vm9, %v3615_v63  ;;  %v11195_v44 = vpop.permute.xlu0 %3426  ;;  %v9040_v46 = vld [vmem:[%s9189_s22 + $0xac] sm:$0xf]  ;;  %v11198_v57 = vpop.permute.xlu1 %3506  ;;  %v9041_v63 = vld [vmem:[%s9189_s22 + $0xa8] sm:$0xf] }
 0x1ec   : > { %v11178_v17 = vrot.slane %v4638_v5, 4  ;;  %v6807_v1 = vrot.slane %v11089_v62, 5  ;;  %8763 = vmatmul.mubr.msk.bf16.gmra.mrb[24].mxu0 %vm1667_vm9, %v1630_v35  ;;  %v6810_v10 = vrot.slane %v11103_v32, 5  ;;  %v6484_v28 = vshrl.u32 %v8464_v6, 16  ;;  %v9042_v35 = vld [vmem:[%s9189_s22 + $0xac] sm:$0xf] }
 0x1ed   : > { %v6487_v2 = vshll.u32 %v8464_v6, 16  ;;  %v6493_v61 = vshll.u32 %v11158_v43, 16  ;;  %v6497_v18 = vshrl.u32 %v11158_v43, 16  ;;  %v6503_v62 = vshll.u32 %v11172_v8, 16 }
 0x1ee   : > { %v6808_v49 = vsel %vm9217_vm2, %v8513_v7, %v6807_v1  ;;  %v6809_v34 = vrot.slane %v6807_v1, 4  ;;  %5172 = vrot.lane.b32.xlu1 %v8293_v14, %s9139_s25  ;;  %v6486_v11 = vrot.slane %v6484_v28, 4  ;;  %v2386_v20 = vshrl.u32 %v2043_v40, 16  ;;  %v8230_v28 = vld [vmem:[%s9189_s22 + $0x74] sm:$0x1] }
 0x1ef   : > { %5094 = vrot.lane.b32.xlu0 %v8278_v15, %s9137_s23  ;;  %v6489_v32 = vrot.slane %v6487_v2, 5  ;;  %v6495_v29 = vrot.slane %v6493_v61, 5  ;;  %v6499_v50 = vrot.slane %v6497_v18, 4  ;;  %v6505_v13 = vrot.slane %v6503_v62, 5  ;;  %v11206_v15 = vpop.f32.mrb[0].mxu1  ;;  %v11220_v61 = vpop.f32.mrb[1].mxu0 }
 0x1f0   : > { %v6811_v23 = vsel %vm9217_vm2, %v6809_v34, %v6810_v10  ;;  %v2389_v33 = vshll.u32 %v2043_v40, 16  ;;  %v2388_v53 = vrot.slane %v2386_v20, 4  ;;  %v2395_v12 = vshll.u32 %v9040_v46, 16  ;;  %v8388_v62 = vld [vmem:[%s9189_s22 + $0x70] sm:$0xf] }
 0x1f1   : > { %v8577_v38 = vcombine.low %v6808_v49, %v6811_v23  ;;  %v6490_v24 = vor.u32 %v6489_v32, %v6486_v11  ;;  %v6500_v0 = vor.u32 %v6499_v50, %v6495_v29  ;;  %v2401_v19 = vrot.slane %v2399_v55, 4  ;;  %v11222_v49 = vpop.f32.mrb[1].mxu1  ;;  %v11230_v11 = vpop.permute.xlu0 %1518  ;;  %v8419_v23 = vld [vmem:[%s9189_s22 + $0x6c] sm:$0xe] }
 0x1f2   : > { %v2391_v39 = vrot.slane %v2389_v33, 5  ;;  %v2407_v5 = vrot.slane %v2405_v56, 5  ;;  %v2397_v3 = vrot.slane %v2395_v12, 5  ;;  %v7851_v7 = vcombine.low %v9041_v63, %v9042_v35  ;;  %v11232_v32 = vpop.f32.mrb[2].mxu0  ;;  %v11237_v50 = vpop.permute.xlu1 %6971  ;;  %v9043_v63 = vld [vmem:[%s9189_s22 + $0xb4] sm:$0xf] }
 0x1f3   : > { %7143 = vrot.lane.b32.xlu1 %v8577_v38, %s9139_s25  ;;  %v6491_v6 = vrot.slane %v6490_v24, 4  ;;  %v8514_v14 = vrot.slane %v8498_v4, 9  ;;  %v6501_v1 = vrot.slane %v6500_v0, 4  ;;  %v6814_v48 = vrot.slane %v11158_v43, 5  ;;  %v9044_v35 = vld [vmem:[%s9189_s22 + $0xb8] sm:$0xf] }
 0x1f4   : > { %v2392_v40 = vor.u32 %v2391_v39, %v2388_v53  ;;  %v6817_v26 = vrot.slane %v11172_v8, 5  ;;  %v2402_v56 = vor.u32 %v2401_v19, %v2397_v3  ;;  %v1565_v10 = vsel %vm1520_vm6, %v7851_v7, %v11071_v52  ;;  %v8159_v52 = vld [vmem:[%s9189_s22 + $0x6c] sm:$0xf]  ;;  %v11250_v53 = vpop.f32.mrb[3].mxu0 }
 0x1f5   : > { %v6496_v55 = vsel %vm9268_vm5, %v6491_v6, %v6495_v29  ;;  %v4631_v2 = vor.u32 %v11151_v54, %v11149_v41  ;;  %v6506_v43 = vsel %vm9268_vm5, %v6501_v1, %v6505_v13  ;;  %v6815_v34 = vsel %vm9217_vm2, %v8514_v14, %v6814_v48  ;;  %v11239_v13 = vpop.f32.mrb[2].mxu1  ;;  %v8160_v6 = vld [vmem:[%s9189_s22 + $0x70] sm:$0xf] }
 0x1f6   : > { %v2393_v8 = vrot.slane %v2392_v40, 4  ;;  %v6816_v18 = vrot.slane %v6814_v48, 4  ;;  %v8562_v41 = vcombine.low %v6496_v55, %v6506_v43  ;;  %v2403_v54 = vrot.slane %v2402_v56, 4  ;;  %v11252_v46 = vpop.f32.mrb[3].mxu1  ;;  %v8183_v48 = vld [vmem:[%s9189_s22 + $0x74] sm:$0x1] }
 0x1f7   : > { %v4632_v29 = vrot.slane %v4631_v2, 4  ;;  %v4641_v20 = vor.u32 %v11178_v17, %v11176_v59  ;;  %v4644_v38 = vshll.u32 %v8230_v28, 16  ;;  %v11247_v24 = vsel %vm1569_vm7, %v1565_v10, %v11078_v37  ;;  %v8389_v17 = vld [vmem:[%s9189_s22 + $0x74] sm:$0x1] }
 0x1f8   : > { %v2398_v33 = vsel %vm9268_vm5, %v2393_v8, %v2397_v3  ;;  %v6818_v4 = vsel %vm9217_vm2, %v6816_v18, %v6817_v26  ;;  %7065 = vrot.lane.b32.xlu0 %v8562_v41, %s9137_s23  ;;  %v2408_v12 = vsel %vm9268_vm5, %v2403_v54, %v2407_v5  ;;  %v7852_v7 = vcombine.low %v9043_v63, %v9044_v35  ;;  %v2046_v28 = vld [vmem:[%s9189_s22 + $0xb4] sm:$0xf]  ;;  %v11276_v18 = vpop.permute.xlu0 %4968 }
 0x1f9   : > { %v8578_v0 = vcombine.low %v6815_v34, %v6818_v4  ;;  %v4637_v39 = vsel %vm9268_vm5, %v4632_v29, %v11176_v59  ;;  %v4642_v19 = vrot.slane %v4641_v20, 4  ;;  %v8033_v37 = vcombine.low %v2398_v33, %v2408_v12  ;;  %v8207_v33 = vld [vmem:[%s9189_s22 + $0x78] sm:$0xf] }
 0x1fa   : > { %v4646_v3 = vrot.slane %v4644_v38, 5  ;;  %v8435_v14 = vrot.slane %v8419_v23, 9  ;;  %v6213_v1 = vrot.slane %v8388_v62, 5  ;;  %v6216_v40 = vrot.slane %v8389_v17, 5 }
 0x1fb   : > { %7145 = vrot.lane.b32.xlu1 %v8578_v0, %s9139_s25  ;;  %v4216_v5 = vshrl.u32 %v8159_v52, 16  ;;  %v4219_v26 = vshll.u32 %v8159_v52, 16  ;;  %v3552_v55 = vsel %vm1520_vm6, %v8033_v37, %v11056_v45  ;;  %v11271_v56 = vsel %vm1520_vm6, %v7852_v7, %v11106_v25  ;;  %v11278_v45 = vpop.permute.xlu1 %5080  ;;  %v8208_v0 = vld [vmem:[%s9189_s22 + $0x7c] sm:$0xf] }
 0x1fc   : > { %v4647_v59 = vsel %vm9268_vm5, %v4642_v19, %v4646_v3  ;;  %v4225_v10 = vshll.u32 %v8160_v6, 16  ;;  %v6214_v43 = vsel %vm9217_vm2, %v8435_v14, %v6213_v1  ;;  %v6215_v8 = vrot.slane %v6213_v1, 4 }
 0x1fd   : > { %v8294_v2 = vcombine.low %v4637_v39, %v4647_v59  ;;  %v4218_v34 = vrot.slane %v4216_v5, 4  ;;  %v4221_v62 = vrot.slane %v4219_v26, 5  ;;  %v4229_v41 = vshrl.u32 %v8160_v6, 16  ;;  %v9045_v6 = vld [vmem:[%s9189_s22 + $0xb8] sm:$0xf] }
 0x1fe   : > { %v4227_v52 = vrot.slane %v4225_v10, 5  ;;  %v4235_v25 = vshll.u32 %v8183_v48, 16  ;;  %v6217_v54 = vsel %vm9217_vm2, %v6215_v8, %v6216_v40  ;;  %v11285_v29 = vsel %vm1569_vm7, %v3552_v55, %v11110_v47  ;;  %v8161_v26 = vld [vmem:[%s9189_s22 + $0x78] sm:$0xf]  ;;  %v11296_v55 = vpop.permute.xlu0 %4970 }
 0x1ff   : > { %5174 = vrot.lane.b32.xlu0 %v8294_v2, %s9139_s25  ;;  %v2410_v20 = vshrl.u32 %v2046_v28, 16  ;;  %v2413_v23 = vshll.u32 %v2046_v28, 16  ;;  %v8547_v4 = vcombine.low %v6214_v43, %v6217_v54  ;;  %v4222_v38 = vor.u32 %v4221_v62, %v4218_v34  ;;  %v11298_v59 = vpop.permute.xlu1 %7051  ;;  %v8162_v28 = vld [vmem:[%s9189_s22 + $0x7c] sm:$0xf]  ;;  %v8184_v62 = vld [vmem:[%s9189_s22 + $0x80] sm:$0x1] }
 0x200   : > { %v4231_v17 = vrot.slane %v4229_v41, 4  ;;  %v4237_v12 = vrot.slane %v4235_v25, 5  ;;  %v2419_v37 = vshll.u32 %v9045_v6, 16  ;;  %v2425_v3 = vrot.slane %v2423_v30, 4 }
 0x201   : > { %v2412_v39 = vrot.slane %v2410_v20, 4  ;;  %v2415_v19 = vrot.slane %v2413_v23, 5  ;;  %6987 = vrot.lane.b32.xlu1 %v8547_v4, %s9138_s24  ;;  %v4223_v47 = vrot.slane %v4222_v38, 4  ;;  %v12996_v35 = vshll.u32 %v10288_v60, 16 }
 0x202   : > { %v4232_v63 = vor.u32 %v4231_v17, %v4227_v52  ;;  %v4649_v14 = vshrl.u32 %v8207_v33, 16  ;;  %v2421_v40 = vrot.slane %v2419_v37, 5  ;;  %v4652_v48 = vshll.u32 %v8207_v33, 16  ;;  %v8467_v17 = vld [vmem:[%s9189_s22 + $0x78] sm:$0xf] }
 0x203   : > { %v2431_v7 = vrot.slane %v12996_v35, 5  ;;  %v2416_v1 = vor.u32 %v2415_v19, %v2412_v39  ;;  %v4658_v5 = vshll.u32 %v8208_v0, 16  ;;  %v4228_v51 = vsel %vm9268_vm5, %v4223_v47, %v4227_v52  ;;  %v11335_v35 = vpop.permute.xlu0 %6973 }
 0x204   : > { %v4233_v30 = vrot.slane %v4232_v63, 4  ;;  %v11302_v10 = vrot.slane %v4649_v14, 4  ;;  %v4662_v60 = vshrl.u32 %v8208_v0, 16  ;;  %v2426_v43 = vor.u32 %v2425_v3, %v2421_v40  ;;  %v11319_v3 = vld [vmem:[%s9189_s22 + $0x7c] sm:$0xf]  ;;  %v11337_v14 = vpop.permute.xlu1 %5160 }
 0x205   : > { %v2417_v2 = vrot.slane %v2416_v1, 4  ;;  %v11305_v8 = vrot.slane %v4652_v48, 5  ;;  %v11307_v34 = vrot.slane %v4658_v5, 5  ;;  %v8279_v52 = vcombine.low %v8207_v33, %v8208_v0  ;;  %v11333_v63 = vld [vmem:[%s9189_s22 + $0x80] sm:$0x1] }
 0x206   : > { %v4238_v41 = vsel %vm9268_vm5, %v4233_v30, %v4237_v12  ;;  %v11312_v25 = vrot.slane %v4662_v60, 4  ;;  %v4240_v54 = vshrl.u32 %v8161_v26, 16  ;;  %v2427_v4 = vrot.slane %v2426_v43, 4 }
 0x207   : > { %v8263_v20 = vcombine.low %v4228_v51, %v4238_v41  ;;  %v2422_v23 = vsel %vm9268_vm5, %v2417_v2, %v2421_v40  ;;  %v4243_v38 = vshll.u32 %v8161_v26, 16  ;;  %5096 = vrot.lane.b32.xlu1 %v8279_v52, %s9137_s23  ;;  %v4249_v19 = vshll.u32 %v8162_v28, 16  ;;  %v8392_v2 = vld [vmem:[%s9189_s22 + $0x80] sm:$0x1] }
 0x208   : > { %v4242_v39 = vrot.slane %v4240_v54, 4  ;;  %v4253_v6 = vshrl.u32 %v8162_v28, 16  ;;  %v4259_v37 = vshll.u32 %v8184_v62, 16  ;;  %v2432_v33 = vsel %vm9268_vm5, %v2427_v4, %v2431_v7  ;;  %v8391_v28 = vld [vmem:[%s9189_s22 + $0x7c] sm:$0xf] }
 0x209   : > { %4984 = vrot.lane.b32.xlu0 %v8263_v20, %s9138_s24  ;;  %v4245_v12 = vrot.slane %v4243_v38, 5  ;;  %v1632_v0 = vsel %vm1602_vm8, %v11247_v24, %v11134_v42  ;;  %v11330_v47 = vsel %vm1569_vm7, %v11271_v56, %v11160_v27  ;;  %v8034_v7 = vcombine.low %v2422_v23, %v2432_v33  ;;  %v8420_v56 = vld [vmem:[%s9189_s22 + $0x78] sm:$0xe] }
 0x20a   : > { %v4251_v1 = vrot.slane %v4249_v19, 5  ;;  %v4255_v40 = vrot.slane %v4253_v6, 4  ;;  %v4261_v48 = vrot.slane %v4259_v37, 5  ;;  %8766 = vmatprep.mubr.msk.bf16.mxu0 %vm1667_vm9, %v1632_v0  ;;  %v6508_v24 = vshrl.u32 %v8467_v17, 16  ;;  %v8231_v19 = vld [vmem:[%s9189_s22 + $0x80] sm:$0x1]  ;;  %v11351_v6 = vpop.permute.xlu0 %5082  ;;  %v11353_v37 = vpop.permute.xlu1 %7131 }
 0x20b   : > { %v4246_v42 = vor.u32 %v4245_v12, %v4242_v39  ;;  %v6511_v5 = vshll.u32 %v8467_v17, 16  ;;  %v6517_v27 = vshll.u32 %v11319_v3, 16  ;;  %v3555_v26 = vsel %vm1520_vm6, %v8034_v7, %v11129_v58 }
 0x20c   : > { %v4256_v51 = vor.u32 %v4255_v40, %v4251_v1  ;;  %v6521_v30 = vshrl.u32 %v11319_v3, 16  ;;  %v6527_v60 = vshll.u32 %v11333_v63, 16  ;;  %v6510_v62 = vrot.slane %v6508_v24, 4 }
 0x20d   : > { %v4247_v43 = vrot.slane %v4246_v42, 4  ;;  %v6513_v41 = vrot.slane %v6511_v5, 5  ;;  %v6519_v52 = vrot.slane %v6517_v27, 5  ;;  %v8436_v4 = vrot.slane %v8420_v56, 9 }
 0x20e   : > { %v4257_v54 = vrot.slane %v4256_v51, 4  ;;  %v6523_v20 = vrot.slane %v6521_v30, 4  ;;  %v6529_v23 = vrot.slane %v6527_v60, 5  ;;  %v6220_v17 = vrot.slane %v8391_v28, 5  ;;  %v8499_v28 = vld [vmem:[%s9189_s22 + $0x78] sm:$0xe] }
 0x20f   : > { %v4252_v58 = vsel %vm9268_vm5, %v4247_v43, %v4251_v1  ;;  %v6514_v38 = vor.u32 %v6513_v41, %v6510_v62  ;;  %v6223_v39 = vrot.slane %v8392_v2, 5  ;;  %v3617_v0 = vsel %vm1602_vm8, %v11285_v29, %v11174_v21  ;;  %v8209_v1 = vld [vmem:[%s9189_s22 + $0x84] sm:$0xf] }
 0x210   : > { %v4262_v33 = vsel %vm9268_vm5, %v4257_v54, %v4261_v48  ;;  %v6524_v12 = vor.u32 %v6523_v20, %v6519_v52  ;;  %v3587_v7 = vsel %vm1569_vm7, %v3555_v26, %v11195_v44  ;;  %v6221_v24 = vsel %vm9217_vm2, %v8436_v4, %v6220_v17  ;;  %8806 = vmatprep.mubr.msk.bf16.mxu1 %vm1667_vm9, %v3617_v0  ;;  %v8210_v26 = vld [vmem:[%s9189_s22 + $0x88] sm:$0xf]  ;;  %v11385_v54 = vpop.permute.xlu1 %7133 }
 0x211   : > { %v8264_v40 = vcombine.low %v4252_v58, %v4262_v33  ;;  %v6515_v42 = vrot.slane %v6514_v38, 4  ;;  %v6222_v5 = vrot.slane %v6220_v17, 4  ;;  %v4655_v27 = vor.u32 %v11305_v8, %v11302_v10  ;;  %v8470_v38 = vld [vmem:[%s9189_s22 + $0x84] sm:$0xf]  ;;  %v11392_v17 = vld [vmem:[%s9189_s22 + $0x88] sm:$0xf] }
 0x212   : > { %v6525_v48 = vrot.slane %v6524_v12, 4  ;;  %v4665_v21 = vor.u32 %v11312_v25, %v11307_v34  ;;  %v4668_v29 = vshll.u32 %v8231_v19, 16  ;;  %v4673_v51 = vshrl.u32 %v8209_v1, 16  ;;  %v11404_v12 = vld [vmem:[%s9189_s22 + $0x8c] sm:$0x1] }
 0x213   : > { %4986 = vrot.lane.b32.xlu0 %v8264_v40, %s9138_s24  ;;  %v6520_v44 = vsel %vm9268_vm5, %v6515_v42, %v6519_v52  ;;  %v6224_v56 = vsel %vm9217_vm2, %v6222_v5, %v6223_v39  ;;  %v4676_v30 = vshll.u32 %v8209_v1, 16  ;;  %v4656_v8 = vrot.slane %v4655_v27, 4  ;;  %v11383_v52 = vpop.permute.xlu0 %7053 }
 0x214   : > { %v6530_v60 = vsel %vm9268_vm5, %v6525_v48, %v6529_v23  ;;  %v8548_v10 = vcombine.low %v6221_v24, %v6224_v56  ;;  %v4666_v25 = vrot.slane %v4665_v21, 4  ;;  %v4670_v43 = vrot.slane %v4668_v29, 5  ;;  %v8363_v24 = vld [vmem:[%s9189_s22 + $0xc] sm:$0xf] }
 0x215   : > { %v8563_v2 = vcombine.low %v6520_v44, %v6530_v60  ;;  %v11379_v62 = vrot.slane %v4673_v51, 4  ;;  %v11381_v41 = vrot.slane %v4676_v30, 5  ;;  %v4661_v20 = vsel %vm9268_vm5, %v4656_v8, %v11307_v34  ;;  %v8500_v8 = vld [vmem:[%s9189_s22 + $0x84] sm:$0xe] }
 0x216   : > { %v4682_v23 = vshll.u32 %v8210_v26, 16  ;;  %v4686_v4 = vshrl.u32 %v8210_v26, 16  ;;  %v8280_v58 = vcombine.low %v8209_v1, %v8210_v26  ;;  %v4671_v39 = vsel %vm9268_vm5, %v4666_v25, %v4670_v43  ;;  %v11424_v26 = vpop.permute.xlu1 %6975  ;;  %v9046_v43 = vld [vmem:[%s9189_s22 + $0x10] sm:$0xf] }
 0x217   : > { %7067 = vrot.lane.b32.xlu1 %v8563_v2, %s9137_s23  ;;  %6989 = vrot.lane.b32.xlu0 %v8548_v10, %s9138_s24  ;;  %v3619_v19 = vsel %vm1602_vm8, %v3587_v7, %v11198_v57  ;;  %v1634_v34 = vsel %vm1602_vm8, %v11330_v47, %v11230_v11  ;;  %v8515_v33 = vrot.slane %v8499_v28, 9  ;;  %v8295_v0 = vcombine.low %v4661_v20, %v4671_v39  ;;  %v11422_v56 = vpop.permute.xlu0 %5162 }
 0x218   : > { %v11406_v1 = vrot.slane %v4682_v23, 5  ;;  %v11408_v40 = vrot.slane %v4686_v4, 4  ;;  %v6821_v42 = vrot.slane %v11319_v3, 5  ;;  %8767 = vmatmul.mubr.msk.bf16.gmra.mrb[28].mxu0 %vm1667_vm9, %v1634_v34  ;;  %8807 = vmatmul.mubr.msk.bf16.gmra.mrb[28].mxu1 %vm1667_vm9, %v3619_v19  ;;  %v6824_v57 = vrot.slane %v11333_v63, 5 }
 0x219   : > { %v6532_v7 = vshrl.u32 %v8470_v38, 16  ;;  %v6535_v5 = vshll.u32 %v8470_v38, 16  ;;  %v6541_v11 = vshll.u32 %v11392_v17, 16  ;;  %v6545_v27 = vshrl.u32 %v11392_v17, 16 }
 0x21a   : > { %v6822_v47 = vsel %vm9217_vm2, %v8515_v33, %v6821_v42  ;;  %v6823_v48 = vrot.slane %v6821_v42, 4  ;;  %v6551_v3 = vshll.u32 %v11404_v12, 16  ;;  %v5708_v44 = vshrl.u32 %v8363_v24, 16  ;;  %v9048_v42 = vld [vmem:[%s9189_s22 + $0x10] sm:$0xf] }
 0x21b   : > { %5176 = vrot.lane.b32.xlu1 %v8295_v0, %s9139_s25  ;;  %5098 = vrot.lane.b32.xlu0 %v8280_v58, %s9137_s23  ;;  %v6534_v21 = vrot.slane %v6532_v7, 4  ;;  %v6537_v63 = vrot.slane %v6535_v5, 5  ;;  %v6543_v29 = vrot.slane %v6541_v11, 5  ;;  %v6547_v30 = vrot.slane %v6545_v27, 4  ;;  %v9047_v0 = vld [vmem:[%s9189_s22 + $0xc] sm:$0xf] }
 0x21c   : > { %v6825_v51 = vsel %vm9217_vm2, %v6823_v48, %v6824_v57  ;;  %v6553_v60 = vrot.slane %v6551_v3, 5  ;;  %v5711_v10 = vshll.u32 %v8363_v24, 16  ;;  %v5710_v2 = vrot.slane %v5708_v44, 4  ;;  %v8232_v27 = vld [vmem:[%s9189_s22 + $0x8c] sm:$0x1] }
 0x21d   : > { %v8579_v25 = vcombine.low %v6822_v47, %v6825_v51  ;;  %v6538_v28 = vor.u32 %v6537_v63, %v6534_v21  ;;  %v5717_v20 = vshll.u32 %v9046_v43, 16  ;;  %v6548_v23 = vor.u32 %v6547_v30, %v6543_v29  ;;  %v11446_v21 = vpop.permute.xlu0 %4972  ;;  %v11448_v63 = vpop.permute.xlu1 %5084  ;;  %v8163_v51 = vld [vmem:[%s9189_s22 + $0x84] sm:$0xf]  ;;  %v8395_v43 = vld [vmem:[%s9189_s22 + $0x8c] sm:$0x1] }
 0x21e   : > { %v5713_v4 = vrot.slane %v5711_v10, 5  ;;  %v12997_v58 = vshrl.u32 %v10390_v16, 16  ;;  %v12998_v39 = vshll.u32 %v10395_v36, 16  ;;  %v8239_v24 = vcombine.low %v9047_v0, %v9048_v42  ;;  %v9050_v0 = vld [vmem:[%s9189_s22 + $0x1c] sm:$0xf] }
 0x21f   : > { %7147 = vrot.lane.b32.xlu1 %v8579_v25, %s9139_s25  ;;  %v6539_v34 = vrot.slane %v6538_v28, 4  ;;  %v5719_v33 = vrot.slane %v5717_v20, 5  ;;  %v8516_v57 = vrot.slane %v8500_v8, 9  ;;  %v6549_v7 = vrot.slane %v6548_v23, 4  ;;  %v8421_v8 = vld [vmem:[%s9189_s22 + $0x84] sm:$0xe] }
 0x220   : > { %v5723_v38 = vrot.slane %v12997_v58, 4  ;;  %v5729_v19 = vrot.slane %v12998_v39, 5  ;;  %v5714_v5 = vor.u32 %v5713_v4, %v5710_v2  ;;  %v6828_v11 = vrot.slane %v11392_v17, 5  ;;  %v11468_v20 = vpop.f32.mrb[4].mxu0  ;;  %v11470_v23 = vpop.f32.mrb[4].mxu1 }
 0x221   : > { %v6831_v16 = vrot.slane %v11404_v12, 5  ;;  %v6544_v36 = vsel %vm9268_vm5, %v6539_v34, %v6543_v29  ;;  %v5194_v48 = vsel %vm1520_vm6, %v8239_v24, %v11276_v18  ;;  %v4679_v3 = vor.u32 %v11381_v41, %v11379_v62  ;;  %v8394_v41 = vld [vmem:[%s9189_s22 + $0x88] sm:$0xf] }
 0x222   : > { %v5724_v47 = vor.u32 %v5723_v38, %v5719_v33  ;;  %v6554_v17 = vsel %vm9268_vm5, %v6549_v7, %v6553_v60  ;;  %v5715_v12 = vrot.slane %v5714_v5, 4  ;;  %v6829_v29 = vsel %vm9217_vm2, %v8516_v57, %v6828_v11  ;;  %v8164_v39 = vld [vmem:[%s9189_s22 + $0x88] sm:$0xf]  ;;  %v8185_v5 = vld [vmem:[%s9189_s22 + $0x8c] sm:$0x1] }
 0x223   : > { %v6830_v44 = vrot.slane %v6828_v11, 4  ;;  %v8564_v30 = vcombine.low %v6544_v36, %v6554_v17  ;;  %v4680_v10 = vrot.slane %v4679_v3, 4  ;;  %v4689_v62 = vor.u32 %v11408_v40, %v11406_v1  ;;  %v11485_v36 = vpop.permute.xlu1 %7055  ;;  %v8366_v3 = vld [vmem:[%s9189_s22 + $0x18] sm:$0xf]  ;;  %v11496_v17 = vpop.f32.mrb[5].mxu0 }
 0x224   : > { %v5725_v18 = vrot.slane %v5724_v47, 4  ;;  %v5720_v25 = vsel %vm9268_vm5, %v5715_v12, %v5719_v33  ;;  %v4692_v28 = vshll.u32 %v8232_v27, 16  ;;  %v11465_v2 = vsel %vm1569_vm7, %v5194_v48, %v11278_v45  ;;  %v9049_v33 = vld [vmem:[%s9189_s22 + $0x18] sm:$0xf]  ;;  %v11498_v12 = vpop.f32.mrb[5].mxu1 }
 0x225   : > { %v6832_v60 = vsel %vm9217_vm2, %v6830_v44, %v6831_v16  ;;  %7069 = vrot.lane.b32.xlu0 %v8564_v30, %s9137_s23  ;;  %v4685_v58 = vsel %vm9268_vm5, %v4680_v10, %v11406_v1  ;;  %v4690_v38 = vrot.slane %v4689_v62, 4  ;;  %v8240_v42 = vcombine.low %v9049_v33, %v9050_v0  ;;  %v11483_v16 = vpop.permute.xlu0 %4974  ;;  %v11502_v30 = vpop.f32.mrb[6].mxu0  ;;  %v9051_v0 = vld [vmem:[%s9189_s22 + $0x1c] sm:$0xf] }
 0x226   : > { %v5730_v40 = vsel %vm9268_vm5, %v5725_v18, %v5729_v19  ;;  %v8580_v4 = vcombine.low %v6829_v29, %v6832_v60  ;;  %v4694_v34 = vrot.slane %v4692_v28, 5  ;;  %v8437_v24 = vrot.slane %v8421_v8, 9  ;;  %v11504_v18 = vpop.f32.mrb[6].mxu1  ;;  %v11506_v8 = vpop.f32.mrb[7].mxu0 }
 0x227   : > { %v8523_v45 = vcombine.low %v5720_v25, %v5730_v40  ;;  %v6227_v57 = vrot.slane %v8394_v41, 5  ;;  %v6230_v7 = vrot.slane %v8395_v43, 5  ;;  %v4264_v19 = vshrl.u32 %v8163_v51, 16  ;;  %12999 = vst [vmem:[#allocation2_spill] sm:$0xff] %v11504_v18  ;;  %13000 = vst [vmem:[#allocation3_spill] sm:$0xff] %v11506_v8  ;;  %v11508_v25 = vpop.f32.mrb[7].mxu1 }
 0x228   : > { %7149 = vrot.lane.b32.xlu1 %v8580_v4, %s9139_s25  ;;  %v4267_v11 = vshll.u32 %v8163_v51, 16  ;;  %v4695_v47 = vsel %vm9268_vm5, %v4690_v38, %v4694_v34  ;;  %v11493_v48 = vsel %vm1520_vm6, %v8240_v42, %v11296_v55  ;;  %v4273_v27 = vshll.u32 %v8164_v39, 16  ;;  %13001 = vst [vmem:[#allocation4_spill] sm:$0xff] %v11508_v25  ;;  %v8211_v4 = vld [vmem:[%s9189_s22 + $0x90] sm:$0xf] }
 0x229   : > { %v7165_v1 = vsel %vm1520_vm6, %v8523_v45, %v11237_v50  ;;  %v8296_v29 = vcombine.low %v4685_v58, %v4695_v47  ;;  %v6228_v44 = vsel %vm9217_vm2, %v8437_v24, %v6227_v57  ;;  %v6229_v51 = vrot.slane %v6227_v57, 4 }
 0x22a   : > { %v4266_v50 = vrot.slane %v4264_v19, 4  ;;  %v4269_v10 = vrot.slane %v4267_v11, 5  ;;  %v4275_v55 = vrot.slane %v4273_v27, 5  ;;  %v4277_v62 = vshrl.u32 %v8164_v39, 16  ;;  %v8212_v19 = vld [vmem:[%s9189_s22 + $0x94] sm:$0xf] }
 0x22b   : > { %v4283_v41 = vshll.u32 %v8185_v5, 16  ;;  %5178 = vrot.lane.b32.xlu0 %v8296_v29, %s9139_s25  ;;  %v6231_v60 = vsel %vm9217_vm2, %v6229_v51, %v6230_v7  ;;  %v11515_v28 = vsel %vm1569_vm7, %v7165_v1, %v11298_v59  ;;  %v5732_v43 = vshrl.u32 %v8366_v3, 16  ;;  %v9052_v7 = vld [vmem:[%s9189_s22 + $0x20] sm:$0x1]  ;;  %v11522_v1 = vpop.permute.xlu1 %5164 }
 0x22c   : > { %v5735_v40 = vshll.u32 %v8366_v3, 16  ;;  %v8549_v58 = vcombine.low %v6228_v44, %v6231_v60  ;;  %v4270_v38 = vor.u32 %v4269_v10, %v4266_v50  ;;  %v4279_v39 = vrot.slane %v4277_v62, 4  ;;  %v8165_v44 = vld [vmem:[%s9189_s22 + $0x90] sm:$0xf] }
 0x22d   : > { %v4285_v45 = vrot.slane %v4283_v41, 5  ;;  %v5734_v34 = vrot.slane %v5732_v43, 4  ;;  %v5741_v42 = vshll.u32 %v9051_v0, 16  ;;  %v5745_v24 = vshrl.u32 %v9051_v0, 16  ;;  %v11529_v41 = vpop.permute.xlu0 %6977  ;;  %v8186_v0 = vld [vmem:[%s9189_s22 + $0x98] sm:$0x1] }
 0x22e   : > { %v5737_v33 = vrot.slane %v5735_v40, 5  ;;  %6991 = vrot.lane.b32.xlu1 %v8549_v58, %s9138_s24  ;;  %v4271_v57 = vrot.slane %v4270_v38, 4  ;;  %v4280_v59 = vor.u32 %v4279_v39, %v4275_v55  ;;  %v5751_v5 = vshll.u32 %v9052_v7, 16  ;;  %v8166_v38 = vld [vmem:[%s9189_s22 + $0x94] sm:$0xf] }
 0x22f   : > { %v4697_v11 = vshrl.u32 %v8211_v4, 16  ;;  %v5743_v27 = vrot.slane %v5741_v42, 5  ;;  %v5747_v3 = vrot.slane %v5745_v24, 4  ;;  %v4700_v29 = vshll.u32 %v8211_v4, 16 }
 0x230   : > { %v5738_v47 = vor.u32 %v5737_v33, %v5734_v34  ;;  %v4276_v51 = vsel %vm9268_vm5, %v4271_v57, %v4275_v55  ;;  %v4281_v50 = vrot.slane %v4280_v59, 4  ;;  %v5753_v10 = vrot.slane %v5751_v5, 5 }
 0x231   : > { %v11527_v62 = vrot.slane %v4697_v11, 4  ;;  %v5748_v43 = vor.u32 %v5747_v3, %v5743_v27  ;;  %v11531_v40 = vrot.slane %v4700_v29, 5  ;;  %v4706_v58 = vshll.u32 %v8212_v19, 16 }
 0x232   : > { %v5739_v60 = vrot.slane %v5738_v47, 4  ;;  %v4286_v39 = vsel %vm9268_vm5, %v4281_v50, %v4285_v45  ;;  %v4710_v34 = vshrl.u32 %v8212_v19, 16  ;;  %v8281_v33 = vcombine.low %v8211_v4, %v8212_v19  ;;  %v8473_v47 = vld [vmem:[%s9189_s22 + $0x90] sm:$0xf]  ;;  %v11545_v4 = vpop.permute.xlu1 %7135 }
 0x233   : > { %v4288_v55 = vshrl.u32 %v8165_v44, 16  ;;  %v8265_v42 = vcombine.low %v4276_v51, %v4286_v39  ;;  %v5749_v57 = vrot.slane %v5748_v43, 4  ;;  %v11539_v59 = vrot.slane %v4706_v58, 5  ;;  %v11554_v51 = vld [vmem:[%s9189_s22 + $0x94] sm:$0xf] }
 0x234   : > { %v5744_v24 = vsel %vm9268_vm5, %v5739_v60, %v5743_v27  ;;  %v11541_v7 = vrot.slane %v4710_v34, 4  ;;  %5100 = vrot.lane.b32.xlu1 %v8281_v33, %s9137_s23  ;;  %v4291_v11 = vshll.u32 %v8165_v44, 16  ;;  %v4297_v45 = vshll.u32 %v8166_v38, 16  ;;  %v11562_v58 = vld [vmem:[%s9189_s22 + $0x98] sm:$0x1] }
 0x235   : > { %v4290_v5 = vrot.slane %v4288_v55, 4  ;;  %4988 = vrot.lane.b32.xlu0 %v8265_v42, %s9138_s24  ;;  %v5754_v19 = vsel %vm9268_vm5, %v5749_v57, %v5753_v10  ;;  %v4301_v27 = vshrl.u32 %v8166_v38, 16  ;;  %v4307_v3 = vshll.u32 %v8186_v0, 16  ;;  %v11565_v10 = vpop.permute.xlu0 %5086  ;;  %v8422_v34 = vld [vmem:[%s9189_s22 + $0x90] sm:$0xe] }
 0x236   : > { %v5273_v29 = vsel %vm1602_vm8, %v11465_v2, %v11337_v14  ;;  %v8524_v50 = vcombine.low %v5744_v24, %v5754_v19  ;;  %v4293_v44 = vrot.slane %v4291_v11, 5  ;;  %v4299_v60 = vrot.slane %v4297_v45, 5  ;;  %v8398_v45 = vld [vmem:[%s9189_s22 + $0x98] sm:$0x1] }
 0x237   : > { %v11559_v43 = vsel %vm1569_vm7, %v11493_v48, %v11351_v6  ;;  %8818 = vmatprep.mubr.msk.bf16.mxu0 %vm1667_vm9, %v5273_v29  ;;  %v4303_v38 = vrot.slane %v4301_v27, 4  ;;  %v4309_v14 = vrot.slane %v4307_v3, 5  ;;  %v6556_v2 = vshrl.u32 %v8473_v47, 16  ;;  %v8397_v48 = vld [vmem:[%s9189_s22 + $0x94] sm:$0xf]  ;;  %v11575_v29 = vpop.permute.xlu1 %7137 }
 0x238   : > { %v6559_v39 = vshll.u32 %v8473_v47, 16  ;;  %v7168_v33 = vsel %vm1520_vm6, %v8524_v50, %v11335_v35  ;;  %v4294_v0 = vor.u32 %v4293_v44, %v4290_v5  ;;  %v6565_v55 = vshll.u32 %v11554_v51, 16 }
 0x239   : > { %v6569_v6 = vshrl.u32 %v11554_v51, 16  ;;  %v4304_v42 = vor.u32 %v4303_v38, %v4299_v60  ;;  %v6558_v24 = vrot.slane %v6556_v2, 4  ;;  %v6575_v11 = vshll.u32 %v11562_v58, 16 }
 0x23a   : > { %v6561_v57 = vrot.slane %v6559_v39, 5  ;;  %v4295_v19 = vrot.slane %v4294_v0, 4  ;;  %v6567_v27 = vrot.slane %v6565_v55, 5  ;;  %v8438_v3 = vrot.slane %v8422_v34, 9  ;;  %v8233_v0 = vld [vmem:[%s9189_s22 + $0x98] sm:$0x1]  ;;  %v11583_v55 = vpop.permute.xlu0 %7057 }
 0x23b   : > { %v6571_v47 = vrot.slane %v6569_v6, 4  ;;  %v4305_v35 = vrot.slane %v4304_v42, 4  ;;  %v6577_v50 = vrot.slane %v6575_v11, 5  ;;  %v6234_v44 = vrot.slane %v8397_v48, 5 }
 0x23c   : > { %v6562_v5 = vor.u32 %v6561_v57, %v6558_v24  ;;  %v4300_v38 = vsel %vm9268_vm5, %v4295_v19, %v4299_v60  ;;  %v6237_v39 = vrot.slane %v8398_v45, 5  ;;  %v7244_v25 = vsel %vm1602_vm8, %v11515_v28, %v11353_v37  ;;  %v8213_v24 = vld [vmem:[%s9189_s22 + $0x9c] sm:$0xf] }
 0x23d   : > { %v6572_v2 = vor.u32 %v6571_v47, %v6567_v27  ;;  %v4310_v34 = vsel %vm9268_vm5, %v4305_v35, %v4309_v14  ;;  %v6235_v48 = vsel %vm9217_vm2, %v8438_v3, %v6234_v44  ;;  %v6236_v42 = vrot.slane %v6234_v44, 4  ;;  %8858 = vmatprep.mubr.msk.bf16.mxu1 %vm1667_vm9, %v7244_v25  ;;  %v8214_v25 = vld [vmem:[%s9189_s22 + $0xa0] sm:$0xf]  ;;  %v11605_v47 = vpop.permute.xlu1 %6979 }
 0x23e   : > { %v6563_v6 = vrot.slane %v6562_v5, 4  ;;  %v8266_v60 = vcombine.low %v4300_v38, %v4310_v34  ;;  %v7214_v37 = vsel %vm1569_vm7, %v7168_v33, %v11383_v52  ;;  %v4703_v28 = vor.u32 %v11531_v40, %v11527_v62 }
 0x23f   : > { %v6573_v57 = vrot.slane %v6572_v2, 4  ;;  %v6238_v11 = vsel %vm9217_vm2, %v6236_v42, %v6237_v39  ;;  %v4713_v45 = vor.u32 %v11541_v7, %v11539_v59  ;;  %v4716_v19 = vshll.u32 %v8233_v0, 16  ;;  %v8476_v7 = vld [vmem:[%s9189_s22 + $0x9c] sm:$0xf]  ;;  %v8501_v39 = vld [vmem:[%s9189_s22 + $0x90] sm:$0xe]  ;;  %v11614_v0 = vpop.permute.xlu0 %5166 }
 0x240   : > { %v6568_v14 = vsel %vm9268_vm5, %v6563_v6, %v6567_v27  ;;  %4990 = vrot.lane.b32.xlu0 %v8266_v60, %s9138_s24  ;;  %v8550_v33 = vcombine.low %v6235_v48, %v6238_v11  ;;  %v4704_v62 = vrot.slane %v4703_v28, 4  ;;  %v4721_v40 = vshrl.u32 %v8213_v24, 16  ;;  %v11627_v60 = vld [vmem:[%s9189_s22 + $0xa4] sm:$0x1] }
 0x241   : > { %v6578_v52 = vsel %vm9268_vm5, %v6573_v57, %v6577_v50  ;;  %v4714_v3 = vrot.slane %v4713_v45, 4  ;;  %v4718_v35 = vrot.slane %v4716_v19, 5  ;;  %v4724_v5 = vshll.u32 %v8213_v24, 16 }
 0x242   : > { %v8565_v27 = vcombine.low %v6568_v14, %v6578_v52  ;;  %v4709_v44 = vsel %vm9268_vm5, %v4704_v62, %v11539_v59  ;;  %v11611_v38 = vrot.slane %v4721_v40, 4  ;;  %v4730_v2 = vshll.u32 %v8214_v25, 16  ;;  %v11624_v59 = vld [vmem:[%s9189_s22 + $0xa0] sm:$0xf] }
 0x243   : > { %v4734_v50 = vshrl.u32 %v8214_v25, 16  ;;  %v4719_v34 = vsel %vm9268_vm5, %v4714_v3, %v4718_v35  ;;  %v11619_v6 = vrot.slane %v4724_v5, 5  ;;  %v8282_v48 = vcombine.low %v8213_v24, %v8214_v25  ;;  %v8369_v24 = vld [vmem:[%s9189_s22 + $0x24] sm:$0xf]  ;;  %v11651_v3 = vpop.f32.mrb[8].mxu0  ;;  %v11653_v35 = vpop.f32.mrb[8].mxu1 }
 0x244   : > { %7071 = vrot.lane.b32.xlu1 %v8565_v27, %s9137_s23  ;;  %v7246_v42 = vsel %vm1602_vm8, %v7214_v37, %v11385_v54  ;;  %6993 = vrot.lane.b32.xlu0 %v8550_v33, %s9138_s24  ;;  %v8297_v57 = vcombine.low %v4709_v44, %v4719_v34  ;;  %v11630_v28 = vrot.slane %v4730_v2, 5  ;;  %v5275_v11 = vsel %vm1602_vm8, %v11559_v43, %v11422_v56  ;;  %v11645_v56 = vpop.permute.xlu1 %5088  ;;  %v8502_v27 = vld [vmem:[%s9189_s22 + $0x9c] sm:$0xe] }
 0x245   : > { %v11632_v14 = vrot.slane %v4734_v50, 4  ;;  %8859 = vmatmul.mubr.msk.bf16.vlgmr.msra.gmra.mrb[32].mxu1 %vm1667_vm9, %v7246_v42  ;;  %v8517_v54 = vrot.slane %v8501_v39, 9  ;;  %v6835_v37 = vrot.slane %v11554_v51, 5  ;;  %v6838_v45 = vrot.slane %v11562_v58, 5  ;;  %8819 = vmatmul.mubr.msk.bf16.vlgmr.msra.gmra.mrb[32].mxu0 %vm1667_vm9, %v5275_v11  ;;  %13002 = vst [vmem:[#allocation5_spill] sm:$0xff] %v11651_v3  ;;  %13003 = vst [vmem:[#allocation6_spill] sm:$0xff] %v11653_v35  ;;  %v11656_v50 = vpop.permute.xlu0 %4976 }
 0x246   : > { %v6580_v19 = vshrl.u32 %v8476_v7, 16  ;;  %v6583_v25 = vshll.u32 %v8476_v7, 16  ;;  %v6589_v52 = vshll.u32 %v11624_v59, 16  ;;  %v6593_v33 = vshrl.u32 %v11624_v59, 16  ;;  %v11658_v39 = vpop.f32.mrb[9].mxu0 }
 0x247   : > { %v6599_v62 = vshll.u32 %v11627_v60, 16  ;;  %v6836_v43 = vsel %vm9217_vm2, %v8517_v54, %v6835_v37  ;;  %v6837_v51 = vrot.slane %v6835_v37, 4  ;;  %v5756_v40 = vshrl.u32 %v8369_v24, 16  ;;  %13004 = vst [vmem:[#allocation7_spill] sm:$0xff] %v11658_v39  ;;  %v9053_v11 = vld [vmem:[%s9189_s22 + $0x28] sm:$0xf] }
 0x248   : > { %5180 = vrot.lane.b32.xlu1 %v8297_v57, %s9139_s25  ;;  %v6582_v58 = vrot.slane %v6580_v19, 4  ;;  %5102 = vrot.lane.b32.xlu0 %v8282_v48, %s9137_s23  ;;  %v6585_v5 = vrot.slane %v6583_v25, 5  ;;  %v6591_v7 = vrot.slane %v6589_v52, 5  ;;  %v6595_v44 = vrot.slane %v6593_v33, 4  ;;  %v11663_v37 = vpop.f32.mrb[9].mxu1  ;;  %v11665_v48 = vpop.f32.mrb[10].mxu0 }
 0x249   : > { %v6601_v2 = vrot.slane %v6599_v62, 5  ;;  %v6839_v34 = vsel %vm9217_vm2, %v6837_v51, %v6838_v45  ;;  %v5758_v42 = vrot.slane %v5756_v40, 4  ;;  %v5759_v57 = vshll.u32 %v8369_v24, 16  ;;  %13005 = vst [vmem:[#allocation8_spill] sm:$0xff] %v11663_v37  ;;  %13006 = vst [vmem:[#allocation9_spill] sm:$0xff] %v11665_v48  ;;  %v11667_v62 = vpop.f32.mrb[10].mxu1 }
 0x24a   : > { %v5765_v54 = vshll.u32 %v9053_v11, 16  ;;  %v8581_v19 = vcombine.low %v6836_v43, %v6839_v34  ;;  %v6586_v25 = vor.u32 %v6585_v5, %v6582_v58  ;;  %v6596_v52 = vor.u32 %v6595_v44, %v6591_v7  ;;  %13007 = vst [vmem:[#allocation10_spill] sm:$0xff] %v11667_v62  ;;  %v11669_v39 = vpop.f32.mrb[11].mxu0  ;;  %v9054_v51 = vld [vmem:[%s9189_s22 + $0x2c] sm:$0x1]  ;;  %v11674_v18 = vpop.f32.mrb[11].mxu1 }
 0x24b   : > { %v5769_v33 = vshrl.u32 %v9053_v11, 16  ;;  %13008 = vst [vmem:[#allocation11_spill] sm:$0xff] %v11669_v39  ;;  %v5761_v35 = vrot.slane %v5759_v57, 5  ;;  %v5775_v24 = vshll.u32 %v9054_v51, 16  ;;  %v9055_v40 = vld [vmem:[%s9189_s22 + $0x24] sm:$0xf]  ;;  %v11681_v39 = vpop.permute.xlu1 %7059 }
 0x24c   : > { %v5767_v45 = vrot.slane %v5765_v54, 5  ;;  %v9056_v3 = vld [vmem:[%s9189_s22 + $0x28] sm:$0xf]  ;;  %13009 = vst [vmem:[#allocation12_spill] sm:$0xff] %v11674_v18  ;;  %7151 = vrot.lane.b32.xlu1 %v8581_v19, %s9139_s25  ;;  %v6587_v43 = vrot.slane %v6586_v25, 4  ;;  %v6597_v58 = vrot.slane %v6596_v52, 4  ;;  %v4737_v52 = vor.u32 %v11632_v14, %v11630_v28 }
 0x24d   : > { %v8241_v8 = vcombine.low %v9055_v40, %v9056_v3  ;;  %v5771_v5 = vrot.slane %v5769_v33, 4  ;;  %v8518_v44 = vrot.slane %v8502_v27, 9  ;;  %v5762_v34 = vor.u32 %v5761_v35, %v5758_v42  ;;  %v8234_v51 = vld [vmem:[%s9189_s22 + $0xa4] sm:$0x1]  ;;  %v11688_v35 = vpop.permute.xlu0 %4978  ;;  %v8423_v33 = vld [vmem:[%s9189_s22 + $0x9c] sm:$0xe] }
 0x24e   : > { %v5777_v11 = vrot.slane %v5775_v24, 5  ;;  %v6842_v54 = vrot.slane %v11624_v59, 5  ;;  %v6592_v3 = vsel %vm9268_vm5, %v6587_v43, %v6591_v7  ;;  %v6602_v19 = vsel %vm9268_vm5, %v6597_v58, %v6601_v2  ;;  %v9057_v58 = vld [vmem:[%s9189_s22 + $0x30] sm:$0xf]  ;;  %v8401_v14 = vld [vmem:[%s9189_s22 + $0xa4] sm:$0x1] }
 0x24f   : > { %v5200_v57 = vsel %vm1520_vm6, %v8241_v8, %v11446_v21  ;;  %v5772_v25 = vor.u32 %v5771_v5, %v5767_v45  ;;  %v6845_v27 = vrot.slane %v11627_v60, 5  ;;  %v8566_v21 = vcombine.low %v6592_v3, %v6602_v19  ;;  %v8400_v5 = vld [vmem:[%s9189_s22 + $0xa0] sm:$0xf] }
 0x250   : > { %v5763_v8 = vrot.slane %v5762_v34, 4  ;;  %v6843_v59 = vsel %vm9217_vm2, %v8518_v44, %v6842_v54  ;;  %v6844_v42 = vrot.slane %v6842_v54, 4  ;;  %v4727_v2 = vor.u32 %v11619_v6, %v11611_v38  ;;  %v9058_v38 = vld [vmem:[%s9189_s22 + $0x34] sm:$0xf]  ;;  %v8167_v44 = vld [vmem:[%s9189_s22 + $0x9c] sm:$0xf] }
 0x251   : > { %v5773_v7 = vrot.slane %v5772_v25, 4  ;;  %v4740_v60 = vshll.u32 %v8234_v51, 16  ;;  %7073 = vrot.lane.b32.xlu0 %v8566_v21, %s9137_s23  ;;  %v11704_v43 = vsel %vm1569_vm7, %v5200_v57, %v11448_v63  ;;  %v8242_v6 = vcombine.low %v9057_v58, %v9058_v38  ;;  %v8168_v3 = vld [vmem:[%s9189_s22 + $0xa0] sm:$0xf] }
 0x252   : > { %v5768_v24 = vsel %vm9268_vm5, %v5763_v8, %v5767_v45  ;;  %v6846_v40 = vsel %vm9217_vm2, %v6844_v42, %v6845_v27  ;;  %v4728_v51 = vrot.slane %v4727_v2, 4  ;;  %v4738_v45 = vrot.slane %v4737_v52, 4  ;;  %v11718_v27 = vpop.permute.xlu1 %5168 }
 0x253   : > { %v5778_v34 = vsel %vm9268_vm5, %v5773_v7, %v5777_v11  ;;  %v8582_v54 = vcombine.low %v6843_v59, %v6846_v40  ;;  %v4742_v25 = vrot.slane %v4740_v60, 5  ;;  %v11716_v63 = vsel %vm1520_vm6, %v8242_v6, %v11483_v16  ;;  %v8187_v59 = vld [vmem:[%s9189_s22 + $0xa4] sm:$0x1]  ;;  %v11725_v7 = vpop.permute.xlu0 %6981 }
 0x254   : > { %v8525_v19 = vcombine.low %v5768_v24, %v5778_v34  ;;  %v8439_v57 = vrot.slane %v8423_v33, 9  ;;  %v4733_v11 = vsel %vm9268_vm5, %v4728_v51, %v11630_v28  ;;  %v6241_v21 = vrot.slane %v8400_v5, 5  ;;  %v8372_v33 = vld [vmem:[%s9189_s22 + $0x30] sm:$0xf]  ;;  %v11734_v34 = vpop.f32.mrb[12].mxu0 }
 0x255   : > { %7153 = vrot.lane.b32.xlu1 %v8582_v54, %s9139_s25  ;;  %v6244_v8 = vrot.slane %v8401_v14, 5  ;;  %v4312_v42 = vshrl.u32 %v8167_v44, 16  ;;  %v4743_v16 = vsel %vm9268_vm5, %v4738_v45, %v4742_v25  ;;  %v4315_v52 = vshll.u32 %v8167_v44, 16  ;;  %13010 = vst [vmem:[#allocation13_spill] sm:$0xff] %v11734_v34 }
 0x256   : > { %v7171_v2 = vsel %vm1520_vm6, %v8525_v19, %v11424_v26  ;;  %v4321_v60 = vshll.u32 %v8168_v3, 16  ;;  %v8298_v24 = vcombine.low %v4733_v11, %v4743_v16  ;;  %v6242_v28 = vsel %vm9217_vm2, %v8439_v57, %v6241_v21  ;;  %v11736_v26 = vpop.f32.mrb[12].mxu1  ;;  %v8215_v19 = vld [vmem:[%s9189_s22 + $0xa8] sm:$0xf] }
 0x257   : > { %v6243_v40 = vrot.slane %v6241_v21, 4  ;;  %v4314_v58 = vrot.slane %v4312_v42, 4  ;;  %v4317_v38 = vrot.slane %v4315_v52, 5  ;;  %v4325_v5 = vshrl.u32 %v8168_v3, 16  ;;  %13011 = vst [vmem:[#allocation14_spill] sm:$0xff] %v11736_v26  ;;  %v11746_v3 = vpop.f32.mrb[13].mxu0  ;;  %v11750_v42 = vpop.permute.xlu1 %7139 }
 0x258   : > { %v4323_v6 = vrot.slane %v4321_v60, 5  ;;  %v4331_v14 = vshll.u32 %v8187_v59, 16  ;;  %5182 = vrot.lane.b32.xlu0 %v8298_v24, %s9139_s25  ;;  %v11743_v54 = vsel %vm1569_vm7, %v7171_v2, %v11485_v36  ;;  %v5780_v51 = vshrl.u32 %v8372_v33, 16  ;;  %13012 = vst [vmem:[#allocation15_spill] sm:$0xff] %v11746_v3  ;;  %v11748_v25 = vpop.f32.mrb[13].mxu1  ;;  %v11756_v24 = vpop.permute.xlu0 %5090 }
 0x259   : > { %v6245_v44 = vsel %vm9217_vm2, %v6243_v40, %v6244_v8  ;;  %v5783_v45 = vshll.u32 %v8372_v33, 16  ;;  %13013 = vst [vmem:[#allocation16_spill] sm:$0xff] %v11748_v25  ;;  %v4318_v11 = vor.u32 %v4317_v38, %v4314_v58  ;;  %v4327_v21 = vrot.slane %v4325_v5, 4  ;;  %v11752_v8 = vpop.f32.mrb[14].mxu0  ;;  %v9059_v2 = vld [vmem:[%s9189_s22 + $0x34] sm:$0xf] }
 0x25a   : > { %v8551_v57 = vcombine.low %v6242_v28, %v6245_v44  ;;  %v4333_v59 = vrot.slane %v4331_v14, 5  ;;  %13014 = vst [vmem:[#allocation17_spill] sm:$0xff] %v11752_v8  ;;  %v5782_v16 = vrot.slane %v5780_v51, 4  ;;  %v5789_v52 = vshll.u32 %v9059_v2, 16  ;;  %v8216_v33 = vld [vmem:[%s9189_s22 + $0xac] sm:$0xf] }
 0x25b   : > { %v5785_v36 = vrot.slane %v5783_v45, 5  ;;  %v5793_v60 = vshrl.u32 %v9059_v2, 16  ;;  %v4319_v28 = vrot.slane %v4318_v11, 4  ;;  %v4328_v40 = vor.u32 %v4327_v21, %v4323_v6  ;;  %v9060_v58 = vld [vmem:[%s9189_s22 + $0x38] sm:$0x1]  ;;  %v11760_v14 = vpop.f32.mrb[14].mxu1  ;;  %v11777_v62 = vpop.permute.xlu1 %7141 }
 0x25c   : > { %6995 = vrot.lane.b32.xlu1 %v8551_v57, %s9138_s24  ;;  %v5799_v38 = vshll.u32 %v9060_v58, 16  ;;  %v4745_v5 = vshrl.u32 %v8215_v19, 16  ;;  %13015 = vst [vmem:[#allocation18_spill] sm:$0xff] %v11760_v14  ;;  %v11762_v44 = vpop.f32.mrb[15].mxu0  ;;  %v5791_v45 = vrot.slane %v5789_v52, 5  ;;  %v4748_v2 = vshll.u32 %v8215_v19, 16 }
 0x25d   : > { %13016 = vst [vmem:[#allocation19_spill] sm:$0xff] %v11762_v44  ;;  %v5786_v51 = vor.u32 %v5785_v36, %v5782_v16  ;;  %v5795_v8 = vrot.slane %v5793_v60, 4  ;;  %v8169_v25 = vld [vmem:[%s9189_s22 + $0xa8] sm:$0xf]  ;;  %v11765_v3 = vpop.f32.mrb[15].mxu1  ;;  %v4324_v57 = vsel %vm9268_vm5, %v4319_v28, %v4323_v6  ;;  %v4329_v11 = vrot.slane %v4328_v40, 4 }
 0x25e   : > { %13017 = vst [vmem:[#allocation20_spill] sm:$0xff] %v11765_v3  ;;  %v5801_v21 = vrot.slane %v5799_v38, 5  ;;  %v11769_v58 = vrot.slane %v4745_v5, 4  ;;  %v11771_v34 = vrot.slane %v4748_v2, 5  ;;  %v4754_v44 = vshll.u32 %v8216_v33, 16 }
 0x25f   : > { %v5787_v26 = vrot.slane %v5786_v51, 4  ;;  %v5796_v14 = vor.u32 %v5795_v8, %v5791_v45  ;;  %v8170_v16 = vld [vmem:[%s9189_s22 + $0xac] sm:$0xf]  ;;  %v4334_v36 = vsel %vm9268_vm5, %v4329_v11, %v4333_v59  ;;  %v4758_v52 = vshrl.u32 %v8216_v33, 16  ;;  %v8188_v3 = vld [vmem:[%s9189_s22 + $0xb0] sm:$0x1]  ;;  %v11787_v51 = vpop.permute.xlu0 %7061 }
 0x260   : > { %v8283_v60 = vcombine.low %v8215_v19, %v8216_v33  ;;  %v4336_v18 = vshrl.u32 %v8169_v25, 16  ;;  %v8267_v6 = vcombine.low %v4324_v57, %v4334_v36  ;;  %v11781_v40 = vrot.slane %v4754_v44, 5  ;;  %v8479_v33 = vld [vmem:[%s9189_s22 + $0xa8] sm:$0xf]  ;;  %v11796_v2 = vld [vmem:[%s9189_s22 + $0xac] sm:$0xf] }
 0x261   : > { %v5792_v28 = vsel %vm9268_vm5, %v5787_v26, %v5791_v45  ;;  %v5797_v8 = vrot.slane %v5796_v14, 4  ;;  %v11783_v38 = vrot.slane %v4758_v52, 4  ;;  %v4339_v5 = vshll.u32 %v8169_v25, 16  ;;  %v11804_v36 = vld [vmem:[%s9189_s22 + $0xb0] sm:$0x1] }
 0x262   : > { %5104 = vrot.lane.b32.xlu1 %v8283_v60, %s9137_s23  ;;  %v4338_v59 = vrot.slane %v4336_v18, 4  ;;  %v4345_v19 = vshll.u32 %v8170_v16, 16  ;;  %4992 = vrot.lane.b32.xlu0 %v8267_v6, %s9138_s24  ;;  %v4349_v14 = vshrl.u32 %v8170_v16, 16  ;;  %v4355_v44 = vshll.u32 %v8188_v3, 16 }
 0x263   : > { %v5802_v26 = vsel %vm9268_vm5, %v5797_v8, %v5801_v21  ;;  %v5277_v45 = vsel %vm1602_vm8, %v11704_v43, %v11522_v1  ;;  %v4341_v25 = vrot.slane %v4339_v5, 5  ;;  %v11801_v11 = vsel %vm1569_vm7, %v11716_v63, %v11565_v10  ;;  %v8424_v43 = vld [vmem:[%s9189_s22 + $0xa8] sm:$0xe]  ;;  %v8403_v10 = vld [vmem:[%s9189_s22 + $0xac] sm:$0xf]  ;;  %v11813_v63 = vpop.permute.xlu1 %6983  ;;  %v11817_v37 = vpop.permute.xlu0 %5170 }
 0x264   : > { %v8526_v18 = vcombine.low %v5792_v28, %v5802_v26  ;;  %v4347_v57 = vrot.slane %v4345_v19, 5  ;;  %8822 = vmatprep.mubr.msk.bf16.mxu0 %vm1667_vm9, %v5277_v45  ;;  %v4351_v3 = vrot.slane %v4349_v14, 4  ;;  %v4357_v21 = vrot.slane %v4355_v44, 5  ;;  %v8404_v14 = vld [vmem:[%s9189_s22 + $0xb0] sm:$0x1] }
 0x265   : > { %v6604_v16 = vshrl.u32 %v8479_v33, 16  ;;  %v6607_v1 = vshll.u32 %v8479_v33, 16  ;;  %v4342_v60 = vor.u32 %v4341_v25, %v4338_v59  ;;  %v6613_v6 = vshll.u32 %v11796_v2, 16 }
 0x266   : > { %v7174_v52 = vsel %vm1520_vm6, %v8526_v18, %v11529_v41  ;;  %v6617_v28 = vshrl.u32 %v11796_v2, 16  ;;  %v4352_v8 = vor.u32 %v4351_v3, %v4347_v57  ;;  %v6623_v26 = vshll.u32 %v11804_v36, 16  ;;  %v11822_v3 = vld [vmem:[%s12975_s2] ss:$0 sm:$0xff] }
 0x267   : > { %v6606_v5 = vrot.slane %v6604_v16, 4  ;;  %v6609_v19 = vrot.slane %v6607_v1, 5  ;;  %v4343_v44 = vrot.slane %v4342_v60, 4  ;;  %v6615_v33 = vrot.slane %v6613_v6, 5 }
 0x268   : > { %v6619_v45 = vrot.slane %v6617_v28, 4  ;;  %v8440_v48 = vrot.slane %v8424_v43, 9  ;;  %v4353_v41 = vrot.slane %v4352_v8, 4  ;;  %v6625_v18 = vrot.slane %v6623_v26, 5  ;;  %v11849_v26 = vpop.f32.mrb[16].mxu0 }
 0x269   : > { %v6610_v59 = vor.u32 %v6609_v19, %v6606_v5  ;;  %v6248_v25 = vrot.slane %v8403_v10, 5  ;;  %v4348_v16 = vsel %vm9268_vm5, %v4343_v44, %v4347_v57  ;;  %v6251_v60 = vrot.slane %v8404_v14, 5  ;;  %v11836_v5 = vld [vmem:[%s12976_s3] ss:$0 sm:$0xff] }
 0x26a   : > { %v6620_v1 = vor.u32 %v6619_v45, %v6615_v33  ;;  %v7248_v43 = vsel %vm1602_vm8, %v11743_v54, %v11545_v4  ;;  %v4358_v6 = vsel %vm9268_vm5, %v4353_v41, %v4357_v21  ;;  %v11841_v4 = vsel %vm1569_vm7, %v7174_v52, %v11583_v55  ;;  %v11847_v21 = vpop.permute.xlu1 %5092  ;;  %v11859_v45 = vpop.f32.mrb[16].mxu1 }
 0x26b   : > { %v6611_v28 = vrot.slane %v6610_v59, 4  ;;  %v6249_v10 = vsel %vm9217_vm2, %v8440_v48, %v6248_v25  ;;  %v6250_v8 = vrot.slane %v6248_v25, 4  ;;  %8862 = vmatprep.mubr.msk.bf16.mxu1 %vm1667_vm9, %v7248_v43  ;;  %v8268_v57 = vcombine.low %v4348_v16, %v4358_v6  ;;  %v8235_v48 = vld [vmem:[%s9189_s22 + $0xb0] sm:$0x1]  ;;  %v11870_v16 = vpop.permute.xlu0 %4980  ;;  %v8218_v43 = vld [vmem:[%s9189_s22 + $0xb8] sm:$0xf] }
 0x26c   : > { %v6621_v19 = vrot.slane %v6620_v1, 4  ;;  %v1869_v54 = vmul.f32 %v11200_v9, %v11822_v3  ;;  %v3848_v55 = vmul.f32 %v11206_v15, %v11822_v3  ;;  %v4751_v52 = vor.u32 %v11771_v34, %v11769_v58  ;;  %v11861_v9 = vpop.f32.mrb[17].mxu0  ;;  %v8217_v15 = vld [vmem:[%s9189_s22 + $0xb4] sm:$0xf]  ;;  %v11872_v34 = vpop.f32.mrb[17].mxu1 }
 0x26d   : > { %v6616_v14 = vsel %vm9268_vm5, %v6611_v28, %v6615_v33  ;;  %v6252_v44 = vsel %vm9217_vm2, %v6250_v8, %v6251_v60  ;;  %13018 = vst [vmem:[#allocation21_spill] sm:$0xff] %v11861_v9  ;;  %4994 = vrot.lane.b32.xlu0 %v8268_v57, %s9138_s24  ;;  %v4761_v25 = vor.u32 %v11783_v38, %v11781_v40  ;;  %13019 = vst [vmem:[#allocation22_spill] sm:$0xff] %v11872_v34  ;;  %v11881_v6 = vpop.f32.mrb[18].mxu0  ;;  %v11883_v38 = vpop.f32.mrb[18].mxu1 }
 0x26e   : > { %v6626_v41 = vsel %vm9268_vm5, %v6621_v19, %v6625_v18  ;;  %v8552_v33 = vcombine.low %v6249_v10, %v6252_v44  ;;  %v1907_v59 = vadd.f32 %v11836_v5, %v1869_v54  ;;  %v3880_v1 = vadd.f32 %v11836_v5, %v3848_v55  ;;  %13020 = vst [vmem:[#allocation23_spill] sm:$0xff] %v11881_v6  ;;  %v11889_v19 = vpop.f32.mrb[19].mxu0  ;;  %v11891_v54 = vpop.f32.mrb[19].mxu1 }
 0x26f   : > { %v8567_v58 = vcombine.low %v6616_v14, %v6626_v41  ;;  %v4752_v18 = vrot.slane %v4751_v52, 4  ;;  %v4764_v60 = vshll.u32 %v8235_v48, 16  ;;  %13021 = vst [vmem:[#allocation24_spill] sm:$0xff] %v11883_v38  ;;  %v4762_v10 = vrot.slane %v4761_v25, 4  ;;  %13022 = vst [vmem:[#allocation25_spill] sm:$0xff] %v11889_v19 }
 0x270   : > { %v1939_v28 = vmax.f32 %v1907_v59, 0.0  ;;  %v1867_v8 = vmul.f32 %v11822_v3, %v11220_v61  ;;  %v3846_v57 = vmul.f32 %v11822_v3, %v11222_v49  ;;  %13023 = vst [vmem:[#allocation26_spill] sm:$0xff] %v11891_v54  ;;  %v3912_v48 = vmax.f32 %v3880_v1, 0.0  ;;  %v8503_v1 = vld [vmem:[%s9189_s22 + $0xa8] sm:$0xe] }
 0x271   : > { %7075 = vrot.lane.b32.xlu1 %v8567_v58, %s9137_s23  ;;  %v4757_v14 = vsel %vm9268_vm5, %v4752_v18, %v11781_v40  ;;  %v4766_v44 = vrot.slane %v4764_v60, 5  ;;  %v4769_v55 = vshrl.u32 %v8217_v15, 16  ;;  %6997 = vrot.lane.b32.xlu0 %v8552_v33, %s9138_s24  ;;  %v4772_v52 = vshll.u32 %v8217_v15, 16  ;;  %v9063_v19 = vld [vmem:[%s9189_s22 + $0x3c] sm:$0xf] }
 0x272   : > { %1971 = vst [vmem:[%s11877_s28 + $0x10] sm:$0xff] %v1939_v28  ;;  %v1905_v61 = vadd.f32 %v11836_v5, %v1867_v8  ;;  %v3878_v49 = vadd.f32 %v11836_v5, %v3846_v57  ;;  %v4778_v41 = vshll.u32 %v8218_v43, 16  ;;  %8113 = vst [vmem:[%s11877_s28 + $0x110] sm:$0xff] %v3912_v48  ;;  %v4782_v40 = vshrl.u32 %v8218_v43, 16 }
 0x273   : > { %v4767_v59 = vsel %vm9268_vm5, %v4762_v10, %v4766_v44  ;;  %v11904_v25 = vrot.slane %v4769_v55, 4  ;;  %v8284_v58 = vcombine.low %v8217_v15, %v8218_v43  ;;  %v11907_v28 = vrot.slane %v4772_v52, 5  ;;  %v8482_v44 = vld [vmem:[%s9189_s22 + $0xb4] sm:$0xf]  ;;  %v11918_v55 = vpop.permute.xlu0 %4982  ;;  %v11920_v15 = vpop.permute.xlu1 %7063 }
 0x274   : > { %v8299_v33 = vcombine.low %v4757_v14, %v4767_v59  ;;  %v1937_v18 = vmax.f32 %v1905_v61, 0.0  ;;  %v3910_v60 = vmax.f32 %v3878_v49, 0.0  ;;  %v11909_v8 = vrot.slane %v4778_v41, 5  ;;  %v11947_v59 = vld [vmem:[%s9189_s22 + $0xbc] sm:$0x1] }
 0x275   : > { %v11911_v57 = vrot.slane %v4782_v40, 4  ;;  %v1870_v48 = vmul.f32 %v11232_v32, %v11822_v3  ;;  %v3849_v10 = vmul.f32 %v11239_v13, %v11822_v3  ;;  %5106 = vrot.lane.b32.xlu0 %v8284_v58, %s9137_s23  ;;  %v7250_v32 = vsel %vm1602_vm8, %v11841_v4, %v11575_v29  ;;  %v11944_v4 = vld [vmem:[%s9189_s22 + $0xb8] sm:$0xf] }
 0x276   : > { %5184 = vrot.lane.b32.xlu1 %v8299_v33, %s9139_s25  ;;  %1969 = vst [vmem:[%s11877_s28] sm:$0xff] %v1937_v18  ;;  %8111 = vst [vmem:[%s11877_s28 + $0x100] sm:$0xff] %v3910_v60  ;;  %v1868_v13 = vmul.f32 %v11822_v3, %v11250_v53  ;;  %v3847_v43 = vmul.f32 %v11822_v3, %v11252_v46  ;;  %v8519_v14 = vrot.slane %v8503_v1, 9  ;;  %v6849_v41 = vrot.slane %v11796_v2, 5  ;;  %v8375_v1 = vld [vmem:[%s9189_s22 + $0x3c] sm:$0xf] }
 0x277   : > { %v1908_v61 = vadd.f32 %v11836_v5, %v1870_v48  ;;  %v3881_v49 = vadd.f32 %v11836_v5, %v3849_v10  ;;  %v5279_v52 = vsel %vm1602_vm8, %v11801_v11, %v11614_v0  ;;  %8863 = vmatmul.mubr.msk.bf16.gmra.mrb[36].mxu1 %vm1667_vm9, %v7250_v32  ;;  %v6852_v46 = vrot.slane %v11804_v36, 5 }
 0x278   : > { %v1906_v29 = vadd.f32 %v11836_v5, %v1868_v13  ;;  %v3879_v53 = vadd.f32 %v11836_v5, %v3847_v43  ;;  %v6628_v40 = vshrl.u32 %v8482_v44, 16  ;;  %8823 = vmatmul.mubr.msk.bf16.gmra.mrb[36].mxu0 %vm1667_vm9, %v5279_v52  ;;  %v6850_v2 = vsel %vm9217_vm2, %v8519_v14, %v6849_v41  ;;  %v11960_v43 = vpop.permute.xlu0 %6985  ;;  %v11962_v14 = vpop.permute.xlu1 %5172 }
 0x279   : > { %v1940_v0 = vmax.f32 %v1908_v61, 0.0  ;;  %v3913_v11 = vmax.f32 %v3881_v49, 0.0  ;;  %v6851_v58 = vrot.slane %v6849_v41, 4  ;;  %v6631_v36 = vshll.u32 %v8482_v44, 16 }
 0x27a   : > { %v1938_v33 = vmax.f32 %v1906_v29, 0.0  ;;  %v3911_v18 = vmax.f32 %v3879_v53, 0.0  ;;  %v6630_v60 = vrot.slane %v6628_v40, 4  ;;  %v6637_v10 = vshll.u32 %v11944_v4, 16 }
 0x27b   : > { %1972 = vst [vmem:[%s11877_s28 + $0x18] sm:$0xff] %v1940_v0  ;;  %8114 = vst [vmem:[%s11877_s28 + $0x118] sm:$0xff] %v3913_v11  ;;  %v6853_v48 = vsel %vm9217_vm2, %v6851_v58, %v6852_v46  ;;  %v6641_v32 = vshrl.u32 %v11944_v4, 16  ;;  %v6647_v13 = vshll.u32 %v11947_v59, 16  ;;  %v6633_v61 = vrot.slane %v6631_v36, 5 }
 0x27c   : > { %1970 = vst [vmem:[%s11877_s28 + $0x8] sm:$0xff] %v1938_v33  ;;  %8112 = vst [vmem:[%s11877_s28 + $0x108] sm:$0xff] %v3911_v18  ;;  %v8583_v44 = vcombine.low %v6850_v2, %v6853_v48  ;;  %v5804_v49 = vshrl.u32 %v8375_v1, 16  ;;  %v5807_v52 = vshll.u32 %v8375_v1, 16  ;;  %v6639_v41 = vrot.slane %v6637_v10, 5 }
 0x27d   : > { %v6643_v29 = vrot.slane %v6641_v32, 4  ;;  %v6649_v53 = vrot.slane %v6647_v13, 5  ;;  %v9061_v46 = vld [vmem:[%s9189_s22 + $0x40] sm:$0xf]  ;;  %v8504_v0 = vld [vmem:[%s9189_s22 + $0xb4] sm:$0xe]  ;;  %v6634_v11 = vor.u32 %v6633_v61, %v6630_v60  ;;  %v11975_v61 = vpop.permute.xlu0 %5094 }
 0x27e   : > { %v5813_v40 = vshll.u32 %v9061_v46, 16  ;;  %7155 = vrot.lane.b32.xlu1 %v8583_v44, %s9139_s25  ;;  %v5806_v58 = vrot.slane %v5804_v49, 4  ;;  %v5809_v54 = vrot.slane %v5807_v52, 5  ;;  %v5817_v33 = vshrl.u32 %v9061_v46, 16  ;;  %v9062_v36 = vld [vmem:[%s9189_s22 + $0x44] sm:$0x1]  ;;  %v11977_v49 = vpop.permute.xlu1 %7143 }
 0x27f   : > { %v6644_v18 = vor.u32 %v6643_v29, %v6639_v41  ;;  %v5823_v48 = vshll.u32 %v9062_v36, 16  ;;  %v9064_v1 = vld [vmem:[%s9189_s22 + $0x40] sm:$0xf]  ;;  %v6635_v38 = vrot.slane %v6634_v11, 4  ;;  %v8520_v6 = vrot.slane %v8504_v0, 9 }
 0x280   : > { %v5815_v2 = vrot.slane %v5813_v40, 5  ;;  %v8243_v10 = vcombine.low %v9063_v19, %v9064_v1  ;;  %v5810_v32 = vor.u32 %v5809_v54, %v5806_v58  ;;  %v5819_v13 = vrot.slane %v5817_v33, 4  ;;  %v8236_v46 = vld [vmem:[%s9189_s22 + $0xbc] sm:$0x1]  ;;  %v8425_v58 = vld [vmem:[%s9189_s22 + $0xb4] sm:$0xe] }
 0x281   : > { %v6645_v34 = vrot.slane %v6644_v18, 4  ;;  %v5825_v9 = vrot.slane %v5823_v48, 5  ;;  %v6856_v44 = vrot.slane %v11944_v4, 5  ;;  %v6640_v19 = vsel %vm9268_vm5, %v6635_v38, %v6639_v41  ;;  %v8407_v18 = vld [vmem:[%s9189_s22 + $0xbc] sm:$0x1] }
 0x282   : > { %v5206_v60 = vsel %vm1520_vm6, %v8243_v10, %v11656_v50  ;;  %v5811_v52 = vrot.slane %v5810_v32, 4  ;;  %v5820_v54 = vor.u32 %v5819_v13, %v5815_v2  ;;  %v6859_v29 = vrot.slane %v11947_v59, 5  ;;  %v9065_v48 = vld [vmem:[%s9189_s22 + $0x48] sm:$0xf]  ;;  %v9066_v1 = vld [vmem:[%s9189_s22 + $0x4c] sm:$0xf] }
 0x283   : > { %v6650_v50 = vsel %vm9268_vm5, %v6645_v34, %v6649_v53  ;;  %v6857_v4 = vsel %vm9217_vm2, %v8520_v6, %v6856_v44  ;;  %v6858_v40 = vrot.slane %v6856_v44, 4  ;;  %v4775_v0 = vor.u32 %v11907_v28, %v11904_v25  ;;  %v8171_v34 = vld [vmem:[%s9189_s22 + $0xb4] sm:$0xf]  ;;  %v8406_v28 = vld [vmem:[%s9189_s22 + $0xb8] sm:$0xf] }
 0x284   : > { %v8568_v11 = vcombine.low %v6640_v19, %v6650_v50  ;;  %v5816_v38 = vsel %vm9268_vm5, %v5811_v52, %v5815_v2  ;;  %v5821_v59 = vrot.slane %v5820_v54, 4  ;;  %v4785_v41 = vor.u32 %v11911_v57, %v11909_v8  ;;  %v8172_v32 = vld [vmem:[%s9189_s22 + $0xb8] sm:$0xf]  ;;  %v12012_v19 = vpop.permute.xlu0 %7065  ;;  %v12014_v52 = vpop.permute.xlu1 %7145 }
 0x285   : > { %v6860_v6 = vsel %vm9217_vm2, %v6858_v40, %v6859_v29  ;;  %v4776_v53 = vrot.slane %v4775_v0, 4  ;;  %v4788_v33 = vshll.u32 %v8236_v46, 16  ;;  %v11999_v25 = vsel %vm1569_vm7, %v5206_v60, %v11645_v56  ;;  %v8189_v46 = vld [vmem:[%s9189_s22 + $0xbc] sm:$0x1] }
 0x286   : > { %7077 = vrot.lane.b32.xlu0 %v8568_v11, %s9137_s23  ;;  %v5826_v2 = vsel %vm9268_vm5, %v5821_v59, %v5825_v9  ;;  %v8584_v57 = vcombine.low %v6857_v4, %v6860_v6  ;;  %v4786_v36 = vrot.slane %v4785_v41, 4  ;;  %v8244_v10 = vcombine.low %v9065_v48, %v9066_v1  ;;  %v8378_v11 = vld [vmem:[%s9189_s22 + $0x48] sm:$0xf] }
 0x287   : > { %v8527_v13 = vcombine.low %v5816_v38, %v5826_v2  ;;  %v4781_v56 = vsel %vm9268_vm5, %v4776_v53, %v11909_v8  ;;  %v4790_v60 = vrot.slane %v4788_v33, 5  ;;  %v8441_v44 = vrot.slane %v8425_v58, 9  ;;  %v8219_v2 = vld [vmem:[%s9189_s22 + $0xc0] sm:$0xf] }
 0x288   : > { %7157 = vrot.lane.b32.xlu1 %v8584_v57, %s9139_s25  ;;  %v12019_v9 = vsel %vm1520_vm6, %v8244_v10, %v11688_v35  ;;  %v6255_v54 = vrot.slane %v8406_v28, 5  ;;  %v6258_v29 = vrot.slane %v8407_v18, 5  ;;  %v4360_v50 = vshrl.u32 %v8171_v34, 16  ;;  %v12037_v10 = vpop.permute.xlu0 %5174 }
 0x289   : > { %v7177_v4 = vsel %vm1520_vm6, %v8527_v13, %v11605_v47  ;;  %v4791_v8 = vsel %vm9268_vm5, %v4786_v36, %v4790_v60  ;;  %v4363_v40 = vshll.u32 %v8171_v34, 16  ;;  %v4369_v0 = vshll.u32 %v8172_v32, 16  ;;  %v9067_v60 = vld [vmem:[%s9189_s22 + $0x4c] sm:$0xf] }
 0x28a   : > { %v8300_v38 = vcombine.low %v4781_v56, %v4791_v8  ;;  %v6256_v59 = vsel %vm9217_vm2, %v8441_v44, %v6255_v54  ;;  %v6257_v35 = vrot.slane %v6255_v54, 4  ;;  %v4362_v41 = vrot.slane %v4360_v50, 4 }
 0x28b   : > { %v4365_v58 = vrot.slane %v4363_v40, 5  ;;  %v4371_v6 = vrot.slane %v4369_v0, 5  ;;  %v4373_v53 = vshrl.u32 %v8172_v32, 16  ;;  %v4379_v33 = vshll.u32 %v8189_v46, 16  ;;  %v12039_v32 = vpop.permute.xlu1 %6987  ;;  %v9068_v46 = vld [vmem:[%s9189_s22 + $0x50] sm:$0x1] }
 0x28c   : > { %5186 = vrot.lane.b32.xlu0 %v8300_v38, %s9139_s25  ;;  %v6259_v47 = vsel %vm9217_vm2, %v6257_v35, %v6258_v29  ;;  %v12034_v34 = vsel %vm1569_vm7, %v7177_v4, %v11681_v39  ;;  %v5828_v28 = vshrl.u32 %v8378_v11, 16  ;;  %v5831_v18 = vshll.u32 %v8378_v11, 16  ;;  %v8220_v4 = vld [vmem:[%s9189_s22 + $0xc4] sm:$0xf] }
 0x28d   : > { %v8553_v57 = vcombine.low %v6256_v59, %v6259_v47  ;;  %v4366_v36 = vor.u32 %v4365_v58, %v4362_v41  ;;  %v4375_v48 = vrot.slane %v4373_v53, 4  ;;  %v4381_v1 = vrot.slane %v4379_v33, 5  ;;  %v8173_v59 = vld [vmem:[%s9189_s22 + $0xc0] sm:$0xf] }
 0x28e   : > { %v5830_v13 = vrot.slane %v5828_v28, 4  ;;  %v5833_v56 = vrot.slane %v5831_v18, 5  ;;  %v5837_v44 = vshll.u32 %v9067_v60, 16  ;;  %v5841_v39 = vshrl.u32 %v9067_v60, 16 }
 0x28f   : > { %6999 = vrot.lane.b32.xlu1 %v8553_v57, %s9138_s24  ;;  %v4367_v54 = vrot.slane %v4366_v36, 4  ;;  %v4376_v29 = vor.u32 %v4375_v48, %v4371_v6  ;;  %v5847_v50 = vshll.u32 %v9068_v46, 16  ;;  %v4793_v8 = vshrl.u32 %v8219_v2, 16  ;;  %v8174_v57 = vld [vmem:[%s9189_s22 + $0xc4] sm:$0xf] }
 0x290   : > { %v5834_v40 = vor.u32 %v5833_v56, %v5830_v13  ;;  %v5839_v0 = vrot.slane %v5837_v44, 5  ;;  %v5843_v11 = vrot.slane %v5841_v39, 4  ;;  %v4796_v38 = vshll.u32 %v8219_v2, 16  ;;  %v8190_v56 = vld [vmem:[%s9189_s22 + $0xc8] sm:$0x1]  ;;  %v12056_v44 = vpop.permute.xlu0 %4984 }
 0x291   : > { %v4372_v35 = vsel %vm9268_vm5, %v4367_v54, %v4371_v6  ;;  %v4377_v41 = vrot.slane %v4376_v29, 4  ;;  %v5849_v58 = vrot.slane %v5847_v50, 5  ;;  %v12048_v53 = vrot.slane %v4793_v8, 4  ;;  %v12058_v6 = vpop.permute.xlu1 %5096  ;;  %v8485_v50 = vld [vmem:[%s9189_s22 + $0xc0] sm:$0xf] }
 0x292   : > { %v5835_v33 = vrot.slane %v5834_v40, 4  ;;  %v5844_v47 = vor.u32 %v5843_v11, %v5839_v0  ;;  %v12050_v28 = vrot.slane %v4796_v38, 5  ;;  %v4802_v18 = vshll.u32 %v8220_v4, 16 }
 0x293   : > { %v4382_v36 = vsel %vm9268_vm5, %v4377_v41, %v4381_v1  ;;  %v4806_v48 = vshrl.u32 %v8220_v4, 16  ;;  %v8285_v13 = vcombine.low %v8219_v2, %v8220_v4  ;;  %v4384_v60 = vshrl.u32 %v8173_v59, 16  ;;  %v12065_v8 = vpop.f32.mrb[20].mxu0  ;;  %v12067_v1 = vpop.f32.mrb[20].mxu1 }
 0x294   : > { %v8269_v39 = vcombine.low %v4372_v35, %v4382_v36  ;;  %v5840_v54 = vsel %vm9268_vm5, %v5835_v33, %v5839_v0  ;;  %v5845_v29 = vrot.slane %v5844_v47, 4  ;;  %v12062_v46 = vrot.slane %v4802_v18, 5  ;;  %13024 = vst [vmem:[#allocation27_spill] sm:$0xff] %v12065_v8  ;;  %13025 = vst [vmem:[#allocation28_spill] sm:$0xff] %v12067_v1  ;;  %v12072_v38 = vpop.f32.mrb[21].mxu0  ;;  %v12074_v0 = vpop.f32.mrb[21].mxu1 }
 0x295   : > { %v12069_v2 = vrot.slane %v4806_v48, 4  ;;  %5108 = vrot.lane.b32.xlu1 %v8285_v13, %s9137_s23  ;;  %v4386_v4 = vrot.slane %v4384_v60, 4  ;;  %v4387_v40 = vshll.u32 %v8173_v59, 16  ;;  %v4393_v11 = vshll.u32 %v8174_v57, 16  ;;  %13026 = vst [vmem:[#allocation29_spill] sm:$0xff] %v12072_v38  ;;  %13027 = vst [vmem:[#allocation30_spill] sm:$0xff] %v12074_v0  ;;  %v12110_v1 = vpop.permute.xlu0 %4986  ;;  %v12112_v8 = vpop.permute.xlu1 %7067 }
 0x296   : > { %4996 = vrot.lane.b32.xlu0 %v8269_v39, %s9138_s24  ;;  %v5850_v35 = vsel %vm9268_vm5, %v5845_v29, %v5849_v58  ;;  %v4397_v41 = vshrl.u32 %v8174_v57, 16  ;;  %v4403_v33 = vshll.u32 %v8190_v56, 16  ;;  %v5281_v47 = vsel %vm1602_vm8, %v11999_v25, %v11718_v27  ;;  %v12083_v18 = vld [vmem:[%s9189_s22 + $0xc4] sm:$0xf]  ;;  %v12085_v59 = vpop.f32.mrb[22].mxu0  ;;  %v12087_v36 = vpop.f32.mrb[22].mxu1 }
 0x297   : > { %13028 = vst [vmem:[#allocation31_spill] sm:$0xff] %v12085_v59  ;;  %13029 = vst [vmem:[#allocation32_spill] sm:$0xff] %v12087_v36  ;;  %v8528_v48 = vcombine.low %v5840_v54, %v5850_v35  ;;  %v4389_v13 = vrot.slane %v4387_v40, 5  ;;  %v4395_v60 = vrot.slane %v4393_v11, 5  ;;  %v12092_v58 = vsel %vm1569_vm7, %v12019_v9, %v11756_v24  ;;  %v12095_v57 = vld [vmem:[%s9189_s22 + $0xc8] sm:$0x1]  ;;  %8826 = vmatprep.mubr.msk.bf16.mxu0 %vm1667_vm9, %v5281_v47 }
 0x298   : > { %v12098_v27 = vpop.f32.mrb[23].mxu0  ;;  %v12100_v25 = vpop.f32.mrb[23].mxu1  ;;  %v4399_v56 = vrot.slane %v4397_v41, 4  ;;  %v4405_v39 = vrot.slane %v4403_v33, 5  ;;  %v6652_v54 = vshrl.u32 %v8485_v50, 16  ;;  %v6655_v29 = vshll.u32 %v8485_v50, 16 }
 0x299   : > { %13030 = vst [vmem:[#allocation33_spill] sm:$0xff] %v12098_v27  ;;  %13031 = vst [vmem:[#allocation34_spill] sm:$0xff] %v12100_v25  ;;  %v8426_v40 = vld [vmem:[%s9189_s22 + $0xc0] sm:$0xe]  ;;  %v7180_v11 = vsel %vm1520_vm6, %v8528_v48, %v11725_v7  ;;  %v4390_v35 = vor.u32 %v4389_v13, %v4386_v4  ;;  %v6661_v24 = vshll.u32 %v12083_v18, 16  ;;  %v6665_v9 = vshrl.u32 %v12083_v18, 16 }
 0x29a   : > { %v8409_v36 = vld [vmem:[%s9189_s22 + $0xc4] sm:$0xf]  ;;  %v4400_v47 = vor.u32 %v4399_v56, %v4395_v60  ;;  %v6654_v59 = vrot.slane %v6652_v54, 4  ;;  %v6657_v27 = vrot.slane %v6655_v29, 5  ;;  %v6671_v0 = vshll.u32 %v12095_v57, 16 }
 0x29b   : > { %v8410_v25 = vld [vmem:[%s9189_s22 + $0xc8] sm:$0x1]  ;;  %v4391_v41 = vrot.slane %v4390_v35, 4  ;;  %v6663_v33 = vrot.slane %v6661_v24, 5  ;;  %v6667_v38 = vrot.slane %v6665_v9, 4  ;;  %v8442_v50 = vrot.slane %v8426_v40, 9 }
 0x29c   : > { %v4401_v7 = vrot.slane %v4400_v47, 4  ;;  %v6658_v4 = vor.u32 %v6657_v27, %v6654_v59  ;;  %v6673_v48 = vrot.slane %v6671_v0, 5  ;;  %v6262_v13 = vrot.slane %v8409_v36, 5 }
 0x29d   : > { %v4396_v56 = vsel %vm9268_vm5, %v4391_v41, %v4395_v60  ;;  %v6668_v54 = vor.u32 %v6667_v38, %v6663_v33  ;;  %v6265_v29 = vrot.slane %v8410_v25, 5  ;;  %v7252_v35 = vsel %vm1602_vm8, %v12034_v34, %v11750_v42  ;;  %v8237_v42 = vld [vmem:[%s9189_s22 + $0xc8] sm:$0x1]  ;;  %v8221_v41 = vld [vmem:[%s9189_s22 + $0xcc] sm:$0xf] }
 0x29e   : > { %v4406_v40 = vsel %vm9268_vm5, %v4401_v7, %v4405_v39  ;;  %v6659_v24 = vrot.slane %v6658_v4, 4  ;;  %v6263_v9 = vsel %vm9217_vm2, %v8442_v50, %v6262_v13  ;;  %v6264_v59 = vrot.slane %v6262_v13, 4  ;;  %8866 = vmatprep.mubr.msk.bf16.mxu1 %vm1667_vm9, %v7252_v35  ;;  %v12146_v50 = vpop.permute.xlu1 %5176  ;;  %v8222_v4 = vld [vmem:[%s9189_s22 + $0xd0] sm:$0xf] }
 0x29f   : > { %v8270_v0 = vcombine.low %v4396_v56, %v4406_v40  ;;  %v6669_v36 = vrot.slane %v6668_v54, 4  ;;  %v7222_v38 = vsel %vm1569_vm7, %v7180_v11, %v11787_v51  ;;  %v1873_v60 = vmul.f32 %v11468_v20, %v11822_v3 }
 0x2a0   : > { %v6664_v34 = vsel %vm9268_vm5, %v6659_v24, %v6663_v33  ;;  %v6266_v27 = vsel %vm9217_vm2, %v6264_v59, %v6265_v29  ;;  %v3852_v25 = vmul.f32 %v11470_v23, %v11822_v3  ;;  %v4799_v39 = vor.u32 %v12050_v28, %v12048_v53  ;;  %v12144_v33 = vpop.permute.xlu0 %6989 }
 0x2a1   : > { %4998 = vrot.lane.b32.xlu0 %v8270_v0, %s9138_s24  ;;  %v6674_v51 = vsel %vm9268_vm5, %v6669_v36, %v6673_v48  ;;  %v8554_v20 = vcombine.low %v6263_v9, %v6266_v27  ;;  %v1911_v11 = vadd.f32 %v11836_v5, %v1873_v60  ;;  %v4809_v47 = vor.u32 %v12069_v2, %v12062_v46  ;;  %v8505_v60 = vld [vmem:[%s9189_s22 + $0xc0] sm:$0xe] }
 0x2a2   : > { %v8569_v23 = vcombine.low %v6664_v34, %v6674_v51  ;;  %v3884_v53 = vadd.f32 %v11836_v5, %v3852_v25  ;;  %v4800_v28 = vrot.slane %v4799_v39, 4  ;;  %v4812_v7 = vshll.u32 %v8237_v42, 16  ;;  %v12172_v51 = vpop.permute.xlu1 %7147 }
 0x2a3   : > { %v1943_v48 = vmax.f32 %v1911_v11, 0.0  ;;  %v4810_v13 = vrot.slane %v4809_v47, 4  ;;  %v1871_v56 = vmul.f32 %v11822_v3, %v11496_v17  ;;  %v3850_v2 = vmul.f32 %v11822_v3, %v11498_v12 }
 0x2a4   : > { %7079 = vrot.lane.b32.xlu1 %v8569_v23, %s9137_s23  ;;  %v3916_v54 = vmax.f32 %v3884_v53, 0.0  ;;  %v4805_v29 = vsel %vm9268_vm5, %v4800_v28, %v12062_v46  ;;  %v4814_v35 = vrot.slane %v4812_v7, 5  ;;  %v4817_v40 = vshrl.u32 %v8221_v41, 16  ;;  %v12170_v39 = vpop.permute.xlu0 %5098  ;;  %v13032_v23 = vld [vmem:[#allocation2_spill] sm:$0xff]  ;;  %v8488_v53 = vld [vmem:[%s9189_s22 + $0xcc] sm:$0xf] }
 0x2a5   : > { %7001 = vrot.lane.b32.xlu0 %v8554_v20, %s9138_s24  ;;  %1975 = vst [vmem:[%s11877_s28 + $0x30] sm:$0xff] %v1943_v48  ;;  %v1909_v24 = vadd.f32 %v11836_v5, %v1871_v56  ;;  %v3882_v17 = vadd.f32 %v11836_v5, %v3850_v2  ;;  %v4820_v9 = vshll.u32 %v8221_v41, 16  ;;  %v4826_v59 = vshll.u32 %v8222_v4, 16  ;;  %v13033_v7 = vld [vmem:[#allocation3_spill] sm:$0xff]  ;;  %v13034_v48 = vld [vmem:[#allocation4_spill] sm:$0xff] }
 0x2a6   : > { %8117 = vst [vmem:[%s11877_s28 + $0x130] sm:$0xff] %v3916_v54  ;;  %v4815_v12 = vsel %vm9268_vm5, %v4810_v13, %v4814_v35  ;;  %v12165_v0 = vrot.slane %v4817_v40, 4  ;;  %v4830_v46 = vshrl.u32 %v8222_v4, 16  ;;  %v8286_v36 = vcombine.low %v8221_v41, %v8222_v4  ;;  %v12204_v40 = vld [vmem:[%s9189_s22 + $0xd0] sm:$0xf] }
 0x2a7   : > { %v8301_v42 = vcombine.low %v4805_v29, %v4815_v12  ;;  %v1941_v34 = vmax.f32 %v1909_v24, 0.0  ;;  %v3914_v27 = vmax.f32 %v3882_v17, 0.0  ;;  %v12168_v25 = vrot.slane %v4820_v9, 5  ;;  %v12207_v24 = vld [vmem:[%s9189_s22 + $0xd4] sm:$0x1] }
 0x2a8   : > { %v12174_v20 = vrot.slane %v4826_v59, 5  ;;  %v12176_v11 = vrot.slane %v4830_v46, 4  ;;  %v1874_v47 = vmul.f32 %v11502_v30, %v11822_v3  ;;  %v3853_v41 = vmul.f32 %v13032_v23, %v11822_v3  ;;  %v8381_v59 = vld [vmem:[%s9189_s22 + $0x54] sm:$0xf] }
 0x2a9   : > { %5188 = vrot.lane.b32.xlu1 %v8301_v42, %s9139_s25  ;;  %1973 = vst [vmem:[%s11877_s28 + $0x20] sm:$0xff] %v1941_v34  ;;  %8115 = vst [vmem:[%s11877_s28 + $0x120] sm:$0xff] %v3914_v27  ;;  %5110 = vrot.lane.b32.xlu0 %v8286_v36, %s9137_s23  ;;  %v7254_v28 = vsel %vm1602_vm8, %v7222_v38, %v11777_v62  ;;  %v1872_v4 = vmul.f32 %v11822_v3, %v13033_v7  ;;  %v8521_v13 = vrot.slane %v8505_v60, 9  ;;  %v12213_v60 = vpop.permute.xlu0 %7069  ;;  %v12215_v42 = vpop.permute.xlu1 %7149 }
 0x2aa   : > { %v3851_v30 = vmul.f32 %v11822_v3, %v13034_v48  ;;  %v1912_v56 = vadd.f32 %v11836_v5, %v1874_v47  ;;  %v3885_v2 = vadd.f32 %v11836_v5, %v3853_v41  ;;  %v5283_v54 = vsel %vm1602_vm8, %v12092_v58, %v11817_v37  ;;  %8867 = vmatmul.mubr.msk.bf16.gmra.mrb[40].mxu1 %vm1667_vm9, %v7254_v28 }
 0x2ab   : > { %v6863_v29 = vrot.slane %v12083_v18, 5  ;;  %v1910_v62 = vadd.f32 %v11836_v5, %v1872_v4  ;;  %v6866_v35 = vrot.slane %v12095_v57, 5  ;;  %v6676_v17 = vshrl.u32 %v8488_v53, 16  ;;  %8827 = vmatmul.mubr.msk.bf16.gmra.mrb[40].mxu0 %vm1667_vm9, %v5283_v54 }
 0x2ac   : > { %v3883_v38 = vadd.f32 %v11836_v5, %v3851_v30  ;;  %v1944_v37 = vmax.f32 %v1912_v56, 0.0  ;;  %v3917_v58 = vmax.f32 %v3885_v2, 0.0  ;;  %v6679_v36 = vshll.u32 %v8488_v53, 16  ;;  %v8506_v2 = vld [vmem:[%s9189_s22 + $0xcc] sm:$0xe] }
 0x2ad   : > { %v6864_v18 = vsel %vm9217_vm2, %v8521_v13, %v6863_v29  ;;  %v6865_v9 = vrot.slane %v6863_v29, 4  ;;  %v1942_v12 = vmax.f32 %v1910_v62, 0.0  ;;  %v6678_v46 = vrot.slane %v6676_v17, 4  ;;  %v9069_v13 = vld [vmem:[%s9189_s22 + $0x58] sm:$0xf] }
 0x2ae   : > { %v3915_v57 = vmax.f32 %v3883_v38, 0.0  ;;  %1976 = vst [vmem:[%s11877_s28 + $0x38] sm:$0xff] %v1944_v37  ;;  %8118 = vst [vmem:[%s11877_s28 + $0x138] sm:$0xff] %v3917_v58  ;;  %v6685_v27 = vshll.u32 %v12204_v40, 16  ;;  %v6689_v47 = vshrl.u32 %v12204_v40, 16  ;;  %v6695_v23 = vshll.u32 %v12207_v24, 16 }
 0x2af   : > { %v6867_v34 = vsel %vm9217_vm2, %v6865_v9, %v6866_v35  ;;  %1974 = vst [vmem:[%s11877_s28 + $0x28] sm:$0xff] %v1942_v12  ;;  %v6681_v53 = vrot.slane %v6679_v36, 5  ;;  %v5852_v28 = vshrl.u32 %v8381_v59, 16  ;;  %v5855_v7 = vshll.u32 %v8381_v59, 16  ;;  %v9070_v37 = vld [vmem:[%s9189_s22 + $0x5c] sm:$0x1] }
 0x2b0   : > { %8116 = vst [vmem:[%s11877_s28 + $0x128] sm:$0xff] %v3915_v57  ;;  %v8585_v41 = vcombine.low %v6864_v18, %v6867_v34  ;;  %v6687_v4 = vrot.slane %v6685_v27, 5  ;;  %v6691_v48 = vrot.slane %v6689_v47, 4  ;;  %v6697_v30 = vrot.slane %v6695_v23, 5  ;;  %v9071_v18 = vld [vmem:[%s9189_s22 + $0x54] sm:$0xf]  ;;  %v12232_v27 = vpop.permute.xlu0 %5178  ;;  %v12234_v47 = vpop.permute.xlu1 %6991 }
 0x2b1   : > { %v5861_v56 = vshll.u32 %v9069_v13, 16  ;;  %v6682_v54 = vor.u32 %v6681_v53, %v6678_v46  ;;  %v5854_v29 = vrot.slane %v5852_v28, 4  ;;  %v5857_v62 = vrot.slane %v5855_v7, 5  ;;  %v9072_v9 = vld [vmem:[%s9189_s22 + $0x58] sm:$0xf] }
 0x2b2   : > { %7159 = vrot.lane.b32.xlu1 %v8585_v41, %s9139_s25  ;;  %v5865_v38 = vshrl.u32 %v9069_v13, 16  ;;  %v6692_v35 = vor.u32 %v6691_v48, %v6687_v4  ;;  %v5871_v58 = vshll.u32 %v9070_v37, 16  ;;  %v8245_v59 = vcombine.low %v9071_v18, %v9072_v9  ;;  %v9073_v18 = vld [vmem:[%s9189_s22 + $0x60] sm:$0xf]  ;;  %v9074_v9 = vld [vmem:[%s9189_s22 + $0x64] sm:$0xf] }
 0x2b3   : > { %v5863_v17 = vrot.slane %v5861_v56, 5  ;;  %v6683_v12 = vrot.slane %v6682_v54, 4  ;;  %v5858_v57 = vor.u32 %v5857_v62, %v5854_v29  ;;  %v8522_v34 = vrot.slane %v8506_v2, 9  ;;  %v8238_v56 = vld [vmem:[%s9189_s22 + $0xd4] sm:$0x1] }
 0x2b4   : > { %v5867_v36 = vrot.slane %v5865_v38, 4  ;;  %v6693_v46 = vrot.slane %v6692_v35, 4  ;;  %v5873_v23 = vrot.slane %v5871_v58, 5  ;;  %v5212_v41 = vsel %vm1520_vm6, %v8245_v59, %v11870_v16  ;;  %v8384_v38 = vld [vmem:[%s9189_s22 + $0x60] sm:$0xf]  ;;  %v12263_v59 = vpop.permute.xlu0 %4988  ;;  %v12265_v31 = vpop.permute.xlu1 %5100 }
 0x2b5   : > { %v6870_v53 = vrot.slane %v12204_v40, 5  ;;  %v6688_v28 = vsel %vm9268_vm5, %v6683_v12, %v6687_v4  ;;  %v5859_v7 = vrot.slane %v5858_v57, 4  ;;  %v6873_v13 = vrot.slane %v12207_v24, 5 }
 0x2b6   : > { %v5868_v48 = vor.u32 %v5867_v36, %v5863_v17  ;;  %v6698_v2 = vsel %vm9268_vm5, %v6693_v46, %v6697_v30  ;;  %v4823_v16 = vor.u32 %v12168_v25, %v12165_v0  ;;  %v4833_v24 = vor.u32 %v12176_v11, %v12174_v20 }
 0x2b7   : > { %v6871_v54 = vsel %vm9217_vm2, %v8522_v34, %v6870_v53  ;;  %v6872_v29 = vrot.slane %v6870_v53, 4  ;;  %v8570_v40 = vcombine.low %v6688_v28, %v6698_v2  ;;  %v5864_v4 = vsel %vm9268_vm5, %v5859_v7, %v5863_v17 }
 0x2b8   : > { %v5869_v62 = vrot.slane %v5868_v48, 4  ;;  %v4824_v35 = vrot.slane %v4823_v16, 4  ;;  %v4836_v37 = vshll.u32 %v8238_v56, 16  ;;  %v5253_v58 = vsel %vm1569_vm7, %v5212_v41, %v11847_v21  ;;  %v12280_v56 = vld [vmem:[%s9189_s22 + $0x6c] sm:$0xf] }
 0x2b9   : > { %v6874_v30 = vsel %vm9217_vm2, %v6872_v29, %v6873_v13  ;;  %7081 = vrot.lane.b32.xlu0 %v8570_v40, %s9137_s23  ;;  %v4834_v17 = vrot.slane %v4833_v24, 4  ;;  %v8246_v11 = vcombine.low %v9073_v18, %v9074_v9  ;;  %v5876_v36 = vshrl.u32 %v8384_v38, 16  ;;  %v9076_v13 = vld [vmem:[%s9189_s22 + $0x68] sm:$0x1] }
 0x2ba   : > { %v5874_v0 = vsel %vm9268_vm5, %v5869_v62, %v5873_v23  ;;  %v8586_v25 = vcombine.low %v6871_v54, %v6874_v30  ;;  %v4829_v21 = vsel %vm9268_vm5, %v4824_v35, %v12174_v20  ;;  %v4838_v57 = vrot.slane %v4836_v37, 5  ;;  %v9075_v23 = vld [vmem:[%s9189_s22 + $0x64] sm:$0xf]  ;;  %v12295_v35 = vpop.permute.xlu0 %4990  ;;  %v12297_v37 = vpop.permute.xlu1 %7071 }
 0x2bb   : > { %v8529_v12 = vcombine.low %v5864_v4, %v5874_v0  ;;  %v5215_v34 = vsel %vm1520_vm6, %v8246_v11, %v11918_v55  ;;  %v5879_v46 = vshll.u32 %v8384_v38, 16  ;;  %v5885_v41 = vshll.u32 %v9075_v23, 16  ;;  %v13037_v0 = vld [vmem:[#allocation7_spill] sm:$0xff] }
 0x2bc   : > { %7161 = vrot.lane.b32.xlu1 %v8586_v25, %s9139_s25  ;;  %v5889_v53 = vshrl.u32 %v9075_v23, 16  ;;  %v4839_v7 = vsel %vm9268_vm5, %v4834_v17, %v4838_v57  ;;  %v5878_v48 = vrot.slane %v5876_v36, 4  ;;  %v5895_v20 = vshll.u32 %v9076_v13, 16  ;;  %v13038_v17 = vld [vmem:[#allocation8_spill] sm:$0xff]  ;;  %v13040_v36 = vld [vmem:[#allocation10_spill] sm:$0xff] }
 0x2bd   : > { %v7183_v28 = vsel %vm1520_vm6, %v8529_v12, %v11813_v63  ;;  %v8302_v2 = vcombine.low %v4829_v21, %v4839_v7  ;;  %v5881_v55 = vrot.slane %v5879_v46, 5  ;;  %v5887_v29 = vrot.slane %v5885_v41, 5  ;;  %v13039_v21 = vld [vmem:[#allocation9_spill] sm:$0xff] }
 0x2be   : > { %v7224_v54 = vsel %vm1569_vm7, %v7183_v28, %v11920_v15  ;;  %v5891_v16 = vrot.slane %v5889_v53, 4  ;;  %v5897_v40 = vrot.slane %v5895_v20, 5  ;;  %v5285_v4 = vsel %vm1602_vm8, %v5253_v58, %v11962_v14  ;;  %v13035_v15 = vld [vmem:[#allocation5_spill] sm:$0xff]  ;;  %v12308_v9 = vpop.f32.mrb[24].mxu1 }
 0x2bf   : > { %v5255_v63 = vsel %vm1569_vm7, %v5215_v34, %v11975_v61  ;;  %5190 = vrot.lane.b32.xlu0 %v8302_v2, %s9139_s25  ;;  %v5882_v62 = vor.u32 %v5881_v55, %v5878_v48  ;;  %8830 = vmatprep.mubr.msk.bf16.mxu0 %vm1667_vm9, %v5285_v4  ;;  %v7256_v24 = vsel %vm1602_vm8, %v7224_v54, %v11977_v49  ;;  %v5900_v30 = vshrl.u32 %v12280_v56, 16  ;;  %v13036_v61 = vld [vmem:[#allocation6_spill] sm:$0xff]  ;;  %v12306_v49 = vpop.f32.mrb[24].mxu0  ;;  %v12317_v23 = vpop.f32.mrb[25].mxu1 }
 0x2c0   : > { %v1877_v38 = vmul.f32 %v13035_v15, %v11822_v3  ;;  %v5892_v14 = vor.u32 %v5891_v16, %v5887_v29  ;;  %v3856_v58 = vmul.f32 %v13036_v61, %v11822_v3  ;;  %v1875_v25 = vmul.f32 %v11822_v3, %v13037_v0  ;;  %8870 = vmatprep.mubr.msk.bf16.mxu1 %vm1667_vm9, %v7256_v24  ;;  %v12315_v46 = vpop.f32.mrb[25].mxu0  ;;  %v12324_v13 = vpop.f32.mrb[26].mxu1  ;;  %v13042_v0 = vld [vmem:[#allocation12_spill] sm:$0xff] }
 0x2c1   : > { %v3854_v18 = vmul.f32 %v11822_v3, %v13038_v17  ;;  %v5883_v11 = vrot.slane %v5882_v62, 4  ;;  %v1878_v57 = vmul.f32 %v13039_v21, %v11822_v3  ;;  %v3857_v34 = vmul.f32 %v13040_v36, %v11822_v3  ;;  %v12322_v48 = vpop.f32.mrb[26].mxu0  ;;  %v12332_v4 = vpop.f32.mrb[27].mxu1 }
 0x2c2   : > { %v1915_v12 = vadd.f32 %v11836_v5, %v1877_v38  ;;  %v5893_v41 = vrot.slane %v5892_v14, 4  ;;  %v3888_v53 = vadd.f32 %v11836_v5, %v3856_v58  ;;  %v1913_v28 = vadd.f32 %v11836_v5, %v1875_v25  ;;  %v12330_v16 = vpop.f32.mrb[27].mxu0  ;;  %v13041_v58 = vld [vmem:[#allocation11_spill] sm:$0xff] }
 0x2c3   : > { %v3886_v7 = vadd.f32 %v11836_v5, %v3854_v18  ;;  %v5888_v20 = vsel %vm9268_vm5, %v5883_v11, %v5887_v29  ;;  %v1916_v54 = vadd.f32 %v11836_v5, %v1878_v57  ;;  %v3889_v55 = vadd.f32 %v11836_v5, %v3857_v34  ;;  %v12364_v57 = vpop.permute.xlu0 %6993 }
 0x2c4   : > { %v1947_v2 = vmax.f32 %v1915_v12, 0.0  ;;  %v5898_v62 = vsel %vm9268_vm5, %v5893_v41, %v5897_v40  ;;  %v3920_v24 = vmax.f32 %v3888_v53, 0.0  ;;  %v1945_v15 = vmax.f32 %v1913_v28, 0.0  ;;  %v12345_v40 = vld [vmem:[%s12975_s2] ss:$0 sm:$0xff] }
 0x2c5   : > { %v3918_v38 = vmax.f32 %v3886_v7, 0.0  ;;  %v8530_v29 = vcombine.low %v5888_v20, %v5898_v62  ;;  %v1948_v14 = vmax.f32 %v1916_v54, 0.0  ;;  %v3921_v61 = vmax.f32 %v3889_v55, 0.0  ;;  %v12359_v12 = vld [vmem:[%s12976_s3] ss:$0 sm:$0xff] }
 0x2c6   : > { %1979 = vst [vmem:[%s11877_s28 + $0x50] sm:$0xff] %v1947_v2  ;;  %v1876_v5 = vmul.f32 %v11822_v3, %v13041_v58  ;;  %8121 = vst [vmem:[%s11877_s28 + $0x150] sm:$0xff] %v3920_v24  ;;  %v3855_v25 = vmul.f32 %v12345_v40, %v13042_v0  ;;  %v5287_v17 = vsel %vm1602_vm8, %v5255_v63, %v12037_v10  ;;  %v5902_v18 = vrot.slane %v5900_v30, 4  ;;  %v9079_v10 = vld [vmem:[%s9189_s22 + $0x70] sm:$0xf] }
 0x2c7   : > { %1977 = vst [vmem:[%s11877_s28 + $0x40] sm:$0xff] %v1945_v15  ;;  %8119 = vst [vmem:[%s11877_s28 + $0x140] sm:$0xff] %v3918_v38  ;;  %v5903_v11 = vshll.u32 %v12280_v56, 16  ;;  %v7186_v3 = vsel %vm1520_vm6, %v8530_v29, %v11960_v43  ;;  %8831 = vmatmul.mubr.msk.bf16.gmra.mrb[44].mxu0 %vm1667_vm9, %v5287_v17  ;;  %v5909_v63 = vshll.u32 %v9079_v10, 16  ;;  %v5913_v30 = vshrl.u32 %v9079_v10, 16  ;;  %v12366_v56 = vpop.permute.xlu1 %5180 }
 0x2c8   : > { %1980 = vst [vmem:[%s11877_s28 + $0x58] sm:$0xff] %v1948_v14  ;;  %8122 = vst [vmem:[%s11877_s28 + $0x158] sm:$0xff] %v3921_v61  ;;  %v1914_v21 = vadd.f32 %v12359_v12, %v1876_v5  ;;  %v7226_v43 = vsel %vm1569_vm7, %v7186_v3, %v12012_v19  ;;  %v3887_v36 = vadd.f32 %v12359_v12, %v3855_v25  ;;  %v9080_v41 = vld [vmem:[%s9189_s22 + $0x74] sm:$0x1]  ;;  %v8390_v28 = vld [vmem:[%s9189_s22 + $0x78] sm:$0xf] }
 0x2c9   : > { %v5905_v34 = vrot.slane %v5903_v11, 5  ;;  %v5919_v53 = vshll.u32 %v9080_v41, 16  ;;  %v7258_v7 = vsel %vm1602_vm8, %v7226_v43, %v12014_v52  ;;  %v5911_v2 = vrot.slane %v5909_v63, 5  ;;  %v9081_v24 = vld [vmem:[%s9189_s22 + $0x6c] sm:$0xf] }
 0x2ca   : > { %v1946_v20 = vmax.f32 %v1914_v21, 0.0  ;;  %v5915_v54 = vrot.slane %v5913_v30, 4  ;;  %v3919_v55 = vmax.f32 %v3887_v36, 0.0  ;;  %8871 = vmatmul.mubr.msk.bf16.gmra.mrb[44].mxu1 %vm1667_vm9, %v7258_v7  ;;  %v9082_v15 = vld [vmem:[%s9189_s22 + $0x70] sm:$0xf]  ;;  %v5924_v5 = vshrl.u32 %v8390_v28, 16  ;;  %v12389_v30 = vpop.permute.xlu0 %5102 }
 0x2cb   : > { %v5906_v19 = vor.u32 %v5905_v34, %v5902_v18  ;;  %v5921_v62 = vrot.slane %v5919_v53, 5  ;;  %v8247_v38 = vcombine.low %v9081_v24, %v9082_v15  ;;  %v9083_v14 = vld [vmem:[%s9189_s22 + $0x78] sm:$0xf]  ;;  %v9084_v61 = vld [vmem:[%s9189_s22 + $0x7c] sm:$0xf]  ;;  %v5927_v52 = vshll.u32 %v8390_v28, 16  ;;  %v12391_v43 = vpop.permute.xlu1 %7151 }
 0x2cc   : > { %1978 = vst [vmem:[%s11877_s28 + $0x48] sm:$0xff] %v1946_v20  ;;  %v5916_v29 = vor.u32 %v5915_v54, %v5911_v2  ;;  %v8248_v58 = vcombine.low %v9083_v14, %v9084_v61  ;;  %8120 = vst [vmem:[%s11877_s28 + $0x148] sm:$0xff] %v3919_v55  ;;  %v9085_v17 = vld [vmem:[%s9189_s22 + $0x7c] sm:$0xf]  ;;  %v5926_v63 = vrot.slane %v5924_v5, 4  ;;  %v13044_v15 = vld [vmem:[#allocation14_spill] sm:$0xff] }
 0x2cd   : > { %v5907_v0 = vrot.slane %v5906_v19, 4  ;;  %v5218_v25 = vsel %vm1520_vm6, %v8247_v38, %v12056_v44  ;;  %v5933_v11 = vshll.u32 %v9085_v17, 16  ;;  %v5937_v18 = vshrl.u32 %v9085_v17, 16  ;;  %v9086_v28 = vld [vmem:[%s9189_s22 + $0x80] sm:$0x1]  ;;  %v13045_v38 = vld [vmem:[#allocation15_spill] sm:$0xff] }
 0x2ce   : > { %v5917_v3 = vrot.slane %v5916_v29, 4  ;;  %v5257_v21 = vsel %vm1569_vm7, %v5218_v25, %v12058_v6  ;;  %v5221_v10 = vsel %vm1520_vm6, %v8248_v58, %v12110_v1  ;;  %v5929_v34 = vrot.slane %v5927_v52, 5  ;;  %v13046_v14 = vld [vmem:[#allocation16_spill] sm:$0xff] }
 0x2cf   : > { %v5912_v36 = vsel %vm9268_vm5, %v5907_v0, %v5911_v2  ;;  %v5935_v44 = vrot.slane %v5933_v11, 5  ;;  %v5939_v41 = vrot.slane %v5937_v18, 4  ;;  %v5943_v7 = vshll.u32 %v9086_v28, 16  ;;  %v13043_v2 = vld [vmem:[#allocation13_spill] sm:$0xff]  ;;  %v12419_v11 = vpop.permute.xlu0 %7073  ;;  %v12421_v18 = vpop.permute.xlu1 %7153  ;;  %v13048_v28 = vld [vmem:[#allocation18_spill] sm:$0xff] }
 0x2d0   : > { %v5922_v53 = vsel %vm9268_vm5, %v5917_v3, %v5921_v62  ;;  %v5289_v6 = vsel %vm1602_vm8, %v5257_v21, %v12146_v50  ;;  %v5259_v1 = vsel %vm1569_vm7, %v5221_v10, %v12170_v39  ;;  %v5930_v54 = vor.u32 %v5929_v34, %v5926_v63  ;;  %v8393_v10 = vld [vmem:[%s9189_s22 + $0x84] sm:$0xf] }
 0x2d1   : > { %v8531_v20 = vcombine.low %v5912_v36, %v5922_v53  ;;  %v5940_v55 = vor.u32 %v5939_v41, %v5935_v44  ;;  %8834 = vmatprep.mubr.msk.bf16.mxu0 %vm1667_vm9, %v5289_v6  ;;  %v1881_v19 = vmul.f32 %v12345_v40, %v13043_v2  ;;  %v5945_v24 = vrot.slane %v5943_v7, 5  ;;  %v13047_v53 = vld [vmem:[#allocation17_spill] sm:$0xff]  ;;  %v13049_v6 = vld [vmem:[#allocation19_spill] sm:$0xff] }
 0x2d2   : > { %v3860_v62 = vmul.f32 %v12345_v40, %v13044_v15  ;;  %v1879_v29 = vmul.f32 %v12345_v40, %v13045_v38  ;;  %v3858_v50 = vmul.f32 %v12345_v40, %v13046_v14  ;;  %v5931_v61 = vrot.slane %v5930_v54, 4 }
 0x2d3   : > { %v7189_v39 = vsel %vm1520_vm6, %v8531_v20, %v12039_v32  ;;  %v5941_v58 = vrot.slane %v5940_v55, 4  ;;  %v1919_v5 = vadd.f32 %v12359_v12, %v1881_v19  ;;  %v3861_v7 = vmul.f32 %v12345_v40, %v13048_v28 }
 0x2d4   : > { %v7228_v52 = vsel %vm1569_vm7, %v7189_v39, %v12112_v8  ;;  %v3892_v0 = vadd.f32 %v12359_v12, %v3860_v62  ;;  %v1917_v25 = vadd.f32 %v12359_v12, %v1879_v29  ;;  %v3890_v17 = vadd.f32 %v12359_v12, %v3858_v50  ;;  %v12457_v50 = vpop.permute.xlu0 %5182  ;;  %v12459_v39 = vpop.permute.xlu1 %6995 }
 0x2d5   : > { %v5936_v32 = vsel %vm9268_vm5, %v5931_v61, %v5935_v44  ;;  %v5946_v3 = vsel %vm9268_vm5, %v5941_v58, %v5945_v24  ;;  %v7260_v8 = vsel %vm1602_vm8, %v7228_v52, %v12172_v51  ;;  %v1951_v21 = vmax.f32 %v1919_v5, 0.0  ;;  %v13050_v51 = vld [vmem:[#allocation20_spill] sm:$0xff] }
 0x2d6   : > { %v8532_v63 = vcombine.low %v5936_v32, %v5946_v3  ;;  %v3924_v36 = vmax.f32 %v3892_v0, 0.0  ;;  %v1949_v34 = vmax.f32 %v1917_v25, 0.0  ;;  %v3922_v41 = vmax.f32 %v3890_v17, 0.0  ;;  %8874 = vmatprep.mubr.msk.bf16.mxu1 %vm1667_vm9, %v7260_v8  ;;  %v9088_v32 = vld [vmem:[%s9189_s22 + $0x8c] sm:$0x1] }
 0x2d7   : > { %1983 = vst [vmem:[%s11877_s28 + $0x70] sm:$0xff] %v1951_v21  ;;  %v1882_v44 = vmul.f32 %v12345_v40, %v13047_v53  ;;  %v1880_v20 = vmul.f32 %v12345_v40, %v13049_v6  ;;  %v3859_v54 = vmul.f32 %v12345_v40, %v13050_v51  ;;  %v5291_v2 = vsel %vm1602_vm8, %v5259_v1, %v12232_v27  ;;  %v9089_v21 = vld [vmem:[%s9189_s22 + $0x84] sm:$0xf] }
 0x2d8   : > { %v7192_v55 = vsel %vm1520_vm6, %v8532_v63, %v12144_v33  ;;  %8125 = vst [vmem:[%s11877_s28 + $0x170] sm:$0xff] %v3924_v36  ;;  %1981 = vst [vmem:[%s11877_s28 + $0x60] sm:$0xff] %v1949_v34  ;;  %v5948_v19 = vshrl.u32 %v8393_v10, 16  ;;  %v5951_v24 = vshll.u32 %v8393_v10, 16  ;;  %v3893_v38 = vadd.f32 %v12359_v12, %v3861_v7  ;;  %8835 = vmatmul.mubr.msk.bf16.gmra.mrb[48].mxu0 %vm1667_vm9, %v5291_v2  ;;  %v9090_v10 = vld [vmem:[%s9189_s22 + $0x88] sm:$0xf] }
 0x2d9   : > { %8123 = vst [vmem:[%s11877_s28 + $0x160] sm:$0xff] %v3922_v41  ;;  %v7230_v15 = vsel %vm1569_vm7, %v7192_v55, %v12213_v60  ;;  %v1920_v62 = vadd.f32 %v12359_v12, %v1882_v44  ;;  %v1918_v29 = vadd.f32 %v12359_v12, %v1880_v20  ;;  %v3891_v27 = vadd.f32 %v12359_v12, %v3859_v54  ;;  %v8396_v60 = vld [vmem:[%s9189_s22 + $0x90] sm:$0xf]  ;;  %v9092_v34 = vld [vmem:[%s9189_s22 + $0x94] sm:$0xf] }
 0x2da   : > { %v7262_v33 = vsel %vm1602_vm8, %v7230_v15, %v12215_v42  ;;  %v5950_v1 = vrot.slane %v5948_v19, 4  ;;  %v5953_v14 = vrot.slane %v5951_v24, 5  ;;  %v3925_v58 = vmax.f32 %v3893_v38, 0.0  ;;  %v9087_v42 = vld [vmem:[%s9189_s22 + $0x88] sm:$0xf]  ;;  %v12481_v38 = vpop.permute.xlu0 %4992 }
 0x2db   : > { %v1952_v61 = vmax.f32 %v1920_v62, 0.0  ;;  %v1950_v5 = vmax.f32 %v1918_v29, 0.0  ;;  %8875 = vmatmul.mubr.msk.bf16.gmra.mrb[48].mxu1 %vm1667_vm9, %v7262_v33  ;;  %v5957_v52 = vshll.u32 %v9087_v42, 16  ;;  %v3923_v0 = vmax.f32 %v3891_v27, 0.0  ;;  %v9091_v36 = vld [vmem:[%s9189_s22 + $0x90] sm:$0xf]  ;;  %v12483_v29 = vpop.permute.xlu1 %5104 }
 0x2dc   : > { %v5954_v25 = vor.u32 %v5953_v14, %v5950_v1  ;;  %v5961_v17 = vshrl.u32 %v9087_v42, 16  ;;  %v5967_v3 = vshll.u32 %v9088_v32, 16  ;;  %8126 = vst [vmem:[%s11877_s28 + $0x178] sm:$0xff] %v3925_v58  ;;  %v8249_v63 = vcombine.low %v9089_v21, %v9090_v10  ;;  %v9093_v55 = vld [vmem:[%s9189_s22 + $0x94] sm:$0xf] }
 0x2dd   : > { %1984 = vst [vmem:[%s11877_s28 + $0x78] sm:$0xff] %v1952_v61  ;;  %1982 = vst [vmem:[%s11877_s28 + $0x68] sm:$0xff] %v1950_v5  ;;  %v5959_v8 = vrot.slane %v5957_v52, 5  ;;  %v8250_v41 = vcombine.low %v9091_v36, %v9092_v34  ;;  %v5972_v53 = vshrl.u32 %v8396_v60, 16  ;;  %v5975_v6 = vshll.u32 %v8396_v60, 16  ;;  %v13051_v52 = vld [vmem:[#allocation21_spill] sm:$0xff] }
 0x2de   : > { %8124 = vst [vmem:[%s11877_s28 + $0x168] sm:$0xff] %v3923_v0  ;;  %v5955_v44 = vrot.slane %v5954_v25, 4  ;;  %v5963_v28 = vrot.slane %v5961_v17, 4  ;;  %v5969_v7 = vrot.slane %v5967_v3, 5  ;;  %v5224_v20 = vsel %vm1520_vm6, %v8249_v63, %v12263_v59  ;;  %v9094_v27 = vld [vmem:[%s9189_s22 + $0x98] sm:$0x1] }
 0x2df   : > { %v5227_v51 = vsel %vm1520_vm6, %v8250_v41, %v12295_v35  ;;  %v5974_v54 = vrot.slane %v5972_v53, 4  ;;  %v5981_v2 = vshll.u32 %v9093_v55, 16  ;;  %v5261_v15 = vsel %vm1569_vm7, %v5224_v20, %v12265_v31  ;;  %v13053_v36 = vld [vmem:[#allocation23_spill] sm:$0xff]  ;;  %v12509_v41 = vpop.permute.xlu0 %4994 }
 0x2e0   : > { %v5960_v19 = vsel %vm9268_vm5, %v5955_v44, %v5959_v8  ;;  %v5964_v24 = vor.u32 %v5963_v28, %v5959_v8  ;;  %v5977_v62 = vrot.slane %v5975_v6, 5  ;;  %v5985_v59 = vshrl.u32 %v9093_v55, 16  ;;  %v13054_v55 = vld [vmem:[#allocation24_spill] sm:$0xff] }
 0x2e1   : > { %v5983_v33 = vrot.slane %v5981_v2, 5  ;;  %v5991_v1 = vshll.u32 %v9094_v27, 16  ;;  %v5293_v35 = vsel %vm1602_vm8, %v5261_v15, %v12366_v56  ;;  %v5263_v61 = vsel %vm1569_vm7, %v5227_v51, %v12389_v30  ;;  %v13052_v30 = vld [vmem:[#allocation22_spill] sm:$0xff]  ;;  %v13055_v15 = vld [vmem:[#allocation25_spill] sm:$0xff] }
 0x2e2   : > { %v5965_v14 = vrot.slane %v5964_v24, 4  ;;  %v5978_v60 = vor.u32 %v5977_v62, %v5974_v54  ;;  %8838 = vmatprep.mubr.msk.bf16.mxu0 %vm1667_vm9, %v5293_v35  ;;  %v1885_v31 = vmul.f32 %v12345_v40, %v11849_v26  ;;  %v5987_v58 = vrot.slane %v5985_v59, 4  ;;  %v13056_v62 = vld [vmem:[#allocation26_spill] sm:$0xff] }
 0x2e3   : > { %v5993_v5 = vrot.slane %v5991_v1, 5  ;;  %v3864_v42 = vmul.f32 %v12345_v40, %v11859_v45  ;;  %v1883_v0 = vmul.f32 %v12345_v40, %v13051_v52  ;;  %v3862_v32 = vmul.f32 %v12345_v40, %v13052_v30  ;;  %v12511_v53 = vpop.permute.xlu1 %7075 }
 0x2e4   : > { %v5970_v56 = vsel %vm9268_vm5, %v5965_v14, %v5969_v7  ;;  %v5979_v25 = vrot.slane %v5978_v60, 4  ;;  %v1923_v17 = vadd.f32 %v12359_v12, %v1885_v31  ;;  %v5988_v26 = vor.u32 %v5987_v58, %v5983_v33 }
 0x2e5   : > { %v8533_v3 = vcombine.low %v5960_v19, %v5970_v56  ;;  %v3896_v8 = vadd.f32 %v12359_v12, %v3864_v42  ;;  %v1921_v21 = vadd.f32 %v12359_v12, %v1883_v0  ;;  %v3894_v63 = vadd.f32 %v12359_v12, %v3862_v32  ;;  %v8399_v19 = vld [vmem:[%s9189_s22 + $0x9c] sm:$0xf]  ;;  %v9095_v42 = vld [vmem:[%s9189_s22 + $0xa0] sm:$0xf]  ;;  %v8402_v56 = vld [vmem:[%s9189_s22 + $0xa8] sm:$0xf] }
 0x2e6   : > { %v5984_v45 = vsel %vm9268_vm5, %v5979_v25, %v5983_v33  ;;  %v1955_v10 = vmax.f32 %v1923_v17, 0.0  ;;  %v1886_v34 = vmul.f32 %v12345_v40, %v13053_v36  ;;  %v5989_v28 = vrot.slane %v5988_v26, 4 }
 0x2e7   : > { %v7195_v44 = vsel %vm1520_vm6, %v8533_v3, %v12234_v47  ;;  %v3928_v7 = vmax.f32 %v3896_v8, 0.0  ;;  %v1953_v6 = vmax.f32 %v1921_v21, 0.0  ;;  %v3926_v51 = vmax.f32 %v3894_v63, 0.0  ;;  %v9096_v63 = vld [vmem:[%s9189_s22 + $0xa4] sm:$0x1] }
 0x2e8   : > { %v7232_v20 = vsel %vm1569_vm7, %v7195_v44, %v12297_v37  ;;  %1987 = vst [vmem:[%s11877_s28 + $0x90] sm:$0xff] %v1955_v10  ;;  %v1924_v54 = vadd.f32 %v12359_v12, %v1886_v34  ;;  %v3865_v2 = vmul.f32 %v12345_v40, %v13054_v55  ;;  %v5994_v24 = vsel %vm9268_vm5, %v5989_v28, %v5993_v5  ;;  %v9097_v34 = vld [vmem:[%s9189_s22 + $0x9c] sm:$0xf]  ;;  %v9098_v44 = vld [vmem:[%s9189_s22 + $0xa0] sm:$0xf] }
 0x2e9   : > { %v7264_v47 = vsel %vm1602_vm8, %v7232_v20, %v12391_v43  ;;  %8129 = vst [vmem:[%s11877_s28 + $0x190] sm:$0xff] %v3928_v7  ;;  %1985 = vst [vmem:[%s11877_s28 + $0x80] sm:$0xff] %v1953_v6  ;;  %v1884_v37 = vmul.f32 %v12345_v40, %v13055_v15  ;;  %v3863_v33 = vmul.f32 %v12345_v40, %v13056_v62  ;;  %v5996_v60 = vshrl.u32 %v8399_v19, 16  ;;  %v9099_v55 = vld [vmem:[%s9189_s22 + $0xac] sm:$0xf] }
 0x2ea   : > { %v8534_v59 = vcombine.low %v5984_v45, %v5994_v24  ;;  %8127 = vst [vmem:[%s11877_s28 + $0x180] sm:$0xff] %v3926_v51  ;;  %8878 = vmatprep.mubr.msk.bf16.mxu1 %vm1667_vm9, %v7264_v47  ;;  %v1956_v27 = vmax.f32 %v1924_v54, 0.0  ;;  %v3897_v1 = vadd.f32 %v12359_v12, %v3865_v2  ;;  %v5295_v43 = vsel %vm1602_vm8, %v5263_v61, %v12457_v50  ;;  %v12545_v50 = vpop.permute.xlu0 %6997  ;;  %v5185_v61 = vpop.permute.xlu1 %5184 }
 0x2eb   : > { %v1922_v35 = vadd.f32 %v12359_v12, %v1884_v37  ;;  %v3895_v14 = vadd.f32 %v12359_v12, %v3863_v33  ;;  %8839 = vmatmul.mubr.msk.bf16.gmra.mrb[52].mxu0 %vm1667_vm9, %v5295_v43  ;;  %v5999_v31 = vshll.u32 %v8399_v19, 16  ;;  %v6005_v52 = vshll.u32 %v9095_v42, 16  ;;  %v12551_v3 = vpop.f32.mrb[28].mxu1 }
 0x2ec   : > { %v7198_v58 = vsel %vm1520_vm6, %v8534_v59, %v12364_v57  ;;  %1988 = vst [vmem:[%s11877_s28 + $0x98] sm:$0xff] %v1956_v27  ;;  %v3929_v5 = vmax.f32 %v3897_v1, 0.0  ;;  %v6009_v0 = vshrl.u32 %v9095_v42, 16  ;;  %v5998_v32 = vrot.slane %v5996_v60, 4  ;;  %v12549_v57 = vpop.f32.mrb[28].mxu0 }
 0x2ed   : > { %v7234_v25 = vsel %vm1569_vm7, %v7198_v58, %v12419_v11  ;;  %v1954_v17 = vmax.f32 %v1922_v35, 0.0  ;;  %v3927_v30 = vmax.f32 %v3895_v14, 0.0  ;;  %v6001_v8 = vrot.slane %v5999_v31, 5  ;;  %v12556_v10 = vpop.f32.mrb[29].mxu0  ;;  %v12558_v11 = vpop.f32.mrb[29].mxu1 }
 0x2ee   : > { %8130 = vst [vmem:[%s11877_s28 + $0x198] sm:$0xff] %v3929_v5  ;;  %v7266_v26 = vsel %vm1602_vm8, %v7234_v25, %v12421_v18  ;;  %v6007_v21 = vrot.slane %v6005_v52, 5  ;;  %v6011_v45 = vrot.slane %v6009_v0, 4  ;;  %v6015_v36 = vshll.u32 %v9096_v63, 16  ;;  %v12566_v6 = vpop.f32.mrb[30].mxu0  ;;  %v12568_v18 = vpop.f32.mrb[30].mxu1 }
 0x2ef   : > { %1986 = vst [vmem:[%s11877_s28 + $0x88] sm:$0xff] %v1954_v17  ;;  %8128 = vst [vmem:[%s11877_s28 + $0x188] sm:$0xff] %v3927_v30  ;;  %8879 = vmatmul.mubr.msk.bf16.gmra.mrb[52].mxu1 %vm1667_vm9, %v7266_v26  ;;  %v8251_v28 = vcombine.low %v9097_v34, %v9098_v44  ;;  %v6020_v7 = vshrl.u32 %v8402_v56, 16  ;;  %v6002_v20 = vor.u32 %v6001_v8, %v5998_v32  ;;  %v6023_v54 = vshll.u32 %v8402_v56, 16  ;;  %v12571_v19 = vpop.f32.mrb[31].mxu0  ;;  %v12573_v24 = vpop.f32.mrb[31].mxu1 }
 0x2f0   : > { %v6012_v51 = vor.u32 %v6011_v45, %v6007_v21  ;;  %v6029_v2 = vshll.u32 %v9099_v55, 16  ;;  %v6017_v47 = vrot.slane %v6015_v36, 5  ;;  %v6033_v43 = vshrl.u32 %v9099_v55, 16  ;;  %v9100_v35 = vld [vmem:[%s9189_s22 + $0xb0] sm:$0x1]  ;;  %v5107_v31 = vpop.permute.xlu0 %5106  ;;  %v13057_v17 = vld [vmem:[#allocation27_spill] sm:$0xff]  ;;  %v7156_v32 = vpop.permute.xlu1 %7155 }
 0x2f1   : > { %v5230_v15 = vsel %vm1520_vm6, %v8251_v28, %v12481_v38  ;;  %v6022_v37 = vrot.slane %v6020_v7, 4  ;;  %v6003_v62 = vrot.slane %v6002_v20, 4  ;;  %v6025_v27 = vrot.slane %v6023_v54, 5  ;;  %v9101_v5 = vld [vmem:[%s9189_s22 + $0xa8] sm:$0xf]  ;;  %v13058_v26 = vld [vmem:[#allocation28_spill] sm:$0xff] }
 0x2f2   : > { %v6013_v33 = vrot.slane %v6012_v51, 4  ;;  %v5265_v59 = vsel %vm1569_vm7, %v5230_v15, %v12483_v29  ;;  %v6031_v1 = vrot.slane %v6029_v2, 5  ;;  %v6039_v14 = vshll.u32 %v9100_v35, 16  ;;  %v9102_v42 = vld [vmem:[%s9189_s22 + $0xac] sm:$0xf]  ;;  %v13060_v63 = vld [vmem:[#allocation30_spill] sm:$0xff] }
 0x2f3   : > { %v5297_v60 = vsel %vm1602_vm8, %v5265_v59, %v5185_v61  ;;  %v6008_v58 = vsel %vm9268_vm5, %v6003_v62, %v6007_v21  ;;  %v8252_v52 = vcombine.low %v9101_v5, %v9102_v42  ;;  %v6026_v0 = vor.u32 %v6025_v27, %v6022_v37  ;;  %v13059_v21 = vld [vmem:[#allocation29_spill] sm:$0xff]  ;;  %v13061_v7 = vld [vmem:[#allocation31_spill] sm:$0xff]  ;;  %v13062_v27 = vld [vmem:[#allocation32_spill] sm:$0xff] }
 0x2f4   : > { %v6018_v38 = vsel %vm9268_vm5, %v6013_v33, %v6017_v47  ;;  %8842 = vmatprep.mubr.msk.bf16.mxu0 %vm1667_vm9, %v5297_v60  ;;  %v6035_v56 = vrot.slane %v6033_v43, 4  ;;  %v6041_v25 = vrot.slane %v6039_v14, 5  ;;  %v1889_v30 = vmul.f32 %v12345_v40, %v13057_v17  ;;  %v13063_v14 = vld [vmem:[#allocation33_spill] sm:$0xff] }
 0x2f5   : > { %v8535_v29 = vcombine.low %v6008_v58, %v6018_v38  ;;  %v6027_v61 = vrot.slane %v6026_v0, 4  ;;  %v3868_v8 = vmul.f32 %v12345_v40, %v13058_v26  ;;  %v1887_v45 = vmul.f32 %v12345_v40, %v13059_v21  ;;  %v13064_v58 = vld [vmem:[#allocation34_spill] sm:$0xff] }
 0x2f6   : > { %v3866_v36 = vmul.f32 %v12345_v40, %v13060_v63  ;;  %v6036_v44 = vor.u32 %v6035_v56, %v6031_v1  ;;  %v1927_v28 = vadd.f32 %v12359_v12, %v1889_v30  ;;  %v1890_v20 = vmul.f32 %v12345_v40, %v13061_v7  ;;  %v8405_v63 = vld [vmem:[%s9189_s22 + $0xb4] sm:$0xf] }
 0x2f7   : > { %v7201_v34 = vsel %vm1520_vm6, %v8535_v29, %v12459_v39  ;;  %v6032_v54 = vsel %vm9268_vm5, %v6027_v61, %v6031_v1  ;;  %v3900_v55 = vadd.f32 %v12359_v12, %v3868_v8  ;;  %v1925_v2 = vadd.f32 %v12359_v12, %v1887_v45 }
 0x2f8   : > { %v7236_v51 = vsel %vm1569_vm7, %v7201_v34, %v12511_v53  ;;  %v6037_v47 = vrot.slane %v6036_v44, 4  ;;  %v7078_v15 = vpop.permute.xlu0 %7077  ;;  %v1959_v37 = vmax.f32 %v1927_v28, 0.0  ;;  %v3898_v62 = vadd.f32 %v12359_v12, %v3866_v36 }
 0x2f9   : > { %v7268_v39 = vsel %vm1602_vm8, %v7236_v51, %v7156_v32  ;;  %v3932_v33 = vmax.f32 %v3900_v55, 0.0  ;;  %v1957_v59 = vmax.f32 %v1925_v2, 0.0  ;;  %v1928_v53 = vadd.f32 %v12359_v12, %v1890_v20 }
 0x2fa   : > { %8882 = vmatprep.mubr.msk.bf16.mxu1 %vm1667_vm9, %v7268_v39  ;;  %v3869_v1 = vmul.f32 %v12345_v40, %v13062_v27  ;;  %v6042_v43 = vsel %vm9268_vm5, %v6037_v47, %v6041_v25  ;;  %1991 = vst [vmem:[%s11877_s28 + $0xb0] sm:$0xff] %v1959_v37  ;;  %v3930_v35 = vmax.f32 %v3898_v62, 0.0  ;;  %v1888_v60 = vmul.f32 %v12345_v40, %v13063_v14  ;;  %v7158_v29 = vpop.permute.xlu1 %7157 }
 0x2fb   : > { %v3867_v38 = vmul.f32 %v12345_v40, %v13064_v58  ;;  %v8536_v5 = vcombine.low %v6032_v54, %v6042_v43  ;;  %8133 = vst [vmem:[%s11877_s28 + $0x1b0] sm:$0xff] %v3932_v33  ;;  %1989 = vst [vmem:[%s11877_s28 + $0xa0] sm:$0xff] %v1957_v59  ;;  %v1960_v42 = vmax.f32 %v1928_v53, 0.0  ;;  %v5233_v17 = vsel %vm1520_vm6, %v8252_v52, %v12509_v41  ;;  %v9104_v59 = vld [vmem:[%s9189_s22 + $0xbc] sm:$0x1] }
 0x2fc   : > { %v3901_v0 = vadd.f32 %v12359_v12, %v3869_v1  ;;  %8131 = vst [vmem:[%s11877_s28 + $0x1a0] sm:$0xff] %v3930_v35  ;;  %v1926_v56 = vadd.f32 %v12359_v12, %v1888_v60  ;;  %v5267_v32 = vsel %vm1569_vm7, %v5233_v17, %v5107_v31  ;;  %v6044_v41 = vshrl.u32 %v8405_v63, 16  ;;  %v9103_v31 = vld [vmem:[%s9189_s22 + $0xb8] sm:$0xf] }
 0x2fd   : > { %v3899_v25 = vadd.f32 %v12359_v12, %v3867_v38  ;;  %v7204_v30 = vsel %vm1520_vm6, %v8536_v5, %v12545_v50  ;;  %1992 = vst [vmem:[%s11877_s28 + $0xb8] sm:$0xff] %v1960_v42  ;;  %v6047_v50 = vshll.u32 %v8405_v63, 16  ;;  %v6053_v52 = vshll.u32 %v9103_v31, 16 }
 0x2fe   : > { %v3933_v61 = vmax.f32 %v3901_v0, 0.0  ;;  %v7238_v26 = vsel %vm1569_vm7, %v7204_v30, %v7078_v15  ;;  %v1958_v8 = vmax.f32 %v1926_v56, 0.0  ;;  %v5187_v45 = vpop.permute.xlu0 %5186  ;;  %v6057_v44 = vshrl.u32 %v9103_v31, 16 }
 0x2ff   : > { %v3931_v21 = vmax.f32 %v3899_v25, 0.0  ;;  %v7270_v36 = vsel %vm1602_vm8, %v7238_v26, %v7158_v29  ;;  %v5299_v34 = vsel %vm1602_vm8, %v5267_v32, %v5187_v45  ;;  %v1893_v28 = vmul.f32 %v12345_v40, %v12306_v49  ;;  %v12656_v49 = vld [vmem:[%s9189_s22 + $0xc0] sm:$0xf] }
 0x300   : > { %8134 = vst [vmem:[%s11877_s28 + $0x1b8] sm:$0xff] %v3933_v61  ;;  %1990 = vst [vmem:[%s11877_s28 + $0xa8] sm:$0xff] %v1958_v8  ;;  %8843 = vmatmul.mubr.msk.bf16.gmra.mrb[56].mxu0 %vm1667_vm9, %v5299_v34  ;;  %8883 = vmatmul.mubr.msk.bf16.gmra.mrb[56].mxu1 %vm1667_vm9, %v7270_v36  ;;  %v6046_v7 = vrot.slane %v6044_v41, 4  ;;  %v6049_v20 = vrot.slane %v6047_v50, 5  ;;  %v3872_v51 = vmul.f32 %v12345_v40, %v12308_v9  ;;  %v12648_v55 = vrot.slane %v6053_v52, 5 }
 0x301   : > { %8132 = vst [vmem:[%s11877_s28 + $0x1a8] sm:$0xff] %v3931_v21  ;;  %v1891_v54 = vmul.f32 %v12345_v40, %v12315_v46  ;;  %v12650_v2 = vrot.slane %v6057_v44, 4  ;;  %v1931_v47 = vadd.f32 %v12359_v12, %v1893_v28  ;;  %v3870_v39 = vmul.f32 %v12345_v40, %v12317_v23  ;;  %v12666_v43 = vpop.permute.xlu1 %6999 }
 0x302   : > { %v3904_v15 = vadd.f32 %v12359_v12, %v3872_v51  ;;  %v1894_v9 = vmul.f32 %v12345_v40, %v12322_v48  ;;  %v6050_v33 = vor.u32 %v6049_v20, %v6046_v7  ;;  %v6063_v53 = vshll.u32 %v9104_v59, 16  ;;  %v9105_v20 = vld [vmem:[%s9189_s22 + $0xc4] sm:$0xf] }
 0x303   : > { %v1929_v37 = vadd.f32 %v12359_v12, %v1891_v54  ;;  %v1963_v46 = vmax.f32 %v1931_v47, 0.0  ;;  %v3902_v62 = vadd.f32 %v12359_v12, %v3870_v39  ;;  %v6060_v1 = vor.u32 %v12650_v2, %v12648_v55 }
 0x304   : > { %v3936_v27 = vmax.f32 %v3904_v15, 0.0  ;;  %v6068_v35 = vshrl.u32 %v12656_v49, 16  ;;  %v1932_v48 = vadd.f32 %v12359_v12, %v1894_v9  ;;  %v6071_v60 = vshll.u32 %v12656_v49, 16  ;;  %v9106_v15 = vld [vmem:[%s9189_s22 + $0xb4] sm:$0xf] }
 0x305   : > { %v1961_v23 = vmax.f32 %v1929_v37, 0.0  ;;  %1995 = vst [vmem:[%s11877_s28 + $0xd0] sm:$0xff] %v1963_v46  ;;  %v3934_v14 = vmax.f32 %v3902_v62, 0.0  ;;  %v3873_v58 = vmul.f32 %v12345_v40, %v12324_v13  ;;  %v1892_v38 = vmul.f32 %v12345_v40, %v12330_v16  ;;  %v9107_v37 = vld [vmem:[%s9189_s22 + $0xb8] sm:$0xf] }
 0x306   : > { %8137 = vst [vmem:[%s11877_s28 + $0x1d0] sm:$0xff] %v3936_v27  ;;  %v3871_v5 = vmul.f32 %v12345_v40, %v12332_v4  ;;  %v1964_v42 = vmax.f32 %v1932_v48, 0.0  ;;  %v1897_v0 = vmul.f32 %v12345_v40, %v12549_v57  ;;  %v3876_v29 = vmul.f32 %v12345_v40, %v12551_v3 }
 0x307   : > { %1993 = vst [vmem:[%s11877_s28 + $0xc0] sm:$0xff] %v1961_v23  ;;  %8135 = vst [vmem:[%s11877_s28 + $0x1c0] sm:$0xff] %v3934_v14  ;;  %v1895_v56 = vmul.f32 %v12345_v40, %v12556_v10  ;;  %v3905_v25 = vadd.f32 %v12359_v12, %v3873_v58  ;;  %v1930_v13 = vadd.f32 %v12359_v12, %v1892_v38  ;;  %v5109_v8 = vpop.permute.xlu1 %5108  ;;  %v6051_v50 = vrot.slane %v6050_v33, 4 }
 0x308   : > { %v3903_v16 = vadd.f32 %v12359_v12, %v3871_v5  ;;  %v3874_v4 = vmul.f32 %v12345_v40, %v12558_v11  ;;  %1996 = vst [vmem:[%s11877_s28 + $0xd8] sm:$0xff] %v1964_v42  ;;  %v1935_v57 = vadd.f32 %v12359_v12, %v1897_v0  ;;  %v3908_v3 = vadd.f32 %v12359_v12, %v3876_v29  ;;  %v4997_v52 = vpop.permute.xlu0 %4996 }
 0x309   : > { %v1933_v17 = vadd.f32 %v12359_v12, %v1895_v56  ;;  %v1898_v10 = vmul.f32 %v12345_v40, %v12566_v6  ;;  %v3937_v30 = vmax.f32 %v3905_v25, 0.0  ;;  %v1962_v61 = vmax.f32 %v1930_v13, 0.0 }
 0x30a   : > { %v3935_v32 = vmax.f32 %v3903_v16, 0.0  ;;  %v3906_v26 = vadd.f32 %v12359_v12, %v3874_v4  ;;  %v1967_v11 = vmax.f32 %v1935_v57, 0.0  ;;  %v3940_v21 = vmax.f32 %v3908_v3, 0.0 }
 0x30b   : > { %v1965_v45 = vmax.f32 %v1933_v17, 0.0  ;;  %v1936_v63 = vadd.f32 %v12359_v12, %v1898_v10  ;;  %8138 = vst [vmem:[%s11877_s28 + $0x1d8] sm:$0xff] %v3937_v30  ;;  %1994 = vst [vmem:[%s11877_s28 + $0xc8] sm:$0xff] %v1962_v61  ;;  %v3877_v6 = vmul.f32 %v12345_v40, %v12568_v18  ;;  %v1896_v34 = vmul.f32 %v12345_v40, %v12571_v19 }
 0x30c   : > { %8136 = vst [vmem:[%s11877_s28 + $0x1c8] sm:$0xff] %v3935_v32  ;;  %v3938_v36 = vmax.f32 %v3906_v26, 0.0  ;;  %v3875_v41 = vmul.f32 %v12345_v40, %v12573_v24  ;;  %v6065_v31 = vrot.slane %v6063_v53, 5  ;;  %1999 = vst [vmem:[%s11877_s28 + $0xf0] sm:$0xff] %v1967_v11  ;;  %v6061_v28 = vrot.slane %v6060_v1, 4 }
 0x30d   : > { %8141 = vst [vmem:[%s11877_s28 + $0x1f0] sm:$0xff] %v3940_v21  ;;  %1997 = vst [vmem:[%s11877_s28 + $0xe0] sm:$0xff] %v1965_v45  ;;  %v1968_v44 = vmax.f32 %v1936_v63, 0.0  ;;  %v3909_v18 = vadd.f32 %v12359_v12, %v3877_v6  ;;  %v1934_v7 = vadd.f32 %v12359_v12, %v1896_v34  ;;  %v12716_v24 = vrot.slane %v6068_v35, 4  ;;  %v9108_v35 = vld [vmem:[%s9189_s22 + $0xc8] sm:$0x1] }
 0x30e   : > { %8139 = vst [vmem:[%s11877_s28 + $0x1e0] sm:$0xff] %v3938_v36  ;;  %v3907_v19 = vadd.f32 %v12359_v12, %v3875_v41  ;;  %v6077_v51 = vshll.u32 %v9105_v20, 16  ;;  %v6081_v54 = vshrl.u32 %v9105_v20, 16  ;;  %v6073_v2 = vrot.slane %v6071_v60, 5 }
 0x30f   : > { %2000 = vst [vmem:[%s11877_s28 + $0xf8] sm:$0xff] %v1968_v44  ;;  %v3941_v47 = vmax.f32 %v3909_v18, 0.0  ;;  %v1966_v39 = vmax.f32 %v1934_v7, 0.0  ;;  %v8253_v9 = vcombine.low %v9106_v15, %v9107_v37  ;;  %v6056_v62 = vsel %vm9268_vm5, %v6051_v50, %v12648_v55 }
 0x310   : > { %v3939_v49 = vmax.f32 %v3907_v19, 0.0  ;;  %v6066_v33 = vsel %vm9268_vm5, %v6061_v28, %v6065_v31  ;;  %v12732_v53 = vrot.slane %v6077_v51, 5  ;;  %v6083_v27 = vrot.slane %v6081_v54, 4 }
 0x311   : > { %8142 = vst [vmem:[%s11877_s28 + $0x1f8] sm:$0xff] %v3941_v47  ;;  %1998 = vst [vmem:[%s11877_s28 + $0xe8] sm:$0xff] %v1966_v39  ;;  %v6074_v1 = vor.u32 %v6073_v2, %v12716_v24  ;;  %v6087_v14 = vshll.u32 %v9108_v35, 16  ;;  %v8537_v58 = vcombine.low %v6056_v62, %v6066_v33  ;;  %v5236_v38 = vsel %vm1520_vm6, %v8253_v9, %v4997_v52  ;;  %v9109_v9 = vld [vmem:[%s9189_s22 + $0xc0] sm:$0xf] }
 0x312   : > { %8140 = vst [vmem:[%s11877_s28 + $0x1e8] sm:$0xff] %v3939_v49  ;;  %v5269_v56 = vsel %vm1569_vm7, %v5236_v38, %v5109_v8  ;;  %v6084_v57 = vor.u32 %v6083_v27, %v12732_v53 }
 0x313   : > { %v12730_v59 = vpop.permute.xlu0 %4998  ;;  %v6075_v28 = vrot.slane %v6074_v1, 4  ;;  %v6089_v7 = vrot.slane %v6087_v14, 5  ;;  %v7207_v24 = vsel %vm1520_vm6, %v8537_v58, %v12666_v43 }
 0x314   : > { %v6085_v18 = vrot.slane %v6084_v57, 4 }
 0x315   : > { %v6080_v39 = vsel %vm9268_vm5, %v6075_v28, %v12732_v53  ;;  %v12814_v28 = vld [vmem:[%s12975_s2] ss:$0 sm:$0xff] }
 0x316   : > { %v7080_v46 = vpop.permute.xlu1 %7079  ;;  %v6090_v49 = vsel %vm9268_vm5, %v6085_v18, %v6089_v7 }
 0x317   : > { %v7002_v34 = vpop.permute.xlu0 %7001  ;;  %v7240_v54 = vsel %vm1569_vm7, %v7207_v24, %v7080_v46  ;;  %v8538_v43 = vcombine.low %v6080_v39, %v6090_v49  ;;  %v9110_v46 = vld [vmem:[%s9189_s22 + $0xc4] sm:$0xf] }
 0x318   : > { %v8860_v23 = vpop.f32.mrb[32].mxu1  ;;  %v8820_v48 = vpop.f32.mrb[32].mxu0  ;;  %v8254_v62 = vcombine.low %v9109_v9, %v9110_v46 }
 0x319   : > { %v7503_v60 = vmul.f32 %v12345_v40, %v8860_v23  ;;  %v7374_v55 = vpop.f32.mrb[33].mxu1  ;;  %v5532_v5 = vmul.f32 %v12345_v40, %v8820_v48  ;;  %v5403_v42 = vpop.f32.mrb[33].mxu0  ;;  %v7210_v33 = vsel %vm1520_vm6, %v8538_v43, %v7002_v34 }
 0x31a   : > { %v7501_v0 = vmul.f32 %v12345_v40, %v7374_v55  ;;  %v8861_v29 = vpop.f32.mrb[34].mxu1  ;;  %v5530_v16 = vmul.f32 %v12345_v40, %v5403_v42  ;;  %v8821_v30 = vpop.f32.mrb[34].mxu0  ;;  %v5239_v22 = vsel %vm1520_vm6, %v8254_v62, %v12730_v59 }
 0x31b   : > { %v5189_v25 = vpop.permute.xlu1 %5188  ;;  %v7535_v13 = vadd.f32 %v12359_v12, %v7503_v60  ;;  %v7504_v4 = vmul.f32 %v12345_v40, %v8861_v29  ;;  %v5564_v17 = vadd.f32 %v12359_v12, %v5532_v5  ;;  %v7377_v61 = vpop.f32.mrb[35].mxu1  ;;  %v5533_v8 = vmul.f32 %v12345_v40, %v8821_v30 }
 0x31c   : > { %v5301_v3 = vsel %vm1602_vm8, %v5269_v56, %v5189_v25  ;;  %v7533_v10 = vadd.f32 %v12359_v12, %v7501_v0  ;;  %v5562_v26 = vadd.f32 %v12359_v12, %v5530_v16  ;;  %v5406_v21 = vpop.f32.mrb[35].mxu0  ;;  %v7502_v6 = vmul.f32 %v12345_v40, %v7377_v61  ;;  %v5111_v15 = vpop.permute.xlu0 %5110 }
 0x31d   : > { %8846 = vmatprep.mubr.msk.bf16.mxu0 %vm1667_vm9, %v5301_v3  ;;  %v7567_v32 = vmax.f32 %v7535_v13, 0.0  ;;  %v7536_v11 = vadd.f32 %v12359_v12, %v7504_v4  ;;  %v5596_v45 = vmax.f32 %v5564_v17, 0.0  ;;  %v5531_v36 = vmul.f32 %v12345_v40, %v5406_v21 }
 0x31e   : > { %v7565_v63 = vmax.f32 %v7533_v10, 0.0  ;;  %v5594_v41 = vmax.f32 %v5562_v26, 0.0  ;;  %v5565_v50 = vadd.f32 %v12359_v12, %v5533_v8  ;;  %v7534_v44 = vadd.f32 %v12359_v12, %v7502_v6 }
 0x31f   : > { %8617 = vst [vmem:[%s11877_s28 + $0x310] sm:$0xff] %v7567_v32  ;;  %v7568_v31 = vmax.f32 %v7536_v11, 0.0  ;;  %8333 = vst [vmem:[%s11877_s28 + $0x210] sm:$0xff] %v5596_v45  ;;  %v5563_v52 = vadd.f32 %v12359_v12, %v5531_v36  ;;  %v5271_v53 = vsel %vm1569_vm7, %v5239_v22, %v5111_v15 }
 0x320   : > { %8615 = vst [vmem:[%s11877_s28 + $0x300] sm:$0xff] %v7565_v63  ;;  %8331 = vst [vmem:[%s11877_s28 + $0x200] sm:$0xff] %v5594_v41  ;;  %v5597_v19 = vmax.f32 %v5565_v50, 0.0  ;;  %v7566_v51 = vmax.f32 %v7534_v44, 0.0 }
 0x321   : > { %8618 = vst [vmem:[%s11877_s28 + $0x318] sm:$0xff] %v7568_v31  ;;  %v5595_v20 = vmax.f32 %v5563_v52, 0.0 }
 0x322   : > { %8334 = vst [vmem:[%s11877_s28 + $0x218] sm:$0xff] %v5597_v19  ;;  %8616 = vst [vmem:[%s11877_s28 + $0x308] sm:$0xff] %v7566_v51 }
 0x323   : > { %8332 = vst [vmem:[%s11877_s28 + $0x208] sm:$0xff] %v5595_v20 }
 0x324   : > { %v7160_v2 = vpop.permute.xlu1 %7159 }
 0x325   : > { %v7272_v47 = vsel %vm1602_vm8, %v7240_v54, %v7160_v2 }
 0x326   : > { %8886 = vmatprep.mubr.msk.bf16.mxu1 %vm1667_vm9, %v7272_v47  ;;  %v12824_v47 = vld [vmem:[%s12976_s3] ss:$0 sm:$0xff] }
 0x32b   : > { %v7082_v37 = vpop.permute.xlu0 %7081 }
 0x32c   : > { %v7242_v27 = vsel %vm1569_vm7, %v7210_v33, %v7082_v37 }
 0x32e   : > { %v7162_v23 = vpop.permute.xlu1 %7161 }
 0x32f   : > { %v7274_v1 = vsel %vm1602_vm8, %v7242_v27, %v7162_v23 }
 0x330   : > { %8887 = vmatmul.mubr.msk.bf16.gmra.mrb[60].mxu1 %vm1667_vm9, %v7274_v1 }
 0x331   : > { %v5191_v35 = vpop.permute.xlu0 %5190 }
 0x332   : > { %v5303_v14 = vsel %vm1602_vm8, %v5271_v53, %v5191_v35 }
 0x333   : > { %8847 = vmatmul.mubr.msk.bf16.gmra.mrb[60].mxu0 %vm1667_vm9, %v5303_v14 }
 0x34a   : > { %v8864_v48 = vpop.f32.mrb[36].mxu1 }
 0x34b   : > { %v8824_v60 = vpop.f32.mrb[36].mxu0  ;;  %v7507_v55 = vmul.f32 %v12345_v40, %v8864_v48  ;;  %v7390_v58 = vpop.f32.mrb[37].mxu1 }
 0x34c   : > { %v5536_v38 = vmul.f32 %v12345_v40, %v8824_v60  ;;  %v5419_v5 = vpop.f32.mrb[37].mxu0  ;;  %v7505_v42 = vmul.f32 %v12345_v40, %v7390_v58  ;;  %v8865_v0 = vpop.f32.mrb[38].mxu1 }
 0x34d   : > { %v7539_v59 = vadd.f32 %v12359_v12, %v7507_v55  ;;  %v5534_v29 = vmul.f32 %v12345_v40, %v5419_v5  ;;  %v8825_v56 = vpop.f32.mrb[38].mxu0  ;;  %v7508_v25 = vmul.f32 %v12345_v40, %v8865_v0  ;;  %v7393_v13 = vpop.f32.mrb[39].mxu1 }
 0x34e   : > { %v5568_v16 = vadd.f32 %v12359_v12, %v5536_v38  ;;  %v7537_v4 = vadd.f32 %v12359_v12, %v7505_v42  ;;  %v5537_v57 = vmul.f32 %v12345_v40, %v8825_v56  ;;  %v5422_v3 = vpop.f32.mrb[39].mxu0  ;;  %v7506_v17 = vmul.f32 %v12345_v40, %v7393_v13 }
 0x34f   : > { %v7571_v10 = vmax.f32 %v7539_v59, 0.0  ;;  %v5566_v30 = vadd.f32 %v12359_v12, %v5534_v29  ;;  %v7540_v61 = vadd.f32 %v12359_v12, %v7508_v25  ;;  %v5535_v32 = vmul.f32 %v12345_v40, %v5422_v3 }
 0x350   : > { %v5600_v26 = vmax.f32 %v5568_v16, 0.0  ;;  %v7569_v8 = vmax.f32 %v7537_v4, 0.0  ;;  %v5569_v11 = vadd.f32 %v12359_v12, %v5537_v57  ;;  %v7538_v21 = vadd.f32 %v12359_v12, %v7506_v17 }
 0x351   : > { %8621 = vst [vmem:[%s11877_s28 + $0x330] sm:$0xff] %v7571_v10  ;;  %v5598_v45 = vmax.f32 %v5566_v30, 0.0  ;;  %v7572_v63 = vmax.f32 %v7540_v61, 0.0  ;;  %v5567_v36 = vadd.f32 %v12359_v12, %v5535_v32 }
 0x352   : > { %8337 = vst [vmem:[%s11877_s28 + $0x230] sm:$0xff] %v5600_v26  ;;  %8619 = vst [vmem:[%s11877_s28 + $0x320] sm:$0xff] %v7569_v8  ;;  %v5601_v6 = vmax.f32 %v5569_v11, 0.0  ;;  %v7570_v34 = vmax.f32 %v7538_v21, 0.0 }
 0x353   : > { %8335 = vst [vmem:[%s11877_s28 + $0x220] sm:$0xff] %v5598_v45  ;;  %8622 = vst [vmem:[%s11877_s28 + $0x338] sm:$0xff] %v7572_v63  ;;  %v5599_v41 = vmax.f32 %v5567_v36, 0.0 }
 0x354   : > { %8338 = vst [vmem:[%s11877_s28 + $0x238] sm:$0xff] %v5601_v6  ;;  %8620 = vst [vmem:[%s11877_s28 + $0x328] sm:$0xff] %v7570_v34 }
 0x355   : > { %8336 = vst [vmem:[%s11877_s28 + $0x228] sm:$0xff] %v5599_v41 }
 0x37d   : > { %v8868_v50 = vpop.f32.mrb[40].mxu1 }
 0x37e   : > { %v8828_v31 = vpop.f32.mrb[40].mxu0  ;;  %v7511_v52 = vmul.f32 %v12345_v40, %v8868_v50  ;;  %v7406_v44 = vpop.f32.mrb[41].mxu1 }
 0x37f   : > { %v5540_v18 = vmul.f32 %v12814_v28, %v8828_v31  ;;  %v5435_v7 = vpop.f32.mrb[41].mxu0  ;;  %v7509_v19 = vmul.f32 %v12814_v28, %v7406_v44  ;;  %v8869_v24 = vpop.f32.mrb[42].mxu1 }
 0x380   : > { %v7543_v20 = vadd.f32 %v12359_v12, %v7511_v52  ;;  %v5538_v51 = vmul.f32 %v12814_v28, %v5435_v7  ;;  %v8829_v54 = vpop.f32.mrb[42].mxu0  ;;  %v7512_v2 = vmul.f32 %v12814_v28, %v8869_v24  ;;  %v7409_v40 = vpop.f32.mrb[43].mxu1 }
 0x381   : > { %v5572_v39 = vadd.f32 %v12824_v47, %v5540_v18  ;;  %v7541_v49 = vadd.f32 %v12824_v47, %v7509_v19  ;;  %v5541_v15 = vmul.f32 %v12814_v28, %v8829_v54  ;;  %v5438_v12 = vpop.f32.mrb[43].mxu0  ;;  %v7510_v43 = vmul.f32 %v12814_v28, %v7409_v40 }
 0x382   : > { %v7575_v37 = vmax.f32 %v7543_v20, 0.0  ;;  %v5570_v9 = vadd.f32 %v12824_v47, %v5538_v51  ;;  %v7544_v46 = vadd.f32 %v12824_v47, %v7512_v2  ;;  %v5539_v62 = vmul.f32 %v12814_v28, %v5438_v12 }
 0x383   : > { %v5604_v33 = vmax.f32 %v5572_v39, 0.0  ;;  %v7573_v27 = vmax.f32 %v7541_v49, 0.0  ;;  %v5573_v23 = vadd.f32 %v12824_v47, %v5541_v15  ;;  %v7542_v1 = vadd.f32 %v12824_v47, %v7510_v43 }
 0x384   : > { %8625 = vst [vmem:[%s11877_s28 + $0x350] sm:$0xff] %v7575_v37  ;;  %v5602_v22 = vmax.f32 %v5570_v9, 0.0  ;;  %v7576_v53 = vmax.f32 %v7544_v46, 0.0  ;;  %v5571_v35 = vadd.f32 %v12824_v47, %v5539_v62 }
 0x385   : > { %8341 = vst [vmem:[%s11877_s28 + $0x250] sm:$0xff] %v5604_v33  ;;  %8623 = vst [vmem:[%s11877_s28 + $0x340] sm:$0xff] %v7573_v27  ;;  %v5605_v14 = vmax.f32 %v5573_v23, 0.0  ;;  %v7574_v48 = vmax.f32 %v7542_v1, 0.0 }
 0x386   : > { %8339 = vst [vmem:[%s11877_s28 + $0x240] sm:$0xff] %v5602_v22  ;;  %8626 = vst [vmem:[%s11877_s28 + $0x358] sm:$0xff] %v7576_v53  ;;  %v5603_v60 = vmax.f32 %v5571_v35, 0.0 }
 0x387   : > { %8342 = vst [vmem:[%s11877_s28 + $0x258] sm:$0xff] %v5605_v14  ;;  %8624 = vst [vmem:[%s11877_s28 + $0x348] sm:$0xff] %v7574_v48 }
 0x388   : > { %8340 = vst [vmem:[%s11877_s28 + $0x248] sm:$0xff] %v5603_v60 }
 0x39a   : > { %v8832_v55 = vpop.f32.mrb[44].mxu0 }
 0x39b   : > { %v5544_v58 = vmul.f32 %v12814_v28, %v8832_v55  ;;  %v5451_v38 = vpop.f32.mrb[45].mxu0 }
 0x39c   : > { %v5542_v5 = vmul.f32 %v12814_v28, %v5451_v38  ;;  %v8833_v42 = vpop.f32.mrb[46].mxu0 }
 0x39d   : > { %v5576_v0 = vadd.f32 %v12824_v47, %v5544_v58  ;;  %v8872_v59 = vpop.f32.mrb[44].mxu1  ;;  %v5545_v29 = vmul.f32 %v12814_v28, %v8833_v42  ;;  %v5454_v56 = vpop.f32.mrb[47].mxu0 }
 0x39e   : > { %v7515_v25 = vmul.f32 %v12814_v28, %v8872_v59  ;;  %v5574_v13 = vadd.f32 %v12824_v47, %v5542_v5  ;;  %v7422_v16 = vpop.f32.mrb[45].mxu1  ;;  %v5543_v4 = vmul.f32 %v12814_v28, %v5454_v56 }
 0x39f   : > { %v5608_v57 = vmax.f32 %v5576_v0, 0.0  ;;  %v7513_v3 = vmul.f32 %v12814_v28, %v7422_v16  ;;  %v5577_v17 = vadd.f32 %v12824_v47, %v5545_v29  ;;  %v8873_v10 = vpop.f32.mrb[46].mxu1 }
 0x3a0   : > { %v7547_v30 = vadd.f32 %v12824_v47, %v7515_v25  ;;  %v5606_v61 = vmax.f32 %v5574_v13, 0.0  ;;  %v7516_v32 = vmul.f32 %v12814_v28, %v8873_v10  ;;  %v5575_v26 = vadd.f32 %v12824_v47, %v5543_v4  ;;  %v7425_v8 = vpop.f32.mrb[47].mxu1 }
 0x3a1   : > { %8345 = vst [vmem:[%s11877_s28 + $0x270] sm:$0xff] %v5608_v57  ;;  %v7545_v11 = vadd.f32 %v12824_v47, %v7513_v3  ;;  %v5609_v21 = vmax.f32 %v5577_v17, 0.0  ;;  %v7514_v45 = vmul.f32 %v12814_v28, %v7425_v8 }
 0x3a2   : > { %v7579_v63 = vmax.f32 %v7547_v30, 0.0  ;;  %8343 = vst [vmem:[%s11877_s28 + $0x260] sm:$0xff] %v5606_v61  ;;  %v7548_v36 = vadd.f32 %v12824_v47, %v7516_v32  ;;  %v5607_v6 = vmax.f32 %v5575_v26, 0.0 }
 0x3a3   : > { %v7577_v34 = vmax.f32 %v7545_v11, 0.0  ;;  %8346 = vst [vmem:[%s11877_s28 + $0x278] sm:$0xff] %v5609_v21  ;;  %v7546_v41 = vadd.f32 %v12824_v47, %v7514_v45 }
 0x3a4   : > { %8629 = vst [vmem:[%s11877_s28 + $0x370] sm:$0xff] %v7579_v63  ;;  %v7580_v50 = vmax.f32 %v7548_v36, 0.0  ;;  %8344 = vst [vmem:[%s11877_s28 + $0x268] sm:$0xff] %v5607_v6 }
 0x3a5   : > { %8627 = vst [vmem:[%s11877_s28 + $0x360] sm:$0xff] %v7577_v34  ;;  %v7578_v31 = vmax.f32 %v7546_v41, 0.0 }
 0x3a6   : > { %8630 = vst [vmem:[%s11877_s28 + $0x378] sm:$0xff] %v7580_v50 }
 0x3a7   : > { %8628 = vst [vmem:[%s11877_s28 + $0x368] sm:$0xff] %v7578_v31 }
 0x3ab   : > { %v8836_v52 = vpop.f32.mrb[48].mxu0 }
 0x3ac   : > { %v5548_v44 = vmul.f32 %v12814_v28, %v8836_v52  ;;  %v5467_v18 = vpop.f32.mrb[49].mxu0 }
 0x3ad   : > { %v5546_v19 = vmul.f32 %v12814_v28, %v5467_v18  ;;  %v8837_v24 = vpop.f32.mrb[50].mxu0 }
 0x3ae   : > { %v8876_v7 = vpop.f32.mrb[48].mxu1  ;;  %v5580_v20 = vadd.f32 %v12824_v47, %v5548_v44  ;;  %v5549_v2 = vmul.f32 %v12814_v28, %v8837_v24  ;;  %v5470_v40 = vpop.f32.mrb[51].mxu0 }
 0x3af   : > { %v7519_v51 = vmul.f32 %v12814_v28, %v8876_v7  ;;  %v7438_v54 = vpop.f32.mrb[49].mxu1  ;;  %v5578_v39 = vadd.f32 %v12824_v47, %v5546_v19  ;;  %v5547_v12 = vmul.f32 %v12814_v28, %v5470_v40 }
 0x3b0   : > { %v7517_v49 = vmul.f32 %v12814_v28, %v7438_v54  ;;  %v8877_v15 = vpop.f32.mrb[50].mxu1  ;;  %v5612_v43 = vmax.f32 %v5580_v20, 0.0  ;;  %v5581_v9 = vadd.f32 %v12824_v47, %v5549_v2 }
 0x3b1   : > { %v7551_v37 = vadd.f32 %v12824_v47, %v7519_v51  ;;  %v7520_v46 = vmul.f32 %v12814_v28, %v8877_v15  ;;  %v7441_v62 = vpop.f32.mrb[51].mxu1  ;;  %v5610_v33 = vmax.f32 %v5578_v39, 0.0  ;;  %v5579_v23 = vadd.f32 %v12824_v47, %v5547_v12 }
 0x3b2   : > { %v7549_v27 = vadd.f32 %v12824_v47, %v7517_v49  ;;  %v7518_v1 = vmul.f32 %v12814_v28, %v7441_v62  ;;  %8349 = vst [vmem:[%s11877_s28 + $0x290] sm:$0xff] %v5612_v43  ;;  %v5613_v53 = vmax.f32 %v5581_v9, 0.0 }
 0x3b3   : > { %v7583_v22 = vmax.f32 %v7551_v37, 0.0  ;;  %v7552_v35 = vadd.f32 %v12824_v47, %v7520_v46  ;;  %8347 = vst [vmem:[%s11877_s28 + $0x280] sm:$0xff] %v5610_v33  ;;  %v5611_v48 = vmax.f32 %v5579_v23, 0.0 }
 0x3b4   : > { %v7581_v14 = vmax.f32 %v7549_v27, 0.0  ;;  %v7550_v60 = vadd.f32 %v12824_v47, %v7518_v1  ;;  %8350 = vst [vmem:[%s11877_s28 + $0x298] sm:$0xff] %v5613_v53 }
 0x3b5   : > { %8633 = vst [vmem:[%s11877_s28 + $0x390] sm:$0xff] %v7583_v22  ;;  %v7584_v55 = vmax.f32 %v7552_v35, 0.0  ;;  %8348 = vst [vmem:[%s11877_s28 + $0x288] sm:$0xff] %v5611_v48 }
 0x3b6   : > { %8631 = vst [vmem:[%s11877_s28 + $0x380] sm:$0xff] %v7581_v14  ;;  %v7582_v58 = vmax.f32 %v7550_v60, 0.0 }
 0x3b7   : > { %8634 = vst [vmem:[%s11877_s28 + $0x398] sm:$0xff] %v7584_v55 }
 0x3b8   : > { %8632 = vst [vmem:[%s11877_s28 + $0x388] sm:$0xff] %v7582_v58 }
 0x3be   : > { %v8840_v38 = vpop.f32.mrb[52].mxu0 }
 0x3bf   : > { %v5552_v5 = vmul.f32 %v12814_v28, %v8840_v38  ;;  %v5483_v42 = vpop.f32.mrb[53].mxu0 }
 0x3c0   : > { %v5550_v0 = vmul.f32 %v12814_v28, %v5483_v42  ;;  %v8841_v59 = vpop.f32.mrb[54].mxu0 }
 0x3c1   : > { %v5584_v29 = vadd.f32 %v12824_v47, %v5552_v5  ;;  %v5553_v56 = vmul.f32 %v12814_v28, %v8841_v59  ;;  %v5486_v25 = vpop.f32.mrb[55].mxu0 }
 0x3c2   : > { %v8880_v13 = vpop.f32.mrb[52].mxu1  ;;  %v5582_v16 = vadd.f32 %v12824_v47, %v5550_v0  ;;  %v5551_v4 = vmul.f32 %v12814_v28, %v5486_v25 }
 0x3c3   : > { %v5616_v57 = vmax.f32 %v5584_v29, 0.0  ;;  %v7523_v3 = vmul.f32 %v12814_v28, %v8880_v13  ;;  %v7454_v17 = vpop.f32.mrb[53].mxu1  ;;  %v5585_v10 = vadd.f32 %v12824_v47, %v5553_v56 }
 0x3c4   : > { %v5614_v30 = vmax.f32 %v5582_v16, 0.0  ;;  %v7521_v61 = vmul.f32 %v12814_v28, %v7454_v17  ;;  %v8881_v32 = vpop.f32.mrb[54].mxu1  ;;  %v5583_v26 = vadd.f32 %v12824_v47, %v5551_v4 }
 0x3c5   : > { %8353 = vst [vmem:[%s11877_s28 + $0x2b0] sm:$0xff] %v5616_v57  ;;  %v7555_v8 = vadd.f32 %v12824_v47, %v7523_v3  ;;  %v5617_v11 = vmax.f32 %v5585_v10, 0.0  ;;  %v7524_v21 = vmul.f32 %v12814_v28, %v8881_v32  ;;  %v7457_v45 = vpop.f32.mrb[55].mxu1 }
 0x3c6   : > { %8351 = vst [vmem:[%s11877_s28 + $0x2a0] sm:$0xff] %v5614_v30  ;;  %v7553_v63 = vadd.f32 %v12824_v47, %v7521_v61  ;;  %v5615_v36 = vmax.f32 %v5583_v26, 0.0  ;;  %v7522_v6 = vmul.f32 %v12814_v28, %v7457_v45 }
 0x3c7   : > { %v7587_v34 = vmax.f32 %v7555_v8, 0.0  ;;  %8354 = vst [vmem:[%s11877_s28 + $0x2b8] sm:$0xff] %v5617_v11  ;;  %v7556_v41 = vadd.f32 %v12824_v47, %v7524_v21 }
 0x3c8   : > { %v7585_v50 = vmax.f32 %v7553_v63, 0.0  ;;  %8352 = vst [vmem:[%s11877_s28 + $0x2a8] sm:$0xff] %v5615_v36  ;;  %v7554_v31 = vadd.f32 %v12824_v47, %v7522_v6 }
 0x3c9   : > { %8637 = vst [vmem:[%s11877_s28 + $0x3b0] sm:$0xff] %v7587_v34  ;;  %v7588_v52 = vmax.f32 %v7556_v41, 0.0 }
 0x3ca   : > { %8635 = vst [vmem:[%s11877_s28 + $0x3a0] sm:$0xff] %v7585_v50  ;;  %v7586_v44 = vmax.f32 %v7554_v31, 0.0 }
 0x3cb   : > { %8638 = vst [vmem:[%s11877_s28 + $0x3b8] sm:$0xff] %v7588_v52 }
 0x3cc   : > { %8636 = vst [vmem:[%s11877_s28 + $0x3a8] sm:$0xff] %v7586_v44 }
 0x3d3   : > { %v8844_v18 = vpop.f32.mrb[56].mxu0  ;;  %v8884_v7 = vpop.f32.mrb[56].mxu1 }
 0x3d4   : > { %v5556_v19 = vmul.f32 %v12814_v28, %v8844_v18  ;;  %v7527_v24 = vmul.f32 %v12814_v28, %v8884_v7  ;;  %v5499_v20 = vpop.f32.mrb[57].mxu0  ;;  %v7470_v51 = vpop.f32.mrb[57].mxu1 }
 0x3d5   : > { %v5554_v54 = vmul.f32 %v12814_v28, %v5499_v20  ;;  %v7525_v2 = vmul.f32 %v12814_v28, %v7470_v51  ;;  %v8845_v40 = vpop.f32.mrb[58].mxu0  ;;  %v8885_v39 = vpop.f32.mrb[58].mxu1 }
 0x3d6   : > { %v5588_v49 = vadd.f32 %v12824_v47, %v5556_v19  ;;  %v7559_v15 = vadd.f32 %v12824_v47, %v7527_v24  ;;  %v5557_v12 = vmul.f32 %v12814_v28, %v8845_v40  ;;  %v7528_v43 = vmul.f32 %v12814_v28, %v8885_v39  ;;  %v5502_v37 = vpop.f32.mrb[59].mxu0  ;;  %v7473_v9 = vpop.f32.mrb[59].mxu1 }
 0x3d7   : > { %v5586_v46 = vadd.f32 %v12824_v47, %v5554_v54  ;;  %v7557_v62 = vadd.f32 %v12824_v47, %v7525_v2  ;;  %v5555_v33 = vmul.f32 %v12814_v28, %v5502_v37  ;;  %v7526_v27 = vmul.f32 %v12814_v28, %v7473_v9 }
 0x3d8   : > { %v5620_v23 = vmax.f32 %v5588_v49, 0.0  ;;  %v7591_v1 = vmax.f32 %v7559_v15, 0.0  ;;  %v5589_v22 = vadd.f32 %v12824_v47, %v5557_v12  ;;  %v7560_v53 = vadd.f32 %v12824_v47, %v7528_v43 }
 0x3d9   : > { %v5618_v35 = vmax.f32 %v5586_v46, 0.0  ;;  %v7589_v14 = vmax.f32 %v7557_v62, 0.0  ;;  %v5587_v48 = vadd.f32 %v12824_v47, %v5555_v33  ;;  %v7558_v60 = vadd.f32 %v12824_v47, %v7526_v27 }
 0x3da   : > { %8357 = vst [vmem:[%s11877_s28 + $0x2d0] sm:$0xff] %v5620_v23  ;;  %8641 = vst [vmem:[%s11877_s28 + $0x3d0] sm:$0xff] %v7591_v1  ;;  %v5621_v55 = vmax.f32 %v5589_v22, 0.0  ;;  %v7592_v58 = vmax.f32 %v7560_v53, 0.0 }
 0x3db   : > { %8355 = vst [vmem:[%s11877_s28 + $0x2c0] sm:$0xff] %v5618_v35  ;;  %8639 = vst [vmem:[%s11877_s28 + $0x3c0] sm:$0xff] %v7589_v14  ;;  %v5619_v38 = vmax.f32 %v5587_v48, 0.0  ;;  %v7590_v5 = vmax.f32 %v7558_v60, 0.0 }
 0x3dc   : > { %8358 = vst [vmem:[%s11877_s28 + $0x2d8] sm:$0xff] %v5621_v55  ;;  %8642 = vst [vmem:[%s11877_s28 + $0x3d8] sm:$0xff] %v7592_v58 }
 0x3dd   : > { %8356 = vst [vmem:[%s11877_s28 + $0x2c8] sm:$0xff] %v5619_v38  ;;  %8640 = vst [vmem:[%s11877_s28 + $0x3c8] sm:$0xff] %v7590_v5 }
 0x403   : > { %v8888_v42 = vpop.f32.mrb[60].mxu1 }
 0x404   : > { %v7531_v0 = vmul.f32 %v12814_v28, %v8888_v42  ;;  %v7486_v59 = vpop.f32.mrb[61].mxu1 }
 0x405   : > { %v7529_v29 = vmul.f32 %v12814_v28, %v7486_v59  ;;  %v8889_v56 = vpop.f32.mrb[62].mxu1 }
 0x406   : > { %v7563_v25 = vadd.f32 %v12824_v47, %v7531_v0  ;;  %v7532_v13 = vmul.f32 %v12814_v28, %v8889_v56  ;;  %v7489_v16 = vpop.f32.mrb[63].mxu1  ;;  %v8848_v4 = vpop.f32.mrb[60].mxu0 }
 0x407   : > { %v7561_v57 = vadd.f32 %v12824_v47, %v7529_v29  ;;  %v7530_v3 = vmul.f32 %v12814_v28, %v7489_v16  ;;  %v5560_v17 = vmul.f32 %v12814_v28, %v8848_v4  ;;  %v5515_v30 = vpop.f32.mrb[61].mxu0 }
 0x408   : > { %v7595_v10 = vmax.f32 %v7563_v25, 0.0  ;;  %v7564_v61 = vadd.f32 %v12824_v47, %v7532_v13  ;;  %v5558_v32 = vmul.f32 %v12814_v28, %v5515_v30  ;;  %v8849_v8 = vpop.f32.mrb[62].mxu0 }
 0x409   : > { %v7593_v26 = vmax.f32 %v7561_v57, 0.0  ;;  %v7562_v11 = vadd.f32 %v12824_v47, %v7530_v3  ;;  %v5592_v21 = vadd.f32 %v12824_v47, %v5560_v17  ;;  %v5561_v45 = vmul.f32 %v12814_v28, %v8849_v8  ;;  %v5518_v36 = vpop.f32.mrb[63].mxu0 }
 0x40a   : > { %8645 = vst [vmem:[%s11877_s28 + $0x3f0] sm:$0xff] %v7595_v10  ;;  %v7596_v63 = vmax.f32 %v7564_v61, 0.0  ;;  %v5590_v6 = vadd.f32 %v12824_v47, %v5558_v32  ;;  %v5559_v34 = vmul.f32 %v12814_v28, %v5518_v36 }
 0x40b   : > { %8643 = vst [vmem:[%s11877_s28 + $0x3e0] sm:$0xff] %v7593_v26  ;;  %v7594_v41 = vmax.f32 %v7562_v11, 0.0  ;;  %v5624_v50 = vmax.f32 %v5592_v21, 0.0  ;;  %v5593_v31 = vadd.f32 %v12824_v47, %v5561_v45 }
 0x40c   : > { %8646 = vst [vmem:[%s11877_s28 + $0x3f8] sm:$0xff] %v7596_v63  ;;  %v5622_v52 = vmax.f32 %v5590_v6, 0.0  ;;  %v5591_v44 = vadd.f32 %v12824_v47, %v5559_v34 }
 0x40d   : > { %8644 = vst [vmem:[%s11877_s28 + $0x3e8] sm:$0xff] %v7594_v41  ;;  %8361 = vst [vmem:[%s11877_s28 + $0x2f0] sm:$0xff] %v5624_v50  ;;  %v5625_v18 = vmax.f32 %v5593_v31, 0.0 }
 0x40e   : > { %8359 = vst [vmem:[%s11877_s28 + $0x2e0] sm:$0xff] %v5622_v52  ;;  %v5623_v7 = vmax.f32 %v5591_v44, 0.0 }
 0x40f   : > { %8362 = vst [vmem:[%s11877_s28 + $0x2f8] sm:$0xff] %v5625_v18 }
 0x410   : > { %8360 = vst [vmem:[%s11877_s28 + $0x2e8] sm:$0xff] %v5623_v7 }
 0x411 PF: > { %s14_s17 = sadd.s32 1, %s9135_s17   ;;  %s13065_s15 = smov %s9131_s16 }
 0x412   : > { %p11_p5 = scmp.ge.s32.totalorder %s14_s17, 4   ;;  %s13066_s16 = smov %s13068_s18 }
 0x414   :  { %13 = sbr.rel (!%p11_p5) target bundleno = 2 (0x2), region = 83 }

</bundles_post_ra>
